<compile_context>
chip_gen: v7x
topology: tpu7x:2x2x1
jax: 0.10.0
libtpu: 0.0.40
codegen_flags: <defaults>
</compile_context>

<pallas_src>
import functools

import jax
import jax.numpy as jnp
from jax import lax
from jax.experimental import pallas as pl
from jax.experimental.pallas import tpu as pltpu

_BN_EPS = 1e-5


# ---------------------------------------------------------------------------
# Fused Pallas kernel (one batch element per grid step)
# ---------------------------------------------------------------------------

def _conv_tap(p_ref, dy, dx, ho, wo, stride):
    """Read the (ho, wo, C) window p[dy + stride*i, dx + stride*j, :]."""
    if stride == 1:
        return p_ref[dy:dy + ho, dx:dx + wo, :]
    # In-kernel striding: read only the strided output positions.
    return p_ref[pl.ds(dy, ho, stride=stride), pl.ds(dx, wo, stride=stride), :]


def _conv3x3_acc(pad_ref, w_ref, C, Ho, Wo, stride):
    """3x3 conv as accumulated MXU matmuls (f32 accumulation).

    If C % 128 == 0, the 3 dx-taps of each dy row are concatenated into one
    lane-aligned (Ho*Wo, 3C) operand (K = 3C).  Otherwise each tap is its own
    K = C matmul so no misaligned lane concat is built.  Either way the peak
    live im2col footprint is ~1-3 taps instead of 9 + a concatenated patch.
    """
    group_dx = (C % 128 == 0)
    acc = None
    for dy in range(3):
        if group_dx:
            a = jnp.concatenate(
                [_conv_tap(pad_ref, dy, dx, Ho, Wo, stride).reshape(Ho * Wo, C)
                 for dx in range(3)], axis=-1)                    # (HoWo, 3C) bf16
            part = jnp.dot(a, w_ref[dy * 3 * C:(dy + 1) * 3 * C, :],
                           preferred_element_type=jnp.float32)
            acc = part if acc is None else acc + part
        else:
            for dx in range(3):
                t = dy * 3 + dx
                a = _conv_tap(pad_ref, dy, dx, Ho, Wo,
                              stride).reshape(Ho * Wo, C)         # (HoWo, C) bf16
                part = jnp.dot(a, w_ref[t * C:(t + 1) * C, :],
                               preferred_element_type=jnp.float32)
                acc = part if acc is None else acc + part
    return acc                                                     # (HoWo, Cout) f32


def _fused_preact_se_kernel(x_ref, s1_ref, t1_ref, w1_ref, s2_ref, t2_ref,
                            w2_ref, sew1_ref, seb1_ref, sew2_ref, seb2_ref,
                            *rest, H, W, Cin, Cout, stride, has_shortcut):
    if has_shortcut:
        scw_ref, o_ref, pad1_ref, pad2_ref = rest
    else:
        o_ref, pad1_ref, pad2_ref = rest
        scw_ref = None

    Ho, Wo = H // stride, W // stride
    bf16 = jnp.bfloat16

    # Zero the padded scratches ONCE: the 1-pixel borders are never written
    # again and the interior is fully overwritten every grid step.
    @pl.when(pl.program_id(0) == 0)
    def _init_pads():
        pad1_ref[...] = jnp.zeros_like(pad1_ref)
        pad2_ref[...] = jnp.zeros_like(pad2_ref)

    # ---- bn1 + relu (f32, VPU) -> bf16 zero-padded VMEM scratch --------------
    x = x_ref[0]                                                   # (H, W, Cin) f32
    pad1_ref[1:H + 1, 1:W + 1, :] = jnp.maximum(
        x * s1_ref[...] + t1_ref[...], 0.0).astype(bf16)

    # ---- conv1: strided 3x3 via accumulated deep-K matmuls -------------------
    c1 = _conv3x3_acc(pad1_ref, w1_ref, Cin, Ho, Wo, stride)       # (HoWo, Cout) f32

    # ---- bn2 + relu (f32) -> second bf16 zero-padded VMEM scratch ------------
    pad2_ref[1:Ho + 1, 1:Wo + 1, :] = jnp.maximum(
        c1 * s2_ref[...] + t2_ref[...], 0.0).astype(bf16).reshape(Ho, Wo, Cout)

    # ---- conv2: 3x3 / stride 1 ------------------------------------------------
    y = _conv3x3_acc(pad2_ref, w2_ref, Cout, Ho, Wo, 1)            # (HoWo, Cout) f32

    # ---- SE squeeze / excite on VPU/XLU/EUP (no M=1 MXU matmuls) --------------
    pooled = jnp.mean(y, axis=0, keepdims=True)                    # (1, Cout)
    z = jnp.maximum(
        jnp.sum(pooled * sew1_ref[...], axis=1, keepdims=True) + seb1_ref[...],
        0.0)                                                       # (hf, 1)
    g = jax.nn.sigmoid(
        jnp.sum(z * sew2_ref[...], axis=0, keepdims=True) + seb2_ref[...])  # (1, Cout)

    # ---- shortcut -------------------------------------------------------------
    if has_shortcut:
        if stride == 1:
            xs = x.reshape(Ho * Wo, Cin)
        else:
            xs = x_ref[0, pl.ds(0, Ho, stride=stride),
                       pl.ds(0, Wo, stride=stride), :].reshape(Ho * Wo, Cin)
        sc = jnp.dot(xs.astype(bf16), scw_ref[...],
                     preferred_element_type=jnp.float32)
    else:
        sc = x.reshape(Ho * Wo, Cout)

    # Lane-dense (HoWo, Cout) store; the (Ho, Wo) split is done in the wrapper.
    o_ref[0] = (y * g + sc).astype(o_ref.dtype)


# ---------------------------------------------------------------------------
# Wrappers
# ---------------------------------------------------------------------------

def _bn_affine(p):
    scale = p["gamma"] / jnp.sqrt(p["var"] + _BN_EPS)
    shift = p["beta"] - p["mean"] * scale
    return (scale.reshape(1, -1).astype(jnp.float32),
            shift.reshape(1, -1).astype(jnp.float32))


def preact_se_block_nhwc(x_nhwc, params, stride=1):
    """PreActSEBlock forward on NHWC input -> NHWC output (no transpose glue)."""
    x = x_nhwc.astype(jnp.float32)
    N, H, W, Cin = x.shape
    Cout = params["conv1_w"].shape[-1]
    hf = params["se_w1"].shape[-1]
    assert H % stride == 0 and W % stride == 0
    Ho, Wo = H // stride, W // stride
    has_shortcut = (stride != 1) or (Cin != Cout)

    s1, t1 = _bn_affine(params["bn1"])                             # (1, Cin)
    s2, t2 = _bn_affine(params["bn2"])                             # (1, Cout)

    bf16 = jnp.bfloat16
    w1 = params["conv1_w"].reshape(9 * Cin, Cout).astype(bf16)     # (9Cin, Cout)
    w2 = params["conv2_w"].reshape(9 * Cout, Cout).astype(bf16)    # (9Cout, Cout)
    sew1 = jnp.transpose(params["se_w1"]).astype(jnp.float32)      # (hf, Cout)
    seb1 = params["se_b1"].reshape(hf, 1).astype(jnp.float32)
    sew2 = params["se_w2"].astype(jnp.float32)                     # (hf, Cout)
    seb2 = params["se_b2"].reshape(1, Cout).astype(jnp.float32)

    args = [x, s1, t1, w1, s2, t2, w2, sew1, seb1, sew2, seb2]
    in_specs = [
        pl.BlockSpec((1, H, W, Cin), lambda n: (n, 0, 0, 0)),
        pl.BlockSpec((1, Cin), lambda n: (0, 0)),
        pl.BlockSpec((1, Cin), lambda n: (0, 0)),
        pl.BlockSpec((9 * Cin, Cout), lambda n: (0, 0)),
        pl.BlockSpec((1, Cout), lambda n: (0, 0)),
        pl.BlockSpec((1, Cout), lambda n: (0, 0)),
        pl.BlockSpec((9 * Cout, Cout), lambda n: (0, 0)),
        pl.BlockSpec((hf, Cout), lambda n: (0, 0)),
        pl.BlockSpec((hf, 1), lambda n: (0, 0)),
        pl.BlockSpec((hf, Cout), lambda n: (0, 0)),
        pl.BlockSpec((1, Cout), lambda n: (0, 0)),
    ]
    if has_shortcut:
        args.append(params["shortcut_w"].astype(bf16))             # (Cin, Cout)
        in_specs.append(pl.BlockSpec((Cin, Cout), lambda n: (0, 0)))

    kernel = functools.partial(
        _fused_preact_se_kernel, H=H, W=W, Cin=Cin, Cout=Cout,
        stride=stride, has_shortcut=has_shortcut)

    flops = 2 * N * Ho * Wo * (9 * Cin * Cout + 9 * Cout * Cout
                               + (Cin * Cout if has_shortcut else 0))
    bytes_accessed = (4 * (x.size + N * Ho * Wo * Cout)
                      + 2 * (w1.size + w2.size))
    cost = pl.CostEstimate(flops=flops, transcendentals=N * (hf + Cout),
                           bytes_accessed=bytes_accessed)

    out = pl.pallas_call(
        kernel,
        out_shape=jax.ShapeDtypeStruct((N, Ho * Wo, Cout), jnp.float32),
        grid=(N,),
        in_specs=in_specs,
        out_specs=pl.BlockSpec((1, Ho * Wo, Cout), lambda n: (n, 0, 0)),
        scratch_shapes=[
            pltpu.VMEM((H + 2, W + 2, Cin), jnp.bfloat16),    # padded relu(bn1(x))
            pltpu.VMEM((Ho + 2, Wo + 2, Cout), jnp.bfloat16), # padded relu(bn2(c1))
        ],
        compiler_params=pltpu.CompilerParams(
            dimension_semantics=("parallel",),
            vmem_limit_bytes=32 * 1024 * 1024),
        cost_estimate=cost,
    )(*args)
    # Free metadata reshape: kernel stored the lane-dense (HoWo, Cout) slab.
    return out.reshape(N, Ho, Wo, Cout)


def preact_se_block(x_nchw, params, stride=1):
    """PyTorch-compatible NCHW interface: (N,Cin,H,W) -> (N,Cout,H/s,W/s).

    The NCHW<->NHWC transposes are interface glue only; call
    preact_se_block_nhwc end-to-end to avoid the extra HBM passes.
    """
    x = jnp.transpose(x_nchw, (0, 2, 3, 1))
    out = preact_se_block_nhwc(x, params, stride=stride)
    return jnp.transpose(out, (0, 3, 1, 2))


# ---------------------------------------------------------------------------
# Pure-JAX reference (mirrors the bf16 MXU casts for a tight comparison)
# ---------------------------------------------------------------------------

def preact_se_block_ref(x_nchw, params, stride=1):
    x = jnp.transpose(x_nchw, (0, 2, 3, 1)).astype(jnp.float32)
    N, H, W, Cin = x.shape
    Cout = params["conv1_w"].shape[-1]
    s1, t1 = _bn_affine(params["bn1"])
    s2, t2 = _bn_affine(params["bn2"])
    bf16 = jnp.bfloat16

    def conv(h, w, s, p):
        return lax.conv_general_dilated(
            h.astype(bf16), w.astype(bf16), (s, s), [(p, p), (p, p)],
            dimension_numbers=("NHWC", "HWIO", "NHWC"),
            preferred_element_type=jnp.float32)

    h = jnp.maximum(x * s1 + t1, 0.0)
    h = conv(h, params["conv1_w"], stride, 1)
    h = jnp.maximum(h * s2 + t2, 0.0)
    h = conv(h, params["conv2_w"], 1, 1)

    gap = jnp.mean(h, axis=(1, 2))
    z = jnp.maximum(gap @ params["se_w1"] + params["se_b1"], 0.0)
    g = jax.nn.sigmoid(z @ params["se_w2"] + params["se_b2"])
    h = h * g[:, None, None, :]

    if stride != 1 or Cin != Cout:
        sc = conv(x, params["shortcut_w"].reshape(1, 1, Cin, Cout), stride, 0)
    else:
        sc = x
    return jnp.transpose(h + sc, (0, 3, 1, 2))


# ---------------------------------------------------------------------------
# Deterministic parameter init + smoke test
# ---------------------------------------------------------------------------

def init_params(key, in_c, out_c, r=16):
    hf = int(out_c // r)
    ks = jax.random.split(key, 13)
    return {
        "bn1": {
            "gamma": 1.0 + 0.1 * jax.random.normal(ks[0], (in_c,), jnp.float32),
            "beta": 0.1 * jax.random.normal(ks[1], (in_c,), jnp.float32),
            "mean": 0.1 * jax.random.normal(ks[2], (in_c,), jnp.float32),
            "var": 0.5 + jax.random.uniform(ks[3], (in_c,), jnp.float32),
        },
        "conv1_w": 0.1 * jax.random.normal(ks[4], (3, 3, in_c, out_c), jnp.float32),
        "bn2": {
            "gamma": 1.0 + 0.1 * jax.random.normal(ks[5], (out_c,), jnp.float32),
            "beta": 0.1 * jax.random.normal(ks[6], (out_c,), jnp.float32),
            "mean": 0.1 * jax.random.normal(ks[7], (out_c,), jnp.float32),
            "var": 0.5 + jax.random.uniform(ks[8], (out_c,), jnp.float32),
        },
        "conv2_w": 0.1 * jax.random.normal(ks[9], (3, 3, out_c, out_c), jnp.float32),
        "se_w1": 0.2 * jax.random.normal(ks[10], (out_c, hf), jnp.float32),
        "se_b1": jnp.zeros((hf,), jnp.float32),
        "se_w2": 0.2 * jax.random.normal(ks[11], (hf, out_c), jnp.float32),
        "se_b2": jnp.zeros((out_c,), jnp.float32),
        "shortcut_w": 0.1 * jax.random.normal(ks[12], (in_c, out_c), jnp.float32),
    }


if __name__ == "__main__":
    key = jax.random.PRNGKey(0)
    k_x, k_p = jax.random.split(key)

    N, Cin, H, W = 2, 64, 16, 16
    Cout, stride = 128, 1          # Cin != Cout -> exercises 1x1-conv shortcut

    x = jax.random.normal(k_x, (N, Cin, H, W), jnp.float32)  # NCHW, like PyTorch
    params = init_params(k_p, Cin, Cout, r=16)

    fwd = jax.jit(preact_se_block, static_argnames=("stride",))
    out = jax.block_until_ready(fwd(x, params, stride=stride))

    ref = preact_se_block_ref(x, params, stride=stride)
    err = float(jnp.max(jnp.abs(out - ref)))
    assert out.shape == (N, Cout, H // stride, W // stride), out.shape
    assert err < 2e-2, f"max abs error {err}"

    print("KERNEL_OK")
</pallas_src>

<mosaic_0001>
module attributes {stable_mosaic.version = 11 : i64} {
  func.func @_fused_preact_se_kernel(%arg0: i32, %arg1: memref<1x16x16x64xf32, #tpu.memory_space<vmem>>, %arg2: memref<1x64xf32, #tpu.memory_space<vmem>>, %arg3: memref<1x64xf32, #tpu.memory_space<vmem>>, %arg4: memref<576x128xbf16, #tpu.memory_space<vmem>>, %arg5: memref<1x128xf32, #tpu.memory_space<vmem>>, %arg6: memref<1x128xf32, #tpu.memory_space<vmem>>, %arg7: memref<1152x128xbf16, #tpu.memory_space<vmem>>, %arg8: memref<8x128xf32, #tpu.memory_space<vmem>>, %arg9: memref<8x1xf32, #tpu.memory_space<vmem>>, %arg10: memref<8x128xf32, #tpu.memory_space<vmem>>, %arg11: memref<1x128xf32, #tpu.memory_space<vmem>>, %arg12: memref<64x128xbf16, #tpu.memory_space<vmem>>, %arg13: memref<1x256x128xf32, #tpu.memory_space<vmem>>, %arg14: memref<18x18x64xbf16, #tpu.memory_space<vmem>>, %arg15: memref<18x18x128xbf16, #tpu.memory_space<vmem>>) attributes {dimension_semantics = [#tpu.dimension_semantics<parallel>], iteration_bounds = array<i64: 2>, scalar_prefetch = 0 : i64, scratch_operands = 2 : i64, tpu.core_type = #tpu.core_type<tc>, window_params = [{transform_indices = @transform_0, window_bounds = array<i64: 1, 16, 16, 64>}, {pipeline_mode = #tpu.pipeline_mode<synchronous>, transform_indices = @transform_1, window_bounds = array<i64: 1, 64>}, {pipeline_mode = #tpu.pipeline_mode<synchronous>, transform_indices = @transform_2, window_bounds = array<i64: 1, 64>}, {pipeline_mode = #tpu.pipeline_mode<synchronous>, transform_indices = @transform_3, window_bounds = array<i64: 576, 128>}, {pipeline_mode = #tpu.pipeline_mode<synchronous>, transform_indices = @transform_4, window_bounds = array<i64: 1, 128>}, {pipeline_mode = #tpu.pipeline_mode<synchronous>, transform_indices = @transform_5, window_bounds = array<i64: 1, 128>}, {pipeline_mode = #tpu.pipeline_mode<synchronous>, transform_indices = @transform_6, window_bounds = array<i64: 1152, 128>}, {pipeline_mode = #tpu.pipeline_mode<synchronous>, transform_indices = @transform_7, window_bounds = array<i64: 8, 128>}, {pipeline_mode = #tpu.pipeline_mode<synchronous>, transform_indices = @transform_8, window_bounds = array<i64: 8, 1>}, {pipeline_mode = #tpu.pipeline_mode<synchronous>, transform_indices = @transform_9, window_bounds = array<i64: 8, 128>}, {pipeline_mode = #tpu.pipeline_mode<synchronous>, transform_indices = @transform_10, window_bounds = array<i64: 1, 128>}, {pipeline_mode = #tpu.pipeline_mode<synchronous>, transform_indices = @transform_11, window_bounds = array<i64: 64, 128>}, {transform_indices = @transform_12, window_bounds = array<i64: 1, 256, 128>}]} {
    %c0_i32 = arith.constant 0 : i32
    %0 = arith.cmpi eq, %arg0, %c0_i32 : i32
    %1 = arith.extui %0 : i1 to i32
    %c0_i32_0 = arith.constant 0 : i32
    %2 = arith.cmpi ne, %1, %c0_i32_0 : i32
    scf.if %2 {
      %cst_118 = arith.constant 0.000000e+00 : bf16
      %136 = vector.broadcast %cst_118 : bf16 to vector<18x18x64xbf16>
      %c0_119 = arith.constant 0 : index
      %c0_120 = arith.constant 0 : index
      %c0_121 = arith.constant 0 : index
      %137 = vector.load %arg14[%c0_119, %c0_120, %c0_121] : memref<18x18x64xbf16, #tpu.memory_space<vmem>>, vector<18x18x64xbf16>
      tpu.vector_store %arg14[%c0_119, %c0_120, %c0_121], %136 {strides = array<i32>} : memref<18x18x64xbf16, #tpu.memory_space<vmem>>, vector<18x18x64xbf16>,
      %cst_122 = arith.constant 0.000000e+00 : bf16
      %138 = vector.broadcast %cst_122 : bf16 to vector<18x18x128xbf16>
      %c0_123 = arith.constant 0 : index
      %c0_124 = arith.constant 0 : index
      %c0_125 = arith.constant 0 : index
      %139 = vector.load %arg15[%c0_123, %c0_124, %c0_125] : memref<18x18x128xbf16, #tpu.memory_space<vmem>>, vector<18x18x128xbf16>
      tpu.vector_store %arg15[%c0_123, %c0_124, %c0_125], %138 {strides = array<i32>} : memref<18x18x128xbf16, #tpu.memory_space<vmem>>, vector<18x18x128xbf16>,
    } else {
    }
    %c0 = arith.constant 0 : index
    %c0_1 = arith.constant 0 : index
    %c0_2 = arith.constant 0 : index
    %c0_3 = arith.constant 0 : index
    %3 = vector.load %arg1[%c0, %c0_1, %c0_2, %c0_3] : memref<1x16x16x64xf32, #tpu.memory_space<vmem>>, vector<1x16x16x64xf32>
    %4 = vector.shape_cast %3 : vector<1x16x16x64xf32> to vector<16x16x64xf32>
    %c0_4 = arith.constant 0 : index
    %c0_5 = arith.constant 0 : index
    %5 = vector.load %arg2[%c0_4, %c0_5] : memref<1x64xf32, #tpu.memory_space<vmem>>, vector<1x64xf32>
    %6 = vector.shape_cast %5 : vector<1x64xf32> to vector<1x1x64xf32>
    %7 = vector.broadcast %6 : vector<1x1x64xf32> to vector<16x16x64xf32>
    %8 = arith.mulf %4, %7 : vector<16x16x64xf32>
    %c0_6 = arith.constant 0 : index
    %c0_7 = arith.constant 0 : index
    %9 = vector.load %arg3[%c0_6, %c0_7] : memref<1x64xf32, #tpu.memory_space<vmem>>, vector<1x64xf32>
    %10 = vector.shape_cast %9 : vector<1x64xf32> to vector<1x1x64xf32>
    %11 = vector.broadcast %10 : vector<1x1x64xf32> to vector<16x16x64xf32>
    %12 = arith.addf %8, %11 : vector<16x16x64xf32>
    %cst = arith.constant 0.000000e+00 : f32
    %13 = vector.broadcast %cst : f32 to vector<16x16x64xf32>
    %14 = arith.maximumf %12, %13 : vector<16x16x64xf32>
    %15 = arith.truncf %14 : vector<16x16x64xf32> to vector<16x16x64xbf16>
    %c1 = arith.constant 1 : index
    %c1_8 = arith.constant 1 : index
    %c0_9 = arith.constant 0 : index
    %16 = vector.load %arg14[%c1, %c1_8, %c0_9] : memref<18x18x64xbf16, #tpu.memory_space<vmem>>, vector<16x16x64xbf16>
    tpu.vector_store %arg14[%c1, %c1_8, %c0_9], %15 {strides = array<i32>} : memref<18x18x64xbf16, #tpu.memory_space<vmem>>, vector<16x16x64xbf16>,
    %c0_10 = arith.constant 0 : index
    %c0_11 = arith.constant 0 : index
    %c0_12 = arith.constant 0 : index
    %17 = vector.load %arg14[%c0_10, %c0_11, %c0_12] : memref<18x18x64xbf16, #tpu.memory_space<vmem>>, vector<16x16x64xbf16>
    %18 = vector.shape_cast %17 : vector<16x16x64xbf16> to vector<256x64xbf16>
    %c0_13 = arith.constant 0 : index
    %c0_14 = arith.constant 0 : index
    %19 = vector.load %arg4[%c0_13, %c0_14] : memref<576x128xbf16, #tpu.memory_space<vmem>>, vector<64x128xbf16>
    %cst_15 = arith.constant dense<0.000000e+00> : vector<256x128xf32>
    %20 = tpu.matmul %18, %19, %cst_15 {dimension_numbers = #tpu.dot_dimension_numbers<[1], [0], [0], [1], [0, 0, 1, 1], [], []>} : vector<256x64xbf16>, vector<64x128xbf16>, vector<256x128xf32> -> vector<256x128xf32>
    %c0_16 = arith.constant 0 : index
    %c1_17 = arith.constant 1 : index
    %c0_18 = arith.constant 0 : index
    %21 = vector.load %arg14[%c0_16, %c1_17, %c0_18] : memref<18x18x64xbf16, #tpu.memory_space<vmem>>, vector<16x16x64xbf16>
    %22 = vector.shape_cast %21 : vector<16x16x64xbf16> to vector<256x64xbf16>
    %c64 = arith.constant 64 : index
    %c0_19 = arith.constant 0 : index
    %23 = vector.load %arg4[%c64, %c0_19] : memref<576x128xbf16, #tpu.memory_space<vmem>>, vector<64x128xbf16>
    %cst_20 = arith.constant dense<0.000000e+00> : vector<256x128xf32>
    %24 = tpu.matmul %22, %23, %cst_20 {dimension_numbers = #tpu.dot_dimension_numbers<[1], [0], [0], [1], [0, 0, 1, 1], [], []>} : vector<256x64xbf16>, vector<64x128xbf16>, vector<256x128xf32> -> vector<256x128xf32>
    %25 = arith.addf %20, %24 : vector<256x128xf32>
    %c0_21 = arith.constant 0 : index
    %c2 = arith.constant 2 : index
    %c0_22 = arith.constant 0 : index
    %26 = vector.load %arg14[%c0_21, %c2, %c0_22] : memref<18x18x64xbf16, #tpu.memory_space<vmem>>, vector<16x16x64xbf16>
    %27 = vector.shape_cast %26 : vector<16x16x64xbf16> to vector<256x64xbf16>
    %c128 = arith.constant 128 : index
    %c0_23 = arith.constant 0 : index
    %28 = vector.load %arg4[%c128, %c0_23] : memref<576x128xbf16, #tpu.memory_space<vmem>>, vector<64x128xbf16>
    %cst_24 = arith.constant dense<0.000000e+00> : vector<256x128xf32>
    %29 = tpu.matmul %27, %28, %cst_24 {dimension_numbers = #tpu.dot_dimension_numbers<[1], [0], [0], [1], [0, 0, 1, 1], [], []>} : vector<256x64xbf16>, vector<64x128xbf16>, vector<256x128xf32> -> vector<256x128xf32>
    %30 = arith.addf %25, %29 : vector<256x128xf32>
    %c1_25 = arith.constant 1 : index
    %c0_26 = arith.constant 0 : index
    %c0_27 = arith.constant 0 : index
    %31 = vector.load %arg14[%c1_25, %c0_26, %c0_27] : memref<18x18x64xbf16, #tpu.memory_space<vmem>>, vector<16x16x64xbf16>
    %32 = vector.shape_cast %31 : vector<16x16x64xbf16> to vector<256x64xbf16>
    %c192 = arith.constant 192 : index
    %c0_28 = arith.constant 0 : index
    %33 = vector.load %arg4[%c192, %c0_28] : memref<576x128xbf16, #tpu.memory_space<vmem>>, vector<64x128xbf16>
    %cst_29 = arith.constant dense<0.000000e+00> : vector<256x128xf32>
    %34 = tpu.matmul %32, %33, %cst_29 {dimension_numbers = #tpu.dot_dimension_numbers<[1], [0], [0], [1], [0, 0, 1, 1], [], []>} : vector<256x64xbf16>, vector<64x128xbf16>, vector<256x128xf32> -> vector<256x128xf32>
    %35 = arith.addf %30, %34 : vector<256x128xf32>
    %c1_30 = arith.constant 1 : index
    %c1_31 = arith.constant 1 : index
    %c0_32 = arith.constant 0 : index
    %36 = vector.load %arg14[%c1_30, %c1_31, %c0_32] : memref<18x18x64xbf16, #tpu.memory_space<vmem>>, vector<16x16x64xbf16>
    %37 = vector.shape_cast %36 : vector<16x16x64xbf16> to vector<256x64xbf16>
    %c256 = arith.constant 256 : index
    %c0_33 = arith.constant 0 : index
    %38 = vector.load %arg4[%c256, %c0_33] : memref<576x128xbf16, #tpu.memory_space<vmem>>, vector<64x128xbf16>
    %cst_34 = arith.constant dense<0.000000e+00> : vector<256x128xf32>
    %39 = tpu.matmul %37, %38, %cst_34 {dimension_numbers = #tpu.dot_dimension_numbers<[1], [0], [0], [1], [0, 0, 1, 1], [], []>} : vector<256x64xbf16>, vector<64x128xbf16>, vector<256x128xf32> -> vector<256x128xf32>
    %40 = arith.addf %35, %39 : vector<256x128xf32>
    %c1_35 = arith.constant 1 : index
    %c2_36 = arith.constant 2 : index
    %c0_37 = arith.constant 0 : index
    %41 = vector.load %arg14[%c1_35, %c2_36, %c0_37] : memref<18x18x64xbf16, #tpu.memory_space<vmem>>, vector<16x16x64xbf16>
    %42 = vector.shape_cast %41 : vector<16x16x64xbf16> to vector<256x64xbf16>
    %c320 = arith.constant 320 : index
    %c0_38 = arith.constant 0 : index
    %43 = vector.load %arg4[%c320, %c0_38] : memref<576x128xbf16, #tpu.memory_space<vmem>>, vector<64x128xbf16>
    %cst_39 = arith.constant dense<0.000000e+00> : vector<256x128xf32>
    %44 = tpu.matmul %42, %43, %cst_39 {dimension_numbers = #tpu.dot_dimension_numbers<[1], [0], [0], [1], [0, 0, 1, 1], [], []>} : vector<256x64xbf16>, vector<64x128xbf16>, vector<256x128xf32> -> vector<256x128xf32>
    %45 = arith.addf %40, %44 : vector<256x128xf32>
    %c2_40 = arith.constant 2 : index
    %c0_41 = arith.constant 0 : index
    %c0_42 = arith.constant 0 : index
    %46 = vector.load %arg14[%c2_40, %c0_41, %c0_42] : memref<18x18x64xbf16, #tpu.memory_space<vmem>>, vector<16x16x64xbf16>
    %47 = vector.shape_cast %46 : vector<16x16x64xbf16> to vector<256x64xbf16>
    %c384 = arith.constant 384 : index
    %c0_43 = arith.constant 0 : index
    %48 = vector.load %arg4[%c384, %c0_43] : memref<576x128xbf16, #tpu.memory_space<vmem>>, vector<64x128xbf16>
    %cst_44 = arith.constant dense<0.000000e+00> : vector<256x128xf32>
    %49 = tpu.matmul %47, %48, %cst_44 {dimension_numbers = #tpu.dot_dimension_numbers<[1], [0], [0], [1], [0, 0, 1, 1], [], []>} : vector<256x64xbf16>, vector<64x128xbf16>, vector<256x128xf32> -> vector<256x128xf32>
    %50 = arith.addf %45, %49 : vector<256x128xf32>
    %c2_45 = arith.constant 2 : index
    %c1_46 = arith.constant 1 : index
    %c0_47 = arith.constant 0 : index
    %51 = vector.load %arg14[%c2_45, %c1_46, %c0_47] : memref<18x18x64xbf16, #tpu.memory_space<vmem>>, vector<16x16x64xbf16>
    %52 = vector.shape_cast %51 : vector<16x16x64xbf16> to vector<256x64xbf16>
    %c448 = arith.constant 448 : index
    %c0_48 = arith.constant 0 : index
    %53 = vector.load %arg4[%c448, %c0_48] : memref<576x128xbf16, #tpu.memory_space<vmem>>, vector<64x128xbf16>
    %cst_49 = arith.constant dense<0.000000e+00> : vector<256x128xf32>
    %54 = tpu.matmul %52, %53, %cst_49 {dimension_numbers = #tpu.dot_dimension_numbers<[1], [0], [0], [1], [0, 0, 1, 1], [], []>} : vector<256x64xbf16>, vector<64x128xbf16>, vector<256x128xf32> -> vector<256x128xf32>
    %55 = arith.addf %50, %54 : vector<256x128xf32>
    %c2_50 = arith.constant 2 : index
    %c2_51 = arith.constant 2 : index
    %c0_52 = arith.constant 0 : index
    %56 = vector.load %arg14[%c2_50, %c2_51, %c0_52] : memref<18x18x64xbf16, #tpu.memory_space<vmem>>, vector<16x16x64xbf16>
    %57 = vector.shape_cast %56 : vector<16x16x64xbf16> to vector<256x64xbf16>
    %c512 = arith.constant 512 : index
    %c0_53 = arith.constant 0 : index
    %58 = vector.load %arg4[%c512, %c0_53] : memref<576x128xbf16, #tpu.memory_space<vmem>>, vector<64x128xbf16>
    %cst_54 = arith.constant dense<0.000000e+00> : vector<256x128xf32>
    %59 = tpu.matmul %57, %58, %cst_54 {dimension_numbers = #tpu.dot_dimension_numbers<[1], [0], [0], [1], [0, 0, 1, 1], [], []>} : vector<256x64xbf16>, vector<64x128xbf16>, vector<256x128xf32> -> vector<256x128xf32>
    %60 = arith.addf %55, %59 : vector<256x128xf32>
    %c0_55 = arith.constant 0 : index
    %c0_56 = arith.constant 0 : index
    %61 = vector.load %arg5[%c0_55, %c0_56] : memref<1x128xf32, #tpu.memory_space<vmem>>, vector<1x128xf32>
    %62 = vector.broadcast %61 : vector<1x128xf32> to vector<256x128xf32>
    %63 = arith.mulf %60, %62 : vector<256x128xf32>
    %c0_57 = arith.constant 0 : index
    %c0_58 = arith.constant 0 : index
    %64 = vector.load %arg6[%c0_57, %c0_58] : memref<1x128xf32, #tpu.memory_space<vmem>>, vector<1x128xf32>
    %65 = vector.broadcast %64 : vector<1x128xf32> to vector<256x128xf32>
    %66 = arith.addf %63, %65 : vector<256x128xf32>
    %cst_59 = arith.constant 0.000000e+00 : f32
    %67 = vector.broadcast %cst_59 : f32 to vector<256x128xf32>
    %68 = arith.maximumf %66, %67 : vector<256x128xf32>
    %69 = arith.truncf %68 : vector<256x128xf32> to vector<256x128xbf16>
    %70 = vector.shape_cast %69 : vector<256x128xbf16> to vector<16x16x128xbf16>
    %c1_60 = arith.constant 1 : index
    %c1_61 = arith.constant 1 : index
    %c0_62 = arith.constant 0 : index
    %71 = vector.load %arg15[%c1_60, %c1_61, %c0_62] : memref<18x18x128xbf16, #tpu.memory_space<vmem>>, vector<16x16x128xbf16>
    tpu.vector_store %arg15[%c1_60, %c1_61, %c0_62], %70 {strides = array<i32>} : memref<18x18x128xbf16, #tpu.memory_space<vmem>>, vector<16x16x128xbf16>,
    %c0_63 = arith.constant 0 : index
    %c0_64 = arith.constant 0 : index
    %c0_65 = arith.constant 0 : index
    %72 = vector.load %arg15[%c0_63, %c0_64, %c0_65] : memref<18x18x128xbf16, #tpu.memory_space<vmem>>, vector<16x16x128xbf16>
    %73 = vector.shape_cast %72 : vector<16x16x128xbf16> to vector<256x128xbf16>
    %c0_66 = arith.constant 0 : index
    %c1_67 = arith.constant 1 : index
    %c0_68 = arith.constant 0 : index
    %74 = vector.load %arg15[%c0_66, %c1_67, %c0_68] : memref<18x18x128xbf16, #tpu.memory_space<vmem>>, vector<16x16x128xbf16>
    %75 = vector.shape_cast %74 : vector<16x16x128xbf16> to vector<256x128xbf16>
    %c0_69 = arith.constant 0 : index
    %c2_70 = arith.constant 2 : index
    %c0_71 = arith.constant 0 : index
    %76 = vector.load %arg15[%c0_69, %c2_70, %c0_71] : memref<18x18x128xbf16, #tpu.memory_space<vmem>>, vector<16x16x128xbf16>
    %77 = vector.shape_cast %76 : vector<16x16x128xbf16> to vector<256x128xbf16>
    %78 = tpu.concatenate %73, %75, %77 in 1 : vector<256x128xbf16>, vector<256x128xbf16>, vector<256x128xbf16> -> vector<256x384xbf16>
    %c0_72 = arith.constant 0 : index
    %c0_73 = arith.constant 0 : index
    %79 = vector.load %arg7[%c0_72, %c0_73] : memref<1152x128xbf16, #tpu.memory_space<vmem>>, vector<384x128xbf16>
    %cst_74 = arith.constant dense<0.000000e+00> : vector<256x128xf32>
    %80 = tpu.matmul %78, %79, %cst_74 {dimension_numbers = #tpu.dot_dimension_numbers<[1], [0], [0], [1], [0, 0, 1, 1], [], []>} : vector<256x384xbf16>, vector<384x128xbf16>, vector<256x128xf32> -> vector<256x128xf32>
    %c1_75 = arith.constant 1 : index
    %c0_76 = arith.constant 0 : index
    %c0_77 = arith.constant 0 : index
    %81 = vector.load %arg15[%c1_75, %c0_76, %c0_77] : memref<18x18x128xbf16, #tpu.memory_space<vmem>>, vector<16x16x128xbf16>
    %82 = vector.shape_cast %81 : vector<16x16x128xbf16> to vector<256x128xbf16>
    %c1_78 = arith.constant 1 : index
    %c1_79 = arith.constant 1 : index
    %c0_80 = arith.constant 0 : index
    %83 = vector.load %arg15[%c1_78, %c1_79, %c0_80] : memref<18x18x128xbf16, #tpu.memory_space<vmem>>, vector<16x16x128xbf16>
    %84 = vector.shape_cast %83 : vector<16x16x128xbf16> to vector<256x128xbf16>
    %c1_81 = arith.constant 1 : index
    %c2_82 = arith.constant 2 : index
    %c0_83 = arith.constant 0 : index
    %85 = vector.load %arg15[%c1_81, %c2_82, %c0_83] : memref<18x18x128xbf16, #tpu.memory_space<vmem>>, vector<16x16x128xbf16>
    %86 = vector.shape_cast %85 : vector<16x16x128xbf16> to vector<256x128xbf16>
    %87 = tpu.concatenate %82, %84, %86 in 1 : vector<256x128xbf16>, vector<256x128xbf16>, vector<256x128xbf16> -> vector<256x384xbf16>
    %c384_84 = arith.constant 384 : index
    %c0_85 = arith.constant 0 : index
    %88 = vector.load %arg7[%c384_84, %c0_85] : memref<1152x128xbf16, #tpu.memory_space<vmem>>, vector<384x128xbf16>
    %cst_86 = arith.constant dense<0.000000e+00> : vector<256x128xf32>
    %89 = tpu.matmul %87, %88, %cst_86 {dimension_numbers = #tpu.dot_dimension_numbers<[1], [0], [0], [1], [0, 0, 1, 1], [], []>} : vector<256x384xbf16>, vector<384x128xbf16>, vector<256x128xf32> -> vector<256x128xf32>
    %90 = arith.addf %80, %89 : vector<256x128xf32>
    %c2_87 = arith.constant 2 : index
    %c0_88 = arith.constant 0 : index
    %c0_89 = arith.constant 0 : index
    %91 = vector.load %arg15[%c2_87, %c0_88, %c0_89] : memref<18x18x128xbf16, #tpu.memory_space<vmem>>, vector<16x16x128xbf16>
    %92 = vector.shape_cast %91 : vector<16x16x128xbf16> to vector<256x128xbf16>
    %c2_90 = arith.constant 2 : index
    %c1_91 = arith.constant 1 : index
    %c0_92 = arith.constant 0 : index
    %93 = vector.load %arg15[%c2_90, %c1_91, %c0_92] : memref<18x18x128xbf16, #tpu.memory_space<vmem>>, vector<16x16x128xbf16>
    %94 = vector.shape_cast %93 : vector<16x16x128xbf16> to vector<256x128xbf16>
    %c2_93 = arith.constant 2 : index
    %c2_94 = arith.constant 2 : index
    %c0_95 = arith.constant 0 : index
    %95 = vector.load %arg15[%c2_93, %c2_94, %c0_95] : memref<18x18x128xbf16, #tpu.memory_space<vmem>>, vector<16x16x128xbf16>
    %96 = vector.shape_cast %95 : vector<16x16x128xbf16> to vector<256x128xbf16>
    %97 = tpu.concatenate %92, %94, %96 in 1 : vector<256x128xbf16>, vector<256x128xbf16>, vector<256x128xbf16> -> vector<256x384xbf16>
    %c768 = arith.constant 768 : index
    %c0_96 = arith.constant 0 : index
    %98 = vector.load %arg7[%c768, %c0_96] : memref<1152x128xbf16, #tpu.memory_space<vmem>>, vector<384x128xbf16>
    %cst_97 = arith.constant dense<0.000000e+00> : vector<256x128xf32>
    %99 = tpu.matmul %97, %98, %cst_97 {dimension_numbers = #tpu.dot_dimension_numbers<[1], [0], [0], [1], [0, 0, 1, 1], [], []>} : vector<256x384xbf16>, vector<384x128xbf16>, vector<256x128xf32> -> vector<256x128xf32>
    %100 = arith.addf %90, %99 : vector<256x128xf32>
    %cst_98 = arith.constant dense<0.000000e+00> : vector<128xf32>
    %101 = vector.multi_reduction <add>, %100, %cst_98 [0] : vector<256x128xf32> to vector<128xf32>
    %102 = vector.shape_cast %101 : vector<128xf32> to vector<1x128xf32>
    %cst_99 = arith.constant 2.560000e+02 : f32
    %103 = vector.broadcast %cst_99 : f32 to vector<1x128xf32>
    %104 = arith.divf %102, %103 : vector<1x128xf32>
    %c0_100 = arith.constant 0 : index
    %c0_101 = arith.constant 0 : index
    %105 = vector.load %arg8[%c0_100, %c0_101] : memref<8x128xf32, #tpu.memory_space<vmem>>, vector<8x128xf32>
    %106 = vector.broadcast %104 : vector<1x128xf32> to vector<8x128xf32>
    %107 = arith.mulf %106, %105 : vector<8x128xf32>
    %cst_102 = arith.constant dense<0.000000e+00> : vector<8xf32>
    %108 = vector.multi_reduction <add>, %107, %cst_102 [1] : vector<8x128xf32> to vector<8xf32>
    %109 = vector.shape_cast %108 : vector<8xf32> to vector<8x1xf32>
    %c0_103 = arith.constant 0 : index
    %c0_104 = arith.constant 0 : index
    %110 = vector.load %arg9[%c0_103, %c0_104] : memref<8x1xf32, #tpu.memory_space<vmem>>, vector<8x1xf32>
    %111 = arith.addf %109, %110 : vector<8x1xf32>
    %cst_105 = arith.constant 0.000000e+00 : f32
    %112 = vector.broadcast %cst_105 : f32 to vector<8x1xf32>
    %113 = arith.maximumf %111, %112 : vector<8x1xf32>
    %c0_106 = arith.constant 0 : index
    %c0_107 = arith.constant 0 : index
    %114 = vector.load %arg10[%c0_106, %c0_107] : memref<8x128xf32, #tpu.memory_space<vmem>>, vector<8x128xf32>
    %115 = vector.broadcast %113 : vector<8x1xf32> to vector<8x128xf32>
    %116 = arith.mulf %115, %114 : vector<8x128xf32>
    %cst_108 = arith.constant dense<0.000000e+00> : vector<128xf32>
    %117 = vector.multi_reduction <add>, %116, %cst_108 [0] : vector<8x128xf32> to vector<128xf32>
    %118 = vector.shape_cast %117 : vector<128xf32> to vector<1x128xf32>
    %c0_109 = arith.constant 0 : index
    %c0_110 = arith.constant 0 : index
    %119 = vector.load %arg11[%c0_109, %c0_110] : memref<1x128xf32, #tpu.memory_space<vmem>>, vector<1x128xf32>
    %120 = arith.addf %118, %119 : vector<1x128xf32>
    %121 = arith.negf %120 : vector<1x128xf32>
    %122 = math.exp %121 : vector<1x128xf32>
    %cst_111 = arith.constant 1.000000e+00 : f32
    %123 = vector.broadcast %cst_111 : f32 to vector<1x128xf32>
    %124 = arith.addf %123, %122 : vector<1x128xf32>
    %125 = arith.divf %123, %124 : vector<1x128xf32>
    %126 = vector.shape_cast %4 : vector<16x16x64xf32> to vector<256x64xf32>
    %127 = arith.truncf %126 : vector<256x64xf32> to vector<256x64xbf16>
    %c0_112 = arith.constant 0 : index
    %c0_113 = arith.constant 0 : index
    %128 = vector.load %arg12[%c0_112, %c0_113] : memref<64x128xbf16, #tpu.memory_space<vmem>>, vector<64x128xbf16>
    %cst_114 = arith.constant dense<0.000000e+00> : vector<256x128xf32>
    %129 = tpu.matmul %127, %128, %cst_114 {dimension_numbers = #tpu.dot_dimension_numbers<[1], [0], [0], [1], [0, 0, 1, 1], [], []>} : vector<256x64xbf16>, vector<64x128xbf16>, vector<256x128xf32> -> vector<256x128xf32>
    %130 = vector.broadcast %125 : vector<1x128xf32> to vector<256x128xf32>
    %131 = arith.mulf %100, %130 : vector<256x128xf32>
    %132 = arith.addf %131, %129 : vector<256x128xf32>
    %c0_115 = arith.constant 0 : index
    %c0_116 = arith.constant 0 : index
    %c0_117 = arith.constant 0 : index
    %133 = vector.load %arg13[%c0_115, %c0_116, %c0_117] : memref<1x256x128xf32, #tpu.memory_space<vmem>>, vector<1x256x128xf32>
    %134 = vector.shape_cast %133 : vector<1x256x128xf32> to vector<256x128xf32>
    %135 = vector.shape_cast %132 : vector<256x128xf32> to vector<1x256x128xf32>
    tpu.vector_store %arg13[%c0_115, %c0_116, %c0_117], %135 {strides = array<i32>} : memref<1x256x128xf32, #tpu.memory_space<vmem>>, vector<1x256x128xf32>,
    return
  }
  func.func @transform_0(%arg0: i32) -> (i32, i32, i32, i32) {
    %c0_i32 = arith.constant 0 : i32
    %c0_i32_0 = arith.constant 0 : i32
    %c0_i32_1 = arith.constant 0 : i32
    %c0_i32_2 = arith.constant 0 : i32
    return %arg0, %c0_i32, %c0_i32_0, %c0_i32_1 : i32, i32, i32, i32
  }
  func.func @transform_1(%arg0: i32) -> (i32, i32) {
    %c0_i32 = arith.constant 0 : i32
    %c0_i32_0 = arith.constant 0 : i32
    %c0_i32_1 = arith.constant 0 : i32
    return %c0_i32, %c0_i32_0 : i32, i32
  }
  func.func @transform_2(%arg0: i32) -> (i32, i32) {
    %c0_i32 = arith.constant 0 : i32
    %c0_i32_0 = arith.constant 0 : i32
    %c0_i32_1 = arith.constant 0 : i32
    return %c0_i32, %c0_i32_0 : i32, i32
  }
  func.func @transform_3(%arg0: i32) -> (i32, i32) {
    %c0_i32 = arith.constant 0 : i32
    %c0_i32_0 = arith.constant 0 : i32
    %c0_i32_1 = arith.constant 0 : i32
    return %c0_i32, %c0_i32_0 : i32, i32
  }
  func.func @transform_4(%arg0: i32) -> (i32, i32) {
    %c0_i32 = arith.constant 0 : i32
    %c0_i32_0 = arith.constant 0 : i32
    %c0_i32_1 = arith.constant 0 : i32
    return %c0_i32, %c0_i32_0 : i32, i32
  }
  func.func @transform_5(%arg0: i32) -> (i32, i32) {
    %c0_i32 = arith.constant 0 : i32
    %c0_i32_0 = arith.constant 0 : i32
    %c0_i32_1 = arith.constant 0 : i32
    return %c0_i32, %c0_i32_0 : i32, i32
  }
  func.func @transform_6(%arg0: i32) -> (i32, i32) {
    %c0_i32 = arith.constant 0 : i32
    %c0_i32_0 = arith.constant 0 : i32
    %c0_i32_1 = arith.constant 0 : i32
    return %c0_i32, %c0_i32_0 : i32, i32
  }
  func.func @transform_7(%arg0: i32) -> (i32, i32) {
    %c0_i32 = arith.constant 0 : i32
    %c0_i32_0 = arith.constant 0 : i32
    %c0_i32_1 = arith.constant 0 : i32
    return %c0_i32, %c0_i32_0 : i32, i32
  }
  func.func @transform_8(%arg0: i32) -> (i32, i32) {
    %c0_i32 = arith.constant 0 : i32
    %c0_i32_0 = arith.constant 0 : i32
    %c0_i32_1 = arith.constant 0 : i32
    return %c0_i32, %c0_i32_0 : i32, i32
  }
  func.func @transform_9(%arg0: i32) -> (i32, i32) {
    %c0_i32 = arith.constant 0 : i32
    %c0_i32_0 = arith.constant 0 : i32
    %c0_i32_1 = arith.constant 0 : i32
    return %c0_i32, %c0_i32_0 : i32, i32
  }
  func.func @transform_10(%arg0: i32) -> (i32, i32) {
    %c0_i32 = arith.constant 0 : i32
    %c0_i32_0 = arith.constant 0 : i32
    %c0_i32_1 = arith.constant 0 : i32
    return %c0_i32, %c0_i32_0 : i32, i32
  }
  func.func @transform_11(%arg0: i32) -> (i32, i32) {
    %c0_i32 = arith.constant 0 : i32
    %c0_i32_0 = arith.constant 0 : i32
    %c0_i32_1 = arith.constant 0 : i32
    return %c0_i32, %c0_i32_0 : i32, i32
  }
  func.func @transform_12(%arg0: i32) -> (i32, i32, i32) {
    %c0_i32 = arith.constant 0 : i32
    %c0_i32_0 = arith.constant 0 : i32
    %c0_i32_1 = arith.constant 0 : i32
    return %arg0, %c0_i32, %c0_i32_0 : i32, i32, i32
  }
}

</mosaic_0001>

<bundles_post_ra>
// kernel: preact_se_block.1
= control target key start
LH: loop header
LB: loop body
LE: loop exit
PB: predicated region body
PF: predicated region fallthrough
CT: control target
= control target key end

     0   :  { %s18948_s0 = inlined_call_operand.vmem [shape: f32[2,16,16,64], index: 0, kind: input, shape index: {}]   ;;  %s18949_s1 = inlined_call_operand.vmem [shape: f32[1,64], index: 1, kind: input, shape index: {}]   ;;  %s18950_s2 = inlined_call_operand.vmem [shape: f32[1,64], index: 2, kind: input, shape index: {}]   ;;  %s18951_s3 = inlined_call_operand.vmem [shape: bf16[576,128], index: 3, kind: input, shape index: {}]   ;;  %s18952_s4 = inlined_call_operand.vmem [shape: f32[1,128], index: 4, kind: input, shape index: {}]   ;;  %s18953_s5 = inlined_call_operand.vmem [shape: f32[1,128], index: 5, kind: input, shape index: {}]   ;;  %s18954_s6 = inlined_call_operand.vmem [shape: bf16[1152,128], index: 6, kind: input, shape index: {}]   ;;  %s18955_s7 = inlined_call_operand.vmem [shape: f32[8,128], index: 7, kind: input, shape index: {}]   ;;  %s18956_s8 = inlined_call_operand.vmem [shape: f32[8,1], index: 8, kind: input, shape index: {}]   ;;  %s18957_s9 = inlined_call_operand.vmem [shape: f32[8,128], index: 9, kind: input, shape index: {}]   ;;  %s18958_s10 = inlined_call_operand.vmem [shape: f32[1,128], index: 10, kind: input, shape index: {}]   ;;  %s18959_s11 = inlined_call_operand.vmem [shape: bf16[64,128], index: 11, kind: input, shape index: {}]   ;;  %s18960_s12 = inlined_call_operand.hbm [shape: f32[2,256,128], index: 12, kind: output, shape index: {}]  }
   0x1   :  { %19046 = sst [smem:[#allocation75_spill]] %s18948_s0 }
   0x2   :  { %19047 = sst [smem:[#allocation76_spill]] %s18949_s1 }
   0x3   :  { %19048 = sst [smem:[#allocation77_spill]] %s18950_s2 }
   0x4   :  { %17 = vsyncpa [#allocation5], 0 }
   0x5   :  { %19 = vsyncpa [#allocation5 + $0x1], 0  ;;  %s14036_s21 = smov 0   ;;  %s14038_s22 = smov 0  }
   0x6   :  { %s14040_s23 = smov 0   ;;  %s14042_s24 = smov 0  }
   0x7 LB: > { %s14057_s25 = sadd.s32 4294967295, %s13964_s24   ;;  %s11174_s26 = sadd.s32 4294967294, %s13964_s24   ;;  %s13964_s24 = sphi %s14042_s24, %s19389_s24   ;;  %s13960_s23 = sphi %s14040_s23, %s19388_s23   ;;  %s13956_s22 = sphi %s14038_s22, %s19387_s22   ;;  %s13952_s21 = sphi %s14036_s21, %s19386_s21  }
   0x8   : > { %s14061_s27 = sadd.s32 1, %s13964_s24   ;;  %s289_s28 = sadd.s32 1, %s13960_s23 }
   0x9   : > { %s286_s29 = ssub.s32 %s13964_s24, %s14061_s27  ;;  %p299_p0 = scmp.ne.s32.totalorder %s13960_s23, %s13956_s22 }
   0xa   : > { %p287_p1 = scmp.eq.s32.totalorder %s286_s29, 0  ;;  %p300_p2 = scmp.eq.s32.totalorder %s14057_s25, 1 }
   0xb   : > { %p305_p3 = scmp.ne.s32.totalorder %s13956_s22, %s13952_s21  ;;  %p306_p4 = scmp.eq.s32.totalorder %s11174_s26, 1 }
   0xc   : > { %s14072_s30 = scalar_select %p287_p1, %s13960_s23, %s289_s28  }
   0xd   : > { %p14074_p5 = por %p300_p2, %p299_p0  ;;  %p14078_p6 = por %p306_p4, %p305_p3 }
   0xe   : > { %p11177_p7 = scmp.ge.s32.totalorder %s13964_s24, 1  ;;  %p365_p8 = scmp.lt.s32.totalorder %s13964_s24, 3 }
  0x10   : > { %p366_p9 = pnand %p11177_p7, %p365_p8 }
  0x12   : > { %369 = sbr.rel (%p366_p9) target bundleno = 2092 (0x82c), region = 68 }
  0x19   : > { %s18990_s15 = sand.u32 1, %s13956_s22   ;;  %p407_p10 = scmp.lt.s32.totalorder %s14057_s25, 1 }
  0x1a   : > { %s11178_s16 = sshll.u32 %s18990_s15, 8  ;;  %s19051_s0 = sld [smem:[#allocation75_spill]] }
  0x1b   : > { %s408_s17 = scalar_select %p407_p10, %s14057_s25, 1 }
  0x1c   : > { %s14094_s28 = scalar_lea.vmem [#allocation4], %s11178_s16  ;;  %p11181_p11 = scmp.ne.s32.totalorder %s14057_s25, 0 }
  0x1d   : > { %s11912_s18 = sshll.u32 %s408_s17, 8  ;;  %vm417_vm0 = vcmask (!%p11181_p11), 519168   ;;  %vm420_vm1 = vcmask (!%p11181_p11), 516096   ;;  %v13966_v0 = vmov (!%p11181_p11), 0  }
  0x1e   : > { %416 = sbr.rel (%p11181_p11) target bundleno = 84 (0x54), region = 72  ;;  %418 = vst.msk [vmem:[#allocation2] sm:$0xf] (!%p11181_p11), %vm417_vm0, %v13966_v0  ;;  %419 = vst.msk [vmem:[#allocation2 + $0x4] sm:$0xf] (!%p11181_p11), %vm417_vm0, %v13966_v0 }
  0x1f   : > { %422 = vst.msk [vmem:[#allocation2 + $0xc] sm:$0xf] (!%p11181_p11), %vm417_vm0, %v13966_v0  ;;  %423 = vst.msk [vmem:[#allocation2 + $0x10] sm:$0xf] (!%p11181_p11), %vm417_vm0, %v13966_v0 }
  0x20   : > { %s14092_s26 = scalar_lea.vmem %s19051_s0, %s11912_s18  ;;  %425 = vst.msk [vmem:[#allocation2 + $0x18] sm:$0xf] (!%p11181_p11), %vm417_vm0, %v13966_v0  ;;  %426 = vst.msk [vmem:[#allocation2 + $0x1c] sm:$0xf] (!%p11181_p11), %vm417_vm0, %v13966_v0 }
  0x21   : > { %428 = vst.msk [vmem:[#allocation2 + $0x24] sm:$0xf] (!%p11181_p11), %vm417_vm0, %v13966_v0  ;;  %429 = vst.msk [vmem:[#allocation2 + $0x28] sm:$0xf] (!%p11181_p11), %vm417_vm0, %v13966_v0 }
  0x22   : > { %431 = vst.msk [vmem:[#allocation2 + $0x30] sm:$0xf] (!%p11181_p11), %vm417_vm0, %v13966_v0  ;;  %432 = vst.msk [vmem:[#allocation2 + $0x34] sm:$0xf] (!%p11181_p11), %vm417_vm0, %v13966_v0 }
  0x23   : > { %434 = vst.msk [vmem:[#allocation2 + $0x3c] sm:$0xf] (!%p11181_p11), %vm417_vm0, %v13966_v0  ;;  %435 = vst.msk [vmem:[#allocation2 + $0x40] sm:$0xf] (!%p11181_p11), %vm417_vm0, %v13966_v0 }
  0x24   : > { %437 = vst.msk [vmem:[#allocation2 + $0x48] sm:$0xf] (!%p11181_p11), %vm417_vm0, %v13966_v0  ;;  %438 = vst.msk [vmem:[#allocation2 + $0x4c] sm:$0xf] (!%p11181_p11), %vm417_vm0, %v13966_v0 }
  0x25   : > { %440 = vst.msk [vmem:[#allocation2 + $0x54] sm:$0xf] %vm417_vm0, %v13966_v0  ;;  %441 = vst.msk [vmem:[#allocation2 + $0x58] sm:$0xf] %vm417_vm0, %v13966_v0 }
  0x26   : > { %443 = vst.msk [vmem:[#allocation2 + $0x60] sm:$0xf] %vm417_vm0, %v13966_v0  ;;  %444 = vst.msk [vmem:[#allocation2 + $0x64] sm:$0xf] %vm417_vm0, %v13966_v0 }
  0x27   : > { %446 = vst.msk [vmem:[#allocation2 + $0x6c] sm:$0xf] %vm417_vm0, %v13966_v0  ;;  %447 = vst.msk [vmem:[#allocation2 + $0x70] sm:$0xf] %vm417_vm0, %v13966_v0 }
  0x28   : > { %449 = vst.msk [vmem:[#allocation2 + $0x78] sm:$0xf] %vm417_vm0, %v13966_v0  ;;  %450 = vst.msk [vmem:[#allocation2 + $0x7c] sm:$0xf] %vm417_vm0, %v13966_v0 }
  0x29   : > { %452 = vst.msk [vmem:[#allocation2 + $0x84] sm:$0xf] %vm417_vm0, %v13966_v0  ;;  %453 = vst.msk [vmem:[#allocation2 + $0x88] sm:$0xf] %vm417_vm0, %v13966_v0 }
  0x2a   : > { %455 = vst.msk [vmem:[#allocation2 + $0x90] sm:$0xf] %vm417_vm0, %v13966_v0  ;;  %456 = vst.msk [vmem:[#allocation2 + $0x94] sm:$0xf] %vm417_vm0, %v13966_v0 }
  0x2b   : > { %458 = vst.msk [vmem:[#allocation2 + $0x9c] sm:$0xf] %vm417_vm0, %v13966_v0  ;;  %459 = vst.msk [vmem:[#allocation2 + $0xa0] sm:$0xf] %vm417_vm0, %v13966_v0 }
  0x2c   : > { %461 = vst.msk [vmem:[#allocation2 + $0xa8] sm:$0xf] %vm417_vm0, %v13966_v0  ;;  %462 = vst.msk [vmem:[#allocation2 + $0xac] sm:$0xf] %vm417_vm0, %v13966_v0 }
  0x2d   : > { %464 = vst.msk [vmem:[#allocation2 + $0xb4] sm:$0xf] %vm417_vm0, %v13966_v0  ;;  %465 = vst.msk [vmem:[#allocation2 + $0xb8] sm:$0xf] %vm417_vm0, %v13966_v0 }
  0x2e   : > { %467 = vst.msk [vmem:[#allocation2 + $0xc0] sm:$0xf] %vm417_vm0, %v13966_v0  ;;  %468 = vst.msk [vmem:[#allocation2 + $0xc4] sm:$0xf] %vm417_vm0, %v13966_v0 }
  0x2f   : > { %470 = vst.msk [vmem:[#allocation2 + $0xcc] sm:$0xf] %vm417_vm0, %v13966_v0  ;;  %471 = vst.msk [vmem:[#allocation2 + $0xd0] sm:$0xf] %vm417_vm0, %v13966_v0 }
  0x30   : > { %473 = vst [vmem:[#allocation3] sm:$0xf] %v13966_v0  ;;  %474 = vst [vmem:[#allocation3 + $0x4] sm:$0xf] %v13966_v0 }
  0x31   : > { %475 = vst [vmem:[#allocation3 + $0x8] sm:$0x1] %v13966_v0  ;;  %476 = vst [vmem:[#allocation3 + $0xc] sm:$0xf] %v13966_v0 }
  0x32   : > { %477 = vst [vmem:[#allocation3 + $0x10] sm:$0xf] %v13966_v0  ;;  %478 = vst [vmem:[#allocation3 + $0x14] sm:$0x1] %v13966_v0 }
  0x33   : > { %479 = vst [vmem:[#allocation3 + $0x18] sm:$0xf] %v13966_v0  ;;  %480 = vst [vmem:[#allocation3 + $0x1c] sm:$0xf] %v13966_v0 }
  0x34   : > { %481 = vst [vmem:[#allocation3 + $0x20] sm:$0x1] %v13966_v0  ;;  %482 = vst [vmem:[#allocation3 + $0x24] sm:$0xf] %v13966_v0 }
  0x35   : > { %483 = vst [vmem:[#allocation3 + $0x28] sm:$0xf] %v13966_v0  ;;  %484 = vst [vmem:[#allocation3 + $0x2c] sm:$0x1] %v13966_v0 }
  0x36   : > { %485 = vst [vmem:[#allocation3 + $0x30] sm:$0xf] %v13966_v0  ;;  %486 = vst [vmem:[#allocation3 + $0x34] sm:$0xf] %v13966_v0 }
  0x37   : > { %487 = vst [vmem:[#allocation3 + $0x38] sm:$0x1] %v13966_v0  ;;  %488 = vst [vmem:[#allocation3 + $0x3c] sm:$0xf] %v13966_v0 }
  0x38   : > { %489 = vst [vmem:[#allocation3 + $0x40] sm:$0xf] %v13966_v0  ;;  %490 = vst [vmem:[#allocation3 + $0x44] sm:$0x1] %v13966_v0 }
  0x39   : > { %491 = vst [vmem:[#allocation3 + $0x48] sm:$0xf] %v13966_v0  ;;  %492 = vst [vmem:[#allocation3 + $0x4c] sm:$0xf] %v13966_v0 }
  0x3a   : > { %493 = vst [vmem:[#allocation3 + $0x50] sm:$0x1] %v13966_v0  ;;  %494 = vst [vmem:[#allocation3 + $0x54] sm:$0xf] %v13966_v0 }
  0x3b   : > { %495 = vst [vmem:[#allocation3 + $0x58] sm:$0xf] %v13966_v0  ;;  %496 = vst [vmem:[#allocation3 + $0x5c] sm:$0x1] %v13966_v0 }
  0x3c   : > { %497 = vst [vmem:[#allocation3 + $0x60] sm:$0xf] %v13966_v0  ;;  %498 = vst [vmem:[#allocation3 + $0x64] sm:$0xf] %v13966_v0 }
  0x3d   : > { %499 = vst [vmem:[#allocation3 + $0x68] sm:$0x1] %v13966_v0  ;;  %500 = vst [vmem:[#allocation3 + $0x6c] sm:$0xf] %v13966_v0 }
  0x3e   : > { %501 = vst [vmem:[#allocation3 + $0x70] sm:$0xf] %v13966_v0  ;;  %502 = vst [vmem:[#allocation3 + $0x74] sm:$0x1] %v13966_v0 }
  0x3f   : > { %503 = vst [vmem:[#allocation3 + $0x78] sm:$0xf] %v13966_v0  ;;  %504 = vst [vmem:[#allocation3 + $0x7c] sm:$0xf] %v13966_v0 }
  0x40   : > { %505 = vst [vmem:[#allocation3 + $0x80] sm:$0x1] %v13966_v0  ;;  %506 = vst [vmem:[#allocation3 + $0x84] sm:$0xf] %v13966_v0 }
  0x41   : > { %507 = vst [vmem:[#allocation3 + $0x88] sm:$0xf] %v13966_v0  ;;  %508 = vst [vmem:[#allocation3 + $0x8c] sm:$0x1] %v13966_v0 }
  0x42   : > { %509 = vst [vmem:[#allocation3 + $0x90] sm:$0xf] %v13966_v0  ;;  %510 = vst [vmem:[#allocation3 + $0x94] sm:$0xf] %v13966_v0 }
  0x43   : > { %511 = vst [vmem:[#allocation3 + $0x98] sm:$0x1] %v13966_v0  ;;  %512 = vst [vmem:[#allocation3 + $0x9c] sm:$0xf] %v13966_v0 }
  0x44   : > { %513 = vst [vmem:[#allocation3 + $0xa0] sm:$0xf] %v13966_v0  ;;  %514 = vst [vmem:[#allocation3 + $0xa4] sm:$0x1] %v13966_v0 }
  0x45   : > { %515 = vst [vmem:[#allocation3 + $0xa8] sm:$0xf] %v13966_v0  ;;  %516 = vst [vmem:[#allocation3 + $0xac] sm:$0xf] %v13966_v0 }
  0x46   : > { %517 = vst [vmem:[#allocation3 + $0xb0] sm:$0x1] %v13966_v0  ;;  %518 = vst [vmem:[#allocation3 + $0xb4] sm:$0xf] %v13966_v0 }
  0x47   : > { %519 = vst [vmem:[#allocation3 + $0xb8] sm:$0xf] %v13966_v0  ;;  %520 = vst [vmem:[#allocation3 + $0xbc] sm:$0x1] %v13966_v0 }
  0x48   : > { %521 = vst [vmem:[#allocation3 + $0xc0] sm:$0xf] %v13966_v0  ;;  %522 = vst [vmem:[#allocation3 + $0xc4] sm:$0xf] %v13966_v0 }
  0x49   : > { %523 = vst [vmem:[#allocation3 + $0xc8] sm:$0x1] %v13966_v0  ;;  %524 = vst [vmem:[#allocation3 + $0xcc] sm:$0xf] %v13966_v0 }
  0x4a   : > { %525 = vst [vmem:[#allocation3 + $0xd0] sm:$0xf] %v13966_v0  ;;  %526 = vst [vmem:[#allocation3 + $0xd4] sm:$0x1] %v13966_v0 }
  0x4b   : > { %421 = vst.msk [vmem:[#allocation2 + $0x8] sm:$0x1] %vm420_vm1, %v13966_v0  ;;  %424 = vst.msk [vmem:[#allocation2 + $0x14] sm:$0x1] %vm420_vm1, %v13966_v0 }
  0x4c   : > { %427 = vst.msk [vmem:[#allocation2 + $0x20] sm:$0x1] %vm420_vm1, %v13966_v0  ;;  %430 = vst.msk [vmem:[#allocation2 + $0x2c] sm:$0x1] %vm420_vm1, %v13966_v0 }
  0x4d   : > { %433 = vst.msk [vmem:[#allocation2 + $0x38] sm:$0x1] %vm420_vm1, %v13966_v0  ;;  %436 = vst.msk [vmem:[#allocation2 + $0x44] sm:$0x1] %vm420_vm1, %v13966_v0 }
  0x4e   : > { %439 = vst.msk [vmem:[#allocation2 + $0x50] sm:$0x1] %vm420_vm1, %v13966_v0  ;;  %442 = vst.msk [vmem:[#allocation2 + $0x5c] sm:$0x1] %vm420_vm1, %v13966_v0 }
  0x4f   : > { %445 = vst.msk [vmem:[#allocation2 + $0x68] sm:$0x1] %vm420_vm1, %v13966_v0  ;;  %448 = vst.msk [vmem:[#allocation2 + $0x74] sm:$0x1] %vm420_vm1, %v13966_v0 }
  0x50   : > { %451 = vst.msk [vmem:[#allocation2 + $0x80] sm:$0x1] %vm420_vm1, %v13966_v0  ;;  %454 = vst.msk [vmem:[#allocation2 + $0x8c] sm:$0x1] %vm420_vm1, %v13966_v0 }
  0x51   : > { %457 = vst.msk [vmem:[#allocation2 + $0x98] sm:$0x1] %vm420_vm1, %v13966_v0  ;;  %460 = vst.msk [vmem:[#allocation2 + $0xa4] sm:$0x1] %vm420_vm1, %v13966_v0 }
  0x52   : > { %463 = vst.msk [vmem:[#allocation2 + $0xb0] sm:$0x1] %vm420_vm1, %v13966_v0  ;;  %466 = vst.msk [vmem:[#allocation2 + $0xbc] sm:$0x1] %vm420_vm1, %v13966_v0 }
  0x53   : > { %469 = vst.msk [vmem:[#allocation2 + $0xc8] sm:$0x1] %vm420_vm1, %v13966_v0  ;;  %472 = vst.msk [vmem:[#allocation2 + $0xd4] sm:$0x1] %vm420_vm1, %v13966_v0 }
  0x54 PF: > { %v13598_v1 = vld [vmem:[%s18951_s3 + $0x20] sm:$0xff]   ;;  %v13599_v2 = vld [vmem:[%s18951_s3 + $0x28] sm:$0xff]   ;;  %v13600_v3 = vld [vmem:[%s18951_s3 + $0x30] sm:$0xff]   ;;  %vm1263_vm2 = vsmask.f32 3328  ;;  %s19052_s1 = sld [smem:[#allocation76_spill]] }
  0x55   : > { %12586 = vmatprep.subr.bf16.mxu0 %v13598_v1  ;;  %13130 = vmatprep.subr.bf16.mxu1 %v13598_v1  ;;  %v14268_v4 = vld [vmem:[#allocation2] sm:$0xf]  ;;  %v14270_v5 = vld [vmem:[#allocation2 + $0x4] sm:$0xf]  ;;  %v1247_v6 = vld [vmem:[#allocation2 + $0x8] sm:$0x1] }
  0x56   : > { %12587 = vmatpush3.bf16.msra.mxu0 %v13598_v1  ;;  %13134 = vmatpush3.bf16.msra.mxu1 %v13598_v1  ;;  %vm1264_vm3 = vsmask.f32 7440  ;;  %v1267_v7 = vshrl.u32 %v14268_v4, 16  ;;  %v1270_v8 = vshll.u32 %v14268_v4, 16  ;;  %v1276_v9 = vshll.u32 %v14270_v5, 16  ;;  %v527_v14 = vld [vmem:[%s14092_s26] sm:$0xff] }
  0x57   : > { %12588 = vmatprep.subr.bf16.mxu0 %v13599_v2  ;;  %13131 = vmatprep.subr.bf16.mxu1 %v13599_v2  ;;  %v1280_v10 = vshrl.u32 %v14270_v5, 16  ;;  %v1286_v11 = vshll.u32 %v1247_v6, 16  ;;  %v13601_v15 = vld [vmem:[%s18951_s3 + $0x38] sm:$0xff]   ;;  %v528_v18 = vld [vmem:[%s14092_s26 + $0x8] sm:$0xff]  ;;  %vm1730_vm4 = vcmask 523264   ;;  %s19053_s2 = sld [smem:[#allocation77_spill]]  ;;  %vm14295_vm5 = vmor %vm1263_vm2, %vm1264_vm3 }
  0x58   : > { %v1269_v12 = vrot.slane %v1267_v7, 4  ;;  %v1272_v13 = vrot.slane %v1270_v8, 5  ;;  %v1278_v16 = vrot.slane %v1276_v9, 5  ;;  %vm1089_vm6 = vcmask 519168   ;;  %v529_v30 = vld [vmem:[%s14092_s26 + $0x10] sm:$0xff]  ;;  %v530_v31 = vld [vmem:[%s14092_s26 + $0x18] sm:$0xff] }
  0x59   : > { %v1282_v17 = vrot.slane %v1280_v10, 4  ;;  %v1288_v26 = vrot.slane %v1286_v11, 5  ;;  %vm1097_vm7 = vcmask 516096   ;;  %vm765_vm8 = vsmask.f32 256  ;;  %v14306_v33 = vld [vmem:[%s18951_s3] sm:$0xff]  }
  0x5a   : > { %12589 = vmatpush3.bf16.msra.mxu0 %v13599_v2  ;;  %13135 = vmatpush3.bf16.msra.mxu1 %v13599_v2  ;;  %v14284_v19 = vld [vmem:[%s19052_s1] ss:$0 sm:$0xff]  ;;  %v1273_v20 = vor.u32 %v1272_v13, %v1269_v12  ;;  %vm766_vm9 = vsmask.f32 4368  ;;  %vm1090_vm10 = vsmask.f32 7938  ;;  %vm14327_vm11 = vmand %vm1097_vm7, %vm765_vm8 }
  0x5b   : > { %12590 = vmatprep.subr.bf16.mxu0 %v13600_v3  ;;  %13132 = vmatprep.subr.bf16.mxu1 %v13600_v3  ;;  %v566_v21 = vmul.f32 %v14284_v19, %v527_v14  ;;  %v567_v22 = vmul.f32 %v14284_v19, %v528_v18  ;;  %v1283_v25 = vor.u32 %v1282_v17, %v1278_v16  ;;  %v531_v42 = vld [vmem:[%s14092_s26 + $0x20] sm:$0xff]  ;;  %v532_v43 = vld [vmem:[%s14092_s26 + $0x28] sm:$0xff]  ;;  %v533_v48 = vld [vmem:[%s14092_s26 + $0x30] sm:$0xff]  ;;  %v19058_v63 = vmov 0  ;;  %s11977_s15 = sshll.u32 %s14057_s25, 12  ;;  %s19385_s17 = sand.u32 1, %s13956_s22  }
  0x5c   : > { %v1274_v27 = vrot.slane %v1273_v20, 4  ;;  %v568_v34 = vmul.f32 %v14284_v19, %v529_v30  ;;  %v569_v35 = vmul.f32 %v14284_v19, %v530_v31  ;;  %v570_v47 = vmul.f32 %v14284_v19, %v531_v42  ;;  %v534_v52 = vld [vmem:[%s14092_s26 + $0x38] sm:$0xff]  ;;  %vm14335_vm12 = vmor %vm765_vm8, %vm766_vm9  ;;  %v1092_v2 = vld [vmem:[#allocation2 + $0xc] sm:$0xf]  ;;  %s18907_s18 = scalar_lea.sflag [#allocation5], %s19385_s17  ;;  %s13968_s20 = smov [#allocation4]  }
  0x5d   : > { %v14291_v23 = vld [vmem:[%s19053_s2] ss:$0 sm:$0xff]  ;;  %v1284_v32 = vrot.slane %v1283_v25, 4  ;;  %v571_v51 = vmul.f32 %v14284_v19, %v532_v43  ;;  %v572_v53 = vmul.f32 %v14284_v19, %v533_v48  ;;  %v19059_v63 = vsel %vm14335_vm12, 4294967295, %v19058_v63  ;;  %vm14343_vm13 = vmand %vm1089_vm6, %vm1090_vm10  ;;  %v1099_v8 = vld [vmem:[#allocation2 + $0x14] sm:$0x1] }
  0x5e   : > { %12591 = vmatpush3.bf16.msra.mxu0 %v13600_v3  ;;  %v605_v28 = vadd.f32 %v14291_v23, %v566_v21  ;;  %v606_v29 = vadd.f32 %v14291_v23, %v567_v22  ;;  %13136 = vmatpush3.bf16.msra.mxu1 %v13600_v3  ;;  %v1279_v36 = vsel %vm14295_vm5, %v1274_v27, %v1278_v16  ;;  %v1102_v17 = vld [vmem:[#allocation2 + $0x18] sm:$0xf]  ;;  %v1106_v21 = vld [vmem:[#allocation2 + $0x20] sm:$0x1]  ;;  %vm2301_vm14 = vcmask 1042432   ;;  %s13906_s29 = sshll.u32 %s13968_s20, 4  ;;  %s13907_s29 = int_to_ptr.vmem [resolvable:$false] %s13906_s29 }
  0x5f   : > { %12592 = vmatprep.subr.bf16.mxu0 %v13601_v15  ;;  %13133 = vmatprep.subr.bf16.mxu1 %v13601_v15  ;;  %v1289_v39 = vsel %vm14295_vm5, %v1284_v32, %v1288_v26  ;;  %v607_v40 = vadd.f32 %v14291_v23, %v568_v34  ;;  %v608_v41 = vadd.f32 %v14291_v23, %v569_v35  ;;  %v535_v30 = vld [vmem:[%s14092_s26 + $0x40] sm:$0xff]  ;;  %vm2302_vm15 = vcmask 1046532   ;;  %s13908_s16 = scalar_lea.vmem %s13907_s29, 8192 }
  0x60   : > { %v637_v37 = vmax.f32 %v605_v28, 0.0  ;;  %v638_v38 = vmax.f32 %v606_v29, 0.0  ;;  %v11216_v44 = vcombine.low %v1279_v36, %v1289_v39  ;;  %v609_v61 = vadd.f32 %v14291_v23, %v570_v47  ;;  %19060 = vst [vmem:[#allocation7_spill] sm:$0xff] %v19059_v63  ;;  %vm14711_vm0 = vmor %vm2301_vm14, %vm2302_vm15 }
  0x61   : > { %v639_v49 = vmax.f32 %v607_v40, 0.0  ;;  %v640_v50 = vmax.f32 %v608_v41, 0.0  ;;  %v610_v62 = vadd.f32 %v14291_v23, %v571_v51  ;;  %v573_v3 = vmul.f32 %v14284_v19, %v534_v52  ;;  %v536_v40 = vld [vmem:[%s14092_s26 + $0x48] sm:$0xff]  ;;  %v537_v41 = vld [vmem:[%s14092_s26 + $0x50] sm:$0xff]  ;;  %v538_v52 = vld [vmem:[%s14092_s26 + $0x58] sm:$0xff] }
  0x62   : > { %12593 = vmatpush3.bf16.msra.mxu0 %v13601_v15  ;;  %v11913_v45 = vpack.c.bf16 %v637_v37, %v637_v37  ;;  %v11914_v46 = vpack.c.bf16 %v638_v38, %v638_v38  ;;  %13137 = vmatpush3.bf16.msra.mxu1 %v13601_v15  ;;  %v611_v6 = vadd.f32 %v14291_v23, %v572_v53  ;;  %v641_v22 = vmax.f32 %v609_v61, 0.0 }
  0x63   : > { %12626 = vmatprep.subr.bf16.mxu0 %v14306_v33  ;;  %12594 = vmatprep.mubr.msk.bf16.mxu0 %vm1730_vm4, %v11216_v44  ;;  %v11915_v59 = vpack.c.bf16 %v639_v49, %v639_v49  ;;  %v11916_v60 = vpack.c.bf16 %v640_v50, %v640_v50  ;;  %v642_v25 = vmax.f32 %v610_v62, 0.0  ;;  %v612_v29 = vadd.f32 %v14291_v23, %v573_v3 }
  0x64   : > { %v769_v54 = vshrl.u32 %v11913_v45, 16  ;;  %v772_v55 = vshll.u32 %v11913_v45, 16  ;;  %v777_v56 = vshrl.u32 %v11914_v46, 16  ;;  %v780_v57 = vshll.u32 %v11914_v46, 16 }
  0x65   : > { %v786_v9 = vshrl.u32 %v11915_v59, 16  ;;  %v789_v10 = vshll.u32 %v11915_v59, 16  ;;  %v794_v11 = vshrl.u32 %v11916_v60, 16  ;;  %v797_v12 = vshll.u32 %v11916_v60, 16 }
  0x66   : > { %v771_v0 = vrot.slane %v769_v54, 7  ;;  %v779_v1 = vrot.slane %v777_v56, 7  ;;  %v11917_v36 = vpack.c.bf16 %v641_v22, %v641_v22  ;;  %v11918_v37 = vpack.c.bf16 %v642_v25, %v642_v25 }
  0x67   : > { %v788_v18 = vrot.slane %v786_v9, 7  ;;  %v796_v20 = vrot.slane %v794_v11, 7  ;;  %v643_v38 = vmax.f32 %v611_v6, 0.0  ;;  %v644_v39 = vmax.f32 %v612_v29, 0.0 }
  0x68   : > { %v774_v13 = vor.u32 %v772_v55, %v771_v0  ;;  %v775_v14 = vrot.slane %v771_v0, 4  ;;  %v782_v15 = vor.u32 %v780_v57, %v779_v1  ;;  %v784_v16 = vrot.slane %v779_v1, 4 }
  0x69   : > { %v791_v31 = vor.u32 %v789_v10, %v788_v18  ;;  %v792_v32 = vrot.slane %v788_v18, 4  ;;  %v799_v34 = vor.u32 %v797_v12, %v796_v20  ;;  %v801_v35 = vrot.slane %v796_v20, 4 }
  0x6a   : > { %v783_v26 = vsel %vm14335_vm12, %v775_v14, %v782_v15  ;;  %v1093_v27 = vsel %vm14343_vm13, %v774_v13, %v1092_v2  ;;  %v1100_v28 = vsel %vm14327_vm11, %v784_v16, %v1099_v8  ;;  %v574_v45 = vmul.f32 %v14284_v19, %v535_v30  ;;  %v1109_v13 = vld [vmem:[#allocation2 + $0x24] sm:$0xf] }
  0x6b   : > { %1094 = vst [vmem:[#allocation2 + $0xc] sm:$0xf] %v1093_v27  ;;  %1096 = vst.msk [vmem:[#allocation2 + $0x10] sm:$0xf] %vm1089_vm6, %v783_v26  ;;  %v800_v42 = vsel %vm14335_vm12, %v792_v32, %v799_v34  ;;  %v1103_v43 = vsel %vm14343_vm13, %v791_v31, %v1102_v17  ;;  %v1107_v44 = vsel %vm14327_vm11, %v801_v35, %v1106_v21  ;;  %v803_v46 = vshrl.u32 %v11917_v36, 16 }
  0x6c   : > { %1101 = vst [vmem:[#allocation2 + $0x14] sm:$0x1] %v1100_v28  ;;  %1104 = vst [vmem:[#allocation2 + $0x18] sm:$0xf] %v1103_v43  ;;  %v806_v47 = vshll.u32 %v11917_v36, 16  ;;  %v811_v48 = vshrl.u32 %v11918_v37, 16  ;;  %v14366_v50 = vpack.c.bf16 %v643_v38, %v643_v38  ;;  %v14368_v51 = vpack.c.bf16 %v644_v39, %v644_v39 }
  0x6d   : > { %1105 = vst.msk [vmem:[#allocation2 + $0x1c] sm:$0xf] %vm1089_vm6, %v800_v42  ;;  %1108 = vst [vmem:[#allocation2 + $0x20] sm:$0x1] %v1107_v44  ;;  %v814_v49 = vshll.u32 %v11918_v37, 16  ;;  %v805_v53 = vrot.slane %v803_v46, 7  ;;  %v575_v55 = vmul.f32 %v14284_v19, %v536_v40  ;;  %v576_v56 = vmul.f32 %v14284_v19, %v537_v41 }
  0x6e   : > { %v813_v54 = vrot.slane %v811_v48, 7  ;;  %v820_v57 = vshrl.u32 %v14366_v50, 16  ;;  %v823_v59 = vshll.u32 %v14366_v50, 16  ;;  %v828_v60 = vshrl.u32 %v14368_v51, 16  ;;  %v1113_v37 = vld [vmem:[#allocation2 + $0x2c] sm:$0x1] }
  0x6f   : > { %v831_v61 = vshll.u32 %v14368_v51, 16  ;;  %v808_v2 = vor.u32 %v806_v47, %v805_v53  ;;  %v14382_v6 = vadd.f32 %v14291_v23, %v574_v45  ;;  %v577_v8 = vmul.f32 %v14284_v19, %v538_v52  ;;  %v1116_v50 = vld [vmem:[#allocation2 + $0x30] sm:$0xf] }
  0x70   : > { %v816_v3 = vor.u32 %v814_v49, %v813_v54  ;;  %v809_v15 = vrot.slane %v805_v53, 4  ;;  %v14390_v16 = vadd.f32 %v14291_v23, %v575_v55  ;;  %v14393_v17 = vadd.f32 %v14291_v23, %v576_v56 }
  0x71   : > { %v1110_v31 = vsel %vm14343_vm13, %v808_v2, %v1109_v13  ;;  %v818_v41 = vrot.slane %v813_v54, 4  ;;  %v822_v49 = vrot.slane %v820_v57, 7  ;;  %v830_v54 = vrot.slane %v828_v60, 7 }
  0x72   : > { %v14377_v62 = vld [vmem:[#allocation2 + $0xc] sm:$0xf]  ;;  %v14379_v0 = vld [vmem:[#allocation2 + $0x10] sm:$0xf]  ;;  %v817_v30 = vsel %vm14335_vm12, %v809_v15, %v816_v3  ;;  %1111 = vst [vmem:[#allocation2 + $0x24] sm:$0xf] %v1110_v31 }
  0x73   : > { %v1248_v1 = vld [vmem:[#allocation2 + $0x14] sm:$0x1]  ;;  %v1291_v9 = vshrl.u32 %v14377_v62, 16  ;;  %v1294_v10 = vshll.u32 %v14377_v62, 16  ;;  %v1300_v11 = vshll.u32 %v14379_v0, 16  ;;  %v1304_v12 = vshrl.u32 %v14379_v0, 16 }
  0x74   : > { %v1310_v14 = vshll.u32 %v1248_v1, 16  ;;  %v14395_v25 = vld [vmem:[#allocation2 + $0x18] sm:$0xf]  ;;  %v14397_v27 = vld [vmem:[#allocation2 + $0x1c] sm:$0xf]  ;;  %v1114_v48 = vsel %vm14327_vm11, %v818_v41, %v1113_v37  ;;  %v13603_v1 = vld [vmem:[%s18951_s3 + $0x8] sm:$0xff]   ;;  %v825_v2 = vor.u32 %v823_v59, %v822_v49  ;;  %v833_v57 = vor.u32 %v831_v61, %v830_v54 }
  0x75   : > { %v1293_v18 = vrot.slane %v1291_v9, 4  ;;  %v1296_v20 = vrot.slane %v1294_v10, 5  ;;  %v1302_v21 = vrot.slane %v1300_v11, 5  ;;  %v1306_v22 = vrot.slane %v1304_v12, 4  ;;  %v1249_v28 = vld [vmem:[#allocation2 + $0x20] sm:$0x1] }
  0x76   : > { %v1312_v26 = vrot.slane %v1310_v14, 5  ;;  %v1315_v29 = vshrl.u32 %v14395_v25, 16  ;;  %v1318_v35 = vshll.u32 %v14395_v25, 16  ;;  %v1324_v36 = vshll.u32 %v14397_v27, 16  ;;  %1112 = vst.msk [vmem:[#allocation2 + $0x28] sm:$0xf] %vm1089_vm6, %v817_v30 }
  0x77   : > { %v1297_v32 = vor.u32 %v1296_v20, %v1293_v18  ;;  %v1307_v34 = vor.u32 %v1306_v22, %v1302_v21  ;;  %v1328_v39 = vshrl.u32 %v14397_v27, 16  ;;  %v1334_v40 = vshll.u32 %v1249_v28, 16  ;;  %1115 = vst [vmem:[#allocation2 + $0x2c] sm:$0x1] %v1114_v48  ;;  %v1120_v11 = vld [vmem:[#allocation2 + $0x38] sm:$0x1] }
  0x78   : > { %v1317_v38 = vrot.slane %v1315_v29, 4  ;;  %v1320_v44 = vrot.slane %v1318_v35, 5  ;;  %v1326_v45 = vrot.slane %v1324_v36, 5  ;;  %v826_v3 = vrot.slane %v822_v49, 4  ;;  %v539_v28 = vld [vmem:[%s14092_s26 + $0x60] sm:$0xff] }
  0x79   : > { %v1298_v42 = vrot.slane %v1297_v32, 4  ;;  %v1308_v43 = vrot.slane %v1307_v34, 4  ;;  %v1330_v46 = vrot.slane %v1328_v39, 4  ;;  %v1336_v47 = vrot.slane %v1334_v40, 5  ;;  %v14419_v14 = vld [vmem:[#allocation2 + $0x24] sm:$0xf] }
  0x7a   : > { %v1321_v53 = vor.u32 %v1320_v44, %v1317_v38  ;;  %v835_v10 = vrot.slane %v830_v54, 4  ;;  %v645_v12 = vmax.f32 %v14382_v6, 0.0  ;;  %v1117_v15 = vsel %vm14343_vm13, %v825_v2, %v1116_v50 }
  0x7b   : > { %v1303_v51 = vsel %vm14295_vm5, %v1298_v42, %v1302_v21  ;;  %v1313_v52 = vsel %vm14295_vm5, %v1308_v43, %v1312_v26  ;;  %v1331_v56 = vor.u32 %v1330_v46, %v1326_v45  ;;  %v646_v59 = vmax.f32 %v14390_v16, 0.0  ;;  %1118 = vst [vmem:[#allocation2 + $0x30] sm:$0xf] %v1117_v15  ;;  %v13604_v26 = vld [vmem:[%s18951_s3 + $0x10] sm:$0xff]  }
  0x7c   : > { %v11217_v55 = vcombine.low %v1303_v51, %v1313_v52  ;;  %v1322_v9 = vrot.slane %v1321_v53, 4  ;;  %v616_v18 = vadd.f32 %v14291_v23, %v577_v8  ;;  %v1339_v6 = vshrl.u32 %v14419_v14, 16 }
  0x7d   : > { %v1332_v13 = vrot.slane %v1331_v56, 4  ;;  %v14421_v60 = vld [vmem:[#allocation2 + $0x28] sm:$0xf]  ;;  %v1342_v20 = vshll.u32 %v14419_v14, 16  ;;  %v834_v8 = vsel %vm14335_vm12, %v826_v3, %v833_v57  ;;  %v11921_v36 = vpack.c.bf16 %v645_v12, %v645_v12  ;;  %v1123_v3 = vld [vmem:[#allocation2 + $0x3c] sm:$0xf] }
  0x7e   : > { %12595 = vmatmul.mubr.msk.bf16.vlgmr.msra.gmra.mrb[0].mxu0 %vm1730_vm4, %v11217_v55  ;;  %v1327_v61 = vsel %vm14295_vm5, %v1322_v9, %v1326_v45  ;;  %v1348_v21 = vshll.u32 %v14421_v60, 16  ;;  %v1352_v16 = vshrl.u32 %v14421_v60, 16  ;;  %v1341_v30 = vrot.slane %v1339_v6, 4  ;;  %1119 = vst.msk [vmem:[#allocation2 + $0x34] sm:$0xf] %vm1089_vm6, %v834_v8 }
  0x7f   : > { %12627 = vmatpush3.bf16.msra.mxu0 %v14306_v33  ;;  %v1337_v22 = vsel %vm14295_vm5, %v1332_v13, %v1336_v47  ;;  %v1121_v33 = vsel %vm14327_vm11, %v835_v10, %v1120_v11  ;;  %v1344_v31 = vrot.slane %v1342_v20, 5  ;;  %v1250_v34 = vld [vmem:[#allocation2 + $0x2c] sm:$0x1]  ;;  %v11922_v37 = vpack.c.bf16 %v646_v59, %v646_v59  ;;  %v13605_v47 = vld [vmem:[%s18951_s3 + $0x18] sm:$0xff]   ;;  %v1127_v20 = vld [vmem:[#allocation2 + $0x44] sm:$0x1] }
  0x80   : > { %12628 = vmatprep.subr.bf16.mxu0 %v13603_v1  ;;  %v11218_v29 = vcombine.low %v1327_v61, %v1337_v22  ;;  %v1350_v32 = vrot.slane %v1348_v21, 5  ;;  %1122 = vst [vmem:[#allocation2 + $0x38] sm:$0x1] %v1121_v33  ;;  %v1354_v35 = vrot.slane %v1352_v16, 4  ;;  %v647_v38 = vmax.f32 %v14393_v17, 0.0  ;;  %v14465_v21 = vld [vmem:[%s18951_s3 + $0x40] sm:$0xff]  }
  0x81   : > { %v1345_v39 = vor.u32 %v1344_v31, %v1341_v30  ;;  %v1358_v40 = vshll.u32 %v1250_v34, 16  ;;  %v648_v41 = vmax.f32 %v616_v18, 0.0  ;;  %v578_v42 = vmul.f32 %v14284_v19, %v539_v28  ;;  %v540_v31 = vld [vmem:[%s14092_s26 + $0x68] sm:$0xff] }
  0x82   : > { %12598 = vmatprep.mubr.msk.bf16.mxu0 %vm1730_vm4, %v11218_v29  ;;  %v1355_v43 = vor.u32 %v1354_v35, %v1350_v32  ;;  %v837_v44 = vshrl.u32 %v11921_v36, 16  ;;  %v840_v45 = vshll.u32 %v11921_v36, 16  ;;  %v845_v46 = vshrl.u32 %v11922_v37, 16  ;;  %v14451_v52 = vld [vmem:[#allocation2 + $0x30] sm:$0xf] }
  0x83   : > { %12629 = vmatpush3.bf16.msra.mxu0 %v13603_v1  ;;  %v1346_v48 = vrot.slane %v1345_v39, 4  ;;  %v1360_v49 = vrot.slane %v1358_v40, 5  ;;  %v848_v17 = vshll.u32 %v11922_v37, 16  ;;  %v11923_v50 = vpack.c.bf16 %v647_v38, %v647_v38  ;;  %v1130_v36 = vld [vmem:[#allocation2 + $0x48] sm:$0xf] }
  0x84   : > { %12630 = vmatprep.subr.bf16.mxu0 %v13604_v26  ;;  %v1356_v51 = vrot.slane %v1355_v43, 4  ;;  %v839_v53 = vrot.slane %v837_v44, 7  ;;  %v847_v54 = vrot.slane %v845_v46, 7  ;;  %v11924_v55 = vpack.c.bf16 %v648_v41, %v648_v41 }
  0x85   : > { %v1351_v56 = vsel %vm14295_vm5, %v1346_v48, %v1350_v32  ;;  %v1363_v1 = vshrl.u32 %v14451_v52, 16  ;;  %v1366_v2 = vshll.u32 %v14451_v52, 16  ;;  %v854_v9 = vshrl.u32 %v11923_v50, 16  ;;  %v14459_v10 = vld [vmem:[#allocation2 + $0x34] sm:$0xf] }
  0x86   : > { %v1361_v57 = vsel %vm14295_vm5, %v1356_v51, %v1360_v49  ;;  %v842_v12 = vor.u32 %v840_v45, %v839_v53  ;;  %v843_v13 = vrot.slane %v839_v53, 4  ;;  %v850_v15 = vor.u32 %v848_v17, %v847_v54 }
  0x87   : > { %12631 = vmatpush3.bf16.msra.mxu0 %v13604_v26  ;;  %v1251_v11 = vld [vmem:[#allocation2 + $0x38] sm:$0x1]  ;;  %v11219_v59 = vcombine.low %v1351_v56, %v1361_v57  ;;  %v1365_v18 = vrot.slane %v1363_v1, 4  ;;  %v1368_v61 = vrot.slane %v1366_v2, 5  ;;  %v1372_v6 = vshll.u32 %v14459_v10, 16 }
  0x88   : > { %12632 = vmatprep.subr.bf16.mxu0 %v13605_v47  ;;  %v1376_v22 = vshrl.u32 %v14459_v10, 16  ;;  %v1382_v16 = vshll.u32 %v1251_v11, 16  ;;  %v851_v8 = vsel %vm14335_vm12, %v843_v13, %v850_v15  ;;  %v852_v33 = vrot.slane %v847_v54, 4  ;;  %v541_v15 = vld [vmem:[%s14092_s26 + $0x70] sm:$0xff] }
  0x89   : > { %12599 = vmatmul.mubr.msk.bf16.gmra.mrb[4].mxu0 %vm1730_vm4, %v11219_v59  ;;  %v1369_v26 = vor.u32 %v1368_v61, %v1365_v18  ;;  %v1374_v28 = vrot.slane %v1372_v6, 5  ;;  %v1124_v29 = vsel %vm14343_vm13, %v842_v12, %v1123_v3  ;;  %1126 = vst.msk [vmem:[#allocation2 + $0x40] sm:$0xf] %vm1089_vm6, %v851_v8  ;;  %v856_v30 = vrot.slane %v854_v9, 7  ;;  %v542_v59 = vld [vmem:[%s14092_s26 + $0x78] sm:$0xff] }
  0x8a   : > { %v1378_v32 = vrot.slane %v1376_v22, 4  ;;  %1125 = vst [vmem:[#allocation2 + $0x3c] sm:$0xf] %v1124_v29  ;;  %v1128_v34 = vsel %vm14327_vm11, %v852_v33, %v1127_v20  ;;  %v857_v35 = vshll.u32 %v11923_v50, 16  ;;  %v1384_v38 = vrot.slane %v1382_v16, 5 }
  0x8b   : > { %12633 = vmatpush3.bf16.msra.mxu0 %v13605_v47  ;;  %v1370_v37 = vrot.slane %v1369_v26, 4  ;;  %1129 = vst [vmem:[#allocation2 + $0x44] sm:$0x1] %v1128_v34  ;;  %v862_v39 = vshrl.u32 %v11924_v55, 16  ;;  %v865_v40 = vshll.u32 %v11924_v55, 16  ;;  %v579_v44 = vmul.f32 %v14284_v19, %v540_v31 }
  0x8c   : > { %12666 = vmatprep.subr.bf16.mxu0 %v14465_v21  ;;  %v1379_v41 = vor.u32 %v1378_v32, %v1374_v28  ;;  %v859_v43 = vor.u32 %v857_v35, %v856_v30  ;;  %v617_v45 = vadd.f32 %v14291_v23, %v578_v42  ;;  %v860_v48 = vrot.slane %v856_v30, 4  ;;  %v1134_v42 = vld [vmem:[#allocation2 + $0x50] sm:$0x1] }
  0x8d   : > { %v1375_v46 = vsel %vm14295_vm5, %v1370_v37, %v1374_v28  ;;  %v864_v49 = vrot.slane %v862_v39, 7  ;;  %v11253_v47 = vcombine.low %v14377_v62, %v14379_v0  ;;  %v618_v51 = vadd.f32 %v14291_v23, %v579_v44  ;;  %v13610_v62 = vld [vmem:[%s18951_s3 + $0x50] sm:$0xff]  }
  0x8e   : > { %v1380_v17 = vrot.slane %v1379_v41, 4  ;;  %v1131_v50 = vsel %vm14343_vm13, %v859_v43, %v1130_v36  ;;  %v649_v53 = vmax.f32 %v617_v45, 0.0  ;;  %v580_v41 = vmul.f32 %v14284_v19, %v541_v15 }
  0x8f   : > { %v867_v54 = vor.u32 %v865_v40, %v864_v49  ;;  %v869_v55 = vrot.slane %v864_v49, 4  ;;  %1132 = vst [vmem:[#allocation2 + $0x48] sm:$0xf] %v1131_v50  ;;  %v650_v2 = vmax.f32 %v618_v51, 0.0  ;;  %v1137_v40 = vld [vmem:[#allocation2 + $0x54] sm:$0xf]  ;;  %v581_v43 = vmul.f32 %v14284_v19, %v542_v59 }
  0x90   : > { %v1385_v56 = vsel %vm14295_vm5, %v1380_v17, %v1384_v38  ;;  %v14489_v1 = vld [vmem:[#allocation2 + $0x40] sm:$0xf]  ;;  %v11925_v3 = vpack.c.bf16 %v649_v53, %v649_v53  ;;  %v1141_v53 = vld [vmem:[#allocation2 + $0x5c] sm:$0x1]  ;;  %vm6535_vm1 = vcmask 1043456   ;;  %vm6541_vm2 = vcmask 1040384  }
  0x91   : > { %v11220_v9 = vcombine.low %v1375_v46, %v1385_v56  ;;  %v14491_v57 = vld [vmem:[#allocation2 + $0x3c] sm:$0xf]  ;;  %v1396_v11 = vshll.u32 %v14489_v1, 16  ;;  %v1400_v12 = vshrl.u32 %v14489_v1, 16  ;;  %v868_v13 = vsel %vm14335_vm12, %v860_v48, %v867_v54  ;;  %v543_v54 = vld [vmem:[%s14092_s26 + $0x80] sm:$0xff]  ;;  %vm16232_vm3 = vmand %vm6535_vm1, %vm1090_vm10 }
  0x92   : > { %v1252_v18 = vld [vmem:[#allocation2 + $0x44] sm:$0x1]  ;;  %v1387_v61 = vshrl.u32 %v14491_v57, 16  ;;  %v1390_v6 = vshll.u32 %v14491_v57, 16  ;;  %1133 = vst.msk [vmem:[#allocation2 + $0x4c] sm:$0xf] %vm1089_vm6, %v868_v13  ;;  %v1135_v20 = vsel %vm14327_vm11, %v869_v55, %v1134_v42  ;;  %v11926_v22 = vpack.c.bf16 %v650_v2, %v650_v2 }
  0x93   : > { %12602 = vmatprep.mubr.msk.bf16.mxu0 %vm1730_vm4, %v11220_v9  ;;  %v1398_v16 = vrot.slane %v1396_v11, 5  ;;  %v1402_v8 = vrot.slane %v1400_v12, 4  ;;  %v1406_v33 = vshll.u32 %v1252_v18, 16  ;;  %1136 = vst [vmem:[#allocation2 + $0x50] sm:$0x1] %v1135_v20  ;;  %v871_v26 = vshrl.u32 %v11925_v3, 16 }
  0x94   : > { %v1389_v28 = vrot.slane %v1387_v61, 4  ;;  %v1392_v29 = vrot.slane %v1390_v6, 5  ;;  %v874_v30 = vshll.u32 %v11925_v3, 16  ;;  %v879_v31 = vshrl.u32 %v11926_v22, 16  ;;  %v544_v9 = vld [vmem:[%s14092_s26 + $0x88] sm:$0xff]  ;;  %v545_v11 = vld [vmem:[%s14092_s26 + $0x90] sm:$0xff] }
  0x95   : > { %v1403_v32 = vor.u32 %v1402_v8, %v1398_v16  ;;  %v1408_v34 = vrot.slane %v1406_v33, 5  ;;  %v873_v35 = vrot.slane %v871_v26, 7  ;;  %v882_v36 = vshll.u32 %v11926_v22, 16 }
  0x96   : > { %v1393_v37 = vor.u32 %v1392_v29, %v1389_v28  ;;  %v14505_v38 = vld [vmem:[#allocation2 + $0x48] sm:$0xf]  ;;  %v881_v39 = vrot.slane %v879_v31, 7  ;;  %v11252_v26 = vcombine.low %v14268_v4, %v14270_v5  ;;  %v619_v28 = vadd.f32 %v14291_v23, %v580_v41 }
  0x97   : > { %v1404_v44 = vrot.slane %v1403_v32, 4  ;;  %v1411_v45 = vshrl.u32 %v14505_v38, 16  ;;  %v1414_v46 = vshll.u32 %v14505_v38, 16  ;;  %v876_v48 = vor.u32 %v874_v30, %v873_v35 }
  0x98   : > { %v1394_v49 = vrot.slane %v1393_v37, 4  ;;  %v877_v17 = vrot.slane %v873_v35, 4  ;;  %v884_v50 = vor.u32 %v882_v36, %v881_v39  ;;  %v886_v51 = vrot.slane %v881_v39, 4 }
  0x99   : > { %v1409_v55 = vsel %vm14295_vm5, %v1404_v44, %v1408_v34  ;;  %v14514_v42 = vld [vmem:[#allocation2 + $0x4c] sm:$0xf]  ;;  %v1413_v56 = vrot.slane %v1411_v45, 4  ;;  %v1416_v2 = vrot.slane %v1414_v46, 5  ;;  %v1138_v3 = vsel %vm14343_vm13, %v876_v48, %v1137_v40 }
  0x9a   : > { %v1399_v12 = vsel %vm14295_vm5, %v1394_v49, %v1398_v16  ;;  %v14522_v13 = vld [vmem:[#allocation2 + $0x50] sm:$0x1]  ;;  %v1420_v15 = vshll.u32 %v14514_v42, 16  ;;  %v1424_v59 = vshrl.u32 %v14514_v42, 16  ;;  %v885_v18 = vsel %vm14335_vm12, %v877_v17, %v884_v50  ;;  %1139 = vst [vmem:[#allocation2 + $0x54] sm:$0xf] %v1138_v3 }
  0x9b   : > { %v11221_v61 = vcombine.low %v1399_v12, %v1409_v55  ;;  %v1417_v6 = vor.u32 %v1416_v2, %v1413_v56  ;;  %v1430_v20 = vshll.u32 %v14522_v13, 16  ;;  %1140 = vst.msk [vmem:[#allocation2 + $0x58] sm:$0xf] %vm1089_vm6, %v885_v18  ;;  %v1142_v22 = vsel %vm14327_vm11, %v886_v51, %v1141_v53  ;;  %v546_v16 = vld [vmem:[%s14092_s26 + $0x98] sm:$0xff]  ;;  %v547_v49 = vld [vmem:[%s14092_s26 + $0xa0] sm:$0xff] }
  0x9c   : > { %v1422_v8 = vrot.slane %v1420_v15, 5  ;;  %v1426_v33 = vrot.slane %v1424_v59, 4  ;;  %1143 = vst [vmem:[#allocation2 + $0x5c] sm:$0x1] %v1142_v22  ;;  %v620_v31 = vadd.f32 %v14291_v23, %v581_v43  ;;  %v582_v32 = vmul.f32 %v14284_v19, %v543_v54 }
  0x9d   : > { %12603 = vmatmul.mubr.msk.bf16.gmra.mrb[8].mxu0 %vm1730_vm4, %v11221_v61  ;;  %v1418_v29 = vrot.slane %v1417_v6, 4  ;;  %v1432_v30 = vrot.slane %v1430_v20, 5  ;;  %v651_v35 = vmax.f32 %v619_v28, 0.0  ;;  %v583_v36 = vmul.f32 %v14284_v19, %v544_v9 }
  0x9e   : > { %v1427_v34 = vor.u32 %v1426_v33, %v1422_v8  ;;  %v584_v37 = vmul.f32 %v14284_v19, %v545_v11  ;;  %v11254_v39 = vcombine.low %v14395_v25, %v14397_v27  ;;  %v652_v40 = vmax.f32 %v620_v31, 0.0 }
  0x9f   : > { %v621_v41 = vadd.f32 %v14291_v23, %v582_v32  ;;  %v585_v44 = vmul.f32 %v14284_v19, %v546_v16  ;;  %v1423_v45 = vsel %vm14295_vm5, %v1418_v29, %v1422_v8  ;;  %v11927_v46 = vpack.c.bf16 %v651_v35, %v651_v35  ;;  %v1144_v16 = vld [vmem:[#allocation2 + $0x60] sm:$0xf] }
  0xa0   : > { %v1428_v43 = vrot.slane %v1427_v34, 4  ;;  %v622_v48 = vadd.f32 %v14291_v23, %v583_v36  ;;  %v11928_v50 = vpack.c.bf16 %v652_v40, %v652_v40  ;;  %v623_v53 = vadd.f32 %v14291_v23, %v584_v37 }
  0xa1   : > { %v14549_v17 = vld [vmem:[#allocation2 + $0x54] sm:$0xf]  ;;  %v653_v51 = vmax.f32 %v621_v41, 0.0  ;;  %v624_v54 = vadd.f32 %v14291_v23, %v585_v44  ;;  %v888_v9 = vshrl.u32 %v11927_v46, 16  ;;  %v586_v18 = vmul.f32 %v14284_v19, %v547_v49 }
  0xa2   : > { %v1433_v55 = vsel %vm14295_vm5, %v1428_v43, %v1432_v30  ;;  %v14555_v56 = vld [vmem:[#allocation2 + $0x58] sm:$0xf]  ;;  %v1435_v2 = vshrl.u32 %v14549_v17, 16  ;;  %v1438_v3 = vshll.u32 %v14549_v17, 16  ;;  %v891_v28 = vshll.u32 %v11927_v46, 16 }
  0xa3   : > { %v11222_v11 = vcombine.low %v1423_v45, %v1433_v55  ;;  %v14559_v12 = vld [vmem:[#allocation2 + $0x5c] sm:$0x1]  ;;  %v1444_v15 = vshll.u32 %v14555_v56, 16  ;;  %v1448_v59 = vshrl.u32 %v14555_v56, 16  ;;  %v890_v22 = vrot.slane %v888_v9, 7 }
  0xa4   : > { %v1437_v61 = vrot.slane %v1435_v2, 4  ;;  %v1440_v6 = vrot.slane %v1438_v3, 5  ;;  %v1454_v20 = vshll.u32 %v14559_v12, 16  ;;  %v896_v29 = vshrl.u32 %v11928_v50, 16  ;;  %v548_v3 = vld [vmem:[%s14092_s26 + $0xa8] sm:$0xff] }
  0xa5   : > { %12606 = vmatprep.mubr.msk.bf16.mxu0 %vm1730_vm4, %v11222_v11  ;;  %v1446_v8 = vrot.slane %v1444_v15, 5  ;;  %v1450_v33 = vrot.slane %v1448_v59, 4  ;;  %v894_v32 = vrot.slane %v890_v22, 4  ;;  %v899_v34 = vshll.u32 %v11928_v50, 16  ;;  %v1151_v59 = vld [vmem:[#allocation2 + $0x6c] sm:$0xf] }
  0xa6   : > { %v1441_v30 = vor.u32 %v1440_v6, %v1437_v61  ;;  %v1456_v31 = vrot.slane %v1454_v20, 5  ;;  %v893_v36 = vor.u32 %v891_v28, %v890_v22  ;;  %v14566_v37 = vrot.slane %v896_v29, 7 }
  0xa7   : > { %v1451_v35 = vor.u32 %v1450_v33, %v1446_v8  ;;  %v654_v40 = vmax.f32 %v622_v48, 0.0  ;;  %v11929_v44 = vpack.c.bf16 %v653_v51, %v653_v51  ;;  %v655_v45 = vmax.f32 %v623_v53, 0.0  ;;  %v1158_v33 = vld [vmem:[#allocation2 + $0x78] sm:$0xf] }
  0xa8   : > { %v1442_v41 = vrot.slane %v1441_v30, 4  ;;  %v656_v43 = vmax.f32 %v624_v54, 0.0  ;;  %v901_v55 = vor.u32 %v899_v34, %v14566_v37  ;;  %v1145_v46 = vsel %vm14343_vm13, %v893_v36, %v1144_v16 }
  0xa9   : > { %v1452_v49 = vrot.slane %v1451_v35, 4  ;;  %v11930_v2 = vpack.c.bf16 %v654_v40, %v654_v40  ;;  %1146 = vst [vmem:[#allocation2 + $0x60] sm:$0xf] %v1145_v46  ;;  %v905_v9 = vshrl.u32 %v11929_v44, 16  ;;  %v908_v11 = vshll.u32 %v11929_v44, 16  ;;  %v549_v35 = vld [vmem:[%s14092_s26 + $0xb0] sm:$0xff] }
  0xaa   : > { %v1447_v50 = vsel %vm14295_vm5, %v1442_v41, %v1446_v8  ;;  %v11931_v15 = vpack.c.bf16 %v655_v45, %v655_v45  ;;  %v902_v51 = vsel %vm14335_vm12, %v894_v32, %v901_v55  ;;  %v11932_v20 = vpack.c.bf16 %v656_v43, %v656_v43  ;;  %v551_v44 = vld [vmem:[%s14092_s26 + $0xc0] sm:$0xff] }
  0xab   : > { %v1457_v48 = vsel %vm14295_vm5, %v1452_v49, %v1456_v31  ;;  %v913_v53 = vshrl.u32 %v11930_v2, 16  ;;  %v916_v54 = vshll.u32 %v11930_v2, 16  ;;  %1147 = vst.msk [vmem:[#allocation2 + $0x64] sm:$0xf] %vm1089_vm6, %v902_v51  ;;  %v907_v6 = vrot.slane %v905_v9, 7  ;;  %v552_v2 = vld [vmem:[%s14092_s26 + $0xc8] sm:$0xff] }
  0xac   : > { %v11223_v61 = vcombine.low %v1447_v50, %v1457_v48  ;;  %v922_v22 = vshrl.u32 %v11931_v15, 16  ;;  %v925_v8 = vshll.u32 %v11931_v15, 16  ;;  %v587_v28 = vmul.f32 %v14284_v19, %v548_v3  ;;  %v13607_v15 = vld [vmem:[%s18951_s3 + $0x48] sm:$0xff]  }
  0xad   : > { %v14579_v16 = vrot.slane %v913_v53, 7  ;;  %v625_v29 = vadd.f32 %v14291_v23, %v586_v18  ;;  %v910_v30 = vor.u32 %v908_v11, %v907_v6  ;;  %v911_v31 = vrot.slane %v907_v6, 4  ;;  %v550_v18 = vld [vmem:[%s14092_s26 + $0xb8] sm:$0xff]  ;;  %v1165_v6 = vld [vmem:[#allocation2 + $0x84] sm:$0xf] }
  0xae   : > { %12607 = vmatmul.mubr.msk.bf16.gmra.mrb[12].mxu0 %vm1730_vm4, %v11223_v61  ;;  %v924_v32 = vrot.slane %v922_v22, 7  ;;  %v930_v34 = vshrl.u32 %v11932_v20, 16  ;;  %v933_v40 = vshll.u32 %v11932_v20, 16  ;;  %v626_v19 = vadd.f32 %v14291_v23, %v587_v28  ;;  %v14602_v23 = vld [vmem:[%s19052_s1] ss:$0 sm:$0xff]  ;;  %s11112_s1 = sshll.u32 %s14094_s28, 4  ;;  %s18895_s1 = int_to_ptr.vmem [resolvable:$true] %s11112_s1 }
  0xaf   : > { %12634 = vmatprep.mubr.msk.bf16.mxu0 %vm1730_vm4, %v11252_v26  ;;  %v918_v36 = vor.u32 %v916_v54, %v14579_v16  ;;  %v657_v41 = vmax.f32 %v625_v29, 0.0  ;;  %v1152_v45 = vsel %vm14343_vm13, %v910_v30, %v1151_v59  ;;  %v588_v46 = vmul.f32 %v14602_v23, %v549_v35  ;;  %v14618_v54 = vld [vmem:[%s19053_s2] ss:$0 sm:$0xff]  ;;  %s13902_s19 = scalar_lea.vmem %s18895_s1, 4096  ;;  %p13909_p1 = scmp.lt.s32.totalorder %s18895_s1, %s13907_s29 }
  0xb0   : > { %v927_v43 = vor.u32 %v925_v8, %v924_v32  ;;  %v928_v49 = vrot.slane %v924_v32, 4  ;;  %v14595_v55 = vrot.slane %v930_v34, 7  ;;  %1153 = vst [vmem:[#allocation2 + $0x6c] sm:$0xf] %v1152_v45  ;;  %v658_v5 = vmax.f32 %v626_v19, 0.0  ;;  %p13903_p12 = scmp.ne.s32.totalorder %s18895_s1, %s13902_s19  ;;  %p13910_p2 = scmp.lt.s32.totalorder %s13908_s16, %s13902_s19 }
  0xb1   : > { %v919_v4 = vsel %vm14335_vm12, %v911_v31, %v918_v36  ;;  %v11933_v26 = vpack.c.bf16 %v657_v41, %v657_v41  ;;  %v589_v9 = vmul.f32 %v14602_v23, %v550_v18  ;;  %v590_v11 = vmul.f32 %v14602_v23, %v551_v44 }
  0xb2   : > { %1154 = vst.msk [vmem:[#allocation2 + $0x70] sm:$0xf] %vm1089_vm6, %v919_v4  ;;  %v935_v3 = vor.u32 %v933_v40, %v14595_v55  ;;  %v1159_v50 = vsel %vm14343_vm13, %v927_v43, %v1158_v33  ;;  %v11934_v48 = vpack.c.bf16 %v658_v5, %v658_v5  ;;  %v627_v59 = vadd.f32 %v14618_v54, %v588_v46  ;;  %v553_v40 = vld [vmem:[%s14092_s26 + $0xd0] sm:$0xff]  ;;  %p13904_p13 = pnand %p13903_p12, %p14074_p5  ;;  %p13911_p3 = por %p13910_p2, %p13909_p1 }
  0xb3   : > { %1160 = vst [vmem:[#allocation2 + $0x78] sm:$0xf] %v1159_v50  ;;  %v939_v51 = vshrl.u32 %v11933_v26, 16  ;;  %v942_v53 = vshll.u32 %v11933_v26, 16  ;;  %v628_v20 = vadd.f32 %v14618_v54, %v589_v9  ;;  %v591_v22 = vmul.f32 %v14602_v23, %v552_v2  ;;  %v13615_v26 = vld [vmem:[%s18951_s3 + $0x58] sm:$0xff]  }
  0xb4   : > { %v936_v61 = vsel %vm14335_vm12, %v928_v49, %v935_v3  ;;  %v947_v33 = vshrl.u32 %v11934_v48, 16  ;;  %v950_v28 = vshll.u32 %v11934_v48, 16  ;;  %v659_v29 = vmax.f32 %v627_v59, 0.0  ;;  %v14669_v48 = vld [vmem:[%s18951_s3 + $0x60] sm:$0xff]   ;;  %p13905_p0 = pneg %p13904_p13 }
  0xb5   : > { %1161 = vst.msk [vmem:[#allocation2 + $0x7c] sm:$0xf] %vm1089_vm6, %v936_v61  ;;  %v941_v8 = vrot.slane %v939_v51, 7  ;;  %v660_v30 = vmax.f32 %v628_v20, 0.0  ;;  %v629_v31 = vadd.f32 %v14618_v54, %v590_v11  ;;  %v630_v36 = vadd.f32 %v14618_v54, %v591_v22 }
  0xb6   : > { %12635 = vmatmul.mubr.msk.bf16.vlgmr.msra.gmra.mrb[0].mxu0 %vm1730_vm4, %v11253_v47  ;;  %v14636_v34 = vrot.slane %v947_v33, 7  ;;  %v11935_v35 = vpack.c.bf16 %v659_v29, %v659_v29  ;;  %v11255_v27 = vcombine.low %v14419_v14, %v14421_v60  ;;  %v11256_v44 = vcombine.low %v14451_v52, %v14459_v10  ;;  %v1172_v52 = vld [vmem:[#allocation2 + $0x90] sm:$0xf]  ;;  %p13912_p4 = pnand %p13911_p3, %p13905_p0 }
  0xb7   : > { %12667 = vmatpush3.bf16.msra.mxu0 %v14465_v21  ;;  %12638 = vmatprep.mubr.msk.bf16.mxu0 %vm1730_vm4, %v11254_v39  ;;  %v944_v32 = vor.u32 %v942_v53, %v941_v8  ;;  %v945_v0 = vrot.slane %v941_v8, 4  ;;  %v11936_v47 = vpack.c.bf16 %v660_v30, %v660_v30  ;;  %v554_v21 = vld [vmem:[%s14092_s26 + $0xd8] sm:$0xff]  ;;  %v661_v18 = vmax.f32 %v629_v31, 0.0 }
  0xb8   : > { %12668 = vmatprep.subr.bf16.mxu0 %v13607_v15  ;;  %v952_v19 = vor.u32 %v950_v28, %v14636_v34  ;;  %v956_v39 = vshrl.u32 %v11935_v35, 16  ;;  %v959_v41 = vshll.u32 %v11935_v35, 16  ;;  %v662_v45 = vmax.f32 %v630_v36, 0.0  ;;  %v1179_v31 = vld [vmem:[#allocation2 + $0x9c] sm:$0xf] }
  0xb9   : > { %v1166_v25 = vsel %vm14343_vm13, %v944_v32, %v1165_v6  ;;  %v592_v43 = vmul.f32 %v14602_v23, %v553_v40  ;;  %v593_v49 = vmul.f32 %v14602_v23, %v554_v21  ;;  %v964_v14 = vshrl.u32 %v11936_v47, 16 }
  0xba   : > { %1167 = vst [vmem:[#allocation2 + $0x84] sm:$0xf] %v1166_v25  ;;  %v953_v4 = vsel %vm14335_vm12, %v945_v0, %v952_v19  ;;  %v958_v5 = vrot.slane %v956_v39, 7  ;;  %v967_v60 = vshll.u32 %v11936_v47, 16  ;;  %v11937_v3 = vpack.c.bf16 %v661_v18, %v661_v18 }
  0xbb   : > { %12669 = vmatpush3.bf16.msra.mxu0 %v13607_v15  ;;  %1168 = vst.msk [vmem:[#allocation2 + $0x88] sm:$0xf] %vm1089_vm6, %v953_v4  ;;  %v14660_v2 = vrot.slane %v964_v14, 7  ;;  %v11938_v50 = vpack.c.bf16 %v662_v45, %v662_v45  ;;  %v631_v9 = vadd.f32 %v14618_v54, %v592_v43  ;;  %v632_v11 = vadd.f32 %v14618_v54, %v593_v49  ;;  %v555_v15 = vld [vmem:[%s14092_s26 + $0xe0] sm:$0xff] }
  0xbc   : > { %12670 = vmatprep.subr.bf16.mxu0 %v13610_v62  ;;  %v961_v10 = vor.u32 %v959_v41, %v958_v5  ;;  %v962_v46 = vrot.slane %v958_v5, 4  ;;  %v973_v59 = vshrl.u32 %v11937_v3, 16  ;;  %v976_v61 = vshll.u32 %v11937_v3, 16  ;;  %v1223_v43 = vld [vmem:[#allocation2 + $0x60] sm:$0xf] }
  0xbd   : > { %v969_v51 = vor.u32 %v967_v60, %v14660_v2  ;;  %v981_v6 = vshrl.u32 %v11938_v50, 16  ;;  %v984_v20 = vshll.u32 %v11938_v50, 16  ;;  %v663_v22 = vmax.f32 %v631_v9, 0.0  ;;  %v14695_v49 = vld [vmem:[#allocation2 + $0x64] sm:$0xf] }
  0xbe   : > { %12639 = vmatmul.mubr.msk.bf16.gmra.mrb[4].mxu0 %vm1730_vm4, %v11255_v27  ;;  %v1173_v53 = vsel %vm14343_vm13, %v961_v10, %v1172_v52  ;;  %v664_v8 = vmax.f32 %v632_v11, 0.0  ;;  %v11257_v33 = vcombine.low %v14491_v57, %v14489_v1  ;;  %v11258_v28 = vcombine.low %v14505_v38, %v14514_v42  ;;  %v556_v1 = vld [vmem:[%s14092_s26 + $0xe8] sm:$0xff] }
  0xbf   : > { %12642 = vmatprep.mubr.msk.bf16.mxu0 %vm1730_vm4, %v11256_v44  ;;  %12671 = vmatpush3.bf16.msra.mxu0 %v13610_v62  ;;  %1174 = vst [vmem:[#allocation2 + $0x90] sm:$0xf] %v1173_v53  ;;  %v970_v29 = vsel %vm14335_vm12, %v962_v46, %v969_v51  ;;  %v975_v30 = vrot.slane %v973_v59, 7  ;;  %v14681_v32 = vrot.slane %v981_v6, 7  ;;  %v11939_v35 = vpack.c.bf16 %v663_v22, %v663_v22  ;;  %v13805_v44 = vld [vmem:[#allocation2 + $0x10] sm:$0xf] }
  0xc0   : > { %12672 = vmatprep.subr.bf16.mxu0 %v13615_v26  ;;  %1175 = vst.msk [vmem:[#allocation2 + $0x94] sm:$0xf] %vm1089_vm6, %v970_v29  ;;  %v11940_v36 = vpack.c.bf16 %v664_v8, %v664_v8  ;;  %v594_v62 = vmul.f32 %v14602_v23, %v555_v15  ;;  %v595_v41 = vmul.f32 %v14602_v23, %v556_v1  ;;  %v2313_v45 = vrot.slane %v13805_v44, 5  ;;  %v2254_v3 = vld [vmem:[#allocation2 + $0xc] sm:$0xe] }
  0xc1   : > { %v978_v0 = vor.u32 %v976_v61, %v975_v30  ;;  %v979_v47 = vrot.slane %v975_v30, 4  ;;  %v986_v57 = vor.u32 %v984_v20, %v14681_v32  ;;  %v990_v38 = vshrl.u32 %v11939_v35, 16  ;;  %v13806_v51 = vld [vmem:[#allocation2 + $0x14] sm:$0x1]  ;;  %v1225_v59 = vld [vmem:[#allocation2 + $0x6c] sm:$0xf] }
  0xc2   : > { %v993_v21 = vshll.u32 %v11939_v35, 16  ;;  %v998_v19 = vshrl.u32 %v11940_v36, 16  ;;  %v1001_v25 = vshll.u32 %v11940_v36, 16  ;;  %v633_v18 = vadd.f32 %v14618_v54, %v594_v62  ;;  %v14716_v20 = vld [vmem:[#allocation2 + $0x70] sm:$0xf] }
  0xc3   : > { %12673 = vmatpush3.bf16.msra.mxu0 %v13615_v26  ;;  %v1180_v40 = vsel %vm14343_vm13, %v978_v0, %v1179_v31  ;;  %v987_v27 = vsel %vm14335_vm12, %v979_v47, %v986_v57  ;;  %v992_v39 = vrot.slane %v990_v38, 7  ;;  %v11259_v5 = vcombine.low %v14549_v17, %v14555_v56  ;;  %v1186_v26 = vld [vmem:[#allocation2 + $0xa8] sm:$0xf]  ;;  %v1227_v29 = vld [vmem:[#allocation2 + $0x78] sm:$0xf] }
  0xc4   : > { %12706 = vmatprep.subr.bf16.mxu0 %v14669_v48  ;;  %1181 = vst [vmem:[#allocation2 + $0x9c] sm:$0xf] %v1180_v40  ;;  %1182 = vst.msk [vmem:[#allocation2 + $0xa0] sm:$0xf] %vm1089_vm6, %v987_v27  ;;  %v14698_v4 = vrot.slane %v998_v19, 7  ;;  %v634_v10 = vadd.f32 %v14618_v54, %v595_v41  ;;  %v665_v46 = vmax.f32 %v633_v18, 0.0  ;;  %v11260_v50 = vcombine.low %v1223_v43, %v14695_v49 }
  0xc5   : > { %v995_v14 = vor.u32 %v993_v21, %v992_v39  ;;  %v996_v60 = vrot.slane %v992_v39, 4  ;;  %v2316_v53 = vrot.slane %v13806_v51, 5  ;;  %v11289_v6 = vrot.slane %v2254_v3, 9  ;;  %v14719_v30 = vld [vmem:[#allocation2 + $0x7c] sm:$0xf] }
  0xc6   : > { %12643 = vmatmul.mubr.msk.bf16.gmra.mrb[8].mxu0 %vm1730_vm4, %v11257_v33  ;;  %v1003_v52 = vor.u32 %v1001_v25, %v14698_v4  ;;  %v666_v17 = vmax.f32 %v634_v10, 0.0  ;;  %v11941_v15 = vpack.c.bf16 %v665_v46, %v665_v46  ;;  %v11261_v62 = vcombine.low %v1225_v59, %v14716_v20  ;;  %v1193_v47 = vld [vmem:[#allocation2 + $0xb4] sm:$0xf]  ;;  %v2259_v41 = vld [vmem:[#allocation2 + $0x48] sm:$0xe] }
  0xc7   : > { %12646 = vmatprep.mubr.msk.bf16.mxu0 %vm1730_vm4, %v11258_v28  ;;  %v1187_v11 = vsel %vm14343_vm13, %v995_v14, %v1186_v26  ;;  %v2315_v28 = vrot.slane %v2313_v45, 4  ;;  %v14723_v36 = vsel %vm14711_vm0, %v11289_v6, %v2313_v45  ;;  %v11262_v21 = vcombine.low %v1227_v29, %v14719_v30  ;;  %v1229_v18 = vld [vmem:[#allocation2 + $0x84] sm:$0xf]  ;;  %v14742_v44 = vld [vmem:[#allocation2 + $0x88] sm:$0xf] }
  0xc8   : > { %v1004_v9 = vsel %vm14335_vm12, %v996_v60, %v1003_v52  ;;  %1188 = vst [vmem:[#allocation2 + $0xa8] sm:$0xf] %v1187_v11  ;;  %v11942_v22 = vpack.c.bf16 %v666_v17, %v666_v17  ;;  %v1007_v8 = vshrl.u32 %v11941_v15, 16  ;;  %v1010_v33 = vshll.u32 %v11941_v15, 16  ;;  %v1231_v45 = vld [vmem:[#allocation2 + $0x90] sm:$0xf] }
  0xc9   : > { %1189 = vst.msk [vmem:[#allocation2 + $0xac] sm:$0xf] %vm1089_vm6, %v1004_v9  ;;  %v14730_v40 = vsel %vm14711_vm0, %v2315_v28, %v2316_v53  ;;  %v14745_v43 = vld [vmem:[#allocation2 + $0x94] sm:$0xf]  ;;  %v11263_v60 = vcombine.low %v1229_v18, %v14742_v44  ;;  %v2348_v26 = vrot.slane %v14514_v42, 5  ;;  %v2351_v10 = vrot.slane %v14522_v13, 5 }
  0xca   : > { %v1009_v31 = vrot.slane %v1007_v8, 7  ;;  %v1015_v35 = vshrl.u32 %v11942_v22, 16  ;;  %v1018_v0 = vshll.u32 %v11942_v22, 16  ;;  %v11305_v19 = vcombine.low %v14723_v36, %v14730_v40  ;;  %v2260_v14 = vld [vmem:[#allocation2 + $0x54] sm:$0xe] }
  0xcb   : > { %v11264_v52 = vcombine.low %v1231_v45, %v14745_v43  ;;  %v2350_v46 = vrot.slane %v2348_v26, 4  ;;  %v11295_v3 = vrot.slane %v2260_v14, 9  ;;  %v1148_v11 = vld [vmem:[#allocation2 + $0x68] sm:$0x1]  ;;  %v13807_v17 = vld [vmem:[#allocation2 + $0x4] sm:$0xf] }
  0xcc   : > { %v1012_v1 = vor.u32 %v1010_v33, %v1009_v31  ;;  %v1013_v57 = vrot.slane %v1009_v31, 4  ;;  %v14726_v38 = vrot.slane %v1015_v35, 7  ;;  %v2306_v15 = vrot.slane %v13807_v17, 5  ;;  %v1155_v53 = vld [vmem:[#allocation2 + $0x74] sm:$0x1] }
  0xcd   : > { %v14759_v42 = vsel %vm14711_vm0, %v2350_v46, %v2351_v10  ;;  %v1233_v13 = vld [vmem:[#allocation2 + $0x9c] sm:$0xf]  ;;  %v14762_v59 = vld [vmem:[#allocation2 + $0xa0] sm:$0xf]  ;;  %v2358_v28 = vrot.slane %v14559_v12, 5  ;;  %v903_v29 = vrot.slane %v14566_v37, 4 }
  0xce   : > { %12647 = vmatmul.mubr.msk.bf16.gmra.mrb[12].mxu0 %vm1730_vm4, %v11259_v5  ;;  %v1020_v25 = vor.u32 %v1018_v0, %v14726_v38  ;;  %v1194_v27 = vsel %vm14343_vm13, %v1012_v1, %v1193_v47  ;;  %v11294_v5 = vrot.slane %v2259_v41, 9  ;;  %v2253_v6 = vld [vmem:[#allocation2] sm:$0xe]  ;;  %v13808_v31 = vld [vmem:[#allocation2 + $0x8] sm:$0x1]  ;;  %v11265_v47 = vcombine.low %v1233_v13, %v14762_v59 }
  0xcf   : > { %12650 = vmatprep.mubr.msk.bf16.mxu0 %vm1730_vm4, %v11260_v50  ;;  %1195 = vst [vmem:[#allocation2 + $0xb4] sm:$0xf] %v1194_v27  ;;  %v2355_v50 = vrot.slane %v14555_v56, 5  ;;  %v1235_v56 = vld [vmem:[#allocation2 + $0xa8] sm:$0xf]  ;;  %v2309_v35 = vrot.slane %v13808_v31, 5 }
  0xd0   : > { %v1021_v39 = vsel %vm14335_vm12, %v1013_v57, %v1020_v25  ;;  %v14754_v9 = vsel %vm14711_vm0, %v11294_v5, %v2348_v26  ;;  %v14764_v22 = vld [vmem:[#allocation2 + $0xac] sm:$0xf]  ;;  %v1162_v0 = vld [vmem:[#allocation2 + $0x80] sm:$0x1]  ;;  %v1149_v57 = vsel %vm14327_vm11, %v903_v29, %v1148_v11  ;;  %v1176_v27 = vld [vmem:[#allocation2 + $0x98] sm:$0x1] }
  0xd1   : > { %1196 = vst.msk [vmem:[#allocation2 + $0xb8] sm:$0xf] %vm1089_vm6, %v1021_v39  ;;  %v2357_v51 = vrot.slane %v2355_v50, 4  ;;  %v11310_v8 = vcombine.low %v14754_v9, %v14759_v42  ;;  %v14770_v33 = vsel %vm14711_vm0, %v11295_v3, %v2355_v50  ;;  %v11266_v12 = vcombine.low %v1235_v56, %v14764_v22  ;;  %1150 = vst [vmem:[#allocation2 + $0x68] sm:$0x1] %v1149_v57  ;;  %v558_v29 = vld [vmem:[%s14092_s26 + $0xf8] sm:$0xff] }
  0xd2   : > { %v1169_v25 = vld [vmem:[#allocation2 + $0x8c] sm:$0x1]  ;;  %v11288_v39 = vrot.slane %v2253_v6, 9  ;;  %v2308_v41 = vrot.slane %v2306_v15, 4  ;;  %v971_v45 = vrot.slane %v14660_v2, 4  ;;  %v988_v3 = vrot.slane %v14681_v32, 4 }
  0xd3   : > { %v14778_v1 = vsel %vm14711_vm0, %v2357_v51, %v2358_v28  ;;  %v1183_v14 = vld [vmem:[#allocation2 + $0xa4] sm:$0x1]  ;;  %v13809_v2 = vld [vmem:[#allocation2 + $0x1c] sm:$0xf]  ;;  %v1190_v50 = vld [vmem:[#allocation2 + $0xb0] sm:$0x1] }
  0xd4   : > { %v11311_v37 = vcombine.low %v14770_v33, %v14778_v1  ;;  %v2307_v10 = vsel %vm14711_vm0, %v11288_v39, %v2306_v15  ;;  %v2320_v46 = vrot.slane %v13809_v2, 5  ;;  %v2255_v11 = vld [vmem:[#allocation2 + $0x18] sm:$0xe]  ;;  %v1005_v17 = vrot.slane %v14698_v4, 4  ;;  %v1197_v51 = vld [vmem:[#allocation2 + $0xbc] sm:$0x1] }
  0xd5   : > { %v1184_v15 = vsel %vm14327_vm11, %v988_v3, %v1183_v14  ;;  %v1022_v13 = vrot.slane %v14726_v38, 4  ;;  %v557_v28 = vld [vmem:[%s14092_s26 + $0xf0] sm:$0xff]  ;;  %v11290_v32 = vrot.slane %v2255_v11, 9  ;;  %v13811_v57 = vld [vmem:[#allocation2 + $0x28] sm:$0xf]  ;;  %v2362_v7 = vrot.slane %v14695_v49, 5 }
  0xd6   : > { %12651 = vmatmul.mubr.msk.bf16.gmra.mrb[16].mxu0 %vm1730_vm4, %v11261_v62  ;;  %v920_v62 = vrot.slane %v14579_v16, 4  ;;  %v1237_v5 = vld [vmem:[#allocation2 + $0xb4] sm:$0xf]  ;;  %1185 = vst [vmem:[#allocation2 + $0xa4] sm:$0x1] %v1184_v15  ;;  %v1191_v6 = vsel %vm14327_vm11, %v1005_v17, %v1190_v50  ;;  %v2322_v31 = vrot.slane %v2320_v46, 4  ;;  %v596_v38 = vmul.f32 %v14602_v23, %v557_v28 }
  0xd7   : > { %12654 = vmatprep.mubr.msk.bf16.mxu0 %vm1730_vm4, %v11262_v21  ;;  %v937_v21 = vrot.slane %v14595_v55, 4  ;;  %v954_v55 = vrot.slane %v14636_v34, 4  ;;  %v2310_v34 = vsel %vm14711_vm0, %v2308_v41, %v2309_v35  ;;  %v13810_v35 = vld [vmem:[#allocation2 + $0x20] sm:$0x1]  ;;  %1192 = vst [vmem:[#allocation2 + $0xb0] sm:$0x1] %v1191_v6  ;;  %v1198_v4 = vsel %vm14327_vm11, %v1022_v13, %v1197_v51 }
  0xd8   : > { %v1156_v16 = vsel %vm14327_vm11, %v920_v62, %v1155_v53  ;;  %v11304_v56 = vcombine.low %v2307_v10, %v2310_v34  ;;  %v2323_v62 = vrot.slane %v13810_v35, 5  ;;  %1199 = vst [vmem:[#allocation2 + $0xbc] sm:$0x1] %v1198_v4  ;;  %v635_v39 = vadd.f32 %v14618_v54, %v596_v38  ;;  %v2257_v41 = vld [vmem:[#allocation2 + $0x30] sm:$0xe]  ;;  %v13620_v3 = vld [vmem:[%s18951_s3 + $0x68] sm:$0xff]  }
  0xd9   : > { %1157 = vst [vmem:[#allocation2 + $0x74] sm:$0x1] %v1156_v16  ;;  %v1163_v18 = vsel %vm14327_vm11, %v937_v21, %v1162_v0  ;;  %v1170_v26 = vsel %vm14327_vm11, %v954_v55, %v1169_v25  ;;  %v597_v0 = vmul.f32 %v14602_v23, %v558_v29  ;;  %v2327_v21 = vrot.slane %v13811_v57, 5  ;;  %v13812_v25 = vld [vmem:[#allocation2 + $0x34] sm:$0xf] }
  0xda   : > { %1164 = vst [vmem:[#allocation2 + $0x80] sm:$0x1] %v1163_v18  ;;  %1171 = vst [vmem:[#allocation2 + $0x8c] sm:$0x1] %v1170_v26  ;;  %v2324_v16 = vsel %vm14711_vm0, %v2322_v31, %v2323_v62  ;;  %v667_v23 = vmax.f32 %v635_v39, 0.0  ;;  %v11292_v10 = vrot.slane %v2257_v41, 9 }
  0xdb   : > { %v636_v18 = vadd.f32 %v14618_v54, %v597_v0  ;;  %v13813_v14 = vld [vmem:[#allocation2 + $0x2c] sm:$0x1]  ;;  %v13814_v2 = vld [vmem:[#allocation2 + $0x38] sm:$0x1]  ;;  %v2258_v11 = vld [vmem:[#allocation2 + $0x3c] sm:$0xe] }
  0xdc   : > { %v2330_v26 = vrot.slane %v13813_v14, 5  ;;  %v11943_v50 = vpack.c.bf16 %v667_v23, %v667_v23  ;;  %v13815_v54 = vld [vmem:[#allocation2 + $0x40] sm:$0xf]  ;;  %v11293_v35 = vrot.slane %v2258_v11, 9  ;;  %v2262_v49 = vld [vmem:[#allocation2 + $0x6c] sm:$0xe] }
  0xdd   : > { %v2341_v51 = vrot.slane %v13815_v54, 5  ;;  %v14867_v41 = vld [vmem:[%s18951_s3 + $0x80] sm:$0xff]  }
  0xde   : > { %12655 = vmatmul.mubr.msk.bf16.gmra.mrb[20].mxu0 %vm1730_vm4, %v11263_v60  ;;  %v14794_v60 = vld [vmem:[#allocation2 + $0xb8] sm:$0xf]  ;;  %v1027_v15 = vshll.u32 %v11943_v50, 16 }
  0xdf   : > { %12658 = vmatprep.mubr.msk.bf16.mxu0 %vm1730_vm4, %v11264_v52  ;;  %v1177_v52 = vsel %vm14327_vm11, %v971_v45, %v1176_v27  ;;  %v11267_v53 = vcombine.low %v1237_v5, %v14794_v60  ;;  %v2334_v27 = vrot.slane %v13812_v25, 5  ;;  %v2329_v5 = vrot.slane %v2327_v21, 4 }
  0xe0   : > { %1178 = vst [vmem:[#allocation2 + $0x98] sm:$0x1] %v1177_v52  ;;  %v668_v52 = vmax.f32 %v636_v18, 0.0  ;;  %v2343_v0 = vrot.slane %v2341_v51, 4  ;;  %v1255_v18 = vld [vmem:[#allocation2 + $0x68] sm:$0x1] }
  0xe1   : > { %v2336_v34 = vrot.slane %v2334_v27, 4  ;;  %v2335_v36 = vsel %vm14711_vm0, %v11292_v10, %v2334_v27  ;;  %v2342_v27 = vsel %vm14711_vm0, %v11293_v35, %v2341_v51  ;;  %v2365_v14 = vrot.slane %v1255_v18, 5  ;;  %v2264_v51 = vld [vmem:[#allocation2 + $0x84] sm:$0xe]  ;;  %v1258_v1 = vld [vmem:[#allocation2 + $0x8c] sm:$0x1] }
  0xe2   : > { %v11944_v17 = vpack.c.bf16 %v668_v52, %v668_v52  ;;  %v2263_v52 = vld [vmem:[#allocation2 + $0x78] sm:$0xe]  ;;  %v2376_v10 = vrot.slane %v14719_v30, 5 }
  0xe3   : > { %v11298_v42 = vrot.slane %v2263_v52, 9 }
  0xe4   : > { %v1032_v6 = vshrl.u32 %v11944_v17, 16  ;;  %v1035_v28 = vshll.u32 %v11944_v17, 16 }
  0xe6   : > { %12659 = vmatmul.mubr.msk.bf16.gmra.mrb[24].mxu0 %vm1730_vm4, %v11265_v47  ;;  %v2256_v47 = vld [vmem:[#allocation2 + $0x24] sm:$0xe]  ;;  %v14846_v29 = vrot.slane %v1032_v6, 7 }
  0xe7   : > { %12662 = vmatprep.mubr.msk.bf16.mxu0 %vm1730_vm4, %v11266_v12  ;;  %v2321_v12 = vsel %vm14711_vm0, %v11290_v32, %v2320_v46  ;;  %v11291_v55 = vrot.slane %v2256_v47, 9  ;;  %v2337_v46 = vrot.slane %v13814_v2, 5  ;;  %v1200_v32 = vld [vmem:[#allocation2 + $0xc0] sm:$0xf]  ;;  %v13816_v47 = vld [vmem:[#allocation2 + $0x44] sm:$0x1] }
  0xe8   : > { %v11306_v45 = vcombine.low %v2321_v12, %v2324_v16  ;;  %v2344_v57 = vrot.slane %v13816_v47, 5  ;;  %v13622_v12 = vld [vmem:[%s18951_s3 + $0x78] sm:$0xff]   ;;  %v2404_v47 = vrot.slane %v14764_v22, 5 }
  0xe9   : > { %v2328_v13 = vsel %vm14711_vm0, %v11291_v55, %v2327_v21  ;;  %v2338_v40 = vsel %vm14711_vm0, %v2336_v34, %v2337_v46  ;;  %v1037_v21 = vor.u32 %v1035_v28, %v14846_v29  ;;  %v2261_v55 = vld [vmem:[#allocation2 + $0x60] sm:$0xe]  ;;  %v1256_v46 = vld [vmem:[#allocation2 + $0x74] sm:$0x1] }
  0xea   : > { %v11308_v38 = vcombine.low %v2335_v36, %v2338_v40  ;;  %v2345_v39 = vsel %vm14711_vm0, %v2343_v0, %v2344_v57  ;;  %v2372_v9 = vrot.slane %v1256_v46, 5  ;;  %v11299_v36 = vrot.slane %v2264_v51, 9  ;;  %v1260_v0 = vld [vmem:[#allocation2 + $0xa4] sm:$0x1]  ;;  %v1261_v57 = vld [vmem:[#allocation2 + $0xb0] sm:$0x1] }
  0xeb   : > { %v11309_v23 = vcombine.low %v2342_v27, %v2345_v39  ;;  %v2400_v39 = vrot.slane %v1260_v0, 5  ;;  %v2406_v18 = vrot.slane %v2404_v47, 4  ;;  %v3128_v51 = vld [vmem:[#allocation2 + $0x24] sm:$0xf]  ;;  %v1039_v0 = vrot.slane %v14846_v29, 4 }
  0xee   : > { %12663 = vmatmul.mubr.msk.bf16.gmra.mrb[28].mxu0 %vm1730_vm4, %v11267_v53  ;;  %v1024_v53 = vshrl.u32 %v11943_v50, 16  ;;  %v11297_v50 = vrot.slane %v2262_v49, 9  ;;  %v1262_v49 = vld [vmem:[#allocation2 + $0xbc] sm:$0x1] }
  0xef   : > { %12674 = vmatprep.mubr.msk.bf16.mxu0 %vm1730_vm4, %v11304_v56  ;;  %v2331_v56 = vsel %vm14711_vm0, %v2329_v5, %v2330_v26  ;;  %v2364_v5 = vrot.slane %v2362_v7, 4  ;;  %v2369_v26 = vrot.slane %v14716_v20, 5 }
  0xf0   : > { %v11307_v31 = vcombine.low %v2328_v13, %v2331_v56  ;;  %v2377_v13 = vsel %vm14711_vm0, %v11298_v42, %v2376_v10  ;;  %v2265_v56 = vld [vmem:[#allocation2 + $0x90] sm:$0xe] }
  0xf1   : > { %v2366_v2 = vsel %vm14711_vm0, %v2364_v5, %v2365_v14  ;;  %v2371_v17 = vrot.slane %v2369_v26, 4  ;;  %v2370_v20 = vsel %vm14711_vm0, %v11297_v50, %v2369_v26  ;;  %v2268_v26 = vld [vmem:[#allocation2 + $0xb4] sm:$0xe]  ;;  %v2414_v50 = vrot.slane %v1262_v49, 5  ;;  %v1204_v49 = vld [vmem:[#allocation2 + $0xc8] sm:$0x1] }
  0xf2   : > { %v11303_v46 = vrot.slane %v2268_v26, 9 }
  0xf3   : > { %v2373_v30 = vsel %vm14711_vm0, %v2371_v17, %v2372_v9 }
  0xf4   : > { %v11313_v6 = vcombine.low %v2370_v20, %v2373_v30  ;;  %v3125_v20 = vld [vmem:[#allocation2 + $0x18] sm:$0xf]  ;;  %v14925_v30 = vld [vmem:[#allocation2 + $0x1c] sm:$0xf] }
  0xf6   : > { %12675 = vmatmul.mubr.msk.bf16.vlgmr.msra.gmra.mrb[0].mxu0 %vm1730_vm4, %v11305_v19  ;;  %v1026_v19 = vrot.slane %v1024_v53, 7  ;;  %v2383_v53 = vrot.slane %v14742_v44, 5  ;;  %v2266_v44 = vld [vmem:[#allocation2 + $0x9c] sm:$0xe] }
  0xf7   : > { %12707 = vmatpush3.bf16.msra.mxu0 %v14669_v48  ;;  %12678 = vmatprep.mubr.msk.bf16.mxu0 %vm1730_vm4, %v11306_v45  ;;  %v13621_v48 = vld [vmem:[%s18951_s3 + $0x70] sm:$0xff]   ;;  %v11296_v45 = vrot.slane %v2261_v55, 9  ;;  %v2407_v55 = vrot.slane %v1261_v57, 5 }
  0xf8   : > { %12708 = vmatprep.subr.bf16.mxu0 %v13620_v3  ;;  %v1029_v62 = vor.u32 %v1027_v15, %v1026_v19  ;;  %v1030_v4 = vrot.slane %v1026_v19, 4  ;;  %v2390_v15 = vrot.slane %v14745_v43, 5  ;;  %v2385_v40 = vrot.slane %v2383_v53, 4 }
  0xf9   : > { %v2363_v34 = vsel %vm14711_vm0, %v11296_v45, %v2362_v7  ;;  %v11300_v19 = vrot.slane %v2265_v56, 9  ;;  %v2384_v43 = vsel %vm14711_vm0, %v11299_v36, %v2383_v53  ;;  %v3122_v45 = vld [vmem:[#allocation2 + $0xc] sm:$0xf]  ;;  %v2408_v14 = vsel %vm14711_vm0, %v2406_v18, %v2407_v55  ;;  %v14949_v18 = vld [vmem:[#allocation2 + $0x38] sm:$0x1]  ;;  %v13626_v55 = vld [vmem:[#allocation2 + $0x24] sm:$0xff]  }
  0xfa   : > { %v1201_v16 = vsel %vm14343_vm13, %v1029_v62, %v1200_v32  ;;  %v1038_v25 = vsel %vm14335_vm12, %v1030_v4, %v1037_v21  ;;  %v11312_v11 = vcombine.low %v2363_v34, %v2366_v2  ;;  %v2392_v32 = vrot.slane %v2390_v15, 4  ;;  %v2267_v21 = vld [vmem:[#allocation2 + $0xa8] sm:$0xe]  ;;  %v13623_v53 = vld [vmem:[#allocation2 + $0xc] sm:$0xff]  }
  0xfb   : > { %12709 = vmatpush3.bf16.msra.mxu0 %v13620_v3  ;;  %1202 = vst [vmem:[#allocation2 + $0xc0] sm:$0xf] %v1201_v16  ;;  %1203 = vst.msk [vmem:[#allocation2 + $0xc4] sm:$0xf] %vm1089_vm6, %v1038_v25  ;;  %v1257_v3 = vld [vmem:[#allocation2 + $0x80] sm:$0x1]  ;;  %v2391_v4 = vsel %vm14711_vm0, %v11300_v19, %v2390_v15 }
  0xfc   : > { %12710 = vmatprep.subr.bf16.mxu0 %v13621_v48  ;;  %v2379_v54 = vrot.slane %v1257_v3, 5  ;;  %v2397_v62 = vrot.slane %v14762_v59, 5  ;;  %v11301_v25 = vrot.slane %v2266_v44, 9  ;;  %v11302_v7 = vrot.slane %v2267_v21, 9  ;;  %v14927_v15 = vld [vmem:[#allocation2 + $0x28] sm:$0xf]  ;;  %vm16239_vm6 = vmand %vm6541_vm2, %vm765_vm8 }
  0xfd   : > { %v3174_v34 = vshll.u32 %v3122_v45, 16  ;;  %v3204_v36 = vshll.u32 %v14925_v30, 16  ;;  %v3222_v19 = vshll.u32 %v3128_v51, 16 }
  0xfe   : > { %12679 = vmatmul.mubr.msk.bf16.gmra.mrb[4].mxu0 %vm1730_vm4, %v11307_v31  ;;  %v2399_v27 = vrot.slane %v2397_v62, 4  ;;  %v2398_v59 = vsel %vm14711_vm0, %v11301_v25, %v2397_v62  ;;  %v2405_v5 = vsel %vm14711_vm0, %v11302_v7, %v2404_v47 }
  0xff   : > { %12682 = vmatprep.mubr.msk.bf16.mxu0 %vm1730_vm4, %v11308_v38  ;;  %12711 = vmatpush3.bf16.msra.mxu0 %v13621_v48  ;;  %v2386_v48 = vrot.slane %v1258_v1, 5  ;;  %v11318_v2 = vcombine.low %v2405_v5, %v2408_v14  ;;  %v3176_v17 = vrot.slane %v3174_v34, 5  ;;  %v3131_v1 = vld [vmem:[#allocation2 + $0x30] sm:$0xf]  ;;  %v14947_v25 = vrot.slane %v3204_v36, 5 }
 0x100   : > { %12712 = vmatprep.subr.bf16.mxu0 %v13622_v12  ;;  %v2401_v22 = vsel %vm14711_vm0, %v2399_v27, %v2400_v39  ;;  %v3243_v44 = vshrl.u32 %v3131_v1, 16  ;;  %v3224_v7 = vrot.slane %v3222_v19, 5  ;;  %v3134_v34 = vld [vmem:[#allocation2 + $0x3c] sm:$0xf] }
 0x101   : > { %v2387_v35 = vsel %vm14711_vm0, %v2385_v40, %v2386_v48  ;;  %v11317_v52 = vcombine.low %v2398_v59, %v2401_v22  ;;  %v3208_v40 = vshrl.u32 %v14925_v30, 16  ;;  %v3219_v48 = vshrl.u32 %v3128_v51, 16 }
 0x102   : > { %v3270_v36 = vshll.u32 %v3134_v34, 16 }
 0x103   : > { %12713 = vmatpush3.bf16.msra.mxu0 %v13622_v12  ;;  %v11315_v12 = vcombine.low %v2384_v43, %v2387_v35  ;;  %v3246_v43 = vshll.u32 %v3131_v1, 16  ;;  %v3124_v35 = vld [vmem:[#allocation2 + $0x14] sm:$0x1]  ;;  %v3210_v27 = vrot.slane %v3208_v40, 4  ;;  %v3221_v39 = vrot.slane %v3219_v48, 4 }
 0x104   : > { %12746 = vmatprep.subr.bf16.mxu0 %v14867_v41  ;;  %v3190_v26 = vshll.u32 %v3124_v35, 16  ;;  %v13627_v1 = vld [vmem:[#allocation2 + $0x30] sm:$0xff]   ;;  %v3948_v35 = vrot.slane %v14925_v30, 5 }
 0x105   : > { %v3248_v29 = vrot.slane %v3246_v43, 5  ;;  %v3878_v30 = vld [vmem:[#allocation2 + $0x30] sm:$0xe] }
 0x106   : > { %12683 = vmatmul.mubr.msk.bf16.gmra.mrb[8].mxu0 %vm1730_vm4, %v11309_v23  ;;  %v2411_v23 = vrot.slane %v14794_v60, 5  ;;  %v14977_v51 = vrot.slane %v3190_v26, 5  ;;  %v15032_v26 = vld [vmem:[#allocation2 + $0x44] sm:$0x1] }
 0x107   : > { %12686 = vmatprep.mubr.msk.bf16.mxu0 %vm1730_vm4, %v11310_v8  ;;  %v2378_v8 = vrot.slane %v2376_v10, 4  ;;  %v3171_v10 = vshrl.u32 %v3122_v45, 16  ;;  %v13629_v45 = vld [vmem:[%s18951_s3 + $0x88] sm:$0xff]  }
 0x108   : > { %v2413_v3 = vrot.slane %v2411_v23, 4  ;;  %v2412_v9 = vsel %vm14711_vm0, %v11303_v46, %v2411_v23  ;;  %v3245_v23 = vrot.slane %v3243_v44, 4  ;;  %v3211_v46 = vor.u32 %v3210_v27, %v14947_v25 }
 0x109   : > { %v2380_v33 = vsel %vm14711_vm0, %v2378_v8, %v2379_v54  ;;  %v3173_v60 = vrot.slane %v3171_v10, 4 }
 0x10a   : > { %v11314_v28 = vcombine.low %v2377_v13, %v2380_v33  ;;  %v2415_v42 = vsel %vm14711_vm0, %v2413_v3, %v2414_v50  ;;  %v3225_v3 = vor.u32 %v3224_v7, %v3221_v39  ;;  %v3950_v39 = vrot.slane %v3948_v35, 4 }
 0x10b   : > { %v11319_v13 = vcombine.low %v2412_v9, %v2415_v42  ;;  %v3177_v33 = vor.u32 %v3176_v17, %v3173_v60  ;;  %v3249_v60 = vor.u32 %v3248_v29, %v3245_v23  ;;  %v3262_v17 = vshll.u32 %v14949_v18, 16  ;;  %v13634_v42 = vld [vmem:[%s18951_s3 + $0x90] sm:$0xff]   ;;  %v15021_v29 = vld [vmem:[%s18951_s3 + $0xa0] sm:$0xff]  }
 0x10c   : > { %v1205_v9 = vsel %vm14327_vm11, %v1039_v0, %v1204_v49  ;;  %v3877_v0 = vld [vmem:[#allocation2 + $0x24] sm:$0xe]  ;;  %v13630_v49 = vld [vmem:[#allocation2 + $0x48] sm:$0xff]  }
 0x10d   : > { %v14936_v62 = vrot.slane %v3177_v33, 4  ;;  %1206 = vst [vmem:[#allocation2 + $0xc8] sm:$0x1] %v1205_v9  ;;  %v3876_v33 = vld [vmem:[#allocation2 + $0x18] sm:$0xe]  ;;  %v14991_v48 = vrot.slane %v3249_v60, 4 }
 0x10e   : > { %12687 = vmatmul.mubr.msk.bf16.gmra.mrb[12].mxu0 %vm1730_vm4, %v11311_v37  ;;  %v1259_v37 = vld [vmem:[#allocation2 + $0x98] sm:$0x1]  ;;  %v14993_v19 = vrot.slane %v3262_v17, 5  ;;  %v11413_v43 = vrot.slane %v3876_v33, 9  ;;  %v11414_v7 = vrot.slane %v3877_v0, 9 }
 0x10f   : > { %12690 = vmatprep.mubr.msk.bf16.mxu0 %vm1730_vm4, %v11312_v11  ;;  %v2393_v31 = vrot.slane %v1259_v37, 5  ;;  %v3123_v11 = vld [vmem:[#allocation2 + $0x10] sm:$0xf]  ;;  %v15055_v33 = vld [vmem:[#allocation2 + $0x58] sm:$0xf] }
 0x110   : > { %v3180_v8 = vshll.u32 %v3123_v11, 16  ;;  %v3184_v54 = vshrl.u32 %v3123_v11, 16  ;;  %v15009_v27 = vsel %vm14711_vm0, %v11413_v43, %v3948_v35 }
 0x111   : > { %v2394_v38 = vsel %vm14711_vm0, %v2392_v32, %v2393_v31  ;;  %v3228_v32 = vshll.u32 %v14927_v15, 16  ;;  %v3232_v31 = vshrl.u32 %v14927_v15, 16 }
 0x112   : > { %v11316_v16 = vcombine.low %v2391_v4, %v2394_v38  ;;  %v14929_v37 = vrot.slane %v3180_v8, 5  ;;  %v3186_v56 = vrot.slane %v3184_v54, 4  ;;  %v14938_v4 = vld [vmem:[#allocation2 + $0x20] sm:$0x1]  ;;  %v14940_v38 = vld [vmem:[#allocation2 + $0x34] sm:$0xf] }
 0x113   : > { %v14951_v59 = vrot.slane %v3228_v32, 5  ;;  %v3234_v22 = vrot.slane %v3232_v31, 4  ;;  %v3252_v5 = vshll.u32 %v14940_v38, 16  ;;  %v3256_v14 = vshrl.u32 %v14940_v38, 16  ;;  %v13639_v31 = vld [vmem:[%s18951_s3 + $0x98] sm:$0xff]  }
 0x114   : > { %v3187_v47 = vor.u32 %v3186_v56, %v14929_v37  ;;  %v3214_v10 = vshll.u32 %v14938_v4, 16  ;;  %v14983_v56 = vrot.slane %v3211_v46, 4  ;;  %v3880_v46 = vld [vmem:[#allocation2 + $0x48] sm:$0xe] }
 0x115   : > { %v3235_v11 = vor.u32 %v3234_v22, %v14951_v59  ;;  %v14971_v8 = vrot.slane %v3252_v5, 5  ;;  %v3258_v54 = vrot.slane %v3256_v14, 4 }
 0x116   : > { %12691 = vmatmul.mubr.msk.bf16.gmra.mrb[16].mxu0 %vm1730_vm4, %v11313_v6  ;;  %v3195_v6 = vshrl.u32 %v3125_v20, 16 }
 0x117   : > { %12694 = vmatprep.mubr.msk.bf16.mxu0 %vm1730_vm4, %v11314_v28  ;;  %v3198_v28 = vshll.u32 %v3125_v20, 16  ;;  %v14973_v20 = vld [vmem:[#allocation2 + $0x40] sm:$0xf]  ;;  %v14989_v40 = vrot.slane %v3235_v11, 4  ;;  %v3259_v44 = vor.u32 %v3258_v54, %v14971_v8  ;;  %v15039_v11 = vld [vmem:[#allocation2 + $0x50] sm:$0x1] }
 0x118   : > { %v3197_v57 = vrot.slane %v3195_v6, 4  ;;  %v14985_v6 = vrot.slane %v3225_v3, 4  ;;  %v3276_v32 = vshll.u32 %v14973_v20, 16  ;;  %v13631_v3 = vld [vmem:[#allocation2 + $0x54] sm:$0xff]   ;;  %v3969_v9 = vrot.slane %v14973_v20, 5 }
 0x119   : > { %v3200_v21 = vrot.slane %v3198_v28, 5  ;;  %v15013_v22 = vrot.slane %v3259_v44, 4  ;;  %v11417_v44 = vrot.slane %v3880_v46, 9  ;;  %v3979_v35 = vrot.slane %v15039_v11, 5 }
 0x11a   : > { %v15015_v23 = vrot.slane %v3276_v32, 5  ;;  %v15067_v32 = vld [vmem:[#allocation2 + $0x68] sm:$0x1] }
 0x11e   : > { %12695 = vmatmul.mubr.msk.bf16.gmra.mrb[20].mxu0 %vm1730_vm4, %v11315_v12  ;;  %v14945_v12 = vld [vmem:[#allocation2 + $0x2c] sm:$0x1] }
 0x11f   : > { %12698 = vmatprep.mubr.msk.bf16.mxu0 %vm1730_vm4, %v11316_v16  ;;  %v13625_v16 = vld [vmem:[#allocation2 + $0x18] sm:$0xff]   ;;  %v3238_v50 = vshll.u32 %v14945_v12, 16  ;;  %v3958_v14 = vrot.slane %v14945_v12, 5  ;;  %v3965_v12 = vrot.slane %v14949_v18, 5  ;;  %v3971_v18 = vrot.slane %v3969_v9, 4 }
 0x121   : > { %v14987_v28 = vrot.slane %v3238_v50, 5  ;;  %v15037_v50 = vld [vmem:[#allocation2 + $0x4c] sm:$0xf] }
 0x122   : > { %v3976_v43 = vrot.slane %v15037_v50, 5 }
 0x126   : > { %12699 = vmatmul.mubr.msk.bf16.gmra.mrb[24].mxu0 %vm1730_vm4, %v11317_v52  ;;  %v3201_v52 = vor.u32 %v3200_v21, %v3197_v57  ;;  %v3951_v57 = vrot.slane %v14938_v4, 5  ;;  %v15004_v21 = vrot.slane %v3270_v36, 5  ;;  %v3879_v4 = vld [vmem:[#allocation2 + $0x3c] sm:$0xe]  ;;  %v15063_v36 = vld [vmem:[#allocation2 + $0x5c] sm:$0x1] }
 0x127   : > { %12702 = vmatprep.mubr.msk.bf16.mxu0 %vm1730_vm4, %v11318_v2  ;;  %v14959_v2 = vrot.slane %v3187_v47, 4  ;;  %v11416_v17 = vrot.slane %v3879_v4, 9 }
 0x128   : > { %v14979_v58 = vrot.slane %v3201_v52, 4 }
 0x12e   : > { %12703 = vmatmul.mubr.msk.bf16.gmra.mrb[28].mxu0 %vm1730_vm4, %v11319_v13  ;;  %v3267_v13 = vshrl.u32 %v3134_v34, 16  ;;  %v3962_v34 = vrot.slane %v14940_v38, 5  ;;  %v13635_v38 = vld [vmem:[#allocation2 + $0x78] sm:$0xff]  }
 0x12f   : > { %12714 = vmatprep.mubr.msk.bf16.mxu0 %vm1730_vm4, %v13623_v53  ;;  %v14981_v53 = vrot.slane %v3214_v10, 5  ;;  %v11415_v10 = vrot.slane %v3878_v30, 9  ;;  %v3983_v30 = vrot.slane %v15055_v33, 5 }
 0x130   : > { %v15001_v47 = vrot.slane %v3267_v13, 4  ;;  %v3964_v13 = vrot.slane %v3962_v34, 4 }
 0x131   : > { %v15053_v54 = vsel %vm14711_vm0, %v11415_v10, %v3962_v34  ;;  %v13632_v34 = vld [vmem:[#allocation2 + $0x60] sm:$0xff]  }
 0x132   : > { %19068 = vst [vmem:[#allocation11_spill] sm:$0xff] %v15053_v54 }
 0x136   : > { %12715 = vmatmul.mubr.msk.bf16.vlgmr.msra.gmra.mrb[0].mxu0 %vm1730_vm4, %v13625_v16  ;;  %v3280_v16 = vshrl.u32 %v14973_v20, 16  ;;  %v3972_v20 = vrot.slane %v15032_v26, 5 }
 0x137   : > { %12747 = vmatpush3.bf16.msra.mxu0 %v14867_v41  ;;  %12718 = vmatprep.mubr.msk.bf16.mxu0 %vm1730_vm4, %v13626_v55  ;;  %v13628_v41 = vld [vmem:[#allocation2 + $0x3c] sm:$0xff]   ;;  %v3955_v55 = vrot.slane %v14927_v15, 5 }
 0x138   : > { %12748 = vmatprep.subr.bf16.mxu0 %v13629_v45 }
 0x139   : > { %v15029_v15 = vsel %vm14711_vm0, %v11414_v7, %v3955_v55  ;;  %v3957_v5 = vrot.slane %v3955_v55, 4  ;;  %v3978_v7 = vrot.slane %v3976_v43, 4  ;;  %v3881_v55 = vld [vmem:[#allocation2 + $0x54] sm:$0xe] }
 0x13a   : > { %19066 = vst [vmem:[#allocation9_spill] sm:$0xff] %v15029_v15  ;;  %v11418_v4 = vrot.slane %v3881_v55, 9  ;;  %v15116_v55 = vld [vmem:[#allocation2 + $0x74] sm:$0x1]  ;;  %v15236_v15 = vld [vmem:[#allocation2 + $0xc8] sm:$0x1] }
 0x13b   : > { %12749 = vmatpush3.bf16.msra.mxu0 %v13629_v45  ;;  %v15025_v45 = vsel %vm14711_vm0, %v3950_v39, %v3951_v57  ;;  %v15043_v60 = vsel %vm14711_vm0, %v3957_v5, %v3958_v14  ;;  %v15079_v57 = vsel %vm14711_vm0, %v3971_v18, %v3972_v20  ;;  %v15086_v39 = vsel %vm14711_vm0, %v11417_v44, %v3976_v43  ;;  %v3882_v14 = vld [vmem:[#allocation2 + $0x60] sm:$0xe]  ;;  %v15104_v44 = vld [vmem:[#allocation2 + $0x48] sm:$0xf] }
 0x13c   : > { %12750 = vmatprep.subr.bf16.mxu0 %v13634_v42  ;;  %19065 = vst [vmem:[#allocation8_spill] sm:$0xff] %v15025_v45  ;;  %19067 = vst [vmem:[#allocation10_spill] sm:$0xff] %v15043_v60  ;;  %v3986_v5 = vrot.slane %v15063_v36, 5  ;;  %v15095_v46 = vsel %vm14711_vm0, %v3978_v7, %v3979_v35  ;;  %v15102_v18 = vsel %vm14711_vm0, %v11418_v4, %v3983_v30  ;;  %v15114_v7 = vld [vmem:[#allocation2 + $0x70] sm:$0xf] }
 0x13d   : > { %19071 = vst [vmem:[#allocation14_spill] sm:$0xff] %v15079_v57  ;;  %19072 = vst [vmem:[#allocation15_spill] sm:$0xff] %v15086_v39  ;;  %v15124_v4 = vld [vmem:[#allocation2 + $0x7c] sm:$0xf]  ;;  %v15188_v57 = vld [vmem:[#allocation2 + $0xa4] sm:$0x1] }
 0x13e   : > { %12719 = vmatmul.mubr.msk.bf16.gmra.mrb[4].mxu0 %vm1730_vm4, %v13627_v1  ;;  %v15059_v1 = vsel %vm14711_vm0, %v11416_v17, %v3969_v9  ;;  %19073 = vst [vmem:[#allocation16_spill] sm:$0xff] %v15095_v46  ;;  %v11419_v17 = vrot.slane %v3882_v14, 9  ;;  %v13633_v9 = vld [vmem:[#allocation2 + $0x6c] sm:$0xff]   ;;  %19074 = vst [vmem:[#allocation17_spill] sm:$0xff] %v15102_v18  ;;  %v3291_v14 = vshrl.u32 %v15104_v44, 16 }
 0x13f   : > { %12722 = vmatprep.mubr.msk.bf16.mxu0 %vm1730_vm4, %v13628_v41  ;;  %12751 = vmatpush3.bf16.msra.mxu0 %v13634_v42  ;;  %v15047_v42 = vrot.slane %v3280_v16, 4  ;;  %19069 = vst [vmem:[#allocation12_spill] sm:$0xff] %v15059_v1  ;;  %v15065_v41 = vld [vmem:[#allocation2 + $0x64] sm:$0xf]  ;;  %v4004_v16 = vrot.slane %v15124_v4, 5  ;;  %v13637_v18 = vld [vmem:[#allocation2 + $0x90] sm:$0xff]  }
 0x140   : > { %12752 = vmatprep.subr.bf16.mxu0 %v13639_v31  ;;  %v3990_v10 = vrot.slane %v15065_v41, 5  ;;  %v13640_v1 = vld [vmem:[#allocation2 + $0xa8] sm:$0xff]   ;;  %v15224_v60 = vld [vmem:[#allocation2 + $0xb8] sm:$0xf] }
 0x142   : > { %v3992_v20 = vrot.slane %v3990_v10, 4  ;;  %v15112_v35 = vsel %vm14711_vm0, %v11419_v17, %v3990_v10  ;;  %v3883_v10 = vld [vmem:[#allocation2 + $0x6c] sm:$0xe]  ;;  %v4000_v17 = vrot.slane %v15116_v55, 5 }
 0x143   : > { %12753 = vmatpush3.bf16.msra.mxu0 %v13639_v31  ;;  %v15071_v31 = vsel %vm14711_vm0, %v3964_v13, %v3965_v12  ;;  %v3985_v12 = vrot.slane %v3983_v30, 4  ;;  %19076 = vst [vmem:[#allocation19_spill] sm:$0xff] %v15112_v35  ;;  %v13636_v13 = vld [vmem:[#allocation2 + $0x84] sm:$0xff]  }
 0x144   : > { %12786 = vmatprep.subr.bf16.mxu0 %v15021_v29  ;;  %19070 = vst [vmem:[#allocation13_spill] sm:$0xff] %v15071_v31  ;;  %v15150_v35 = vld [vmem:[#allocation2 + $0x88] sm:$0xf] }
 0x145   : > { %v15108_v43 = vsel %vm14711_vm0, %v3985_v12, %v3986_v5  ;;  %v3997_v12 = vrot.slane %v15114_v7, 5 }
 0x146   : > { %12723 = vmatmul.mubr.msk.bf16.gmra.mrb[8].mxu0 %vm1730_vm4, %v13630_v49  ;;  %v3993_v49 = vrot.slane %v15067_v32, 5  ;;  %19075 = vst [vmem:[#allocation18_spill] sm:$0xff] %v15108_v43  ;;  %v15152_v43 = vld [vmem:[#allocation2 + $0x8c] sm:$0x1] }
 0x147   : > { %12726 = vmatprep.mubr.msk.bf16.mxu0 %vm1730_vm4, %v13631_v3  ;;  %v15126_v3 = vld [vmem:[#allocation2 + $0x80] sm:$0x1]  ;;  %v3999_v52 = vrot.slane %v3997_v12, 4 }
 0x148   : > { %v15122_v30 = vsel %vm14711_vm0, %v3992_v20, %v3993_v49  ;;  %v11420_v49 = vrot.slane %v3883_v10, 9  ;;  %v3884_v20 = vld [vmem:[#allocation2 + $0x78] sm:$0xe]  ;;  %v4007_v0 = vrot.slane %v15126_v3, 5 }
 0x149   : > { %19077 = vst [vmem:[#allocation20_spill] sm:$0xff] %v15122_v30  ;;  %v11421_v5 = vrot.slane %v3884_v20, 9  ;;  %v4006_v30 = vrot.slane %v4004_v16, 4  ;;  %v15162_v20 = vld [vmem:[#allocation2 + $0x98] sm:$0x1] }
 0x14a   : > { %v15140_v63 = vsel %vm14711_vm0, %v11420_v49, %v3997_v12  ;;  %v15160_v49 = vld [vmem:[#allocation2 + $0x94] sm:$0xf] }
 0x14b   : > { %19078 = vst [vmem:[#allocation21_spill] sm:$0xff] %v15140_v63  ;;  %v15148_v10 = vsel %vm14711_vm0, %v11421_v5, %v4004_v16  ;;  %v15158_v12 = vsel %vm14711_vm0, %v4006_v30, %v4007_v0  ;;  %v3885_v16 = vld [vmem:[#allocation2 + $0x84] sm:$0xe]  ;;  %v4011_v5 = vrot.slane %v15150_v35, 5  ;;  %v3886_v30 = vld [vmem:[#allocation2 + $0x90] sm:$0xe] }
 0x14c   : > { %19080 = vst [vmem:[#allocation23_spill] sm:$0xff] %v15148_v10  ;;  %19081 = vst [vmem:[#allocation24_spill] sm:$0xff] %v15158_v12  ;;  %v11422_v0 = vrot.slane %v3885_v16, 9  ;;  %v4021_v63 = vrot.slane %v15162_v20, 5  ;;  %v13638_v12 = vld [vmem:[#allocation2 + $0x9c] sm:$0xff]  }
 0x14d   : > { %v4013_v46 = vrot.slane %v4011_v5, 4 }
 0x14e   : > { %12727 = vmatmul.mubr.msk.bf16.gmra.mrb[12].mxu0 %vm1730_vm4, %v13632_v34  ;;  %v3294_v34 = vshll.u32 %v15104_v44, 16  ;;  %v15176_v10 = vsel %vm14711_vm0, %v11422_v0, %v4011_v5  ;;  %v15186_v44 = vld [vmem:[#allocation2 + $0xa0] sm:$0xf]  ;;  %v15196_v0 = vld [vmem:[#allocation2 + $0xac] sm:$0xf] }
 0x14f   : > { %12730 = vmatprep.mubr.msk.bf16.mxu0 %vm1730_vm4, %v13633_v9  ;;  %v15144_v9 = vsel %vm14711_vm0, %v3999_v52, %v4000_v17  ;;  %v4014_v17 = vrot.slane %v15152_v43, 5  ;;  %v11423_v52 = vrot.slane %v3886_v30, 9  ;;  %19082 = vst [vmem:[#allocation25_spill] sm:$0xff] %v15176_v10  ;;  %v15206_v30 = vrot.slane %v3291_v14, 4 }
 0x150   : > { %19079 = vst [vmem:[#allocation22_spill] sm:$0xff] %v15144_v9  ;;  %v4018_v9 = vrot.slane %v15160_v49, 5 }
 0x152   : > { %v4020_v39 = vrot.slane %v4018_v9, 4  ;;  %v15184_v16 = vsel %vm14711_vm0, %v11423_v52, %v4018_v9  ;;  %v3887_v9 = vld [vmem:[#allocation2 + $0x9c] sm:$0xe]  ;;  %v4025_v52 = vrot.slane %v15186_v44, 5 }
 0x153   : > { %19084 = vst [vmem:[#allocation27_spill] sm:$0xff] %v15184_v16 }
 0x154   : > { %v15194_v5 = vsel %vm14711_vm0, %v4020_v39, %v4021_v63  ;;  %v11424_v63 = vrot.slane %v3887_v9, 9  ;;  %v3888_v39 = vld [vmem:[#allocation2 + $0xa8] sm:$0xe]  ;;  %v4027_v31 = vrot.slane %v4025_v52, 4 }
 0x155   : > { %19085 = vst [vmem:[#allocation28_spill] sm:$0xff] %v15194_v5  ;;  %v13641_v5 = vld [vmem:[#allocation2 + $0xb4] sm:$0xff]  }
 0x156   : > { %12731 = vmatmul.mubr.msk.bf16.gmra.mrb[16].mxu0 %vm1730_vm4, %v13635_v38  ;;  %v15198_v38 = vld [vmem:[#allocation2 + $0xb0] sm:$0x1]  ;;  %v15214_v16 = vsel %vm14711_vm0, %v11424_v63, %v4025_v52  ;;  %v15234_v63 = vld [vmem:[#allocation2 + $0xc4] sm:$0xf] }
 0x157   : > { %12734 = vmatprep.mubr.msk.bf16.mxu0 %vm1730_vm4, %v13636_v13  ;;  %v15180_v13 = vsel %vm14711_vm0, %v4013_v46, %v4014_v17  ;;  %v4028_v17 = vrot.slane %v15188_v57, 5  ;;  %v4035_v10 = vrot.slane %v15198_v38, 5  ;;  %v11425_v46 = vrot.slane %v3888_v39, 9  ;;  %19086 = vst [vmem:[#allocation29_spill] sm:$0xff] %v15214_v16  ;;  %v15226_v39 = vld [vmem:[#allocation2 + $0xbc] sm:$0x1] }
 0x158   : > { %19083 = vst [vmem:[#allocation26_spill] sm:$0xff] %v15180_v13  ;;  %v4032_v13 = vrot.slane %v15196_v0, 5 }
 0x159   : > { %v15218_v14 = vsel %vm14711_vm0, %v4027_v31, %v4028_v17  ;;  %v4042_v17 = vrot.slane %v15226_v39, 5 }
 0x15a   : > { %v4034_v54 = vrot.slane %v4032_v13, 4  ;;  %19087 = vst [vmem:[#allocation30_spill] sm:$0xff] %v15218_v14  ;;  %v15222_v9 = vsel %vm14711_vm0, %v11425_v46, %v4032_v13  ;;  %v3183_v13 = vsel %vm14295_vm5, %v14936_v62, %v14929_v37  ;;  %v4039_v46 = vrot.slane %v15224_v60, 5  ;;  %v13642_v37 = vld [vmem:[#allocation2 + $0xc0] sm:$0xff]  }
 0x15b   : > { %19088 = vst [vmem:[#allocation31_spill] sm:$0xff] %v15222_v9  ;;  %v4049_v9 = vrot.slane %v15236_v15, 5 }
 0x15c   : > { %v15232_v52 = vsel %vm14711_vm0, %v4034_v54, %v4035_v10  ;;  %v3193_v54 = vsel %vm14295_vm5, %v14959_v2, %v14977_v51  ;;  %v3889_v10 = vld [vmem:[#allocation2 + $0xb4] sm:$0xe]  ;;  %v4041_v62 = vrot.slane %v4039_v46, 4 }
 0x15d   : > { %19089 = vst [vmem:[#allocation32_spill] sm:$0xff] %v15232_v52  ;;  %v4046_v52 = vrot.slane %v15234_v63, 5  ;;  %v11376_v16 = vcombine.low %v3183_v13, %v3193_v54 }
 0x15e   : > { %12735 = vmatmul.mubr.msk.bf16.gmra.mrb[20].mxu0 %vm1730_vm4, %v13637_v18  ;;  %v15210_v18 = vrot.slane %v3294_v34, 5  ;;  %v11426_v34 = vrot.slane %v3889_v10, 9  ;;  %v3217_v10 = vsel %vm14295_vm5, %v14983_v56, %v14981_v53  ;;  %v3273_v56 = vor.u32 %v15004_v21, %v15001_v47 }
 0x15f   : > { %12738 = vmatprep.mubr.msk.bf16.mxu0 %vm1730_vm4, %v13638_v12  ;;  %v3140_v12 = vld [vmem:[#allocation2 + $0x54] sm:$0xf]  ;;  %v4048_v51 = vrot.slane %v4046_v52, 4  ;;  %v3324_v21 = vshll.u32 %v15055_v33, 16 }
 0x160   : > { %v3315_v31 = vshrl.u32 %v3140_v12, 16  ;;  %v3318_v45 = vshll.u32 %v3140_v12, 16  ;;  %v15256_v2 = vsel %vm14711_vm0, %v11426_v34, %v4039_v46  ;;  %v3231_v34 = vsel %vm14295_vm5, %v14985_v6, %v14951_v59 }
 0x161   : > { %v15286_v53 = vsel %vm14711_vm0, %v4048_v51, %v4049_v9  ;;  %v3255_v6 = vsel %vm14295_vm5, %v14991_v48, %v14971_v8  ;;  %v19090_v9 = vshll.u32 %v15037_v50, 16  ;;  %v19091_v8 = vshrl.u32 %v15037_v50, 16  ;;  %v3146_v51 = vld [vmem:[#allocation2 + $0x6c] sm:$0xf] }
 0x162   : > { %v3317_v54 = vrot.slane %v3315_v31, 4  ;;  %v3320_v46 = vrot.slane %v3318_v45, 5  ;;  %v3348_v45 = vshll.u32 %v15065_v41, 16  ;;  %v3352_v31 = vshrl.u32 %v15065_v41, 16 }
 0x163   : > { %v15308_v13 = vrot.slane %v19090_v9, 5  ;;  %v3306_v48 = vrot.slane %v19091_v8, 4  ;;  %v3376_v41 = vshrl.u32 %v15114_v7, 16  ;;  %v3149_v9 = vld [vmem:[#allocation2 + $0x78] sm:$0xf]  ;;  %v3334_v8 = vshll.u32 %v15063_v36, 16 }
 0x164   : > { %v3387_v36 = vshrl.u32 %v3149_v9, 16 }
 0x166   : > { %12739 = vmatmul.mubr.msk.bf16.gmra.mrb[24].mxu0 %vm1730_vm4, %v13640_v1  ;;  %v3890_v1 = vld [vmem:[#allocation2 + $0xc0] sm:$0xe] }
 0x167   : > { %12742 = vmatprep.mubr.msk.bf16.mxu0 %vm1730_vm4, %v13641_v5  ;;  %v11427_v14 = vrot.slane %v3890_v1, 9  ;;  %v3207_v5 = vsel %vm14295_vm5, %v14979_v58, %v14947_v25  ;;  %v15268_v1 = vsel %vm14711_vm0, %v4041_v62, %v4042_v17  ;;  %v3241_v25 = vsel %vm14295_vm5, %v14989_v40, %v14987_v28 }
 0x168   : > { %v11442_v58 = vcombine.low %v15256_v2, %v15268_v1  ;;  %v3265_v28 = vsel %vm14295_vm5, %v15013_v22, %v14993_v19  ;;  %v11377_v40 = vcombine.low %v3207_v5, %v3217_v10  ;;  %v11378_v47 = vcombine.low %v3231_v34, %v3241_v25  ;;  %v4761_v2 = vld [vmem:[#allocation2 + $0x24] sm:$0xf] }
 0x169   : > { %v15272_v12 = vsel %vm14711_vm0, %v11427_v14, %v4046_v52  ;;  %v3283_v14 = vor.u32 %v15047_v42, %v15015_v23  ;;  %v3143_v52 = vld [vmem:[#allocation2 + $0x60] sm:$0xf]  ;;  %v3328_v42 = vshrl.u32 %v15055_v33, 16  ;;  %v15312_v19 = vcombine.low %v3255_v6, %v3265_v28 }
 0x16a   : > { %v11443_v59 = vcombine.low %v15272_v12, %v15286_v53  ;;  %v3274_v22 = vrot.slane %v3273_v56, 4  ;;  %v3297_v33 = vor.u32 %v15210_v18, %v15206_v30  ;;  %v3339_v5 = vshrl.u32 %v3143_v52, 16  ;;  %v13644_v18 = vld [vmem:[%s18951_s3 + $0xa8] sm:$0xff]   ;;  %v13822_v53 = vld [vmem:[#allocation2 + $0x84] sm:$0xf] }
 0x16b   : > { %v3284_v17 = vrot.slane %v3283_v14, 4  ;;  %v3342_v10 = vshll.u32 %v3143_v52, 16  ;;  %v15319_v34 = vrot.slane %v3324_v21, 5  ;;  %v3330_v50 = vrot.slane %v3328_v42, 4 }
 0x16c   : > { %v3307_v25 = vor.u32 %v3306_v48, %v15308_v13  ;;  %v3321_v56 = vor.u32 %v3320_v46, %v3317_v54  ;;  %v3366_v14 = vshll.u32 %v3146_v51, 16  ;;  %v3279_v30 = vsel %vm14295_vm5, %v3274_v22, %v15015_v23 }
 0x16d   : > { %v3372_v52 = vshll.u32 %v15114_v7, 16  ;;  %v15334_v6 = vrot.slane %v3297_v33, 4  ;;  %v3341_v21 = vrot.slane %v3339_v5, 4  ;;  %v3344_v42 = vrot.slane %v3342_v10, 5 }
 0x16e   : > { %12743 = vmatmul.mubr.msk.bf16.gmra.mrb[28].mxu0 %vm1730_vm4, %v13642_v37  ;;  %v19092_v37 = vshll.u32 %v15032_v26, 16  ;;  %v3363_v26 = vshrl.u32 %v3146_v51, 16  ;;  %v3331_v23 = vor.u32 %v3330_v50, %v15319_v34  ;;  %v15341_v48 = vrot.slane %v3348_v45, 5 }
 0x16f   : > { %12754 = vmatprep.mubr.msk.bf16.mxu0 %vm1730_vm4, %v11376_v16  ;;  %v3310_v16 = vshll.u32 %v15039_v11, 16  ;;  %v3354_v54 = vrot.slane %v3352_v31, 4  ;;  %v3308_v7 = vrot.slane %v3307_v25, 4  ;;  %v3322_v46 = vrot.slane %v3321_v56, 4  ;;  %v3152_v56 = vld [vmem:[#allocation2 + $0x84] sm:$0xf] }
 0x170   : > { %v3288_v62 = vrot.slane %v19092_v37, 5  ;;  %v3365_v22 = vrot.slane %v3363_v26, 4  ;;  %v15345_v37 = vrot.slane %v3372_v52, 5  ;;  %v3390_v51 = vshll.u32 %v3149_v9, 16 }
 0x171   : > { %v15336_v28 = vrot.slane %v3310_v16, 5  ;;  %v3345_v33 = vor.u32 %v3344_v42, %v3341_v21  ;;  %v3358_v16 = vshll.u32 %v15067_v32, 16  ;;  %v3332_v10 = vrot.slane %v3331_v23, 4 }
 0x172   : > { %v3289_v11 = vsel %vm14295_vm5, %v3284_v17, %v3288_v62  ;;  %v3368_v17 = vrot.slane %v3366_v14, 5  ;;  %v3378_v62 = vrot.slane %v3376_v41, 4  ;;  %v3336_v50 = vrot.slane %v3334_v8, 5 }
 0x173   : > { %v11380_v5 = vcombine.low %v3279_v30, %v3289_v11  ;;  %v3355_v45 = vor.u32 %v3354_v54, %v15341_v48  ;;  %v3303_v31 = vsel %vm14295_vm5, %v15334_v6, %v15308_v13  ;;  %v3313_v25 = vsel %vm14295_vm5, %v3308_v7, %v15336_v28  ;;  %v13646_v13 = vld [vmem:[%s18951_s3 + $0xb8] sm:$0xff]  }
 0x174   : > { %v3327_v32 = vsel %vm14295_vm5, %v3322_v46, %v15319_v34  ;;  %v3369_v26 = vor.u32 %v3368_v17, %v3365_v22  ;;  %v3379_v14 = vor.u32 %v3378_v62, %v15345_v37  ;;  %v3389_v30 = vrot.slane %v3387_v36, 4  ;;  %v15382_v22 = vld [vmem:[%s18951_s3 + $0xc0] sm:$0xff]  }
 0x175   : > { %v3392_v11 = vrot.slane %v3390_v51, 5  ;;  %v3346_v52 = vrot.slane %v3345_v33, 4  ;;  %v3360_v41 = vrot.slane %v3358_v16, 5  ;;  %v3356_v34 = vrot.slane %v3355_v45, 4 }
 0x176   : > { %12755 = vmatmul.mubr.msk.bf16.vlgmr.msra.gmra.mrb[0].mxu0 %vm1730_vm4, %v11377_v40  ;;  %v13645_v40 = vld [vmem:[%s18951_s3 + $0xb0] sm:$0xff]   ;;  %v3411_v28 = vshrl.u32 %v3152_v56, 16  ;;  %v3414_v21 = vshll.u32 %v3152_v56, 16  ;;  %v3420_v9 = vshll.u32 %v15150_v35, 16  ;;  %v3424_v23 = vshrl.u32 %v15150_v35, 16 }
 0x177   : > { %12787 = vmatpush3.bf16.msra.mxu0 %v15021_v29  ;;  %12758 = vmatprep.mubr.msk.bf16.mxu0 %vm1730_vm4, %v11378_v47  ;;  %v3396_v29 = vshll.u32 %v15124_v4, 16  ;;  %v3400_v47 = vshrl.u32 %v15124_v4, 16  ;;  %v3382_v4 = vshll.u32 %v15116_v55, 16  ;;  %v3337_v55 = vsel %vm14295_vm5, %v3332_v10, %v3336_v50 }
 0x178   : > { %12788 = vmatprep.subr.bf16.mxu0 %v13644_v18  ;;  %v3370_v8 = vrot.slane %v3369_v26, 4  ;;  %v3380_v54 = vrot.slane %v3379_v14, 4  ;;  %v3393_v7 = vor.u32 %v3392_v11, %v3389_v30  ;;  %v3406_v46 = vshll.u32 %v15126_v3, 16 }
 0x179   : > { %v3402_v6 = vrot.slane %v3400_v47, 4  ;;  %v3384_v42 = vrot.slane %v3382_v4, 5  ;;  %v11381_v17 = vcombine.low %v3303_v31, %v3313_v25  ;;  %v11382_v62 = vcombine.low %v3327_v32, %v3337_v55 }
 0x17a   : > { %v3351_v35 = vsel %vm14295_vm5, %v3346_v52, %v15341_v48  ;;  %v3361_v36 = vsel %vm14295_vm5, %v3356_v34, %v3360_v41  ;;  %v3413_v51 = vrot.slane %v3411_v28, 4  ;;  %v3416_v3 = vrot.slane %v3414_v21, 5 }
 0x17b   : > { %12789 = vmatpush3.bf16.msra.mxu0 %v13644_v18  ;;  %v15369_v18 = vrot.slane %v3396_v29, 5  ;;  %v15390_v33 = vrot.slane %v3420_v9, 5  ;;  %v3426_v16 = vrot.slane %v3424_v23, 4  ;;  %v3375_v10 = vsel %vm14295_vm5, %v3370_v8, %v15345_v37  ;;  %v3161_v23 = vld [vmem:[#allocation2 + $0xa8] sm:$0xf] }
 0x17c   : > { %12790 = vmatprep.subr.bf16.mxu0 %v13645_v40  ;;  %v3385_v50 = vsel %vm14295_vm5, %v3380_v54, %v3384_v42  ;;  %v3394_v48 = vrot.slane %v3393_v7, 4  ;;  %v3408_v45 = vrot.slane %v3406_v46, 5  ;;  %v3430_v25 = vshll.u32 %v15152_v43, 16 }
 0x17d   : > { %v3444_v32 = vshll.u32 %v15160_v49, 16  ;;  %v3448_v4 = vshrl.u32 %v15160_v49, 16  ;;  %v3468_v37 = vshll.u32 %v15186_v44, 16  ;;  %v3472_v14 = vshrl.u32 %v15186_v44, 16 }
 0x17e   : > { %12759 = vmatmul.mubr.msk.bf16.gmra.mrb[4].mxu0 %vm1730_vm4, %v15312_v19  ;;  %v3155_v19 = vld [vmem:[#allocation2 + $0x90] sm:$0xf]  ;;  %v3417_v30 = vor.u32 %v3416_v3, %v3413_v51  ;;  %v3427_v11 = vor.u32 %v3426_v16, %v15390_v33  ;;  %v11383_v43 = vcombine.low %v3351_v35, %v3361_v36  ;;  %v11384_v41 = vcombine.low %v3375_v10, %v3385_v50  ;;  %v3164_v35 = vld [vmem:[#allocation2 + $0xb4] sm:$0xf] }
 0x17f   : > { %12762 = vmatprep.mubr.msk.bf16.mxu0 %vm1730_vm4, %v11380_v5  ;;  %12791 = vmatpush3.bf16.msra.mxu0 %v13645_v40  ;;  %v3403_v40 = vor.u32 %v3402_v6, %v15369_v18  ;;  %v3435_v29 = vshrl.u32 %v3155_v19, 16  ;;  %v3438_v47 = vshll.u32 %v3155_v19, 16  ;;  %v3158_v5 = vld [vmem:[#allocation2 + $0x9c] sm:$0xf]  ;;  %v3399_v49 = vsel %vm14295_vm5, %v3394_v48, %v15369_v18 }
 0x180   : > { %12792 = vmatprep.subr.bf16.mxu0 %v13646_v13  ;;  %v3459_v56 = vshrl.u32 %v3158_v5, 16  ;;  %v3462_v26 = vshll.u32 %v3158_v5, 16  ;;  %v3432_v55 = vrot.slane %v3430_v25, 5  ;;  %v3446_v34 = vrot.slane %v3444_v32, 5 }
 0x181   : > { %v3404_v31 = vrot.slane %v3403_v40, 4  ;;  %v3440_v52 = vrot.slane %v3438_v47, 5  ;;  %v3450_v28 = vrot.slane %v3448_v4, 4  ;;  %v3470_v42 = vrot.slane %v3468_v37, 5 }
 0x182   : > { %v3461_v44 = vrot.slane %v3459_v56, 4  ;;  %v3464_v21 = vrot.slane %v3462_v26, 5  ;;  %v3474_v9 = vrot.slane %v3472_v14, 4  ;;  %v3418_v8 = vrot.slane %v3417_v30, 4 }
 0x183   : > { %12793 = vmatpush3.bf16.msra.mxu0 %v13646_v13  ;;  %v3437_v13 = vrot.slane %v3435_v29, 4  ;;  %v3409_v6 = vsel %vm14295_vm5, %v3404_v31, %v3408_v45  ;;  %v3428_v54 = vrot.slane %v3427_v11, 4  ;;  %v3454_v46 = vshll.u32 %v15162_v20, 16 }
 0x184   : > { %12826 = vmatprep.subr.bf16.mxu0 %v15382_v22  ;;  %v11385_v19 = vcombine.low %v3399_v49, %v3409_v6  ;;  %v3478_v18 = vshll.u32 %v15188_v57, 16  ;;  %v3486_v40 = vshll.u32 %v3161_v23, 16  ;;  %v3465_v36 = vor.u32 %v3464_v21, %v3461_v44 }
 0x185   : > { %v3441_v7 = vor.u32 %v3440_v52, %v3437_v13  ;;  %v3475_v51 = vor.u32 %v3474_v9, %v3470_v42  ;;  %v3492_v3 = vshll.u32 %v15196_v0, 16  ;;  %v3496_v16 = vshrl.u32 %v15196_v0, 16  ;;  %v3167_v13 = vld [vmem:[#allocation2 + $0xc0] sm:$0xf] }
 0x186   : > { %12763 = vmatmul.mubr.msk.bf16.gmra.mrb[8].mxu0 %vm1730_vm4, %v11381_v17  ;;  %v3451_v17 = vor.u32 %v3450_v28, %v3446_v34  ;;  %v3423_v20 = vsel %vm14295_vm5, %v3418_v8, %v15390_v33  ;;  %v3433_v57 = vsel %vm14295_vm5, %v3428_v54, %v3432_v55  ;;  %v3456_v47 = vrot.slane %v3454_v46, 5 }
 0x187   : > { %12766 = vmatprep.mubr.msk.bf16.mxu0 %vm1730_vm4, %v11382_v62  ;;  %v3483_v62 = vshrl.u32 %v3161_v23, 16  ;;  %v3442_v29 = vrot.slane %v3441_v7, 4  ;;  %v3507_v5 = vshrl.u32 %v3164_v35, 16  ;;  %v3510_v10 = vshll.u32 %v3164_v35, 16 }
 0x188   : > { %v3516_v50 = vshll.u32 %v15224_v60, 16  ;;  %v3520_v48 = vshrl.u32 %v15224_v60, 16  ;;  %v3452_v45 = vrot.slane %v3451_v17, 4  ;;  %v3480_v31 = vrot.slane %v3478_v18, 5 }
 0x189   : > { %v3485_v0 = vrot.slane %v3483_v62, 4  ;;  %v3488_v25 = vrot.slane %v3486_v40, 5  ;;  %v3466_v32 = vrot.slane %v3465_v36, 4  ;;  %v3476_v4 = vrot.slane %v3475_v51, 4 }
 0x18a   : > { %v3494_v56 = vrot.slane %v3492_v3, 5  ;;  %v3498_v26 = vrot.slane %v3496_v16, 4  ;;  %v11386_v33 = vcombine.low %v3423_v20, %v3433_v57  ;;  %v3509_v37 = vrot.slane %v3507_v5, 4  ;;  %v3875_v5 = vld [vmem:[#allocation2 + $0xc] sm:$0xe] }
 0x18b   : > { %v3512_v14 = vrot.slane %v3510_v10, 5  ;;  %v3518_v30 = vrot.slane %v3516_v50, 5  ;;  %v3522_v11 = vrot.slane %v3520_v48, 4  ;;  %v3447_v52 = vsel %vm14295_vm5, %v3442_v29, %v3446_v34  ;;  %v13817_v29 = vld [vmem:[#allocation2 + $0x10] sm:$0xf] }
 0x18c   : > { %v3457_v60 = vsel %vm14295_vm5, %v3452_v45, %v3456_v47  ;;  %v3481_v49 = vsel %vm14295_vm5, %v3476_v4, %v3480_v31  ;;  %v3499_v6 = vor.u32 %v3498_v26, %v3494_v56  ;;  %v3502_v55 = vshll.u32 %v15198_v38, 16 }
 0x18d   : > { %v3531_v28 = vshrl.u32 %v3167_v13, 16  ;;  %v3534_v44 = vshll.u32 %v3167_v13, 16  ;;  %v3540_v34 = vshll.u32 %v15234_v63, 16  ;;  %v3544_v21 = vshrl.u32 %v15234_v63, 16 }
 0x18e   : > { %12767 = vmatmul.mubr.msk.bf16.gmra.mrb[12].mxu0 %vm1730_vm4, %v11383_v43  ;;  %v3489_v43 = vor.u32 %v3488_v25, %v3485_v0  ;;  %v3513_v9 = vor.u32 %v3512_v14, %v3509_v37  ;;  %v3523_v23 = vor.u32 %v3522_v11, %v3518_v30  ;;  %v3526_v8 = vshll.u32 %v15226_v39, 16  ;;  %v19093_v11 = vld [vmem:[#allocation8_spill] sm:$0xff] }
 0x18f   : > { %12770 = vmatprep.mubr.msk.bf16.mxu0 %vm1730_vm4, %v11384_v41  ;;  %v3471_v41 = vsel %vm14295_vm5, %v3466_v32, %v3470_v42  ;;  %v11387_v54 = vcombine.low %v3447_v52, %v3457_v60  ;;  %v3500_v46 = vrot.slane %v3499_v6, 4  ;;  %v3533_v17 = vrot.slane %v3531_v28, 4  ;;  %v13818_v32 = vld [vmem:[#allocation2 + $0x14] sm:$0x1]  ;;  %v19095_v52 = vld [vmem:[#allocation9_spill] sm:$0xff]  ;;  %v19096_v60 = vld [vmem:[#allocation10_spill] sm:$0xff] }
 0x190   : > { %v11388_v42 = vcombine.low %v3471_v41, %v3481_v49  ;;  %v3490_v7 = vrot.slane %v3489_v43, 4  ;;  %v3536_v18 = vrot.slane %v3534_v44, 5  ;;  %v3542_v38 = vrot.slane %v3540_v34, 5  ;;  %v13649_v41 = vld [vmem:[%s18951_s3 + $0xd0] sm:$0xff]   ;;  %v19099_v6 = vld [vmem:[#allocation13_spill] sm:$0xff]  ;;  %v19102_v28 = vld [vmem:[#allocation14_spill] sm:$0xff] }
 0x191   : > { %v3546_v62 = vrot.slane %v3544_v21, 4  ;;  %v3514_v40 = vrot.slane %v3513_v9, 4  ;;  %v3524_v35 = vrot.slane %v3523_v23, 4  ;;  %v3528_v36 = vrot.slane %v3526_v8, 5  ;;  %v19098_v49 = vld [vmem:[#allocation11_spill] sm:$0xff]  ;;  %v13652_v34 = vld [vmem:[%s18951_s3 + $0xe0] sm:$0xff]  }
 0x192   : > { %v3495_v63 = vsel %vm14295_vm5, %v3490_v7, %v3494_v56  ;;  %v3537_v51 = vor.u32 %v3536_v18, %v3533_v17  ;;  %v3550_v16 = vshll.u32 %v15236_v15, 16  ;;  %v3941_v47 = vrot.slane %v13817_v29, 5  ;;  %v19104_v21 = vld [vmem:[#allocation15_spill] sm:$0xff]  ;;  %v19105_v9 = vld [vmem:[#allocation16_spill] sm:$0xff]  ;;  %v19107_v8 = vld [vmem:[#allocation17_spill] sm:$0xff] }
 0x193   : > { %v3547_v3 = vor.u32 %v3546_v62, %v3542_v38  ;;  %v3519_v20 = vsel %vm14295_vm5, %v3514_v40, %v3518_v30  ;;  %v3529_v57 = vsel %vm14295_vm5, %v3524_v35, %v3528_v36  ;;  %v11412_v0 = vrot.slane %v3875_v5, 9  ;;  %v13648_v30 = vld [vmem:[%s18951_s3 + $0xc8] sm:$0xff]   ;;  %v19110_v7 = vld [vmem:[#allocation19_spill] sm:$0xff]  ;;  %v19113_v17 = vld [vmem:[#allocation21_spill] sm:$0xff] }
 0x194   : > { %v11390_v50 = vcombine.low %v3519_v20, %v3529_v57  ;;  %v3538_v48 = vrot.slane %v3537_v51, 4  ;;  %v3552_v31 = vrot.slane %v3550_v16, 5  ;;  %v3943_v25 = vrot.slane %v3941_v47, 4  ;;  %v19114_v18 = vld [vmem:[#allocation22_spill] sm:$0xff]  ;;  %v19116_v62 = vld [vmem:[#allocation23_spill] sm:$0xff]  ;;  %v19117_v40 = vld [vmem:[#allocation24_spill] sm:$0xff] }
 0x195   : > { %v3548_v45 = vrot.slane %v3547_v3, 4  ;;  %v3944_v4 = vrot.slane %v13818_v32, 5  ;;  %v3942_v26 = vsel %vm14711_vm0, %v11412_v0, %v3941_v47  ;;  %v19094_v13 = vcombine.low %v15009_v27, %v19093_v11  ;;  %v13650_v27 = vld [vmem:[%s18951_s3 + $0xd8] sm:$0xff]   ;;  %v19119_v36 = vld [vmem:[#allocation25_spill] sm:$0xff]  ;;  %v19122_v51 = vld [vmem:[#allocation27_spill] sm:$0xff] }
 0x196   : > { %12771 = vmatmul.mubr.msk.bf16.gmra.mrb[16].mxu0 %vm1730_vm4, %v11385_v19  ;;  %v3504_v19 = vrot.slane %v3502_v55, 5  ;;  %v3543_v15 = vsel %vm14295_vm5, %v3538_v48, %v3542_v38  ;;  %v19097_v43 = vcombine.low %v19095_v52, %v19096_v60  ;;  %v19100_v55 = vcombine.low %v19098_v49, %v19099_v6  ;;  %v19123_v3 = vld [vmem:[#allocation28_spill] sm:$0xff]  ;;  %v19125_v20 = vld [vmem:[#allocation29_spill] sm:$0xff]  ;;  %v19126_v57 = vld [vmem:[#allocation30_spill] sm:$0xff] }
 0x197   : > { %12774 = vmatprep.mubr.msk.bf16.mxu0 %vm1730_vm4, %v11386_v33  ;;  %v3553_v56 = vsel %vm14295_vm5, %v3548_v45, %v3552_v31  ;;  %v3945_v33 = vsel %vm14711_vm0, %v3943_v25, %v3944_v4  ;;  %v19106_v23 = vcombine.low %v19104_v21, %v19105_v9  ;;  %v19115_v38 = vcombine.low %v19113_v17, %v19114_v18  ;;  %v19128_v47 = vld [vmem:[#allocation31_spill] sm:$0xff]  ;;  %v19129_v5 = vld [vmem:[#allocation32_spill] sm:$0xff]  ;;  %v13819_v48 = vld [vmem:[#allocation2 + $0x6c] sm:$0xf] }
 0x198   : > { %v3505_v39 = vsel %vm14295_vm5, %v3500_v46, %v3504_v19  ;;  %v11391_v37 = vcombine.low %v3543_v15, %v3553_v56  ;;  %v11428_v14 = vcombine.low %v3942_v26, %v3945_v33  ;;  %v19111_v46 = vld [vmem:[#allocation20_spill] sm:$0xff]  ;;  %v19118_v35 = vcombine.low %v19116_v62, %v19117_v40  ;;  %v13653_v56 = vld [vmem:[#allocation2 + $0x24] sm:$0xff]   ;;  %v13654_v26 = vld [vmem:[#allocation2 + $0x30] sm:$0xff]  }
 0x199   : > { %v11389_v10 = vcombine.low %v3495_v63, %v3505_v39  ;;  %v19112_v19 = vcombine.low %v19110_v7, %v19111_v46  ;;  %v19120_v63 = vld [vmem:[#allocation26_spill] sm:$0xff]  ;;  %v19124_v16 = vcombine.low %v19122_v51, %v19123_v3  ;;  %v19127_v29 = vcombine.low %v19125_v20, %v19126_v57  ;;  %v4758_v0 = vld [vmem:[#allocation2 + $0x18] sm:$0xf]  ;;  %v4759_v25 = vld [vmem:[#allocation2 + $0x1c] sm:$0xf] }
 0x19a   : > { %v19121_v39 = vcombine.low %v19119_v36, %v19120_v63  ;;  %v1483_v45 = vshrl.u32 %v13819_v48, 16  ;;  %v1486_v31 = vshll.u32 %v13819_v48, 16  ;;  %v13820_v32 = vld [vmem:[#allocation2 + $0x78] sm:$0xf]  ;;  %v4762_v33 = vld [vmem:[#allocation2 + $0x28] sm:$0xf] }
 0x19b   : > { %v1507_v4 = vshrl.u32 %v13820_v32, 16  ;;  %v1510_v15 = vshll.u32 %v13820_v32, 16  ;;  %v4816_v11 = vshll.u32 %v4759_v25, 16  ;;  %v1534_v60 = vshll.u32 %v13822_v53, 16  ;;  %v13824_v21 = vld [vmem:[#allocation2 + $0x90] sm:$0xf] }
 0x19c   : > { %v15535_v1 = vrot.slane %v1483_v45, 4  ;;  %v15543_v52 = vrot.slane %v1486_v31, 5  ;;  %v4840_v6 = vshll.u32 %v4762_v33, 16  ;;  %v1555_v9 = vshrl.u32 %v13824_v21, 16  ;;  %v15563_v17 = vld [vmem:[#allocation2 + $0x88] sm:$0xf] }
 0x19d   : > { %v15547_v49 = vrot.slane %v1510_v15, 5  ;;  %v15559_v7 = vrot.slane %v4816_v11, 5  ;;  %v15566_v40 = vld [vmem:[#allocation2 + $0x20] sm:$0x1]  ;;  %v15574_v3 = vld [vmem:[#allocation2 + $0x94] sm:$0xf] }
 0x19e   : > { %12775 = vmatmul.mubr.msk.bf16.gmra.mrb[20].mxu0 %vm1730_vm4, %v11387_v54  ;;  %v19108_v54 = vld [vmem:[#allocation18_spill] sm:$0xff]  ;;  %v15568_v36 = vrot.slane %v4840_v6, 5  ;;  %v13827_v20 = vld [vmem:[#allocation2 + $0x9c] sm:$0xf] }
 0x19f   : > { %12778 = vmatprep.mubr.msk.bf16.mxu0 %vm1730_vm4, %v11388_v42  ;;  %v19109_v42 = vcombine.low %v19107_v8, %v19108_v54  ;;  %v13662_v8 = vld [vmem:[%s18951_s3 + $0xf0] sm:$0xff]   ;;  %v1579_v57 = vshrl.u32 %v13827_v20, 16  ;;  %v13829_v31 = vld [vmem:[#allocation2 + $0xa8] sm:$0xf] }
 0x1a0   : > { %v1606_v15 = vshll.u32 %v13829_v31, 16 }
 0x1a6   : > { %12779 = vmatmul.mubr.msk.bf16.gmra.mrb[24].mxu0 %vm1730_vm4, %v11389_v10  ;;  %v19130_v10 = vcombine.low %v19128_v47, %v19129_v5  ;;  %v1582_v47 = vshll.u32 %v13827_v20, 16  ;;  %v15577_v5 = vld [vmem:[#allocation2 + $0xa0] sm:$0xf] }
 0x1a7   : > { %12782 = vmatprep.mubr.msk.bf16.mxu0 %vm1730_vm4, %v11390_v50  ;;  %v13651_v50 = vld [vmem:[#allocation2 + $0x18] sm:$0xff]   ;;  %v13659_v20 = vld [vmem:[#allocation2 + $0x60] sm:$0xff]  }
 0x1ae   : > { %12783 = vmatmul.mubr.msk.bf16.gmra.mrb[28].mxu0 %vm1730_vm4, %v11391_v37  ;;  %v13657_v37 = vld [vmem:[%s18951_s3 + $0xe8] sm:$0xff]  }
 0x1af   : > { %12794 = vmatprep.mubr.msk.bf16.mxu0 %vm1730_vm4, %v11428_v14  ;;  %v4807_v14 = vshrl.u32 %v4758_v0, 16 }
 0x1b1   : > { %v4809_v54 = vrot.slane %v4807_v14, 4 }
 0x1b6   : > { %12795 = vmatmul.mubr.msk.bf16.vlgmr.msra.gmra.mrb[0].mxu0 %vm1730_vm4, %v19094_v13  ;;  %v4820_v13 = vshrl.u32 %v4759_v25, 16  ;;  %v4826_v25 = vshll.u32 %v15566_v40, 16 }
 0x1b7   : > { %12827 = vmatpush3.bf16.msra.mxu0 %v15382_v22  ;;  %12798 = vmatprep.mubr.msk.bf16.mxu0 %vm1730_vm4, %v19097_v43  ;;  %v19101_v22 = vld [vmem:[#allocation12_spill] sm:$0xff]  ;;  %v4831_v43 = vshrl.u32 %v4761_v2, 16 }
 0x1b8   : > { %12828 = vmatprep.subr.bf16.mxu0 %v13648_v30  ;;  %v19103_v44 = vcombine.low %v19101_v22, %v19102_v28  ;;  %v15550_v22 = vld [vmem:[#allocation2 + $0x7c] sm:$0xf]  ;;  %v4822_v46 = vrot.slane %v4820_v13, 4  ;;  %v4828_v6 = vrot.slane %v4826_v25, 5 }
 0x1ba   : > { %v4823_v45 = vor.u32 %v4822_v46, %v15559_v7 }
 0x1bb   : > { %12829 = vmatpush3.bf16.msra.mxu0 %v13648_v30  ;;  %v4810_v30 = vshll.u32 %v4758_v0, 16  ;;  %v1603_v0 = vshrl.u32 %v13829_v31, 16 }
 0x1bc   : > { %12830 = vmatprep.subr.bf16.mxu0 %v13649_v41 }
 0x1be   : > { %12799 = vmatmul.mubr.msk.bf16.gmra.mrb[4].mxu0 %vm1730_vm4, %v19100_v55  ;;  %v4844_v55 = vshrl.u32 %v4762_v33, 16  ;;  %v4764_v33 = vld [vmem:[#allocation2 + $0x30] sm:$0xf] }
 0x1bf   : > { %12802 = vmatprep.mubr.msk.bf16.mxu0 %vm1730_vm4, %v19103_v44  ;;  %12831 = vmatpush3.bf16.msra.mxu0 %v13649_v41  ;;  %v4834_v41 = vshll.u32 %v4761_v2, 16  ;;  %v4858_v46 = vshll.u32 %v4764_v33, 16 }
 0x1c0   : > { %12832 = vmatprep.subr.bf16.mxu0 %v13650_v27  ;;  %v4846_v63 = vrot.slane %v4844_v55, 4 }
 0x1c1   : > { %v4836_v62 = vrot.slane %v4834_v41, 5 }
 0x1c3   : > { %12833 = vmatpush3.bf16.msra.mxu0 %v13650_v27  ;;  %v15545_v27 = vrot.slane %v1507_v4, 4 }
 0x1c4   : > { %12866 = vmatprep.subr.bf16.mxu0 %v13652_v34 }
 0x1c6   : > { %12803 = vmatmul.mubr.msk.bf16.gmra.mrb[8].mxu0 %vm1730_vm4, %v19106_v23  ;;  %v1558_v23 = vshll.u32 %v13824_v21, 16 }
 0x1c7   : > { %12806 = vmatprep.mubr.msk.bf16.mxu0 %vm1730_vm4, %v19109_v42  ;;  %v4812_v42 = vrot.slane %v4810_v30, 5 }
 0x1c8   : > { %v15572_v51 = vrot.slane %v1558_v23, 5 }
 0x1c9   : > { %v4813_v48 = vor.u32 %v4812_v42, %v4809_v54  ;;  %v4855_v42 = vshrl.u32 %v4764_v33, 16  ;;  %v15641_v33 = vld [vmem:[#allocation2 + $0x70] sm:$0xf] }
 0x1cb   : > { %v4814_v13 = vrot.slane %v4813_v48, 4  ;;  %v15616_v48 = vrot.slane %v1603_v0, 4 }
 0x1ce   : > { %12807 = vmatmul.mubr.msk.bf16.gmra.mrb[12].mxu0 %vm1730_vm4, %v19112_v19  ;;  %v15561_v19 = vrot.slane %v1534_v60, 5  ;;  %v4824_v60 = vrot.slane %v4823_v45, 4  ;;  %v15618_v45 = vrot.slane %v1606_v15, 5 }
 0x1cf   : > { %12810 = vmatprep.mubr.msk.bf16.mxu0 %vm1730_vm4, %v19115_v38  ;;  %v13655_v38 = vld [vmem:[#allocation2 + $0x3c] sm:$0xff]  }
 0x1d0   : > { %v4829_v0 = vsel %vm14295_vm5, %v4824_v60, %v4828_v6 }
 0x1d6   : > { %12811 = vmatmul.mubr.msk.bf16.gmra.mrb[16].mxu0 %vm1730_vm4, %v19118_v35  ;;  %v4763_v35 = vld [vmem:[#allocation2 + $0x2c] sm:$0x1] }
 0x1d7   : > { %12814 = vmatprep.mubr.msk.bf16.mxu0 %vm1730_vm4, %v19121_v39  ;;  %v15570_v39 = vrot.slane %v1555_v9, 4  ;;  %v4850_v4 = vshll.u32 %v4763_v35, 16  ;;  %v15599_v9 = vld [vmem:[#allocation2 + $0x34] sm:$0xf]  ;;  %v15609_v35 = vld [vmem:[#allocation2 + $0xac] sm:$0xf] }
 0x1d9   : > { %v4852_v21 = vrot.slane %v4850_v4, 5  ;;  %v15633_v4 = vld [vmem:[#allocation2 + $0x40] sm:$0xf] }
 0x1de   : > { %12815 = vmatmul.mubr.msk.bf16.gmra.mrb[20].mxu0 %vm1730_vm4, %v19124_v16 }
 0x1df   : > { %12818 = vmatprep.mubr.msk.bf16.mxu0 %vm1730_vm4, %v19127_v29  ;;  %v13656_v29 = vld [vmem:[#allocation2 + $0x48] sm:$0xff]  }
 0x1e6   : > { %12819 = vmatmul.mubr.msk.bf16.gmra.mrb[24].mxu0 %vm1730_vm4, %v19130_v10 }
 0x1e7   : > { %12822 = vmatprep.mubr.msk.bf16.mxu0 %vm1730_vm4, %v11442_v58  ;;  %v15537_v58 = vld [vmem:[#allocation2 + $0x70] sm:$0xf] }
 0x1e8   : > { %v1496_v12 = vshrl.u32 %v15537_v58, 16 }
 0x1ee   : > { %12823 = vmatmul.mubr.msk.bf16.gmra.mrb[28].mxu0 %vm1730_vm4, %v11443_v59  ;;  %v1531_v59 = vshrl.u32 %v13822_v53, 16  ;;  %v4847_v53 = vor.u32 %v4846_v63, %v15568_v36 }
 0x1ef   : > { %12834 = vmatprep.mubr.msk.bf16.mxu0 %vm1730_vm4, %v13651_v50  ;;  %v13667_v50 = vld [vmem:[%s18951_s3 + $0xf8] sm:$0xff]  }
 0x1f0   : > { %v15553_v44 = vrot.slane %v1531_v59, 4  ;;  %v15587_v59 = vld [vmem:[#allocation2 + $0x58] sm:$0xf]  ;;  %v4848_v54 = vrot.slane %v4847_v53, 4  ;;  %v4860_v53 = vrot.slane %v4858_v46, 5 }
 0x1f1   : > { %v5612_v14 = vrot.slane %v15587_v59, 5  ;;  %v15659_v46 = vld [vmem:[#allocation2 + $0x38] sm:$0x1] }
 0x1f3   : > { %v5614_v23 = vrot.slane %v5612_v14, 4 }
 0x1f6   : > { %12835 = vmatmul.mubr.msk.bf16.vlgmr.msra.gmra.mrb[0].mxu0 %vm1730_vm4, %v13653_v56  ;;  %v13830_v56 = vld [vmem:[#allocation2 + $0xb4] sm:$0xf] }
 0x1f7   : > { %12867 = vmatpush3.bf16.msra.mxu0 %v13652_v34  ;;  %12838 = vmatprep.mubr.msk.bf16.mxu0 %vm1730_vm4, %v13654_v26  ;;  %v4833_v34 = vrot.slane %v4831_v43, 4  ;;  %v1627_v2 = vshrl.u32 %v13830_v56, 16  ;;  %v15589_v26 = vld [vmem:[#allocation2 + $0x5c] sm:$0x1]  ;;  %v1630_v11 = vshll.u32 %v13830_v56, 16  ;;  %v15597_v43 = vld [vmem:[%s18951_s3 + $0x100] sm:$0xff]   ;;  %v4853_v56 = vsel %vm14295_vm5, %v4848_v54, %v4852_v21 }
 0x1f8   : > { %12868 = vmatprep.subr.bf16.mxu0 %v13657_v37  ;;  %v5615_v30 = vrot.slane %v15589_v26, 5 }
 0x1f9   : > { %v4837_v32 = vor.u32 %v4836_v62, %v4833_v34  ;;  %v15605_v34 = vrot.slane %v1579_v57, 4  ;;  %v15607_v62 = vrot.slane %v1582_v47, 5  ;;  %v4864_v57 = vshll.u32 %v15599_v9, 16 }
 0x1fa   : > { %v15624_v31 = vrot.slane %v1627_v2, 4  ;;  %v15626_v25 = vrot.slane %v1630_v11, 5  ;;  %v4857_v2 = vrot.slane %v4855_v42, 4  ;;  %v5518_v11 = vld [vmem:[#allocation2 + $0x6c] sm:$0xe] }
 0x1fb   : > { %12869 = vmatpush3.bf16.msra.mxu0 %v13657_v37  ;;  %v5516_v37 = vld [vmem:[#allocation2 + $0x54] sm:$0xe]  ;;  %v4838_v55 = vrot.slane %v4837_v32, 4  ;;  %v4767_v32 = vld [vmem:[#allocation2 + $0x3c] sm:$0xf]  ;;  %v13660_v42 = vld [vmem:[#allocation2 + $0x6c] sm:$0xff]  }
 0x1fc   : > { %12870 = vmatprep.subr.bf16.mxu0 %v13662_v8  ;;  %v11541_v41 = vrot.slane %v5516_v37, 9  ;;  %v15645_v37 = vld [vmem:[#allocation2 + $0xb8] sm:$0xf]  ;;  %v4879_v6 = vshrl.u32 %v4767_v32, 16 }
 0x1fd   : > { %v4843_v15 = vsel %vm14295_vm5, %v4838_v55, %v15568_v36  ;;  %v5626_v36 = vrot.slane %v15641_v33, 5  ;;  %v11543_v55 = vrot.slane %v5518_v11, 9 }
 0x1fe   : > { %12839 = vmatmul.mubr.msk.bf16.gmra.mrb[4].mxu0 %vm1730_vm4, %v13655_v38  ;;  %v15603_v38 = vsel %vm14711_vm0, %v11541_v41, %v5612_v14  ;;  %v15654_v41 = vrot.slane %v4864_v57, 5  ;;  %v15656_v21 = vcombine.low %v4843_v15, %v4853_v56  ;;  %v13661_v14 = vld [vmem:[#allocation2 + $0x78] sm:$0xff]  }
 0x1ff   : > { %12842 = vmatprep.mubr.msk.bf16.mxu0 %vm1730_vm4, %v13656_v29  ;;  %12871 = vmatpush3.bf16.msra.mxu0 %v13662_v8  ;;  %v13658_v8 = vld [vmem:[#allocation2 + $0x54] sm:$0xff]   ;;  %v15614_v29 = vsel %vm14711_vm0, %v5614_v23, %v5615_v30  ;;  %v4868_v30 = vshrl.u32 %v15599_v9, 16  ;;  %v4882_v23 = vshll.u32 %v4767_v32, 16  ;;  %v5628_v54 = vrot.slane %v5626_v36, 4  ;;  %v13834_v32 = vld [vmem:[#allocation2 + $0x64] sm:$0xf] }
 0x200   : > { %12872 = vmatprep.subr.bf16.mxu0 %v13667_v50  ;;  %v15663_v47 = vsel %vm14711_vm0, %v11543_v55, %v5626_v36  ;;  %v1468_v56 = vshll.u32 %v13834_v32, 16  ;;  %v1472_v11 = vshrl.u32 %v13834_v32, 16  ;;  %v1492_v36 = vshll.u32 %v15537_v58, 16  ;;  %v13835_v32 = vld [vmem:[#allocation2 + $0x68] sm:$0x1] }
 0x201   : > { %19131 = vst [vmem:[#allocation8_spill] sm:$0xff] %v15663_v47  ;;  %v4870_v63 = vrot.slane %v4868_v30, 4  ;;  %v4874_v55 = vshll.u32 %v15659_v46, 16  ;;  %v1498_v30 = vrot.slane %v1496_v12, 4  ;;  %v1478_v28 = vshll.u32 %v13835_v32, 16 }
 0x202   : > { %v1470_v16 = vrot.slane %v1468_v56, 5  ;;  %v1489_v56 = vor.u32 %v15543_v52, %v15535_v1 }
 0x203   : > { %12873 = vmatpush3.bf16.msra.mxu0 %v13667_v50  ;;  %v4819_v50 = vsel %vm14295_vm5, %v4814_v13, %v15559_v7  ;;  %v15643_v7 = vld [vmem:[#allocation2 + $0x74] sm:$0x1] }
 0x204   : > { %12906 = vmatprep.subr.bf16.mxu0 %v15597_v43  ;;  %v5629_v13 = vrot.slane %v15643_v7, 5  ;;  %v15652_v60 = vcombine.low %v4819_v50, %v4829_v0  ;;  %v13833_v50 = vld [vmem:[#allocation2 + $0x60] sm:$0xf]  ;;  %v1490_v32 = vrot.slane %v1489_v56, 4 }
 0x205   : > { %v1459_v0 = vshrl.u32 %v13833_v50, 16  ;;  %v1462_v57 = vshll.u32 %v13833_v50, 16  ;;  %v1474_v50 = vrot.slane %v1472_v11, 4  ;;  %v1494_v11 = vrot.slane %v1492_v36, 5 }
 0x206   : > { %12843 = vmatmul.mubr.msk.bf16.gmra.mrb[8].mxu0 %vm1730_vm4, %v13658_v8  ;;  %v4888_v8 = vshll.u32 %v15633_v4, 16  ;;  %v15667_v15 = vsel %vm14711_vm0, %v5628_v54, %v5629_v13  ;;  %v4881_v13 = vrot.slane %v4879_v6, 4  ;;  %v4884_v54 = vrot.slane %v4882_v23, 5  ;;  %v13836_v6 = vld [vmem:[#allocation2 + $0x74] sm:$0x1] }
 0x207   : > { %12846 = vmatprep.mubr.msk.bf16.mxu0 %vm1730_vm4, %v13659_v20  ;;  %v4861_v20 = vor.u32 %v4860_v53, %v4857_v2  ;;  %19132 = vst [vmem:[#allocation9_spill] sm:$0xff] %v15667_v15  ;;  %v1461_v2 = vrot.slane %v1459_v0, 4  ;;  %v1464_v53 = vrot.slane %v1462_v57, 5  ;;  %v15677_v0 = vld [vmem:[#allocation2 + $0x44] sm:$0x1]  ;;  %v4892_v57 = vshrl.u32 %v15633_v4, 16 }
 0x208   : > { %v1475_v10 = vor.u32 %v1474_v50, %v1470_v16  ;;  %v1502_v23 = vshll.u32 %v13836_v6, 16  ;;  %v13663_v15 = vld [vmem:[#allocation2 + $0x84] sm:$0xff]   ;;  %v15685_v47 = vrot.slane %v4888_v8, 5  ;;  %v4898_v50 = vshll.u32 %v15677_v0, 16 }
 0x209   : > { %v1465_v18 = vor.u32 %v1464_v53, %v1461_v2  ;;  %v15682_v58 = vrot.slane %v4861_v20, 4  ;;  %v4871_v2 = vor.u32 %v4870_v63, %v15654_v41  ;;  %v13664_v20 = vld [vmem:[#allocation2 + $0x90] sm:$0xff]   ;;  %v4885_v36 = vor.u32 %v4884_v54, %v4881_v13 }
 0x20a   : > { %v1476_v53 = vrot.slane %v1475_v10, 4  ;;  %v1504_v52 = vrot.slane %v1502_v23, 5  ;;  %v1495_v10 = vsel %vm14295_vm5, %v1490_v32, %v1494_v11  ;;  %v4894_v56 = vrot.slane %v4892_v57, 4 }
 0x20b   : > { %v1466_v12 = vrot.slane %v1465_v18, 4  ;;  %v4770_v18 = vld [vmem:[#allocation2 + $0x48] sm:$0xf]  ;;  %v1516_v6 = vshll.u32 %v15550_v22, 16  ;;  %v19133_v54 = vshrl.u32 %v15550_v22, 16  ;;  %v1513_v57 = vor.u32 %v15547_v49, %v15545_v27 }
 0x20c   : > { %v1540_v23 = vshll.u32 %v15563_v17, 16  ;;  %v4895_v32 = vor.u32 %v4894_v56, %v15685_v47  ;;  %v1537_v27 = vor.u32 %v15561_v19, %v15553_v44  ;;  %v19134_v49 = vshrl.u32 %v15563_v17, 16 }
 0x20d   : > { %v1471_v1 = vsel %vm14295_vm5, %v1466_v12, %v1470_v16  ;;  %v4867_v16 = vsel %vm14295_vm5, %v15682_v58, %v15654_v41  ;;  %v4872_v12 = vrot.slane %v4871_v2, 4  ;;  %v15709_v41 = vrot.slane %v4885_v36, 4  ;;  %v15713_v2 = vld [vmem:[#allocation2 + $0x4c] sm:$0xf] }
 0x20e   : > { %12847 = vmatmul.mubr.msk.bf16.gmra.mrb[12].mxu0 %vm1730_vm4, %v13660_v42  ;;  %v1480_v42 = vrot.slane %v1478_v28, 5  ;;  %v15711_v58 = vrot.slane %v4898_v50, 5  ;;  %v1518_v22 = vrot.slane %v1516_v6, 5  ;;  %v4912_v56 = vshll.u32 %v15713_v2, 16 }
 0x20f   : > { %12850 = vmatprep.mubr.msk.bf16.mxu0 %vm1730_vm4, %v13661_v14  ;;  %v1499_v14 = vor.u32 %v1498_v30, %v1494_v11  ;;  %v4876_v30 = vrot.slane %v4874_v55, 5  ;;  %v4903_v11 = vshrl.u32 %v4770_v18, 16  ;;  %v1542_v6 = vrot.slane %v1540_v23, 5 }
 0x210   : > { %v1481_v28 = vsel %vm14295_vm5, %v1476_v53, %v1480_v42  ;;  %v1522_v42 = vrot.slane %v19133_v54, 4  ;;  %v13837_v53 = vld [vmem:[#allocation2 + $0x80] sm:$0x1]  ;;  %v4916_v44 = vshrl.u32 %v15713_v2, 16  ;;  %v13838_v54 = vld [vmem:[#allocation2 + $0x8c] sm:$0x1] }
 0x211   : > { %v1500_v63 = vrot.slane %v1499_v14, 4  ;;  %v11224_v8 = vcombine.low %v1471_v1, %v1481_v28  ;;  %v1514_v14 = vrot.slane %v1513_v57, 4  ;;  %v1546_v1 = vrot.slane %v19134_v49, 4  ;;  %v15738_v57 = vld [vmem:[#allocation2 + $0x50] sm:$0x1] }
 0x212   : > { %v4877_v50 = vsel %vm14295_vm5, %v4872_v12, %v4876_v30  ;;  %v1523_v36 = vor.u32 %v1522_v42, %v1518_v22  ;;  %v1550_v30 = vshll.u32 %v13838_v54, 16  ;;  %v4891_v12 = vsel %vm14295_vm5, %v15709_v41, %v15685_v47 }
 0x213   : > { %v1505_v13 = vsel %vm14295_vm5, %v1500_v63, %v1504_v52  ;;  %12610 = vmatprep.mubr.msk.bf16.mxu1 %vm1730_vm4, %v11224_v8  ;;  %v4906_v52 = vshll.u32 %v4770_v18, 16  ;;  %v4905_v63 = vrot.slane %v4903_v11, 4  ;;  %v1538_v8 = vrot.slane %v1537_v27, 4 }
 0x214   : > { %v11225_v55 = vcombine.low %v1495_v10, %v1505_v13  ;;  %v13665_v10 = vld [vmem:[#allocation2 + $0x9c] sm:$0xff]   ;;  %v13666_v13 = vld [vmem:[#allocation2 + $0xa8] sm:$0xff]   ;;  %v1519_v19 = vsel %vm14295_vm5, %v1514_v14, %v1518_v22  ;;  %v1524_v17 = vrot.slane %v1523_v36, 4  ;;  %v15729_v18 = vcombine.low %v4867_v16, %v4877_v50 }
 0x215   : > { %v1547_v11 = vor.u32 %v1546_v1, %v1542_v6  ;;  %v4908_v23 = vrot.slane %v4906_v52, 5  ;;  %v1561_v27 = vor.u32 %v15572_v51, %v15570_v39  ;;  %v1564_v49 = vshll.u32 %v15574_v3, 16  ;;  %v13839_v52 = vld [vmem:[#allocation2 + $0x98] sm:$0x1] }
 0x216   : > { %12851 = vmatmul.mubr.msk.bf16.gmra.mrb[16].mxu0 %vm1730_vm4, %v13663_v15  ;;  %v1526_v15 = vshll.u32 %v13837_v53, 16  ;;  %12611 = vmatmul.mubr.msk.bf16.vlgmr.msra.gmra.mrb[0].mxu1 %vm1730_vm4, %v11225_v55  ;;  %v15736_v55 = vrot.slane %v4895_v32, 4  ;;  %v1552_v53 = vrot.slane %v1550_v30, 5  ;;  %v15748_v32 = vrot.slane %v4912_v56, 5  ;;  %v13669_v30 = vld [vmem:[#allocation2 + $0xc0] sm:$0xff]  }
 0x217   : > { %12854 = vmatprep.mubr.msk.bf16.mxu0 %vm1730_vm4, %v13664_v20  ;;  %v15723_v20 = vld [vmem:[#allocation2 + $0x54] sm:$0xf]  ;;  %v1548_v14 = vrot.slane %v1547_v11, 4  ;;  %v19135_v1 = vshrl.u32 %v15574_v3, 16  ;;  %v1574_v36 = vshll.u32 %v13839_v52, 16  ;;  %v1562_v3 = vrot.slane %v1561_v27, 4 }
 0x218   : > { %v1528_v28 = vrot.slane %v1526_v15, 5  ;;  %v4927_v42 = vshrl.u32 %v15723_v20, 16  ;;  %v1543_v15 = vsel %vm14295_vm5, %v1538_v8, %v1542_v6  ;;  %v4901_v51 = vsel %vm14295_vm5, %v15736_v55, %v15711_v58  ;;  %v13668_v6 = vld [vmem:[#allocation2 + $0xb4] sm:$0xff]   ;;  %v4788_v55 = vld [vmem:[#allocation2 + $0x90] sm:$0xf] }
 0x219   : > { %v1570_v50 = vrot.slane %v19135_v1, 4  ;;  %v1553_v39 = vsel %vm14295_vm5, %v1548_v14, %v1552_v53  ;;  %v1566_v8 = vrot.slane %v1564_v49, 5  ;;  %v1585_v54 = vor.u32 %v15607_v62, %v15605_v34 }
 0x21a   : > { %v1529_v22 = vsel %vm14295_vm5, %v1524_v17, %v1528_v28  ;;  %v4918_v28 = vrot.slane %v4916_v44, 4  ;;  %v11227_v56 = vcombine.low %v1543_v15, %v1553_v39  ;;  %v4930_v44 = vshll.u32 %v15723_v20, 16 }
 0x21b   : > { %v11226_v16 = vcombine.low %v1519_v19, %v1529_v22  ;;  %v15754_v19 = vrot.slane %v4927_v42, 4  ;;  %v4936_v17 = vshll.u32 %v15587_v59, 16  ;;  %v1571_v42 = vor.u32 %v1570_v50, %v1566_v8 }
 0x21c   : > { %v1576_v11 = vrot.slane %v1574_v36, 5  ;;  %v1588_v22 = vshll.u32 %v15577_v5, 16  ;;  %v19136_v53 = vshrl.u32 %v15577_v5, 16  ;;  %v4919_v15 = vor.u32 %v4918_v28, %v15748_v32  ;;  %v4776_v36 = vld [vmem:[#allocation2 + $0x60] sm:$0xf] }
 0x21d   : > { %12614 = vmatprep.mubr.msk.bf16.mxu1 %vm1730_vm4, %v11226_v16  ;;  %v4940_v20 = vshrl.u32 %v15587_v59, 16  ;;  %v1567_v34 = vsel %vm14295_vm5, %v1562_v3, %v1566_v8  ;;  %v1572_v62 = vrot.slane %v1571_v42, 4  ;;  %v1586_v27 = vrot.slane %v1585_v54, 4  ;;  %v15789_v3 = vld [vmem:[#allocation2 + $0x64] sm:$0xf]  ;;  %v13670_v42 = vld [vmem:[#allocation2 + $0xcc] sm:$0xff]  }
 0x21e   : > { %12855 = vmatmul.mubr.msk.bf16.gmra.mrb[20].mxu0 %vm1730_vm4, %v13665_v10  ;;  %v4922_v10 = vshll.u32 %v15738_v57, 16  ;;  %12615 = vmatmul.mubr.msk.bf16.gmra.mrb[4].mxu1 %vm1730_vm4, %v11227_v56  ;;  %v1594_v16 = vrot.slane %v19136_v53, 4  ;;  %v1590_v49 = vrot.slane %v1588_v22, 5  ;;  %v4932_v5 = vrot.slane %v4930_v44, 5  ;;  %v13841_v54 = vld [vmem:[#allocation2 + $0xb0] sm:$0x1] }
 0x21f   : > { %12858 = vmatprep.mubr.msk.bf16.mxu0 %vm1730_vm4, %v13666_v13  ;;  %v4909_v13 = vor.u32 %v4908_v23, %v4905_v63  ;;  %v13840_v23 = vld [vmem:[#allocation2 + $0xa4] sm:$0x1]  ;;  %v1609_v50 = vor.u32 %v15618_v45, %v15616_v48  ;;  %v1612_v52 = vshll.u32 %v15609_v35, 16  ;;  %v15784_v59 = vrot.slane %v4936_v17, 5 }
 0x220   : > { %v15772_v63 = vrot.slane %v4922_v10, 5  ;;  %v1598_v14 = vshll.u32 %v13840_v23, 16  ;;  %v1577_v28 = vsel %vm14295_vm5, %v1572_v62, %v1576_v11  ;;  %v1595_v10 = vor.u32 %v1594_v16, %v1590_v49 }
 0x221   : > { %v15778_v1 = vrot.slane %v4909_v13, 4  ;;  %v4946_v56 = vshll.u32 %v15589_v26, 16  ;;  %v11228_v8 = vcombine.low %v1567_v34, %v1577_v28  ;;  %v1614_v13 = vrot.slane %v1612_v52, 5  ;;  %v13842_v28 = vld [vmem:[#allocation2 + $0xbc] sm:$0x1] }
 0x222   : > { %v1600_v39 = vrot.slane %v1598_v14, 5  ;;  %v1591_v48 = vsel %vm14295_vm5, %v1586_v27, %v1590_v49  ;;  %v1596_v45 = vrot.slane %v1595_v10, 4  ;;  %v19137_v44 = vshrl.u32 %v15609_v35, 16 }
 0x223   : > { %v15795_v11 = vrot.slane %v4919_v15, 4  ;;  %v4942_v22 = vrot.slane %v4940_v20, 4  ;;  %v4951_v53 = vshrl.u32 %v4776_v36, 16  ;;  %v4954_v26 = vshll.u32 %v4776_v36, 16  ;;  %12618 = vmatprep.mubr.msk.bf16.mxu1 %vm1730_vm4, %v11228_v8  ;;  %v4779_v20 = vld [vmem:[#allocation2 + $0x6c] sm:$0xf] }
 0x224   : > { %v1618_v17 = vrot.slane %v19137_v44, 4  ;;  %v4960_v16 = vshll.u32 %v15789_v3, 16  ;;  %v1601_v23 = vsel %vm14295_vm5, %v1596_v45, %v1600_v39  ;;  %v4964_v35 = vshrl.u32 %v15789_v3, 16  ;;  %v15821_v45 = vld [vmem:[#allocation2 + $0x68] sm:$0x1] }
 0x225   : > { %v11229_v62 = vcombine.low %v1591_v48, %v1601_v23  ;;  %v1633_v15 = vor.u32 %v15626_v25, %v15624_v31  ;;  %v19138_v52 = vshrl.u32 %v15645_v37, 16  ;;  %v1646_v10 = vshll.u32 %v13842_v28, 16 }
 0x226   : > { %12859 = vmatmul.mubr.msk.bf16.gmra.mrb[24].mxu0 %vm1730_vm4, %v13668_v6  ;;  %v1610_v6 = vrot.slane %v1609_v50, 4  ;;  %v1619_v14 = vor.u32 %v1618_v17, %v1614_v13  ;;  %v1636_v50 = vshll.u32 %v15645_v37, 16  ;;  %v4915_v39 = vsel %vm14295_vm5, %v15778_v1, %v15748_v32 }
 0x227   : > { %12862 = vmatprep.mubr.msk.bf16.mxu0 %vm1730_vm4, %v13669_v30  ;;  %v1622_v30 = vshll.u32 %v13841_v54, 16  ;;  %v1642_v36 = vrot.slane %v19138_v52, 4  ;;  %v4933_v8 = vor.u32 %v4932_v5, %v15754_v19  ;;  %v4943_v31 = vor.u32 %v4942_v22, %v15784_v59  ;;  %12619 = vmatmul.mubr.msk.bf16.gmra.mrb[8].mxu1 %vm1730_vm4, %v11229_v62 }
 0x228   : > { %v1615_v27 = vsel %vm14295_vm5, %v1610_v6, %v1614_v13  ;;  %v1620_v49 = vrot.slane %v1619_v14, 4  ;;  %v4953_v25 = vrot.slane %v4951_v53, 4  ;;  %v4956_v37 = vrot.slane %v4954_v26, 5  ;;  %v15835_v14 = vld [vmem:[#allocation2 + $0x7c] sm:$0xf] }
 0x229   : > { %v1624_v34 = vrot.slane %v1622_v30, 5  ;;  %v1634_v13 = vrot.slane %v1633_v15, 4  ;;  %v1638_v48 = vrot.slane %v1636_v50, 5  ;;  %v15823_v44 = vrot.slane %v4960_v16, 5 }
 0x22a   : > { %v4966_v17 = vrot.slane %v4964_v35, 4  ;;  %v4975_v19 = vshrl.u32 %v4779_v20, 16  ;;  %v4925_v54 = vsel %vm14295_vm5, %v15795_v11, %v15772_v63  ;;  %v15829_v30 = vrot.slane %v4946_v56, 5  ;;  %v13672_v11 = vld [vmem:[%s18951_s3 + $0x108] sm:$0xff]  }
 0x22b   : > { %v1625_v6 = vsel %vm14295_vm5, %v1620_v49, %v1624_v34  ;;  %v1648_v22 = vrot.slane %v1646_v10, 5  ;;  %v15831_v53 = vrot.slane %v4933_v8, 4  ;;  %v4978_v26 = vshll.u32 %v4779_v20, 16  ;;  %v4785_v20 = vld [vmem:[#allocation2 + $0x84] sm:$0xf] }
 0x22c   : > { %v11230_v5 = vcombine.low %v1615_v27, %v1625_v6  ;;  %v4984_v23 = vshll.u32 %v15641_v33, 16  ;;  %v4988_v16 = vshrl.u32 %v15641_v33, 16  ;;  %v4957_v34 = vor.u32 %v4956_v37, %v4953_v25 }
 0x22d   : > { %v4970_v35 = vshll.u32 %v15821_v45, 16  ;;  %v1639_v63 = vsel %vm14295_vm5, %v1634_v13, %v1638_v48  ;;  %v15844_v62 = vrot.slane %v4943_v31, 4  ;;  %v4967_v27 = vor.u32 %v4966_v17, %v15823_v44 }
 0x22e   : > { %12863 = vmatmul.mubr.msk.bf16.gmra.mrb[28].mxu0 %vm1730_vm4, %v13670_v42  ;;  %v1643_v42 = vor.u32 %v1642_v36, %v1638_v48  ;;  %12622 = vmatprep.mubr.msk.bf16.mxu1 %vm1730_vm4, %v11230_v5  ;;  %v4977_v33 = vrot.slane %v4975_v19, 4  ;;  %v5008_v50 = vshll.u32 %v15835_v14, 16  ;;  %v5012_v52 = vshrl.u32 %v15835_v14, 16  ;;  %v15849_v36 = vld [vmem:[#allocation2 + $0x88] sm:$0xf] }
 0x22f   : > { %12874 = vmatprep.mubr.msk.bf16.mxu0 %vm1730_vm4, %v15652_v60  ;;  %v4782_v60 = vld [vmem:[#allocation2 + $0x78] sm:$0xf]  ;;  %v4980_v10 = vrot.slane %v4978_v26, 5  ;;  %v15855_v8 = vrot.slane %v4984_v23, 5  ;;  %v4990_v31 = vrot.slane %v4988_v16, 4  ;;  %v4958_v37 = vrot.slane %v4957_v34, 4 }
 0x230   : > { %v1644_v56 = vrot.slane %v1643_v42, 4  ;;  %v4999_v15 = vshrl.u32 %v4782_v60, 16  ;;  %v5002_v49 = vshll.u32 %v4782_v60, 16  ;;  %v4972_v6 = vrot.slane %v4970_v35, 5  ;;  %v15885_v34 = vld [vmem:[#allocation2 + $0x80] sm:$0x1] }
 0x231   : > { %v4994_v13 = vshll.u32 %v15643_v7, 16  ;;  %v5023_v48 = vshrl.u32 %v4785_v20, 16  ;;  %v4968_v17 = vrot.slane %v4967_v27, 4  ;;  %v5026_v19 = vshll.u32 %v4785_v20, 16 }
 0x232   : > { %v1649_v28 = vsel %vm14295_vm5, %v1644_v56, %v1648_v22  ;;  %v5032_v5 = vshll.u32 %v15849_v36, 16  ;;  %v5036_v60 = vshrl.u32 %v15849_v36, 16  ;;  %v15867_v42 = vrot.slane %v5008_v50, 5 }
 0x233   : > { %v11231_v25 = vcombine.low %v1639_v63, %v1649_v28  ;;  %v5014_v22 = vrot.slane %v5012_v52, 4  ;;  %v11503_v7 = vcombine.low %v4891_v12, %v4901_v51  ;;  %v11504_v26 = vcombine.low %v4915_v39, %v4925_v54  ;;  %v13674_v54 = vld [vmem:[%s18951_s3 + $0x118] sm:$0xff]  }
 0x234   : > { %v4981_v23 = vor.u32 %v4980_v10, %v4977_v33  ;;  %v4991_v16 = vor.u32 %v4990_v31, %v15855_v8  ;;  %v4939_v58 = vsel %vm14295_vm5, %v15831_v53, %v15784_v59  ;;  %v4949_v47 = vsel %vm14295_vm5, %v15844_v62, %v15829_v30  ;;  %v15902_v59 = vld [vmem:[#allocation2 + $0x94] sm:$0xf]  ;;  %v4791_v28 = vld [vmem:[#allocation2 + $0x9c] sm:$0xf] }
 0x235   : > { %12623 = vmatmul.mubr.msk.bf16.gmra.mrb[12].mxu1 %vm1730_vm4, %v11231_v25  ;;  %v15895_v41 = vrot.slane %v4994_v13, 5  ;;  %v5025_v12 = vrot.slane %v5023_v48, 4  ;;  %v4963_v32 = vsel %vm14295_vm5, %v4958_v37, %v15823_v44  ;;  %v5028_v51 = vrot.slane %v5026_v19, 5  ;;  %v15911_v44 = vld [vmem:[#allocation2 + $0x8c] sm:$0x1] }
 0x236   : > { %12875 = vmatmul.mubr.msk.bf16.vlgmr.msra.gmra.mrb[0].mxu0 %vm1730_vm4, %v15656_v21  ;;  %v13673_v21 = vld [vmem:[%s18951_s3 + $0x110] sm:$0xff]   ;;  %v15900_v1 = vrot.slane %v5032_v5, 5  ;;  %v5038_v39 = vrot.slane %v5036_v60, 4  ;;  %v4973_v30 = vsel %vm14295_vm5, %v4968_v17, %v4972_v6  ;;  %v5015_v35 = vor.u32 %v5014_v22, %v15867_v42  ;;  %v15919_v6 = vld [vmem:[#allocation2 + $0x98] sm:$0x1] }
 0x237   : > { %12907 = vmatpush3.bf16.msra.mxu0 %v15597_v43  ;;  %12878 = vmatprep.mubr.msk.bf16.mxu0 %vm1730_vm4, %v15729_v18  ;;  %v5001_v43 = vrot.slane %v4999_v15, 4  ;;  %v5004_v18 = vrot.slane %v5002_v49, 5  ;;  %v5018_v63 = vshll.u32 %v15885_v34, 16  ;;  %v4982_v56 = vrot.slane %v4981_v23, 4  ;;  %v15927_v19 = vld [vmem:[#allocation2 + $0xa0] sm:$0xf] }
 0x238   : > { %12908 = vmatprep.subr.bf16.mxu0 %v13672_v11  ;;  %v5047_v62 = vshrl.u32 %v4788_v55, 16  ;;  %v5050_v27 = vshll.u32 %v4788_v55, 16  ;;  %v5056_v33 = vshll.u32 %v15902_v59, 16  ;;  %v5060_v15 = vshrl.u32 %v15902_v59, 16  ;;  %v4794_v5 = vld [vmem:[#allocation2 + $0xa8] sm:$0xf] }
 0x239   : > { %v5005_v53 = vor.u32 %v5004_v18, %v5001_v43  ;;  %v11505_v20 = vcombine.low %v4939_v58, %v4949_v47  ;;  %v5029_v49 = vor.u32 %v5028_v51, %v5025_v12  ;;  %v5039_v50 = vor.u32 %v5038_v39, %v15900_v1 }
 0x23a   : > { %v5042_v52 = vshll.u32 %v15911_v44, 16  ;;  %v11506_v10 = vcombine.low %v4963_v32, %v4973_v30  ;;  %v5016_v25 = vrot.slane %v5015_v35, 4  ;;  %v5020_v37 = vrot.slane %v5018_v63, 5 }
 0x23b   : > { %12909 = vmatpush3.bf16.msra.mxu0 %v13672_v11  ;;  %v4992_v11 = vrot.slane %v4991_v16, 4  ;;  %v5006_v31 = vrot.slane %v5005_v53, 4  ;;  %v4987_v13 = vsel %vm14295_vm5, %v4982_v56, %v15855_v8  ;;  %v5049_v17 = vrot.slane %v5047_v62, 4 }
 0x23c   : > { %12910 = vmatprep.subr.bf16.mxu0 %v13673_v21  ;;  %v15929_v60 = vrot.slane %v5056_v33, 5  ;;  %v5062_v43 = vrot.slane %v5060_v15, 4  ;;  %v5071_v18 = vshrl.u32 %v4791_v28, 16  ;;  %v5074_v22 = vshll.u32 %v4791_v28, 16 }
 0x23d   : > { %v4997_v48 = vsel %vm14295_vm5, %v4992_v11, %v15895_v41  ;;  %v5040_v23 = vrot.slane %v5039_v50, 4  ;;  %v5044_v8 = vrot.slane %v5042_v52, 5  ;;  %v5066_v16 = vshll.u32 %v15919_v6, 16  ;;  %v15951_v11 = vld [vmem:[#allocation2 + $0xa4] sm:$0x1] }
 0x23e   : > { %12879 = vmatmul.mubr.msk.bf16.gmra.mrb[4].mxu0 %vm1730_vm4, %v11503_v7  ;;  %v15931_v7 = vld [vmem:[#allocation2 + $0xac] sm:$0xf]  ;;  %v5080_v58 = vshll.u32 %v15927_v19, 16  ;;  %v5084_v47 = vshrl.u32 %v15927_v19, 16  ;;  %v5095_v41 = vshrl.u32 %v4794_v5, 16  ;;  %v5098_v12 = vshll.u32 %v4794_v5, 16 }
 0x23f   : > { %12882 = vmatprep.mubr.msk.bf16.mxu0 %vm1730_vm4, %v11504_v26  ;;  %12911 = vmatpush3.bf16.msra.mxu0 %v13673_v21  ;;  %v5052_v21 = vrot.slane %v5050_v27, 5  ;;  %v5030_v26 = vrot.slane %v5029_v49, 4  ;;  %v5011_v55 = vsel %vm14295_vm5, %v5006_v31, %v15867_v42  ;;  %v5021_v32 = vsel %vm14295_vm5, %v5016_v25, %v5020_v37  ;;  %v15955_v50 = vld [vmem:[#allocation2 + $0xb0] sm:$0x1] }
 0x240   : > { %12912 = vmatprep.subr.bf16.mxu0 %v13674_v54  ;;  %v5104_v51 = vshll.u32 %v15931_v7, 16  ;;  %v5108_v39 = vshrl.u32 %v15931_v7, 16  ;;  %v5063_v30 = vor.u32 %v5062_v43, %v15929_v60  ;;  %v5073_v53 = vrot.slane %v5071_v18, 4  ;;  %v4800_v18 = vld [vmem:[#allocation2 + $0xc0] sm:$0xf] }
 0x241   : > { %v5076_v35 = vrot.slane %v5074_v22, 5  ;;  %v5035_v63 = vsel %vm14295_vm5, %v5030_v26, %v15900_v1  ;;  %v5045_v42 = vsel %vm14295_vm5, %v5040_v23, %v5044_v8  ;;  %v5068_v56 = vrot.slane %v5066_v16, 5  ;;  %v15964_v22 = vld [vmem:[#allocation2 + $0xc4] sm:$0xf] }
 0x242   : > { %v15953_v62 = vrot.slane %v5080_v58, 5  ;;  %v5086_v27 = vrot.slane %v5084_v47, 4  ;;  %v5097_v33 = vrot.slane %v5095_v41, 4  ;;  %v5100_v15 = vrot.slane %v5098_v12, 5 }
 0x243   : > { %12913 = vmatpush3.bf16.msra.mxu0 %v13674_v54  ;;  %v5053_v54 = vor.u32 %v5052_v21, %v5049_v17  ;;  %v11508_v49 = vcombine.low %v5011_v55, %v5021_v32  ;;  %v15957_v52 = vrot.slane %v5104_v51, 5  ;;  %v5110_v28 = vrot.slane %v5108_v39, 4  ;;  %v15960_v17 = vld [vmem:[#allocation2 + $0xb8] sm:$0xf] }
 0x244   : > { %v5064_v31 = vrot.slane %v5063_v30, 4  ;;  %v5077_v25 = vor.u32 %v5076_v35, %v5073_v53  ;;  %v5090_v37 = vshll.u32 %v15951_v11, 16  ;;  %v11509_v21 = vcombine.low %v5035_v63, %v5045_v42  ;;  %v15978_v42 = vld [vmem:[#allocation2 + $0xbc] sm:$0x1] }
 0x245   : > { %v5054_v1 = vrot.slane %v5053_v54, 4  ;;  %v5087_v5 = vor.u32 %v5086_v27, %v15953_v62  ;;  %v5101_v43 = vor.u32 %v5100_v15, %v5097_v33  ;;  %v5111_v26 = vor.u32 %v5110_v28, %v15957_v52 }
 0x246   : > { %12883 = vmatmul.mubr.msk.bf16.gmra.mrb[8].mxu0 %vm1730_vm4, %v11505_v20  ;;  %v11507_v20 = vcombine.low %v4987_v13, %v4997_v48  ;;  %v5114_v13 = vshll.u32 %v15955_v50, 16  ;;  %v5128_v8 = vshll.u32 %v15960_v17, 16  ;;  %v5132_v16 = vshrl.u32 %v15960_v17, 16 }
 0x247   : > { %12886 = vmatprep.mubr.msk.bf16.mxu0 %vm1730_vm4, %v11506_v10  ;;  %v4797_v10 = vld [vmem:[#allocation2 + $0xb4] sm:$0xf]  ;;  %v5059_v58 = vsel %vm14295_vm5, %v5054_v1, %v15929_v60  ;;  %v5069_v47 = vsel %vm14295_vm5, %v5064_v31, %v5068_v56  ;;  %v5078_v41 = vrot.slane %v5077_v25, 4  ;;  %v5092_v12 = vrot.slane %v5090_v37, 5  ;;  %v4803_v56 = vld [vmem:[#allocation2 + $0xcc] sm:$0xf] }
 0x248   : > { %v5119_v48 = vshrl.u32 %v4797_v10, 16  ;;  %v5122_v23 = vshll.u32 %v4797_v10, 16  ;;  %v5143_v55 = vshrl.u32 %v4800_v18, 16  ;;  %v5146_v32 = vshll.u32 %v4800_v18, 16  ;;  %v15980_v1 = vld [vmem:[#allocation2 + $0xd0] sm:$0xf] }
 0x249   : > { %v5152_v51 = vshll.u32 %v15964_v22, 16  ;;  %v5156_v39 = vshrl.u32 %v15964_v22, 16  ;;  %v5088_v54 = vrot.slane %v5087_v5, 4  ;;  %v5102_v30 = vrot.slane %v5101_v43, 4  ;;  %v15988_v5 = vld [vmem:[#allocation2 + $0xc8] sm:$0x1] }
 0x24a   : > { %v5116_v53 = vrot.slane %v5114_v13, 5  ;;  %v5121_v35 = vrot.slane %v5119_v48, 4  ;;  %v5112_v63 = vrot.slane %v5111_v26, 4  ;;  %v5124_v27 = vrot.slane %v5122_v23, 5 }
 0x24b   : > { %v5130_v60 = vrot.slane %v5128_v8, 5  ;;  %v5134_v33 = vrot.slane %v5132_v16, 4  ;;  %v11510_v15 = vcombine.low %v5059_v58, %v5069_v47  ;;  %v5154_v28 = vrot.slane %v5152_v51, 5 }
 0x24c   : > { %v5158_v10 = vrot.slane %v5156_v39, 4  ;;  %v5083_v31 = vsel %vm14295_vm5, %v5078_v41, %v15953_v62  ;;  %v5093_v25 = vsel %vm14295_vm5, %v5088_v54, %v5092_v12  ;;  %v5138_v37 = vshll.u32 %v15978_v42, 16 }
 0x24d   : > { %v5107_v43 = vsel %vm14295_vm5, %v5102_v30, %v15957_v52  ;;  %v5117_v13 = vsel %vm14295_vm5, %v5112_v63, %v5116_v53  ;;  %v5125_v48 = vor.u32 %v5124_v27, %v5121_v35  ;;  %v5135_v18 = vor.u32 %v5134_v33, %v5130_v60  ;;  %v16000_v63 = vld [vmem:[#allocation2 + $0xd4] sm:$0x1] }
 0x24e   : > { %12887 = vmatmul.mubr.msk.bf16.gmra.mrb[12].mxu0 %vm1730_vm4, %v11507_v20  ;;  %v5145_v20 = vrot.slane %v5143_v55, 4  ;;  %v5167_v62 = vshrl.u32 %v4803_v56, 16  ;;  %v5170_v26 = vshll.u32 %v4803_v56, 16  ;;  %v5176_v23 = vshll.u32 %v15980_v1, 16 }
 0x24f   : > { %12890 = vmatprep.mubr.msk.bf16.mxu0 %vm1730_vm4, %v11508_v49  ;;  %v5148_v49 = vrot.slane %v5146_v32, 5  ;;  %v5180_v8 = vshrl.u32 %v15980_v1, 16  ;;  %v5159_v58 = vor.u32 %v5158_v10, %v5154_v28  ;;  %v11511_v47 = vcombine.low %v5083_v31, %v5093_v25  ;;  %v13843_v31 = vld [vmem:[#allocation2 + $0x1c] sm:$0xf] }
 0x250   : > { %v11512_v41 = vcombine.low %v5107_v43, %v5117_v13  ;;  %v5126_v52 = vrot.slane %v5125_v48, 4  ;;  %v5136_v12 = vrot.slane %v5135_v18, 4  ;;  %v5140_v55 = vrot.slane %v5138_v37, 5  ;;  %v5511_v37 = vld [vmem:[#allocation2 + $0x18] sm:$0xe] }
 0x251   : > { %v5149_v16 = vor.u32 %v5148_v49, %v5145_v20  ;;  %v5169_v32 = vrot.slane %v5167_v62, 4  ;;  %v5172_v51 = vrot.slane %v5170_v26, 5  ;;  %v5178_v39 = vrot.slane %v5176_v23, 5 }
 0x252   : > { %v5182_v54 = vrot.slane %v5180_v8, 4  ;;  %v5160_v53 = vrot.slane %v5159_v58, 4  ;;  %v5131_v27 = vsel %vm14295_vm5, %v5126_v52, %v5130_v60  ;;  %v5141_v33 = vsel %vm14295_vm5, %v5136_v12, %v5140_v55  ;;  %v5513_v52 = vld [vmem:[#allocation2 + $0x30] sm:$0xe] }
 0x253   : > { %v5150_v30 = vrot.slane %v5149_v16, 4  ;;  %v5186_v20 = vshll.u32 %v16000_v63, 16  ;;  %v5577_v25 = vrot.slane %v13843_v31, 5  ;;  %v11513_v43 = vcombine.low %v5131_v27, %v5141_v33  ;;  %v13844_v16 = vld [vmem:[#allocation2 + $0x28] sm:$0xf] }
 0x254   : > { %v5183_v56 = vor.u32 %v5182_v54, %v5178_v39  ;;  %v11536_v62 = vrot.slane %v5511_v37, 9  ;;  %v5580_v23 = vrot.slane %v15566_v40, 5  ;;  %v5584_v58 = vrot.slane %v13844_v16, 5 }
 0x255   : > { %v5155_v49 = vsel %vm14295_vm5, %v5150_v30, %v5154_v28  ;;  %v5188_v18 = vrot.slane %v5186_v20, 5  ;;  %v5579_v26 = vrot.slane %v5577_v25, 4  ;;  %v5591_v40 = vrot.slane %v15599_v9, 5  ;;  %v5514_v20 = vld [vmem:[#allocation2 + $0x3c] sm:$0xe] }
 0x256   : > { %12891 = vmatmul.mubr.msk.bf16.gmra.mrb[16].mxu0 %vm1730_vm4, %v11509_v21  ;;  %v5162_v21 = vshll.u32 %v15988_v5, 16  ;;  %v5184_v48 = vrot.slane %v5183_v56, 4  ;;  %v11538_v30 = vrot.slane %v5513_v52, 9  ;;  %v5598_v33 = vrot.slane %v15633_v4, 5 }
 0x257   : > { %12894 = vmatprep.mubr.msk.bf16.mxu0 %vm1730_vm4, %v11510_v15  ;;  %v5173_v15 = vor.u32 %v5172_v51, %v5169_v32  ;;  %v5586_v51 = vrot.slane %v5584_v58, 4  ;;  %v5608_v4 = vrot.slane %v15738_v57, 5  ;;  %v5622_v16 = vrot.slane %v15821_v45, 5 }
 0x258   : > { %v5164_v35 = vrot.slane %v5162_v21, 5  ;;  %v5189_v8 = vsel %vm14295_vm5, %v5184_v48, %v5188_v18  ;;  %v5578_v21 = vsel %vm14711_vm0, %v11536_v62, %v5577_v25  ;;  %v11539_v25 = vrot.slane %v5514_v20, 9  ;;  %v5522_v20 = vld [vmem:[#allocation2 + $0x9c] sm:$0xe] }
 0x259   : > { %v5174_v13 = vrot.slane %v5173_v15, 4  ;;  %v5592_v15 = vsel %vm14711_vm0, %v11538_v30, %v5591_v40  ;;  %v5600_v37 = vrot.slane %v5598_v33, 4  ;;  %v5619_v62 = vrot.slane %v15789_v3, 5  ;;  %v5519_v3 = vld [vmem:[#allocation2 + $0x78] sm:$0xe] }
 0x25a   : > { %v5165_v10 = vsel %vm14295_vm5, %v5160_v53, %v5164_v35  ;;  %v5593_v53 = vrot.slane %v5591_v40, 4  ;;  %v5594_v35 = vrot.slane %v15659_v46, 5  ;;  %v5605_v46 = vrot.slane %v15713_v2, 5 }
 0x25b   : > { %v11514_v60 = vcombine.low %v5155_v49, %v5165_v10  ;;  %v5179_v28 = vsel %vm14295_vm5, %v5174_v13, %v5178_v39  ;;  %v13845_v39 = vld [vmem:[#allocation2 + $0x2c] sm:$0x1]  ;;  %v5515_v49 = vld [vmem:[#allocation2 + $0x48] sm:$0xe]  ;;  %v5599_v48 = vsel %vm14711_vm0, %v11539_v25, %v5598_v33  ;;  %v11544_v40 = vrot.slane %v5519_v3, 9 }
 0x25c   : > { %v11515_v12 = vcombine.low %v5179_v28, %v5189_v8  ;;  %v5587_v54 = vrot.slane %v13845_v39, 5  ;;  %v5595_v56 = vsel %vm14711_vm0, %v5593_v53, %v5594_v35  ;;  %v5607_v13 = vrot.slane %v5605_v46, 4  ;;  %v5526_v3 = vld [vmem:[#allocation2 + $0xcc] sm:$0xe] }
 0x25d   : > { %v11554_v31 = vcombine.low %v5592_v15, %v5595_v56  ;;  %v5621_v8 = vrot.slane %v5619_v62, 4  ;;  %v19139_v45 = vcombine.low %v15603_v38, %v15614_v29  ;;  %v5647_v39 = vrot.slane %v15902_v59, 5 }
 0x25e   : > { %12895 = vmatmul.mubr.msk.bf16.gmra.mrb[20].mxu0 %vm1730_vm4, %v11511_v47  ;;  %v5581_v47 = vsel %vm14711_vm0, %v5579_v26, %v5580_v23  ;;  %v5588_v9 = vsel %vm14711_vm0, %v5586_v51, %v5587_v54  ;;  %v5517_v26 = vld [vmem:[#allocation2 + $0x60] sm:$0xe]  ;;  %v5520_v51 = vld [vmem:[#allocation2 + $0x84] sm:$0xe]  ;;  %v5521_v54 = vld [vmem:[#allocation2 + $0x90] sm:$0xe] }
 0x25f   : > { %12898 = vmatprep.mubr.msk.bf16.mxu0 %vm1730_vm4, %v11512_v41  ;;  %v5512_v41 = vld [vmem:[#allocation2 + $0x24] sm:$0xe]  ;;  %v11552_v55 = vcombine.low %v5578_v21, %v5581_v47  ;;  %v11542_v28 = vrot.slane %v5517_v26, 9  ;;  %v5623_v21 = vsel %vm14711_vm0, %v5621_v8, %v5622_v16  ;;  %v5633_v47 = vrot.slane %v15835_v14, 5 }
 0x260   : > { %v11537_v32 = vrot.slane %v5512_v41, 9  ;;  %v11545_v30 = vrot.slane %v5520_v51, 9  ;;  %v5643_v38 = vrot.slane %v15911_v44, 5  ;;  %v11546_v29 = vrot.slane %v5521_v54, 9  ;;  %v13678_v51 = vld [vmem:[%s18954_s6 + $0xc8] sm:$0xff]   ;;  %v13680_v54 = vld [vmem:[%s18954_s6 + $0xd0] sm:$0xff]  }
 0x261   : > { %v5635_v52 = vrot.slane %v5633_v47, 4  ;;  %v5649_v35 = vrot.slane %v5647_v39, 4  ;;  %v5654_v56 = vrot.slane %v15927_v19, 5  ;;  %v11547_v25 = vrot.slane %v5522_v20, 9 }
 0x262   : > { %v5585_v27 = vsel %vm14711_vm0, %v11537_v32, %v5584_v58  ;;  %v5620_v58 = vsel %vm14711_vm0, %v11542_v28, %v5619_v62  ;;  %v5634_v32 = vsel %vm14711_vm0, %v11544_v40, %v5633_v47  ;;  %v5648_v44 = vsel %vm14711_vm0, %v11546_v29, %v5647_v39  ;;  %v13679_v39 = vld [vmem:[%s18954_s6 + $0x110] sm:$0xff]   ;;  %v13685_v29 = vld [vmem:[%s18954_s6 + $0x128] sm:$0xff]  }
 0x263   : > { %v11553_v10 = vcombine.low %v5585_v27, %v5588_v9  ;;  %v11558_v41 = vcombine.low %v5620_v58, %v5623_v21  ;;  %v5650_v27 = vrot.slane %v15919_v6, 5  ;;  %v19141_v9 = vld [vmem:[#allocation9_spill] sm:$0xff]  ;;  %v5664_v19 = vrot.slane %v15955_v50, 5 }
 0x264   : > { %v5675_v50 = vrot.slane %v15964_v22, 5  ;;  %v5671_v28 = vrot.slane %v15978_v42, 5  ;;  %v5682_v21 = vrot.slane %v15980_v1, 5  ;;  %v11551_v40 = vrot.slane %v5526_v3, 9 }
 0x265   : > { %v5651_v6 = vsel %vm14711_vm0, %v5649_v35, %v5650_v27  ;;  %v13686_v35 = vld [vmem:[%s18954_s6 + $0xe8] sm:$0xff]   ;;  %v13687_v27 = vld [vmem:[%s18954_s6 + $0x130] sm:$0xff]  }
 0x266   : > { %12899 = vmatmul.mubr.msk.bf16.gmra.mrb[24].mxu0 %vm1730_vm4, %v11513_v43  ;;  %v5601_v43 = vrot.slane %v15677_v0, 5  ;;  %v5609_v0 = vsel %vm14711_vm0, %v5607_v13, %v5608_v4  ;;  %v5655_v4 = vsel %vm14711_vm0, %v11547_v25, %v5654_v56  ;;  %v5677_v16 = vrot.slane %v5675_v50, 4 }
 0x267   : > { %12902 = vmatprep.mubr.msk.bf16.mxu0 %vm1730_vm4, %v11514_v60  ;;  %v11540_v60 = vrot.slane %v5515_v49, 9  ;;  %v5523_v49 = vld [vmem:[#allocation2 + $0xa8] sm:$0xe]  ;;  %v5683_v1 = vsel %vm14711_vm0, %v11551_v40, %v5682_v21 }
 0x268   : > { %v5602_v2 = vsel %vm14711_vm0, %v5600_v37, %v5601_v43  ;;  %v5656_v37 = vrot.slane %v5654_v56, 4  ;;  %v5657_v43 = vrot.slane %v15951_v11, 5 }
 0x269   : > { %v5606_v18 = vsel %vm14711_vm0, %v11540_v60, %v5605_v46  ;;  %v11555_v57 = vcombine.low %v5599_v48, %v5602_v2  ;;  %v5661_v46 = vrot.slane %v15931_v7, 5  ;;  %v11548_v60 = vrot.slane %v5523_v49, 9 }
 0x26a   : > { %v11556_v23 = vcombine.low %v5606_v18, %v5609_v0  ;;  %v5658_v7 = vsel %vm14711_vm0, %v5656_v37, %v5657_v43  ;;  %v5668_v48 = vrot.slane %v15960_v17, 5  ;;  %v5524_v18 = vld [vmem:[#allocation2 + $0xb4] sm:$0xe]  ;;  %v5525_v0 = vld [vmem:[#allocation2 + $0xc0] sm:$0xe]  ;;  %v5678_v17 = vrot.slane %v15988_v5, 5 }
 0x26b   : > { %v5663_v13 = vrot.slane %v5661_v46, 4  ;;  %v5662_v2 = vsel %vm14711_vm0, %v11548_v60, %v5661_v46  ;;  %v11563_v62 = vcombine.low %v5655_v4, %v5658_v7  ;;  %v11550_v8 = vrot.slane %v5525_v0, 9  ;;  %v16212_v7 = vld [vmem:[%s18952_s4] ss:$0 sm:$0xff] }
 0x26c   : > { %v5679_v42 = vsel %vm14711_vm0, %v5677_v16, %v5678_v17 }
 0x26d   : > { %v5665_v11 = vsel %vm14711_vm0, %v5663_v13, %v5664_v19  ;;  %v5676_v47 = vsel %vm14711_vm0, %v11550_v8, %v5675_v50 }
 0x26e   : > { %12903 = vmatmul.mubr.msk.bf16.gmra.mrb[28].mxu0 %vm1730_vm4, %v11515_v12  ;;  %v5636_v12 = vrot.slane %v15885_v34, 5  ;;  %v11564_v26 = vcombine.low %v5662_v2, %v5665_v11  ;;  %v16217_v2 = vld [vmem:[%s18953_s5] ss:$0 sm:$0xff] }
 0x26f   : > { %12914 = vmatprep.mubr.msk.bf16.mxu0 %vm1730_vm4, %v11552_v55  ;;  %v5640_v55 = vrot.slane %v15849_v36, 5  ;;  %v19140_v36 = vld [vmem:[#allocation8_spill] sm:$0xff] }
 0x270   : > { %v5637_v14 = vsel %vm14711_vm0, %v5635_v52, %v5636_v12  ;;  %v19142_v33 = vcombine.low %v19140_v36, %v19141_v9  ;;  %v5684_v52 = vrot.slane %v5682_v21, 4  ;;  %v5685_v12 = vrot.slane %v16000_v63, 5  ;;  %v13676_v63 = vld [vmem:[%s18954_s6 + $0xc0] sm:$0xff]   ;;  %v13688_v36 = vld [vmem:[%s18954_s6 + $0xf0] sm:$0xff]  }
 0x271   : > { %v11560_v34 = vcombine.low %v5634_v32, %v5637_v14  ;;  %v5642_v53 = vrot.slane %v5640_v55, 4  ;;  %v5641_v59 = vsel %vm14711_vm0, %v11545_v30, %v5640_v55  ;;  %v13675_v32 = vld [vmem:[%s18954_s6 + $0x100] sm:$0xff]   ;;  %v13677_v14 = vld [vmem:[%s18954_s6 + $0x108] sm:$0xff]   ;;  %v13682_v30 = vld [vmem:[%s18954_s6 + $0xd8] sm:$0xff]  }
 0x272   : > { %12158 = vmatprep.subr.bf16.mxu1 %v13675_v32 }
 0x273   : > { %v5644_v15 = vsel %vm14711_vm0, %v5642_v53, %v5643_v38  ;;  %12159 = vmatpush3.bf16.msra.mxu1 %v13676_v63  ;;  %v13683_v53 = vld [vmem:[%s18954_s6 + $0x120] sm:$0xff]  }
 0x274   : > { %12160 = vmatprep.subr.bf16.mxu1 %v13677_v14  ;;  %v13684_v38 = vld [vmem:[%s18954_s6 + $0xe0] sm:$0xff]  }
 0x276   : > { %12915 = vmatmul.mubr.msk.bf16.vlgmr.msra.gmra.mrb[0].mxu0 %vm1730_vm4, %v11553_v10  ;;  %v11561_v10 = vcombine.low %v5641_v59, %v5644_v15  ;;  %v13689_v15 = vld [vmem:[%s18954_s6 + $0x138] sm:$0xff]  }
 0x277   : > { %12918 = vmatprep.mubr.msk.bf16.mxu0 %vm1730_vm4, %v11554_v31  ;;  %v11562_v31 = vcombine.low %v5648_v44, %v5651_v6  ;;  %12161 = vmatpush3.bf16.msra.mxu1 %v13678_v51  ;;  %v13690_v44 = vld [vmem:[%s18954_s6 + $0xf8] sm:$0xff]   ;;  %v16182_v6 = vld [vmem:[%s18954_s6 + $0x140] sm:$0xff]  }
 0x278   : > { %12162 = vmatprep.subr.bf16.mxu1 %v13679_v39 }
 0x27b   : > { %12163 = vmatpush3.bf16.msra.mxu1 %v13680_v54 }
 0x27e   : > { %12919 = vmatmul.mubr.msk.bf16.gmra.mrb[4].mxu0 %vm1730_vm4, %v11555_v57  ;;  %v11549_v57 = vrot.slane %v5524_v18, 9 }
 0x27f   : > { %12922 = vmatprep.mubr.msk.bf16.mxu0 %vm1730_vm4, %v11556_v23  ;;  %v5670_v23 = vrot.slane %v5668_v48, 4 }
 0x280   : > { %v5669_v58 = vsel %vm14711_vm0, %v11549_v57, %v5668_v48 }
 0x281   : > { %v5672_v22 = vsel %vm14711_vm0, %v5670_v23, %v5671_v28 }
 0x282   : > { %v11565_v5 = vcombine.low %v5669_v58, %v5672_v22 }
 0x286   : > { %12923 = vmatmul.mubr.msk.bf16.gmra.mrb[8].mxu0 %vm1730_vm4, %v19139_v45  ;;  %v5686_v45 = vsel %vm14711_vm0, %v5684_v52, %v5685_v12 }
 0x287   : > { %12926 = vmatprep.mubr.msk.bf16.mxu0 %vm1730_vm4, %v11558_v41  ;;  %v11566_v41 = vcombine.low %v5676_v47, %v5679_v42  ;;  %v11567_v55 = vcombine.low %v5683_v1, %v5686_v45 }
 0x28e   : > { %12927 = vmatmul.mubr.msk.bf16.gmra.mrb[12].mxu0 %vm1730_vm4, %v19142_v33 }
 0x28f   : > { %12930 = vmatprep.mubr.msk.bf16.mxu0 %vm1730_vm4, %v11560_v34  ;;  %v13681_v34 = vld [vmem:[%s18954_s6 + $0x118] sm:$0xff]  }
 0x290   : > { %12164 = vmatprep.subr.bf16.mxu1 %v13681_v34 }
 0x291   : > { %12165 = vmatpush3.bf16.msra.mxu1 %v13682_v30 }
 0x292   : > { %12166 = vmatprep.subr.bf16.mxu1 %v13683_v53  ;;  %v6546_v53 = vld [vmem:[#allocation3 + $0x18] sm:$0xf] }
 0x295   : > { %12167 = vmatpush3.bf16.msra.mxu1 %v13684_v38 }
 0x296   : > { %12931 = vmatmul.mubr.msk.bf16.gmra.mrb[16].mxu0 %vm1730_vm4, %v11561_v10  ;;  %12168 = vmatprep.subr.bf16.mxu1 %v13685_v29 }
 0x297   : > { %12934 = vmatprep.mubr.msk.bf16.mxu0 %vm1730_vm4, %v11562_v31 }
 0x299   : > { %12169 = vmatpush3.bf16.msra.mxu1 %v13686_v35 }
 0x29a   : > { %12170 = vmatprep.subr.bf16.mxu1 %v13687_v27 }
 0x29d   : > { %12171 = vmatpush3.bf16.msra.mxu1 %v13688_v36 }
 0x29e   : > { %12935 = vmatmul.mubr.msk.bf16.gmra.mrb[20].mxu0 %vm1730_vm4, %v11563_v62  ;;  %12172 = vmatprep.subr.bf16.mxu1 %v13689_v15 }
 0x29f   : > { %12938 = vmatprep.mubr.msk.bf16.mxu0 %vm1730_vm4, %v11564_v26 }
 0x2a1   : > { %12173 = vmatpush3.bf16.msra.mxu1 %v13690_v44  ;;  %v6537_v44 = vld [vmem:[#allocation3 + $0xc] sm:$0xf] }
 0x2a2   : > { %12946 = vmatprep.subr.bf16.mxu1 %v16182_v6 }
 0x2a6   : > { %12939 = vmatmul.mubr.msk.bf16.gmra.mrb[24].mxu0 %vm1730_vm4, %v11565_v5 }
 0x2a7   : > { %12942 = vmatprep.mubr.msk.bf16.mxu0 %vm1730_vm4, %v11566_v41 }
 0x2ae   : > { %12943 = vmatmul.mubr.msk.bf16.gmra.mrb[28].mxu0 %vm1730_vm4, %v11567_v55 }
 0x2e9   : > { %v16165_v9 = vpop.f32.mrb[0].mxu1 }
 0x2ea   : > { %v16167_v33 = vpop.f32.mrb[1].mxu1 }
 0x2eb   : > { %v16169_v59 = vpop.f32.mrb[2].mxu1 }
 0x2ec   : > { %v16174_v56 = vpop.f32.mrb[3].mxu1 }
 0x2f1   : > { %v16185_v20 = vpop.f32.mrb[4].mxu1 }
 0x2f2   : > { %v16187_v46 = vpop.f32.mrb[5].mxu1 }
 0x2f3   : > { %v16189_v49 = vpop.f32.mrb[6].mxu1 }
 0x2f4   : > { %v16191_v10 = vpop.f32.mrb[7].mxu1 }
 0x2fa   : > { %v16193_v31 = vpop.f32.mrb[8].mxu1 }
 0x2fb   : > { %v16195_v25 = vpop.f32.mrb[9].mxu1 }
 0x2fc   : > { %v16197_v37 = vpop.f32.mrb[10].mxu1 }
 0x2fd   : > { %v16199_v43 = vpop.f32.mrb[11].mxu1 }
 0x308   : > { %v16201_v60 = vpop.f32.mrb[12].mxu1 }
 0x309   : > { %v16203_v13 = vpop.f32.mrb[13].mxu1 }
 0x30a   : > { %v16205_v19 = vpop.f32.mrb[14].mxu1 }
 0x30b   : > { %v16207_v4 = vpop.f32.mrb[15].mxu1 }
 0x349   : > { %v12916_v48 = vpop.f32.mrb[0].mxu0 }
 0x34a   : > { %v6017_v11 = vmul.f32 %v12916_v48, %v16212_v7  ;;  %v5849_v18 = vpop.f32.mrb[1].mxu0 }
 0x34b   : > { %v6015_v50 = vmul.f32 %v16212_v7, %v5849_v18  ;;  %v12917_v0 = vpop.f32.mrb[2].mxu0 }
 0x34c   : > { %v6056_v62 = vadd.f32 %v16217_v2, %v6017_v11  ;;  %v6018_v26 = vmul.f32 %v12917_v0, %v16212_v7  ;;  %v5852_v57 = vpop.f32.mrb[3].mxu0 }
 0x34d   : > { %v6054_v23 = vadd.f32 %v16217_v2, %v6015_v50  ;;  %v6016_v28 = vmul.f32 %v16212_v7, %v5852_v57 }
 0x34e   : > { %v6088_v8 = vmax.f32 %v6056_v62, 0.0  ;;  %v6057_v16 = vadd.f32 %v16217_v2, %v6018_v26  ;;  %v6550_v62 = vld [vmem:[#allocation3 + $0x20] sm:$0x1] }
 0x34f   : > { %v6086_v17 = vmax.f32 %v6054_v23, 0.0  ;;  %v6055_v58 = vadd.f32 %v16217_v2, %v6016_v28 }
 0x350   : > { %v11947_v22 = vpack.c.bf16 %v6088_v8, %v6088_v8  ;;  %v6089_v21 = vmax.f32 %v6057_v16, 0.0  ;;  %v6543_v16 = vld [vmem:[#allocation3 + $0x14] sm:$0x1] }
 0x351   : > { %v11945_v47 = vpack.c.bf16 %v6086_v17, %v6086_v17  ;;  %v6087_v42 = vmax.f32 %v6055_v58, 0.0  ;;  %v12920_v3 = vpop.f32.mrb[4].mxu0 }
 0x352   : > { %v6232_v5 = vshrl.u32 %v11947_v22, 16  ;;  %v6235_v41 = vshll.u32 %v11947_v22, 16  ;;  %v11948_v40 = vpack.c.bf16 %v6089_v21, %v6089_v21  ;;  %v6021_v52 = vmul.f32 %v12920_v3, %v16212_v7  ;;  %v5865_v12 = vpop.f32.mrb[5].mxu0 }
 0x353   : > { %v6215_v1 = vshrl.u32 %v11945_v47, 16  ;;  %v6218_v45 = vshll.u32 %v11945_v47, 16  ;;  %v11946_v55 = vpack.c.bf16 %v6087_v42, %v6087_v42  ;;  %v6019_v32 = vmul.f32 %v16212_v7, %v5865_v12  ;;  %v12921_v63 = vpop.f32.mrb[6].mxu0 }
 0x354   : > { %v6234_v14 = vrot.slane %v6232_v5, 7  ;;  %v6240_v51 = vshrl.u32 %v11948_v40, 16  ;;  %v6243_v39 = vshll.u32 %v11948_v40, 16  ;;  %v6060_v54 = vadd.f32 %v16217_v2, %v6021_v52  ;;  %v5868_v34 = vpop.f32.mrb[7].mxu0 }
 0x355   : > { %v6217_v38 = vrot.slane %v6215_v1, 7  ;;  %v6223_v29 = vshrl.u32 %v11946_v55, 16  ;;  %v6226_v35 = vshll.u32 %v11946_v55, 16  ;;  %v6058_v27 = vadd.f32 %v16217_v2, %v6019_v32 }
 0x356   : > { %v6237_v36 = vor.u32 %v6235_v41, %v6234_v14  ;;  %v6238_v15 = vrot.slane %v6234_v14, 4  ;;  %v6242_v48 = vrot.slane %v6240_v51, 7  ;;  %v6092_v11 = vmax.f32 %v6060_v54, 0.0 }
 0x357   : > { %v6220_v18 = vor.u32 %v6218_v45, %v6217_v38  ;;  %v6221_v50 = vrot.slane %v6217_v38, 4  ;;  %v6225_v26 = vrot.slane %v6223_v29, 7  ;;  %v6090_v57 = vmax.f32 %v6058_v27, 0.0  ;;  %v6560_v29 = vld [vmem:[#allocation3 + $0x30] sm:$0xf] }
 0x358   : > { %v6547_v23 = vsel %vm16232_vm3, %v6237_v36, %v6546_v53  ;;  %v6245_v28 = vor.u32 %v6243_v39, %v6242_v48  ;;  %v6247_v8 = vrot.slane %v6242_v48, 4  ;;  %v11951_v17 = vpack.c.bf16 %v6092_v11, %v6092_v11  ;;  %v6553_v11 = vld [vmem:[#allocation3 + $0x24] sm:$0xf] }
 0x359   : > { %6548 = vst [vmem:[#allocation3 + $0x18] sm:$0xf] %v6547_v23  ;;  %v6538_v58 = vsel %vm16232_vm3, %v6220_v18, %v6537_v44  ;;  %v6228_v22 = vor.u32 %v6226_v35, %v6225_v26  ;;  %v6230_v21 = vrot.slane %v6225_v26, 4  ;;  %v11949_v47 = vpack.c.bf16 %v6090_v57, %v6090_v57  ;;  %v12924_v42 = vpop.f32.mrb[8].mxu0 }
 0x35a   : > { %6539 = vst [vmem:[#allocation3 + $0xc] sm:$0xf] %v6538_v58  ;;  %v6246_v5 = vsel %vm14335_vm12, %v6238_v15, %v6245_v28  ;;  %v6551_v41 = vsel %vm16239_vm6, %v6247_v8, %v6550_v62  ;;  %v6266_v40 = vshrl.u32 %v11951_v17, 16  ;;  %v6269_v52 = vshll.u32 %v11951_v17, 16  ;;  %v5881_v12 = vpop.f32.mrb[9].mxu0 }
 0x35b   : > { %6549 = vst [vmem:[#allocation3 + $0x1c] sm:$0xf] %v6246_v5  ;;  %6552 = vst [vmem:[#allocation3 + $0x20] sm:$0x1] %v6551_v41  ;;  %v6229_v1 = vsel %vm14335_vm12, %v6221_v50, %v6228_v22  ;;  %v6544_v45 = vsel %vm16239_vm6, %v6230_v21, %v6543_v16  ;;  %v6249_v55 = vshrl.u32 %v11949_v47, 16  ;;  %v6252_v32 = vshll.u32 %v11949_v47, 16 }
 0x35c   : > { %v12925_v14 = vpop.f32.mrb[10].mxu0  ;;  %6540 = vst [vmem:[#allocation3 + $0x10] sm:$0xf] %v6229_v1  ;;  %6545 = vst [vmem:[#allocation3 + $0x14] sm:$0x1] %v6544_v45  ;;  %v16255_v51 = vrot.slane %v6266_v40, 7  ;;  %v6022_v39 = vmul.f32 %v12921_v63, %v16212_v7  ;;  %v6020_v54 = vmul.f32 %v16212_v7, %v5868_v34  ;;  %v6025_v53 = vmul.f32 %v12924_v42, %v16212_v7 }
 0x35d   : > { %v5884_v38 = vpop.f32.mrb[11].mxu0  ;;  %v16260_v35 = vrot.slane %v6249_v55, 7  ;;  %v6023_v27 = vmul.f32 %v16212_v7, %v5881_v12  ;;  %v6026_v36 = vmul.f32 %v12925_v14, %v16212_v7 }
 0x35e   : > { %v6024_v15 = vmul.f32 %v16212_v7, %v5884_v38  ;;  %v6271_v44 = vor.u32 %v6269_v52, %v16255_v51  ;;  %v6272_v48 = vrot.slane %v16255_v51, 4  ;;  %v6061_v63 = vadd.f32 %v16217_v2, %v6022_v39 }
 0x35f   : > { %v6059_v34 = vadd.f32 %v16217_v2, %v6020_v54  ;;  %v6254_v18 = vor.u32 %v6252_v32, %v16260_v35  ;;  %v6255_v50 = vrot.slane %v16260_v35, 4  ;;  %v6064_v62 = vadd.f32 %v16217_v2, %v6025_v53 }
 0x360   : > { %v6062_v26 = vadd.f32 %v16217_v2, %v6023_v27  ;;  %v6561_v57 = vsel %vm16232_vm3, %v6271_v44, %v6560_v29  ;;  %v6093_v23 = vmax.f32 %v6061_v63, 0.0  ;;  %v6065_v8 = vadd.f32 %v16217_v2, %v6026_v36  ;;  %v6557_v63 = vld [vmem:[#allocation3 + $0x2c] sm:$0x1] }
 0x361   : > { %v6091_v28 = vmax.f32 %v6059_v34, 0.0  ;;  %6562 = vst [vmem:[#allocation3 + $0x30] sm:$0xf] %v6561_v57  ;;  %v6554_v16 = vsel %vm16232_vm3, %v6254_v18, %v6553_v11  ;;  %v6096_v17 = vmax.f32 %v6064_v62, 0.0  ;;  %v6063_v22 = vadd.f32 %v16217_v2, %v6024_v15  ;;  %v12928_v21 = vpop.f32.mrb[12].mxu0 }
 0x362   : > { %v6094_v58 = vmax.f32 %v6062_v26, 0.0  ;;  %6555 = vst [vmem:[#allocation3 + $0x24] sm:$0xf] %v6554_v16  ;;  %v11952_v47 = vpack.c.bf16 %v6093_v23, %v6093_v23  ;;  %v6097_v5 = vmax.f32 %v6065_v8, 0.0  ;;  %v6029_v41 = vmul.f32 %v12928_v21, %v16212_v7  ;;  %v5897_v40 = vpop.f32.mrb[13].mxu0 }
 0x363   : > { %v11950_v42 = vpack.c.bf16 %v6091_v28, %v6091_v28  ;;  %v11955_v52 = vpack.c.bf16 %v6096_v17, %v6096_v17  ;;  %v6095_v1 = vmax.f32 %v6063_v22, 0.0  ;;  %v6027_v45 = vmul.f32 %v16212_v7, %v5897_v40  ;;  %v12929_v55 = vpop.f32.mrb[14].mxu0  ;;  %v6564_v11 = vld [vmem:[#allocation3 + $0x38] sm:$0x1]  ;;  %v6574_v16 = vld [vmem:[#allocation3 + $0x48] sm:$0xf] }
 0x364   : > { %v11953_v12 = vpack.c.bf16 %v6094_v58, %v6094_v58  ;;  %v6274_v32 = vshrl.u32 %v11952_v47, 16  ;;  %v6277_v14 = vshll.u32 %v11952_v47, 16  ;;  %v5900_v54 = vpop.f32.mrb[15].mxu0  ;;  %v11956_v15 = vpack.c.bf16 %v6097_v5, %v6097_v5  ;;  %v6567_v17 = vld [vmem:[#allocation3 + $0x3c] sm:$0xf] }
 0x365   : > { %v6257_v51 = vshrl.u32 %v11950_v42, 16  ;;  %v6260_v39 = vshll.u32 %v11950_v42, 16  ;;  %v6300_v53 = vshrl.u32 %v11955_v52, 16  ;;  %v6303_v38 = vshll.u32 %v11955_v52, 16 }
 0x366   : > { %v6283_v29 = vshrl.u32 %v11953_v12, 16  ;;  %v6286_v35 = vshll.u32 %v11953_v12, 16  ;;  %v6276_v27 = vrot.slane %v6274_v32, 7  ;;  %v11954_v44 = vpack.c.bf16 %v6095_v1, %v6095_v1 }
 0x367   : > { %v6259_v36 = vrot.slane %v6257_v51, 7  ;;  %v6302_v34 = vrot.slane %v6300_v53, 7  ;;  %v6068_v62 = vadd.f32 %v16217_v2, %v6029_v41  ;;  %v6066_v26 = vadd.f32 %v16217_v2, %v6027_v45 }
 0x368   : > { %v6285_v18 = vrot.slane %v6283_v29, 7  ;;  %v6279_v57 = vor.u32 %v6277_v14, %v6276_v27  ;;  %v6281_v23 = vrot.slane %v6276_v27, 4  ;;  %v6308_v45 = vshrl.u32 %v11956_v15, 16 }
 0x369   : > { %v6262_v28 = vor.u32 %v6260_v39, %v6259_v36  ;;  %v6264_v8 = vrot.slane %v6259_v36, 4  ;;  %v6305_v58 = vor.u32 %v6303_v38, %v6302_v34  ;;  %v6306_v22 = vrot.slane %v6302_v34, 4  ;;  %v12932_v42 = vpop.f32.mrb[16].mxu0 }
 0x36a   : > { %v6288_v21 = vor.u32 %v6286_v35, %v6285_v18  ;;  %v6289_v47 = vrot.slane %v6285_v18, 4  ;;  %v6280_v5 = vsel %vm14335_vm12, %v6272_v48, %v6279_v57  ;;  %v6565_v40 = vsel %vm16239_vm6, %v6281_v23, %v6564_v11  ;;  %v5913_v12 = vpop.f32.mrb[17].mxu0  ;;  %v6578_v11 = vld [vmem:[#allocation3 + $0x50] sm:$0x1] }
 0x36b   : > { %v6263_v41 = vsel %vm14335_vm12, %v6255_v50, %v6262_v28  ;;  %v6558_v52 = vsel %vm16239_vm6, %v6264_v8, %v6557_v63  ;;  %6563 = vst [vmem:[#allocation3 + $0x34] sm:$0xf] %v6280_v5  ;;  %6566 = vst [vmem:[#allocation3 + $0x38] sm:$0x1] %v6565_v40  ;;  %v6575_v1 = vsel %vm16232_vm3, %v6305_v58, %v6574_v16  ;;  %v6311_v32 = vshll.u32 %v11956_v15, 16  ;;  %v12933_v14 = vpop.f32.mrb[18].mxu0 }
 0x36c   : > { %6556 = vst [vmem:[#allocation3 + $0x28] sm:$0xf] %v6263_v41  ;;  %6559 = vst [vmem:[#allocation3 + $0x2c] sm:$0x1] %v6558_v52  ;;  %v6568_v48 = vsel %vm16232_vm3, %v6288_v21, %v6567_v17  ;;  %v6291_v50 = vshrl.u32 %v11954_v44, 16  ;;  %v6294_v51 = vshll.u32 %v11954_v44, 16  ;;  %v6030_v35 = vmul.f32 %v12929_v55, %v16212_v7 }
 0x36d   : > { %6576 = vst [vmem:[#allocation3 + $0x48] sm:$0xf] %v6575_v1  ;;  %6569 = vst [vmem:[#allocation3 + $0x3c] sm:$0xf] %v6568_v48  ;;  %v6100_v39 = vmax.f32 %v6068_v62, 0.0  ;;  %v6098_v53 = vmax.f32 %v6066_v26, 0.0  ;;  %v6028_v27 = vmul.f32 %v16212_v7, %v5900_v54  ;;  %v13138_v36 = vadd.f32 %v12932_v42, %v16165_v9 }
 0x36e   : > { %v16295_v38 = vpop.f32.mrb[19].mxu0  ;;  %v6310_v29 = vrot.slane %v6308_v45, 7  ;;  %v6293_v63 = vrot.slane %v6291_v50, 7  ;;  %v13139_v18 = vadd.f32 %v5913_v12, %v16167_v33  ;;  %v6571_v44 = vld [vmem:[#allocation3 + $0x44] sm:$0x1]  ;;  %v6069_v62 = vadd.f32 %v16217_v2, %v6030_v35 }
 0x36f   : > { %v11959_v34 = vpack.c.bf16 %v6100_v39, %v6100_v39  ;;  %v11957_v15 = vpack.c.bf16 %v6098_v53, %v6098_v53  ;;  %v6067_v26 = vadd.f32 %v16217_v2, %v6028_v27  ;;  %v6033_v1 = vmul.f32 %v13138_v36, %v16212_v7  ;;  %v6581_v50 = vld [vmem:[#allocation3 + $0x54] sm:$0xf] }
 0x370   : > { %v6313_v57 = vor.u32 %v6311_v32, %v6310_v29  ;;  %v6315_v23 = vrot.slane %v6310_v29, 4  ;;  %v6296_v28 = vor.u32 %v6294_v51, %v6293_v63  ;;  %v6298_v8 = vrot.slane %v6293_v63, 4 }
 0x371   : > { %v6334_v55 = vshrl.u32 %v11959_v34, 16  ;;  %v6337_v16 = vshll.u32 %v11959_v34, 16  ;;  %v6317_v17 = vshrl.u32 %v11957_v15, 16  ;;  %v6320_v58 = vshll.u32 %v11957_v15, 16  ;;  %v16307_v33 = vpop.f32.mrb[20].mxu0 }
 0x372   : > { %v6314_v9 = vsel %vm14335_vm12, %v6306_v22, %v6313_v57  ;;  %v6579_v54 = vsel %vm16239_vm6, %v6315_v23, %v6578_v11  ;;  %v6297_v21 = vsel %vm14335_vm12, %v6289_v47, %v6296_v28  ;;  %v6572_v42 = vsel %vm16239_vm6, %v6298_v8, %v6571_v44  ;;  %v16313_v41 = vpop.f32.mrb[21].mxu0  ;;  %v6588_v22 = vld [vmem:[#allocation3 + $0x60] sm:$0xf]  ;;  %v6592_v8 = vld [vmem:[#allocation3 + $0x68] sm:$0x1] }
 0x373   : > { %6577 = vst [vmem:[#allocation3 + $0x4c] sm:$0xf] %v6314_v9  ;;  %6580 = vst [vmem:[#allocation3 + $0x50] sm:$0x1] %v6579_v54  ;;  %v6336_v5 = vrot.slane %v6334_v55, 7  ;;  %v6101_v40 = vmax.f32 %v6069_v62, 0.0  ;;  %v6031_v48 = vmul.f32 %v13139_v18, %v16212_v7  ;;  %v13140_v39 = vadd.f32 %v12933_v14, %v16169_v59 }
 0x374   : > { %6570 = vst [vmem:[#allocation3 + $0x40] sm:$0xf] %v6297_v21  ;;  %6573 = vst [vmem:[#allocation3 + $0x44] sm:$0x1] %v6572_v42  ;;  %v6319_v52 = vrot.slane %v6317_v17, 7  ;;  %v6099_v12 = vmax.f32 %v6067_v26, 0.0  ;;  %v6072_v11 = vadd.f32 %v16217_v2, %v6033_v1  ;;  %v13141_v28 = vadd.f32 %v16295_v38, %v16174_v56 }
 0x375   : > { %v16317_v45 = vpop.f32.mrb[22].mxu0  ;;  %v6339_v32 = vor.u32 %v6337_v16, %v6336_v5  ;;  %v6340_v47 = vrot.slane %v6336_v5, 4  ;;  %v11960_v51 = vpack.c.bf16 %v6101_v40, %v6101_v40  ;;  %v6070_v15 = vadd.f32 %v16217_v2, %v6031_v48  ;;  %v16326_v18 = vld [vmem:[#allocation3 + $0xc] sm:$0xf]  ;;  %v6585_v42 = vld [vmem:[#allocation3 + $0x5c] sm:$0x1] }
 0x376   : > { %v16320_v53 = vpop.f32.mrb[23].mxu0  ;;  %v6322_v29 = vor.u32 %v6320_v58, %v6319_v52  ;;  %v6323_v35 = vrot.slane %v6319_v52, 4  ;;  %v11958_v27 = vpack.c.bf16 %v6099_v12, %v6099_v12  ;;  %v6104_v23 = vmax.f32 %v6072_v11, 0.0 }
 0x377   : > { %v6589_v36 = vsel %vm16232_vm3, %v6339_v32, %v6588_v22  ;;  %v6342_v63 = vshrl.u32 %v11960_v51, 16  ;;  %v6345_v34 = vshll.u32 %v11960_v51, 16  ;;  %v6102_v62 = vmax.f32 %v6070_v15, 0.0 }
 0x378   : > { %6590 = vst [vmem:[#allocation3 + $0x60] sm:$0xf] %v6589_v36  ;;  %v6582_v59 = vsel %vm16232_vm3, %v6322_v29, %v6581_v50  ;;  %v6325_v14 = vshrl.u32 %v11958_v27, 16  ;;  %v6328_v57 = vshll.u32 %v11958_v27, 16  ;;  %v6034_v26 = vmul.f32 %v13140_v39, %v16212_v7  ;;  %v16346_v39 = vld [vmem:[#allocation3 + $0x10] sm:$0xf] }
 0x379   : > { %6583 = vst [vmem:[#allocation3 + $0x54] sm:$0xf] %v6582_v59  ;;  %v6344_v44 = vrot.slane %v6342_v63, 7  ;;  %v11963_v16 = vpack.c.bf16 %v6104_v23, %v6104_v23  ;;  %v7564_v9 = vshrl.u32 %v16326_v18, 16  ;;  %v7567_v54 = vshll.u32 %v16326_v18, 16  ;;  %v16335_v17 = vpop.f32.mrb[24].mxu0 }
 0x37a   : > { %v6327_v55 = vrot.slane %v6325_v14, 7  ;;  %v11961_v5 = vpack.c.bf16 %v6102_v62, %v6102_v62  ;;  %v6073_v40 = vadd.f32 %v16217_v2, %v6034_v26  ;;  %v16338_v22 = vpop.f32.mrb[25].mxu0  ;;  %v6032_v15 = vmul.f32 %v13141_v28, %v16212_v7  ;;  %v6595_v23 = vld [vmem:[#allocation3 + $0x6c] sm:$0xf] }
 0x37b   : > { %v6347_v58 = vor.u32 %v6345_v34, %v6344_v44  ;;  %v6349_v21 = vrot.slane %v6344_v44, 4  ;;  %v6368_v56 = vshrl.u32 %v11963_v16, 16  ;;  %v6371_v38 = vshll.u32 %v11963_v16, 16  ;;  %v16340_v1 = vpop.f32.mrb[26].mxu0 }
 0x37c   : > { %v6330_v52 = vor.u32 %v6328_v57, %v6327_v55  ;;  %v6332_v12 = vrot.slane %v6327_v55, 4  ;;  %v6351_v50 = vshrl.u32 %v11961_v5, 16  ;;  %v6354_v51 = vshll.u32 %v11961_v5, 16  ;;  %v16348_v29 = vpop.f32.mrb[27].mxu0  ;;  %v7547_v55 = vld [vmem:[#allocation3 + $0x14] sm:$0x1] }
 0x37d   : > { %v6348_v48 = vsel %vm14335_vm12, %v6340_v47, %v6347_v58  ;;  %v6593_v32 = vsel %vm16239_vm6, %v6349_v21, %v6592_v8  ;;  %v6370_v36 = vrot.slane %v6368_v56, 7  ;;  %v6105_v63 = vmax.f32 %v6073_v40, 0.0  ;;  %v6602_v47 = vld [vmem:[#allocation3 + $0x78] sm:$0xf] }
 0x37e   : > { %6591 = vst [vmem:[#allocation3 + $0x64] sm:$0xf] %v6348_v48  ;;  %6594 = vst [vmem:[#allocation3 + $0x68] sm:$0x1] %v6593_v32  ;;  %v6331_v27 = vsel %vm14335_vm12, %v6323_v35, %v6330_v52  ;;  %v6586_v11 = vsel %vm16239_vm6, %v6332_v12, %v6585_v42  ;;  %v16354_v34 = vrot.slane %v6351_v50, 7  ;;  %v7566_v59 = vrot.slane %v7564_v9, 4 }
 0x37f   : > { %6584 = vst [vmem:[#allocation3 + $0x58] sm:$0xf] %v6331_v27  ;;  %6587 = vst [vmem:[#allocation3 + $0x5c] sm:$0x1] %v6586_v11  ;;  %v7569_v14 = vrot.slane %v7567_v54, 5  ;;  %v6373_v57 = vor.u32 %v6371_v38, %v6370_v36  ;;  %v11964_v44 = vpack.c.bf16 %v6105_v63, %v6105_v63  ;;  %v7573_v62 = vshll.u32 %v16346_v39, 16 }
 0x380   : > { %v6374_v35 = vrot.slane %v6370_v36, 4  ;;  %v6356_v26 = vor.u32 %v6354_v51, %v16354_v34  ;;  %v6071_v8 = vadd.f32 %v16217_v2, %v6032_v15  ;;  %v6357_v21 = vrot.slane %v16354_v34, 4  ;;  %v16363_v54 = vld [vmem:[#allocation3 + $0x18] sm:$0xf]  ;;  %v6606_v27 = vld [vmem:[#allocation3 + $0x80] sm:$0x1] }
 0x381   : > { %v7570_v16 = vor.u32 %v7569_v14, %v7566_v59  ;;  %v6603_v58 = vsel %vm16232_vm3, %v6373_v57, %v6602_v47  ;;  %v6376_v28 = vshrl.u32 %v11964_v44, 16  ;;  %v6379_v9 = vshll.u32 %v11964_v44, 16  ;;  %v16365_v42 = vpop.f32.mrb[28].mxu0 }
 0x382   : > { %6604 = vst [vmem:[#allocation3 + $0x78] sm:$0xf] %v6603_v58  ;;  %v6596_v5 = vsel %vm16232_vm3, %v6356_v26, %v6595_v23  ;;  %v6103_v40 = vmax.f32 %v6071_v8, 0.0  ;;  %v7575_v52 = vrot.slane %v7573_v62, 5  ;;  %v7577_v12 = vshrl.u32 %v16346_v39, 16  ;;  %v16370_v56 = vpop.f32.mrb[29].mxu0 }
 0x383   : > { %6597 = vst [vmem:[#allocation3 + $0x6c] sm:$0xf] %v6596_v5  ;;  %v6378_v38 = vrot.slane %v6376_v28, 7  ;;  %v7571_v48 = vrot.slane %v7570_v16, 4  ;;  %v7583_v32 = vshll.u32 %v7547_v55, 16  ;;  %v13142_v50 = vadd.f32 %v16307_v33, %v16185_v20  ;;  %v16374_v51 = vpop.f32.mrb[30].mxu0 }
 0x384   : > { %v11962_v11 = vpack.c.bf16 %v6103_v40, %v6103_v40  ;;  %v7579_v36 = vrot.slane %v7577_v12, 4  ;;  %v11702_v63 = vcombine.low %v16326_v18, %v16346_v39  ;;  %v7588_v47 = vshrl.u32 %v16363_v54, 16  ;;  %v16379_v34 = vpop.f32.mrb[31].mxu0  ;;  %v16382_v23 = vld [vmem:[#allocation3 + $0x1c] sm:$0xf] }
 0x385   : > { %v6381_v15 = vor.u32 %v6379_v9, %v6378_v38  ;;  %v6383_v59 = vrot.slane %v6378_v38, 4  ;;  %v7585_v14 = vrot.slane %v7583_v32, 5  ;;  %v6037_v57 = vmul.f32 %v13142_v50, %v16212_v7  ;;  %v7548_v62 = vld [vmem:[#allocation3 + $0x20] sm:$0x1]  ;;  %v6599_v5 = vld [vmem:[#allocation3 + $0x74] sm:$0x1] }
 0x386   : > { %v6359_v20 = vshrl.u32 %v11962_v11, 16  ;;  %v6362_v33 = vshll.u32 %v11962_v11, 16  ;;  %v7580_v44 = vor.u32 %v7579_v36, %v7575_v52  ;;  %v7590_v26 = vrot.slane %v7588_v47, 4 }
 0x387   : > { %v6382_v8 = vsel %vm14335_vm12, %v6374_v35, %v6381_v15  ;;  %v6607_v18 = vsel %vm16239_vm6, %v6383_v59, %v6606_v27  ;;  %v6076_v39 = vadd.f32 %v16217_v2, %v6037_v57  ;;  %v7591_v55 = vshll.u32 %v16363_v54, 16 }
 0x388   : > { %6605 = vst [vmem:[#allocation3 + $0x7c] sm:$0xf] %v6382_v8  ;;  %6608 = vst [vmem:[#allocation3 + $0x80] sm:$0x1] %v6607_v18  ;;  %v6361_v16 = vrot.slane %v6359_v20, 7  ;;  %v7581_v58 = vrot.slane %v7580_v44, 4  ;;  %v7576_v40 = vsel %vm14295_vm5, %v7571_v48, %v7575_v52  ;;  %v13143_v48 = vadd.f32 %v16313_v41, %v16187_v46 }
 0x389   : > { %v7597_v28 = vshll.u32 %v16382_v23, 16  ;;  %v7601_v9 = vshrl.u32 %v16382_v23, 16  ;;  %v6108_v35 = vmax.f32 %v6076_v39, 0.0  ;;  %v7593_v12 = vrot.slane %v7591_v55, 5  ;;  %v16405_v8 = vld [vmem:[#allocation3 + $0x24] sm:$0xf] }
 0x38a   : > { %v7607_v38 = vshll.u32 %v7548_v62, 16  ;;  %v6364_v32 = vor.u32 %v6362_v33, %v6361_v16  ;;  %v6366_v50 = vrot.slane %v6361_v16, 4  ;;  %v7586_v27 = vsel %vm14295_vm5, %v7581_v58, %v7585_v14  ;;  %v13694_v33 = vld [vmem:[%s18954_s6 + $0x148] sm:$0xff]  }
 0x38b   : > { %v7599_v11 = vrot.slane %v7597_v28, 5  ;;  %v11718_v36 = vcombine.low %v7576_v40, %v7586_v27  ;;  %v11967_v47 = vpack.c.bf16 %v6108_v35, %v6108_v35  ;;  %v7594_v15 = vor.u32 %v7593_v12, %v7590_v26  ;;  %v6616_v58 = vld [vmem:[#allocation3 + $0x90] sm:$0xf]  ;;  %v16433_v28 = vld [vmem:[#allocation3 + $0x28] sm:$0xf] }
 0x38c   : > { %v7603_v59 = vrot.slane %v7601_v9, 4  ;;  %v6365_v57 = vsel %vm14335_vm12, %v6357_v21, %v6364_v32  ;;  %v6600_v20 = vsel %vm16239_vm6, %v6366_v50, %v6599_v5  ;;  %v7609_v52 = vrot.slane %v7607_v38, 5  ;;  %v7549_v12 = vld [vmem:[#allocation3 + $0x2c] sm:$0x1] }
 0x38d   : > { %6598 = vst [vmem:[#allocation3 + $0x70] sm:$0xf] %v6365_v57  ;;  %6601 = vst [vmem:[#allocation3 + $0x74] sm:$0x1] %v6600_v20  ;;  %8555 = vmatprep.mubr.bf16.mxu1 %v11718_v36  ;;  %v6402_v14 = vshrl.u32 %v11967_v47, 16  ;;  %v6405_v44 = vshll.u32 %v11967_v47, 16  ;;  %v6035_v21 = vmul.f32 %v13143_v48, %v16212_v7  ;;  %v13144_v18 = vadd.f32 %v16317_v45, %v16189_v49 }
 0x38e   : > { %v7595_v62 = vrot.slane %v7594_v15, 4  ;;  %v7604_v26 = vor.u32 %v7603_v59, %v7599_v11  ;;  %8556 = vmatmul.mubr.bf16.vlgmr.msra.gmra.mrb[16].mxu1 %v11702_v63  ;;  %v13145_v46 = vadd.f32 %v16320_v53, %v16191_v10  ;;  %v11703_v41 = vcombine.low %v16363_v54, %v16382_v23  ;;  %v13700_v59 = vld [vmem:[%s18954_s6 + $0x158] sm:$0xff]  }
 0x38f   : > { %12947 = vmatpush3.bf16.msra.mxu1 %v16182_v6  ;;  %v16415_v39 = vrot.slane %v6402_v14, 7  ;;  %v13146_v63 = vadd.f32 %v16335_v17, %v16193_v31  ;;  %v6074_v49 = vadd.f32 %v16217_v2, %v6035_v21  ;;  %v6038_v45 = vmul.f32 %v13144_v18, %v16212_v7  ;;  %v13697_v6 = vld [vmem:[%s18954_s6 + $0x150] sm:$0xff]  }
 0x390   : > { %v7600_v55 = vsel %vm14295_vm5, %v7595_v62, %v7599_v11  ;;  %v7605_v16 = vrot.slane %v7604_v26, 4  ;;  %v6036_v10 = vmul.f32 %v13145_v46, %v16212_v7  ;;  %v7612_v53 = vshrl.u32 %v16405_v8, 16  ;;  %12948 = vmatprep.subr.bf16.mxu1 %v13694_v33 }
 0x391   : > { %v6407_v54 = vor.u32 %v6405_v44, %v16415_v39  ;;  %v6408_v23 = vrot.slane %v16415_v39, 4  ;;  %v6041_v17 = vmul.f32 %v13146_v63, %v16212_v7  ;;  %v6106_v5 = vmax.f32 %v6074_v49, 0.0  ;;  %v13703_v49 = vld [vmem:[%s18954_s6 + $0x160] sm:$0xff]  }
 0x392   : > { %v7610_v31 = vsel %vm14295_vm5, %v7605_v16, %v7609_v52  ;;  %v6077_v40 = vadd.f32 %v16217_v2, %v6038_v45  ;;  %v6075_v35 = vadd.f32 %v16217_v2, %v6036_v10  ;;  %v7614_v50 = vrot.slane %v7612_v53, 4  ;;  %v6609_v45 = vld [vmem:[#allocation3 + $0x84] sm:$0xf] }
 0x393   : > { %v11719_v9 = vcombine.low %v7600_v55, %v7610_v31  ;;  %v6617_v38 = vsel %vm16232_vm3, %v6407_v54, %v6616_v58  ;;  %v6080_v32 = vadd.f32 %v16217_v2, %v6041_v17  ;;  %v7615_v27 = vshll.u32 %v16405_v8, 16  ;;  %12949 = vmatpush3.bf16.msra.mxu1 %v13694_v33 }
 0x394   : > { %6618 = vst [vmem:[#allocation3 + $0x90] sm:$0xf] %v6617_v38  ;;  %v11965_v11 = vpack.c.bf16 %v6106_v5, %v6106_v5  ;;  %v6109_v36 = vmax.f32 %v6077_v40, 0.0  ;;  %v6107_v47 = vmax.f32 %v6075_v35, 0.0  ;;  %v7621_v15 = vshll.u32 %v16433_v28, 16  ;;  %12950 = vmatprep.subr.bf16.mxu1 %v13697_v6 }
 0x395   : > { %8563 = vmatprep.mubr.bf16.mxu1 %v11719_v9  ;;  %v6112_v57 = vmax.f32 %v6080_v32, 0.0  ;;  %v7617_v20 = vrot.slane %v7615_v27, 5  ;;  %v7625_v52 = vshrl.u32 %v16433_v28, 16  ;;  %v7631_v48 = vshll.u32 %v7549_v12, 16  ;;  %v6620_v40 = vld [vmem:[#allocation3 + $0x98] sm:$0x1] }
 0x396   : > { %v6385_v14 = vshrl.u32 %v11965_v11, 16  ;;  %v6388_v44 = vshll.u32 %v11965_v11, 16  ;;  %v11968_v33 = vpack.c.bf16 %v6109_v36, %v6109_v36  ;;  %v11966_v62 = vpack.c.bf16 %v6107_v47, %v6107_v47  ;;  %8564 = vmatmul.mubr.bf16.gmra.mrb[20].mxu1 %v11703_v41  ;;  %v6613_v36 = vld [vmem:[#allocation3 + $0x8c] sm:$0x1]  ;;  %v6630_v47 = vld [vmem:[#allocation3 + $0xa8] sm:$0xf] }
 0x397   : > { %v11971_v26 = vpack.c.bf16 %v6112_v57, %v6112_v57  ;;  %v7618_v21 = vor.u32 %v7617_v20, %v7614_v50  ;;  %v7623_v18 = vrot.slane %v7621_v15, 5  ;;  %v7627_v46 = vrot.slane %v7625_v52, 4  ;;  %12951 = vmatpush3.bf16.msra.mxu1 %v13697_v6  ;;  %v13706_v15 = vld [vmem:[%s18954_s6 + $0x168] sm:$0xff]  }
 0x398   : > { %v6387_v55 = vrot.slane %v6385_v14, 7  ;;  %v6410_v16 = vshrl.u32 %v11968_v33, 16  ;;  %v6413_v63 = vshll.u32 %v11968_v33, 16  ;;  %v6393_v58 = vshrl.u32 %v11966_v62, 16  ;;  %12952 = vmatprep.subr.bf16.mxu1 %v13700_v59 }
 0x399   : > { %v6396_v10 = vshll.u32 %v11966_v62, 16  ;;  %v6436_v53 = vshrl.u32 %v11971_v26, 16  ;;  %v6439_v54 = vshll.u32 %v11971_v26, 16  ;;  %v7619_v31 = vrot.slane %v7618_v21, 4  ;;  %v16470_v62 = vld [vmem:[#allocation3 + $0x30] sm:$0xf] }
 0x39a   : > { %v6390_v41 = vor.u32 %v6388_v44, %v6387_v55  ;;  %v6391_v17 = vrot.slane %v6387_v55, 4  ;;  %v6412_v9 = vrot.slane %v6410_v16, 7  ;;  %v6395_v5 = vrot.slane %v6393_v58, 7  ;;  %v13709_v58 = vld [vmem:[%s18954_s6 + $0x170] sm:$0xff]  }
 0x39b   : > { %v16449_v6 = vrot.slane %v6436_v53, 7  ;;  %v7624_v35 = vsel %vm14295_vm5, %v7619_v31, %v7623_v18  ;;  %v7628_v12 = vor.u32 %v7627_v46, %v7623_v18  ;;  %v7633_v38 = vrot.slane %v7631_v48, 5  ;;  %12953 = vmatpush3.bf16.msra.mxu1 %v13700_v59  ;;  %v16480_v18 = vld [vmem:[#allocation3 + $0x34] sm:$0xf] }
 0x39c   : > { %v6610_v32 = vsel %vm16232_vm3, %v6390_v41, %v6609_v45  ;;  %v6415_v50 = vor.u32 %v6413_v63, %v6412_v9  ;;  %v6417_v27 = vrot.slane %v6412_v9, 4  ;;  %v6398_v11 = vor.u32 %v6396_v10, %v6395_v5  ;;  %12954 = vmatprep.subr.bf16.mxu1 %v13703_v49 }
 0x39d   : > { %6611 = vst [vmem:[#allocation3 + $0x84] sm:$0xf] %v6610_v32  ;;  %v6400_v57 = vrot.slane %v6395_v5, 4  ;;  %v6441_v20 = vor.u32 %v6439_v54, %v16449_v6  ;;  %v6442_v52 = vrot.slane %v16449_v6, 4  ;;  %v7629_v59 = vrot.slane %v7628_v12, 4 }
 0x39e   : > { %v6416_v48 = vsel %vm14335_vm12, %v6408_v23, %v6415_v50  ;;  %v6621_v14 = vsel %vm16239_vm6, %v6417_v27, %v6620_v40  ;;  %v6399_v44 = vsel %vm14335_vm12, %v6391_v17, %v6398_v11  ;;  %v13147_v33 = vadd.f32 %v16338_v22, %v16195_v25 }
 0x39f   : > { %6619 = vst [vmem:[#allocation3 + $0x94] sm:$0xf] %v6416_v48  ;;  %6622 = vst [vmem:[#allocation3 + $0x98] sm:$0x1] %v6621_v14  ;;  %v6614_v39 = vsel %vm16239_vm6, %v6400_v57, %v6613_v36  ;;  %v6631_v23 = vsel %vm16232_vm3, %v6441_v20, %v6630_v47  ;;  %v7634_v26 = vsel %vm14295_vm5, %v7629_v59, %v7633_v38  ;;  %12955 = vmatpush3.bf16.msra.mxu1 %v13703_v49 }
 0x3a0   : > { %6612 = vst [vmem:[#allocation3 + $0x88] sm:$0xf] %v6399_v44  ;;  %v13148_v21 = vadd.f32 %v16340_v1, %v16197_v37  ;;  %6615 = vst [vmem:[#allocation3 + $0x8c] sm:$0x1] %v6614_v39  ;;  %v11720_v25 = vcombine.low %v7624_v35, %v7634_v26  ;;  %v6039_v22 = vmul.f32 %v13147_v33, %v16212_v7  ;;  %12956 = vmatprep.subr.bf16.mxu1 %v13706_v15  ;;  %v13712_v35 = vld [vmem:[%s18954_s6 + $0x178] sm:$0xff]  }
 0x3a1   : > { %6632 = vst [vmem:[#allocation3 + $0xa8] sm:$0xf] %v6631_v23  ;;  %v13149_v46 = vadd.f32 %v16348_v29, %v16199_v43  ;;  %v11704_v55 = vcombine.low %v16405_v8, %v16433_v28  ;;  %v13150_v37 = vadd.f32 %v16365_v42, %v16201_v60  ;;  %v7636_v1 = vshrl.u32 %v16470_v62, 16  ;;  %v7550_v8 = vld [vmem:[#allocation3 + $0x38] sm:$0x1] }
 0x3a2   : > { %v6042_v16 = vmul.f32 %v13148_v21, %v16212_v7  ;;  %v7639_v63 = vshll.u32 %v16470_v62, 16  ;;  %8571 = vmatprep.mubr.bf16.mxu1 %v11720_v25  ;;  %v6078_v43 = vadd.f32 %v16217_v2, %v6039_v22  ;;  %v7645_v28 = vshll.u32 %v16480_v18, 16  ;;  %v6623_v23 = vld [vmem:[#allocation3 + $0x9c] sm:$0xf] }
 0x3a3   : > { %v6040_v29 = vmul.f32 %v13149_v46, %v16212_v7  ;;  %v7649_v49 = vshrl.u32 %v16480_v18, 16  ;;  %8572 = vmatmul.mubr.bf16.gmra.mrb[24].mxu1 %v11704_v55  ;;  %v6045_v42 = vmul.f32 %v13150_v37, %v16212_v7  ;;  %v7638_v45 = vrot.slane %v7636_v1, 4  ;;  %v13846_v1 = vld [vmem:[%s18952_s4] ss:$0 sm:$0xff] }
 0x3a4   : > { %v6081_v60 = vadd.f32 %v16217_v2, %v6042_v16  ;;  %v7641_v10 = vrot.slane %v7639_v63, 5  ;;  %v6110_v53 = vmax.f32 %v6078_v43, 0.0  ;;  %v7647_v31 = vrot.slane %v7645_v28, 5  ;;  %12957 = vmatpush3.bf16.msra.mxu1 %v13706_v15  ;;  %v6634_v16 = vld [vmem:[#allocation3 + $0xb0] sm:$0x1] }
 0x3a5   : > { %v6079_v54 = vadd.f32 %v16217_v2, %v6040_v29  ;;  %v7651_v41 = vrot.slane %v7649_v49, 4  ;;  %v6084_v9 = vadd.f32 %v16217_v2, %v6045_v42  ;;  %v7655_v40 = vshll.u32 %v7550_v8, 16  ;;  %12958 = vmatprep.subr.bf16.mxu1 %v13709_v58  ;;  %v6627_v29 = vld [vmem:[#allocation3 + $0xa4] sm:$0x1] }
 0x3a6   : > { %v6113_v17 = vmax.f32 %v6081_v60, 0.0  ;;  %v7642_v5 = vor.u32 %v7641_v10, %v7638_v45  ;;  %v11969_v12 = vpack.c.bf16 %v6110_v53, %v6110_v53  ;;  %v13151_v32 = vadd.f32 %v16370_v56, %v16203_v13  ;;  %v13715_v13 = vld [vmem:[%s18954_s6 + $0x40] sm:$0xff]   ;;  %v6644_v45 = vld [vmem:[#allocation3 + $0xc0] sm:$0xf] }
 0x3a7   : > { %v6111_v7 = vmax.f32 %v6079_v54, 0.0  ;;  %v7652_v38 = vor.u32 %v7651_v41, %v7647_v31  ;;  %v6116_v27 = vmax.f32 %v6084_v9, 0.0  ;;  %v7657_v36 = vrot.slane %v7655_v40, 5  ;;  %v13847_v10 = vld [vmem:[%s18953_s5] ss:$0 sm:$0xff] }
 0x3a8   : > { %v11972_v50 = vpack.c.bf16 %v6113_v17, %v6113_v17  ;;  %v7643_v11 = vrot.slane %v7642_v5, 4  ;;  %v6419_v47 = vshrl.u32 %v11969_v12, 16  ;;  %v6422_v15 = vshll.u32 %v11969_v12, 16  ;;  %12959 = vmatpush3.bf16.msra.mxu1 %v13709_v58  ;;  %v16527_v54 = vld [vmem:[#allocation3 + $0x3c] sm:$0xf] }
 0x3a9   : > { %v11970_v2 = vpack.c.bf16 %v6111_v7, %v6111_v7  ;;  %v7653_v57 = vrot.slane %v7652_v38, 4  ;;  %v11975_v48 = vpack.c.bf16 %v6116_v27, %v6116_v27  ;;  %12960 = vmatprep.subr.bf16.mxu1 %v13712_v35  ;;  %v6043_v63 = vmul.f32 %v13846_v1, %v13151_v32  ;;  %v16536_v41 = vld [vmem:[#allocation3 + $0x40] sm:$0xf]  ;;  %v16548_v12 = vld [vmem:[#allocation3 + $0x44] sm:$0x1] }
 0x3aa   : > { %v6444_v20 = vshrl.u32 %v11972_v50, 16  ;;  %v6447_v59 = vshll.u32 %v11972_v50, 16  ;;  %v7648_v14 = vsel %vm14295_vm5, %v7643_v11, %v7647_v31  ;;  %v6421_v56 = vrot.slane %v6419_v47, 7 }
 0x3ab   : > { %v6427_v44 = vshrl.u32 %v11970_v2, 16  ;;  %v6430_v33 = vshll.u32 %v11970_v2, 16  ;;  %v7658_v39 = vsel %vm14295_vm5, %v7653_v57, %v7657_v36  ;;  %v6470_v21 = vshrl.u32 %v11975_v48, 16 }
 0x3ac   : > { %v6446_v26 = vrot.slane %v6444_v20, 7  ;;  %v6473_v25 = vshll.u32 %v11975_v48, 16  ;;  %v11721_v22 = vcombine.low %v7648_v14, %v7658_v39  ;;  %v6424_v46 = vor.u32 %v6422_v15, %v6421_v56  ;;  %12961 = vmatpush3.bf16.msra.mxu1 %v13712_v35 }
 0x3ad   : > { %v6425_v55 = vrot.slane %v6421_v56, 4  ;;  %v6429_v37 = vrot.slane %v6427_v44, 7  ;;  %v16518_v8 = vrot.slane %v6470_v21, 7  ;;  %v13152_v28 = vadd.f32 %v16374_v51, %v16205_v19  ;;  %12294 = vmatprep.subr.bf16.mxu1 %v13715_v13  ;;  %v6637_v13 = vld [vmem:[#allocation3 + $0xb4] sm:$0xf] }
 0x3ae   : > { %v6449_v58 = vor.u32 %v6447_v59, %v6446_v26  ;;  %v6451_v43 = vrot.slane %v6446_v26, 4  ;;  %8579 = vmatprep.mubr.bf16.mxu1 %v11721_v22  ;;  %v6624_v49 = vsel %vm16232_vm3, %v6424_v46, %v6623_v23  ;;  %v6082_v53 = vadd.f32 %v13847_v10, %v6043_v63  ;;  %v16558_v23 = vld [vmem:[#allocation3 + $0x4c] sm:$0xf] }
 0x3af   : > { %v6432_v60 = vor.u32 %v6430_v33, %v6429_v37  ;;  %v6434_v42 = vrot.slane %v6429_v37, 4  ;;  %6625 = vst [vmem:[#allocation3 + $0x9c] sm:$0xf] %v6624_v49  ;;  %v6475_v31 = vor.u32 %v6473_v25, %v16518_v8  ;;  %v6046_v6 = vmul.f32 %v13846_v1, %v13152_v28  ;;  %v6648_v28 = vld [vmem:[#allocation3 + $0xc8] sm:$0x1] }
 0x3b0   : > { %v6450_v19 = vsel %vm14335_vm12, %v6442_v52, %v6449_v58  ;;  %v6635_v51 = vsel %vm16239_vm6, %v6451_v43, %v6634_v16  ;;  %v6114_v5 = vmax.f32 %v6082_v53, 0.0  ;;  %v13153_v40 = vadd.f32 %v16379_v34, %v16207_v4 }
 0x3b1   : > { %6633 = vst [vmem:[#allocation3 + $0xac] sm:$0xf] %v6450_v19  ;;  %6636 = vst [vmem:[#allocation3 + $0xb0] sm:$0x1] %v6635_v51  ;;  %v6433_v17 = vsel %vm14335_vm12, %v6425_v55, %v6432_v60  ;;  %v6628_v9 = vsel %vm16239_vm6, %v6434_v42, %v6627_v29  ;;  %v6645_v52 = vsel %vm16232_vm3, %v6475_v31, %v6644_v45  ;;  %v7660_v7 = vshrl.u32 %v16527_v54, 16 }
 0x3b2   : > { %6626 = vst [vmem:[#allocation3 + $0xa0] sm:$0xf] %v6433_v17  ;;  %6629 = vst [vmem:[#allocation3 + $0xa4] sm:$0x1] %v6628_v9  ;;  %v11705_v35 = vcombine.low %v16470_v62, %v16480_v18  ;;  %v11973_v38 = vpack.c.bf16 %v6114_v5, %v6114_v5  ;;  %v6085_v32 = vadd.f32 %v13847_v10, %v6046_v6  ;;  %v7663_v50 = vshll.u32 %v16527_v54, 16 }
 0x3b3   : > { %6646 = vst [vmem:[#allocation3 + $0xc0] sm:$0xf] %v6645_v52  ;;  %v7669_v27 = vshll.u32 %v16536_v41, 16  ;;  %v6044_v11 = vmul.f32 %v13846_v1, %v13153_v40  ;;  %v7662_v36 = vrot.slane %v7660_v7, 4  ;;  %v7673_v47 = vshrl.u32 %v16536_v41, 16 }
 0x3b4   : > { %8580 = vmatmul.mubr.bf16.gmra.mrb[28].mxu1 %v11705_v35  ;;  %v6453_v4 = vshrl.u32 %v11973_v38, 16  ;;  %v6117_v34 = vmax.f32 %v6085_v32, 0.0  ;;  %v7665_v15 = vrot.slane %v7663_v50, 5  ;;  %v7679_v62 = vshll.u32 %v16548_v12, 16  ;;  %v16555_v18 = vld [vmem:[#allocation3 + $0x48] sm:$0xf] }
 0x3b5   : > { %v6476_v2 = vrot.slane %v16518_v8, 4  ;;  %v6083_v57 = vadd.f32 %v13847_v10, %v6044_v11  ;;  %v7671_v20 = vrot.slane %v7669_v27, 5  ;;  %v7675_v59 = vrot.slane %v7673_v47, 4  ;;  %v16571_v10 = vld [vmem:[#allocation3 + $0x50] sm:$0x1] }
 0x3b6   : > { %v6455_v48 = vrot.slane %v6453_v4, 7  ;;  %v6456_v14 = vshll.u32 %v11973_v38, 16  ;;  %v11976_v56 = vpack.c.bf16 %v6117_v34, %v6117_v34  ;;  %v7666_v44 = vor.u32 %v7665_v15, %v7662_v36  ;;  %v16573_v31 = vld [vmem:[#allocation3 + $0x54] sm:$0xf]  ;;  %v16576_v52 = vld [vmem:[#allocation3 + $0x58] sm:$0xf] }
 0x3b7   : > { %v6115_v33 = vmax.f32 %v6083_v57, 0.0  ;;  %v7676_v39 = vor.u32 %v7675_v59, %v7671_v20  ;;  %v7684_v26 = vshrl.u32 %v16555_v18, 16  ;;  %v7687_v21 = vshll.u32 %v16555_v18, 16  ;;  %v6641_v7 = vld [vmem:[#allocation3 + $0xbc] sm:$0x1] }
 0x3b8   : > { %v6458_v25 = vor.u32 %v6456_v14, %v6455_v48  ;;  %v6478_v22 = vshrl.u32 %v11976_v56, 16  ;;  %v6481_v46 = vshll.u32 %v11976_v56, 16  ;;  %v7681_v55 = vrot.slane %v7679_v62, 5  ;;  %v16583_v36 = vld [vmem:[#allocation3 + $0x60] sm:$0xf] }
 0x3b9   : > { %v11974_v16 = vpack.c.bf16 %v6115_v33, %v6115_v33  ;;  %v7667_v37 = vrot.slane %v7666_v44, 4  ;;  %v7677_v1 = vrot.slane %v7676_v39, 4  ;;  %v7686_v63 = vrot.slane %v7684_v26, 4  ;;  %v16587_v4 = vld [vmem:[#allocation3 + $0x5c] sm:$0x1] }
 0x3ba   : > { %v6638_v58 = vsel %vm16232_vm3, %v6458_v25, %v6637_v13  ;;  %v6480_v43 = vrot.slane %v6478_v22, 7  ;;  %v7689_v29 = vrot.slane %v7687_v21, 5  ;;  %v7693_v8 = vshll.u32 %v16558_v23, 16  ;;  %v16603_v21 = vld [vmem:[#allocation3 + $0x68] sm:$0x1] }
 0x3bb   : > { %6639 = vst [vmem:[#allocation3 + $0xb4] sm:$0xf] %v6638_v58  ;;  %v6461_v49 = vshrl.u32 %v11974_v16, 16  ;;  %v7672_v60 = vsel %vm14295_vm5, %v7667_v37, %v7671_v20  ;;  %v7682_v42 = vsel %vm14295_vm5, %v7677_v1, %v7681_v55  ;;  %v11706_v45 = vcombine.low %v16527_v54, %v16536_v41  ;;  %v16610_v1 = vld [vmem:[#allocation3 + $0x6c] sm:$0xf] }
 0x3bc   : > { %v6483_v30 = vor.u32 %v6481_v46, %v6480_v43  ;;  %v6485_v53 = vrot.slane %v6480_v43, 4  ;;  %v11722_v19 = vcombine.low %v7672_v60, %v7682_v42  ;;  %v7690_v51 = vor.u32 %v7689_v29, %v7686_v63 }
 0x3bd   : > { %v6463_v17 = vrot.slane %v6461_v49, 7  ;;  %v6464_v9 = vshll.u32 %v11974_v16, 16  ;;  %v7695_v5 = vrot.slane %v7693_v8, 5  ;;  %v7697_v6 = vshrl.u32 %v16558_v23, 16  ;;  %v16612_v8 = vld [vmem:[#allocation3 + $0x70] sm:$0xf] }
 0x3be   : > { %v6459_v40 = vrot.slane %v6455_v48, 4  ;;  %v6484_v35 = vsel %vm14335_vm12, %v6476_v2, %v6483_v30  ;;  %v6649_v54 = vsel %vm16239_vm6, %v6485_v53, %v6648_v28  ;;  %8587 = vmatprep.mubr.bf16.mxu1 %v11722_v19  ;;  %v7703_v38 = vshll.u32 %v16571_v10, 16  ;;  %v16597_v48 = vld [vmem:[#allocation3 + $0x64] sm:$0xf] }
 0x3bf   : > { %6647 = vst [vmem:[#allocation3 + $0xc4] sm:$0xf] %v6484_v35  ;;  %6650 = vst [vmem:[#allocation3 + $0xc8] sm:$0x1] %v6649_v54  ;;  %v6466_v32 = vor.u32 %v6464_v9, %v6463_v17  ;;  %v6468_v50 = vrot.slane %v6463_v17, 4  ;;  %8588 = vmatmul.mubr.bf16.gmra.mrb[32].mxu1 %v11706_v45  ;;  %v7691_v27 = vrot.slane %v7690_v51, 4  ;;  %v11707_v47 = vcombine.low %v16555_v18, %v16558_v23 }
 0x3c0   : > { %v7699_v11 = vrot.slane %v7697_v6, 4  ;;  %v7708_v34 = vshrl.u32 %v16573_v31, 16  ;;  %v7711_v15 = vshll.u32 %v16573_v31, 16  ;;  %v7717_v62 = vshll.u32 %v16576_v52, 16  ;;  %v16622_v54 = vld [vmem:[#allocation3 + $0x7c] sm:$0xf] }
 0x3c1   : > { %v6467_v2 = vsel %vm14335_vm12, %v6459_v40, %v6466_v32  ;;  %v6642_v57 = vsel %vm16239_vm6, %v6468_v50, %v6641_v7  ;;  %v7721_v59 = vshrl.u32 %v16576_v52, 16  ;;  %v7705_v18 = vrot.slane %v7703_v38, 5  ;;  %v16624_v32 = vld [vmem:[#allocation3 + $0x74] sm:$0x1] }
 0x3c2   : > { %v7700_v20 = vor.u32 %v7699_v11, %v7695_v5  ;;  %6640 = vst [vmem:[#allocation3 + $0xb8] sm:$0xf] %v6467_v2  ;;  %6643 = vst [vmem:[#allocation3 + $0xbc] sm:$0x1] %v6642_v57  ;;  %v7710_v14 = vrot.slane %v7708_v34, 4  ;;  %v7713_v13 = vrot.slane %v7711_v15, 5  ;;  %v7696_v0 = vsel %vm14295_vm5, %v7691_v27, %v7695_v5 }
 0x3c3   : > { %v7719_v56 = vrot.slane %v7717_v62, 5  ;;  %v7723_v33 = vrot.slane %v7721_v59, 4  ;;  %v7727_v39 = vshll.u32 %v16587_v4, 16  ;;  %v7732_v3 = vshrl.u32 %v16583_v36, 16  ;;  %v16627_v11 = vld [vmem:[#allocation3 + $0x78] sm:$0xf] }
 0x3c4   : > { %v7701_v44 = vrot.slane %v7700_v20, 4  ;;  %v7714_v26 = vor.u32 %v7713_v13, %v7710_v14  ;;  %v7735_v25 = vshll.u32 %v16583_v36, 16  ;;  %v7741_v22 = vshll.u32 %v16597_v48, 16 }
 0x3c5   : > { %v7724_v55 = vor.u32 %v7723_v33, %v7719_v56  ;;  %v7734_v16 = vrot.slane %v7732_v3, 4  ;;  %v7745_v37 = vshrl.u32 %v16597_v48, 16  ;;  %v7729_v49 = vrot.slane %v7727_v39, 5  ;;  %v16640_v39 = vld [vmem:[#allocation3 + $0x84] sm:$0xf] }
 0x3c6   : > { %v7706_v46 = vsel %vm14295_vm5, %v7701_v44, %v7705_v18  ;;  %v7715_v58 = vrot.slane %v7714_v26, 4  ;;  %v7737_v43 = vrot.slane %v7735_v25, 5  ;;  %v7743_v29 = vrot.slane %v7741_v22, 5  ;;  %v16642_v3 = vld [vmem:[#allocation3 + $0x88] sm:$0xf] }
 0x3c7   : > { %v11723_v63 = vcombine.low %v7696_v0, %v7706_v46  ;;  %v7725_v28 = vrot.slane %v7724_v55, 4  ;;  %v7747_v60 = vrot.slane %v7745_v37, 4  ;;  %v7751_v42 = vshll.u32 %v16603_v21, 16  ;;  %v16644_v46 = vld [vmem:[#allocation3 + $0x80] sm:$0x1] }
 0x3c8   : > { %v7738_v45 = vor.u32 %v7737_v43, %v7734_v16  ;;  %v7756_v30 = vshrl.u32 %v16610_v1, 16  ;;  %v7759_v53 = vshll.u32 %v16610_v1, 16  ;;  %v7720_v19 = vsel %vm14295_vm5, %v7715_v58, %v7719_v56 }
 0x3c9   : > { %8595 = vmatprep.mubr.bf16.mxu1 %v11723_v63  ;;  %v7730_v51 = vsel %vm14295_vm5, %v7725_v28, %v7729_v49  ;;  %v7748_v17 = vor.u32 %v7747_v60, %v7743_v29  ;;  %v7765_v9 = vshll.u32 %v16612_v8, 16  ;;  %v7753_v38 = vrot.slane %v7751_v42, 5 }
 0x3ca   : > { %8596 = vmatmul.mubr.bf16.gmra.mrb[36].mxu1 %v11707_v47  ;;  %v11724_v5 = vcombine.low %v7720_v19, %v7730_v51  ;;  %v7739_v6 = vrot.slane %v7738_v45, 4  ;;  %v7758_v40 = vrot.slane %v7756_v30, 4  ;;  %v7761_v35 = vrot.slane %v7759_v53, 5 }
 0x3cb   : > { %v7749_v7 = vrot.slane %v7748_v17, 4  ;;  %v7767_v50 = vrot.slane %v7765_v9, 5  ;;  %v7769_v27 = vshrl.u32 %v16612_v8, 16  ;;  %v11708_v47 = vcombine.low %v16573_v31, %v16576_v52  ;;  %v16657_v17 = vld [vmem:[#allocation3 + $0x94] sm:$0xf] }
 0x3cc   : > { %8603 = vmatprep.mubr.bf16.mxu1 %v11724_v5  ;;  %v7744_v62 = vsel %vm14295_vm5, %v7739_v6, %v7743_v29  ;;  %v7762_v2 = vor.u32 %v7761_v35, %v7758_v40  ;;  %v7775_v57 = vshll.u32 %v16624_v32, 16  ;;  %v7789_v20 = vshll.u32 %v16622_v54, 16  ;;  %v16659_v6 = vld [vmem:[#allocation3 + $0x90] sm:$0xf] }
 0x3cd   : > { %v7754_v34 = vsel %vm14295_vm5, %v7749_v7, %v7753_v38  ;;  %v7771_v15 = vrot.slane %v7769_v27, 4  ;;  %v7780_v18 = vshrl.u32 %v16627_v11, 16  ;;  %v7783_v14 = vshll.u32 %v16627_v11, 16 }
 0x3ce   : > { %v7793_v13 = vshrl.u32 %v16622_v54, 16  ;;  %v11725_v31 = vcombine.low %v7744_v62, %v7754_v34  ;;  %v7791_v44 = vrot.slane %v7789_v20, 5  ;;  %v7763_v0 = vrot.slane %v7762_v2, 4  ;;  %v16674_v2 = vld [vmem:[#allocation3 + $0xa0] sm:$0xf] }
 0x3cf   : > { %v7772_v59 = vor.u32 %v7771_v15, %v7767_v50  ;;  %v7777_v26 = vrot.slane %v7775_v57, 5  ;;  %v7782_v25 = vrot.slane %v7780_v18, 4  ;;  %v7785_v22 = vrot.slane %v7783_v14, 5  ;;  %v16678_v18 = vld [vmem:[#allocation3 + $0xac] sm:$0xf] }
 0x3d0   : > { %v7795_v33 = vrot.slane %v7793_v13, 4  ;;  %v7804_v55 = vshrl.u32 %v16640_v39, 16  ;;  %v7807_v16 = vshll.u32 %v16640_v39, 16  ;;  %v7813_v58 = vshll.u32 %v16642_v3, 16 }
 0x3d1   : > { %v7773_v56 = vrot.slane %v7772_v59, 4  ;;  %v7817_v43 = vshrl.u32 %v16642_v3, 16  ;;  %v11709_v29 = vcombine.low %v16583_v36, %v16597_v48  ;;  %v7768_v28 = vsel %vm14295_vm5, %v7763_v0, %v7767_v50  ;;  %v16661_v36 = vld [vmem:[#allocation3 + $0x8c] sm:$0x1] }
 0x3d2   : > { %8604 = vmatmul.mubr.bf16.gmra.mrb[40].mxu1 %v11708_v47  ;;  %v7796_v63 = vor.u32 %v7795_v33, %v7791_v44  ;;  %v7786_v49 = vor.u32 %v7785_v22, %v7782_v25  ;;  %v7799_v60 = vshll.u32 %v16644_v46, 16  ;;  %v7806_v45 = vrot.slane %v7804_v55, 4 }
 0x3d3   : > { %8611 = vmatprep.mubr.bf16.mxu1 %v11725_v31  ;;  %v7778_v37 = vsel %vm14295_vm5, %v7773_v56, %v7777_v26  ;;  %v7809_v53 = vrot.slane %v7807_v16, 5  ;;  %v7815_v19 = vrot.slane %v7813_v58, 5  ;;  %v7819_v51 = vrot.slane %v7817_v43, 4  ;;  %v16680_v31 = vld [vmem:[#allocation3 + $0x98] sm:$0x1] }
 0x3d4   : > { %v11726_v42 = vcombine.low %v7768_v28, %v7778_v37  ;;  %v7797_v30 = vrot.slane %v7796_v63, 4  ;;  %v7787_v9 = vrot.slane %v7786_v49, 4  ;;  %v7801_v5 = vrot.slane %v7799_v60, 5  ;;  %v16682_v56 = vld [vmem:[#allocation3 + $0x9c] sm:$0xf] }
 0x3d5   : > { %v7837_v40 = vshll.u32 %v16657_v17, 16  ;;  %v7841_v35 = vshrl.u32 %v16657_v17, 16  ;;  %v7810_v38 = vor.u32 %v7809_v53, %v7806_v45  ;;  %v7820_v50 = vor.u32 %v7819_v51, %v7815_v19  ;;  %v16686_v26 = vld [vmem:[#allocation3 + $0xa8] sm:$0xf]  ;;  %v16695_v43 = vld [vmem:[#allocation3 + $0xb4] sm:$0xf] }
 0x3d6   : > { %v7802_v7 = vsel %vm14295_vm5, %v7797_v30, %v7801_v5  ;;  %v7828_v27 = vshrl.u32 %v16659_v6, 16  ;;  %v7831_v47 = vshll.u32 %v16659_v6, 16  ;;  %v11710_v34 = vcombine.low %v16610_v1, %v16612_v8  ;;  %v16706_v53 = vld [vmem:[#allocation3 + $0xb8] sm:$0xf]  ;;  %v16708_v51 = vld [vmem:[#allocation3 + $0xa4] sm:$0x1] }
 0x3d7   : > { %v7792_v15 = vsel %vm14295_vm5, %v7787_v9, %v7791_v44  ;;  %v7823_v62 = vshll.u32 %v16661_v36, 16  ;;  %v16676_v20 = vrot.slane %v7837_v40, 5  ;;  %v7843_v59 = vrot.slane %v7841_v35, 4 }
 0x3d8   : > { %v11727_v57 = vcombine.low %v7792_v15, %v7802_v7  ;;  %v7811_v14 = vrot.slane %v7810_v38, 4  ;;  %v7821_v13 = vrot.slane %v7820_v50, 4  ;;  %v7830_v1 = vrot.slane %v7828_v27, 4 }
 0x3d9   : > { %v7833_v44 = vrot.slane %v7831_v47, 5  ;;  %v7861_v33 = vshll.u32 %v16674_v2, 16  ;;  %v7865_v0 = vshrl.u32 %v16674_v2, 16  ;;  %v7825_v25 = vrot.slane %v7823_v62, 5 }
 0x3da   : > { %8612 = vmatmul.mubr.bf16.gmra.mrb[44].mxu1 %v11709_v29  ;;  %v7885_v22 = vshll.u32 %v16678_v18, 16  ;;  %v7889_v55 = vshrl.u32 %v16678_v18, 16  ;;  %v11711_v16 = vcombine.low %v16627_v11, %v16622_v54  ;;  %v7844_v37 = vor.u32 %v7843_v59, %v16676_v20 }
 0x3db   : > { %8619 = vmatprep.mubr.bf16.mxu1 %v11726_v42  ;;  %v7852_v63 = vshrl.u32 %v16682_v56, 16  ;;  %v7855_v58 = vshll.u32 %v16682_v56, 16  ;;  %v7826_v29 = vsel %vm14295_vm5, %v7821_v13, %v7825_v25  ;;  %v7847_v28 = vshll.u32 %v16680_v31, 16 }
 0x3dc   : > { %v7876_v49 = vshrl.u32 %v16686_v26, 16  ;;  %v7879_v60 = vshll.u32 %v16686_v26, 16  ;;  %v7816_v11 = vsel %vm14295_vm5, %v7811_v14, %v7815_v19  ;;  %v7834_v42 = vor.u32 %v7833_v44, %v7830_v1  ;;  %v16718_v14 = vld [vmem:[#allocation3 + $0xb0] sm:$0x1] }
 0x3dd   : > { %v16704_v45 = vrot.slane %v7861_v33, 5  ;;  %v7867_v30 = vrot.slane %v7865_v0, 4  ;;  %v16710_v9 = vrot.slane %v7885_v22, 5  ;;  %v7891_v5 = vrot.slane %v7889_v55, 4 }
 0x3de   : > { %v7900_v40 = vshrl.u32 %v16695_v43, 16  ;;  %v7903_v35 = vshll.u32 %v16695_v43, 16  ;;  %v11728_v7 = vcombine.low %v7816_v11, %v7826_v29  ;;  %v7845_v38 = vrot.slane %v7844_v37, 4 }
 0x3df   : > { %v7854_v50 = vrot.slane %v7852_v63, 4  ;;  %v7857_v27 = vrot.slane %v7855_v58, 5  ;;  %v7878_v19 = vrot.slane %v7876_v49, 4  ;;  %v7881_v47 = vrot.slane %v7879_v60, 5  ;;  %v16726_v63 = vld [vmem:[#allocation3 + $0xc0] sm:$0xf] }
 0x3e0   : > { %v7913_v15 = vshrl.u32 %v16706_v53, 16  ;;  %v7849_v62 = vrot.slane %v7847_v28, 5  ;;  %v7871_v59 = vshll.u32 %v16708_v51, 16  ;;  %v7835_v13 = vrot.slane %v7834_v42, 4  ;;  %v16730_v28 = vld [vmem:[#allocation3 + $0xbc] sm:$0x1] }
 0x3e1   : > { %v7892_v1 = vor.u32 %v7891_v5, %v16710_v9  ;;  %v7902_v44 = vrot.slane %v7900_v40, 4  ;;  %v7905_v33 = vrot.slane %v7903_v35, 5  ;;  %v7858_v25 = vor.u32 %v7857_v27, %v7854_v50 }
 0x3e2   : > { %8620 = vmatmul.mubr.bf16.gmra.mrb[48].mxu1 %v11710_v34  ;;  %v7909_v34 = vshll.u32 %v16706_v53, 16  ;;  %v7850_v0 = vsel %vm14295_vm5, %v7845_v38, %v7849_v62  ;;  %v7882_v22 = vor.u32 %v7881_v47, %v7878_v19  ;;  %v7895_v55 = vshll.u32 %v16718_v14, 16 }
 0x3e3   : > { %8627 = vmatprep.mubr.bf16.mxu1 %v11727_v57  ;;  %v7868_v57 = vor.u32 %v7867_v30, %v16704_v45  ;;  %v7915_v37 = vrot.slane %v7913_v15, 4  ;;  %v11712_v58 = vcombine.low %v16640_v39, %v16642_v3  ;;  %v7840_v49 = vsel %vm14295_vm5, %v7835_v13, %v16676_v20  ;;  %v16735_v30 = vld [vmem:[#allocation3 + $0xc4] sm:$0xf] }
 0x3e4   : > { %v7873_v60 = vrot.slane %v7871_v59, 5  ;;  %v7893_v11 = vrot.slane %v7892_v1, 4  ;;  %v7906_v42 = vor.u32 %v7905_v33, %v7902_v44  ;;  %v11729_v5 = vcombine.low %v7840_v49, %v7850_v0  ;;  %v16758_v1 = vld [vmem:[#allocation3 + $0xc8] sm:$0x1]  ;;  %v7952_v33 = vld [vmem:[#allocation3 + $0x48] sm:$0xe] }
 0x3e5   : > { %v7869_v29 = vrot.slane %v7868_v57, 4  ;;  %v7859_v40 = vrot.slane %v7858_v25, 4  ;;  %v7924_v35 = vshrl.u32 %v16726_v63, 16  ;;  %v7883_v39 = vrot.slane %v7882_v22, 4 }
 0x3e6   : > { %v7897_v38 = vrot.slane %v7895_v55, 5  ;;  %v7919_v27 = vshll.u32 %v16730_v28, 16  ;;  %v7933_v19 = vshll.u32 %v16735_v30, 16  ;;  %v7937_v47 = vshrl.u32 %v16735_v30, 16 }
 0x3e7   : > { %v7874_v20 = vsel %vm14295_vm5, %v7869_v29, %v7873_v60  ;;  %v11714_v15 = vcombine.low %v16682_v56, %v16674_v2  ;;  %v16751_v57 = vrot.slane %v7906_v42, 4  ;;  %v7864_v59 = vsel %vm14295_vm5, %v7859_v40, %v16704_v45  ;;  %v7953_v45 = vld [vmem:[#allocation3 + $0x54] sm:$0xe] }
 0x3e8   : > { %v7898_v62 = vsel %vm14295_vm5, %v7893_v11, %v7897_v38  ;;  %v11715_v13 = vcombine.low %v16686_v26, %v16678_v18  ;;  %v16760_v44 = vrot.slane %v7924_v35, 4  ;;  %v11730_v0 = vcombine.low %v7864_v59, %v7874_v20 }
 0x3e9   : > { %v7888_v25 = vsel %vm14295_vm5, %v7883_v39, %v16710_v9  ;;  %v16769_v55 = vrot.slane %v7919_v27, 5  ;;  %v16773_v29 = vrot.slane %v7937_v47, 4  ;;  %v8048_v49 = vrot.slane %v16558_v23, 5  ;;  %v7955_v27 = vld [vmem:[#allocation3 + $0x6c] sm:$0xe] }
 0x3ea   : > { %8628 = vmatmul.mubr.bf16.gmra.mrb[52].mxu1 %v11711_v16  ;;  %v16724_v16 = vrot.slane %v7909_v34, 5  ;;  %v11713_v34 = vcombine.low %v16659_v6, %v16657_v17  ;;  %v7943_v11 = vshll.u32 %v16758_v1, 16  ;;  %v11691_v9 = vrot.slane %v7952_v33, 9 }
 0x3eb   : > { %8635 = vmatprep.mubr.bf16.mxu1 %v11728_v7  ;;  %v7927_v7 = vshll.u32 %v16726_v63, 16  ;;  %v8055_v42 = vrot.slane %v16576_v52, 5  ;;  %v8050_v35 = vrot.slane %v8048_v49, 4  ;;  %v11692_v39 = vrot.slane %v7953_v45, 9 }
 0x3ec   : > { %v7916_v50 = vor.u32 %v7915_v37, %v16724_v16  ;;  %v11731_v37 = vcombine.low %v7888_v25, %v7898_v62  ;;  %v7912_v60 = vsel %vm14295_vm5, %v16751_v57, %v16724_v16  ;;  %v16791_v38 = vsel %vm14711_vm0, %v11691_v9, %v8048_v49 }
 0x3ed   : > { %v16762_v6 = vrot.slane %v7927_v7, 5  ;;  %v8051_v7 = vrot.slane %v16571_v10, 5  ;;  %v8058_v52 = vrot.slane %v16587_v4, 5  ;;  %v16800_v10 = vsel %vm14711_vm0, %v11692_v39, %v8055_v42 }
 0x3ee   : > { %v16767_v22 = vrot.slane %v7916_v50, 4  ;;  %v8057_v50 = vrot.slane %v8055_v42, 4  ;;  %v8062_v47 = vrot.slane %v16597_v48, 5  ;;  %v8065_v59 = vrot.slane %v16603_v21, 5  ;;  %v7957_v48 = vld [vmem:[#allocation3 + $0x84] sm:$0xe] }
 0x3ef   : > { %v7930_v40 = vor.u32 %v16762_v6, %v16760_v44  ;;  %v16796_v20 = vsel %vm14711_vm0, %v8050_v35, %v8051_v7  ;;  %v8069_v33 = vrot.slane %v16612_v8, 5  ;;  %v11694_v45 = vrot.slane %v7955_v27, 9  ;;  %v7958_v27 = vld [vmem:[#allocation3 + $0x90] sm:$0xe] }
 0x3f0   : > { %v7922_v23 = vsel %vm14295_vm5, %v16767_v22, %v16769_v55  ;;  %v11739_v62 = vcombine.low %v16791_v38, %v16796_v20  ;;  %v16807_v4 = vsel %vm14711_vm0, %v8057_v50, %v8058_v52  ;;  %v8064_v25 = vrot.slane %v8062_v47, 4  ;;  %v13728_v38 = vld [vmem:[%s18954_s6 + $0x30] sm:$0xff]   ;;  %v13729_v20 = vld [vmem:[%s18954_s6 + $0x78] sm:$0xff]  }
 0x3f1   : > { %v8072_v49 = vrot.slane %v16624_v32, 5  ;;  %v8071_v42 = vrot.slane %v8069_v33, 4  ;;  %v8076_v35 = vrot.slane %v16622_v54, 5  ;;  %v16825_v8 = vsel %vm14711_vm0, %v11694_v45, %v8069_v33 }
 0x3f2   : > { %8636 = vmatmul.mubr.bf16.gmra.mrb[56].mxu1 %v11712_v58  ;;  %v16771_v58 = vrot.slane %v7933_v19, 5  ;;  %v16821_v21 = vsel %vm14711_vm0, %v8064_v25, %v8065_v59  ;;  %v8079_v7 = vrot.slane %v16644_v46, 5  ;;  %v8083_v32 = vrot.slane %v16642_v3, 5  ;;  %v7959_v3 = vld [vmem:[#allocation3 + $0x9c] sm:$0xe] }
 0x3f3   : > { %8643 = vmatprep.mubr.bf16.mxu1 %v11729_v5  ;;  %v7954_v5 = vld [vmem:[#allocation3 + $0x60] sm:$0xe]  ;;  %v16833_v50 = vsel %vm14711_vm0, %v8071_v42, %v8072_v49  ;;  %v8078_v54 = vrot.slane %v8076_v35, 4  ;;  %v11696_v52 = vrot.slane %v7957_v48, 9  ;;  %v8086_v46 = vrot.slane %v16661_v36, 5 }
 0x3f4   : > { %v11693_v19 = vrot.slane %v7954_v5, 9  ;;  %v8090_v25 = vrot.slane %v16657_v17, 5  ;;  %v8097_v45 = vrot.slane %v16674_v2, 5  ;;  %v7960_v49 = vld [vmem:[#allocation3 + $0xa8] sm:$0xe]  ;;  %v7931_v26 = vrot.slane %v7930_v40, 4 }
 0x3f5   : > { %v16849_v33 = vsel %vm14711_vm0, %v8078_v54, %v8079_v7  ;;  %v8100_v7 = vrot.slane %v16708_v51, 5  ;;  %v7961_v54 = vld [vmem:[#allocation3 + $0xb4] sm:$0xe] }
 0x3f6   : > { %v16816_v9 = vsel %vm14711_vm0, %v11693_v19, %v8062_v47  ;;  %v7940_v19 = vor.u32 %v16773_v29, %v16771_v58  ;;  %v11742_v47 = vcombine.low %v16825_v8, %v16833_v50  ;;  %v16853_v29 = vsel %vm14711_vm0, %v11696_v52, %v8083_v32  ;;  %v17040_v8 = vld [vmem:[#allocation3 + $0x10] sm:$0xf] }
 0x3f7   : > { %v11741_v39 = vcombine.low %v16816_v9, %v16821_v21  ;;  %v8092_v42 = vrot.slane %v8090_v25, 4  ;;  %v7936_v6 = vsel %vm14295_vm5, %v7931_v26, %v16771_v58 }
 0x3f8   : > { %v7941_v22 = vrot.slane %v7940_v19, 4 }
 0x3fa   : > { %8644 = vmatmul.mubr.bf16.gmra.mrb[60].mxu1 %v11713_v34  ;;  %v7956_v34 = vld [vmem:[#allocation3 + $0x78] sm:$0xe] }
 0x3fb   : > { %8651 = vmatprep.mubr.bf16.mxu1 %v11730_v0  ;;  %v11740_v0 = vcombine.low %v16800_v10, %v16807_v4  ;;  %v11695_v5 = vrot.slane %v7956_v34, 9  ;;  %v8085_v34 = vrot.slane %v8083_v32, 4  ;;  %v8104_v32 = vrot.slane %v16678_v18, 5  ;;  %v13730_v10 = vld [vmem:[%s18954_s6 + $0x38] sm:$0xff]   ;;  %v17034_v4 = vld [vmem:[%s18954_s6 + $0x80] sm:$0xff]  }
 0x3fc   : > { %v8121_v18 = vrot.slane %v16758_v1, 5  ;;  %v11716_v1 = vcombine.low %v16695_v43, %v16706_v53  ;;  %v11717_v43 = vcombine.low %v16726_v63, %v16735_v30 }
 0x3fd   : > { %v16845_v59 = vsel %vm14711_vm0, %v11695_v5, %v8076_v35  ;;  %v16860_v56 = vsel %vm14711_vm0, %v8085_v34, %v8086_v46  ;;  %v8093_v5 = vrot.slane %v16680_v31, 5  ;;  %v11698_v35 = vrot.slane %v7959_v3, 9 }
 0x3fe   : > { %v11743_v36 = vcombine.low %v16845_v59, %v16849_v33  ;;  %v11744_v48 = vcombine.low %v16853_v29, %v16860_v56  ;;  %v11699_v31 = vrot.slane %v7960_v49, 9  ;;  %v8106_v46 = vrot.slane %v8104_v32, 4  ;;  %v7962_v49 = vld [vmem:[#allocation3 + $0xc0] sm:$0xe] }
 0x3ff   : > { %v16874_v2 = vsel %vm14711_vm0, %v8092_v42, %v8093_v5  ;;  %v16878_v52 = vsel %vm14711_vm0, %v11698_v35, %v8097_v45  ;;  %v8107_v3 = vrot.slane %v16718_v14, 5  ;;  %v11732_v5 = vcombine.low %v7912_v60, %v7922_v23 }
 0x400   : > { %v16903_v14 = vsel %vm14711_vm0, %v11699_v31, %v8104_v32  ;;  %v11701_v23 = vrot.slane %v7962_v49, 9 }
 0x401   : > { %v16907_v35 = vsel %vm14711_vm0, %v8106_v46, %v8107_v3  ;;  %v13849_v46 = vld [vmem:[#allocation3 + $0x14] sm:$0x1] }
 0x402   : > { %8652 = vmatmul.mubr.bf16.gmra.mrb[64].mxu1 %v11714_v15  ;;  %v11697_v15 = vrot.slane %v7958_v27, 9  ;;  %v8111_v27 = vrot.slane %v16706_v53, 5  ;;  %v11747_v55 = vcombine.low %v16903_v14, %v16907_v35  ;;  %v8016_v3 = vrot.slane %v13849_v46, 5  ;;  %v13716_v46 = vld [vmem:[%s18954_s6] sm:$0xff]  }
 0x403   : > { %8659 = vmatprep.mubr.bf16.mxu1 %v11731_v37  ;;  %v8099_v37 = vrot.slane %v8097_v45, 4  ;;  %v8114_v45 = vrot.slane %v16730_v28, 5  ;;  %v8118_v28 = vrot.slane %v16735_v30, 5 }
 0x404   : > { %v16868_v17 = vsel %vm14711_vm0, %v11697_v15, %v8090_v25  ;;  %v11700_v15 = vrot.slane %v7961_v54, 9  ;;  %v8113_v42 = vrot.slane %v8111_v27, 4  ;;  %v13848_v54 = vld [vmem:[#allocation3 + $0x10] sm:$0xf] }
 0x405   : > { %v11745_v34 = vcombine.low %v16868_v17, %v16874_v2  ;;  %v16885_v51 = vsel %vm14711_vm0, %v8099_v37, %v8100_v7  ;;  %v8120_v37 = vrot.slane %v8118_v28, 4  ;;  %v16933_v19 = vsel %vm14711_vm0, %v11701_v23, %v8118_v28  ;;  %v7948_v23 = vld [vmem:[#allocation3 + $0x18] sm:$0xe] }
 0x406   : > { %v11746_v25 = vcombine.low %v16878_v52, %v16885_v51  ;;  %v16917_v16 = vsel %vm14711_vm0, %v11700_v15, %v8111_v27  ;;  %v16921_v57 = vsel %vm14711_vm0, %v8113_v42, %v8114_v45  ;;  %v8013_v31 = vrot.slane %v13848_v54, 5  ;;  %v7947_v27 = vld [vmem:[#allocation3 + $0xc] sm:$0xe]  ;;  %v13850_v15 = vld [vmem:[#allocation3 + $0x1c] sm:$0xf] }
 0x407   : > { %v11748_v60 = vcombine.low %v16917_v16, %v16921_v57  ;;  %v16937_v7 = vsel %vm14711_vm0, %v8120_v37, %v8121_v18  ;;  %v8020_v42 = vrot.slane %v13850_v15, 5  ;;  %v11686_v45 = vrot.slane %v7947_v27, 9  ;;  %v13852_v18 = vld [vmem:[#allocation3 + $0x20] sm:$0x1]  ;;  %v7086_v57 = vld [vmem:[#allocation3 + $0x24] sm:$0xe] }
 0x408   : > { %v11749_v44 = vcombine.low %v16933_v19, %v16937_v7  ;;  %v8015_v40 = vrot.slane %v8013_v31, 4  ;;  %v8023_v26 = vrot.slane %v13852_v18, 5  ;;  %v7090_v7 = vld [vmem:[#allocation3 + $0x54] sm:$0xe] }
 0x409   : > { %v8014_v53 = vsel %vm14711_vm0, %v11686_v45, %v8013_v31  ;;  %v13717_v45 = vld [vmem:[%s18954_s6 + $0x48] sm:$0xff]  }
 0x40a   : > { %8660 = vmatmul.mubr.bf16.gmra.mrb[68].mxu1 %v11715_v13  ;;  %v7945_v13 = vrot.slane %v7943_v11, 5  ;;  %v8017_v49 = vsel %vm14711_vm0, %v8015_v40, %v8016_v3  ;;  %v8041_v40 = vrot.slane %v16536_v41, 5 }
 0x40b   : > { %8667 = vmatprep.mubr.bf16.mxu1 %v11732_v5  ;;  %v13851_v5 = vld [vmem:[#allocation3 + $0x28] sm:$0xf]  ;;  %v11734_v58 = vcombine.low %v8014_v53, %v8017_v49 }
 0x40c   : > { %v7946_v32 = vsel %vm14295_vm5, %v7941_v22, %v7945_v13  ;;  %v8027_v28 = vrot.slane %v13851_v5, 5  ;;  %v8022_v22 = vrot.slane %v8020_v42, 4  ;;  %v7949_v13 = vld [vmem:[#allocation3 + $0x24] sm:$0xe]  ;;  %v8043_v41 = vrot.slane %v8041_v40, 4 }
 0x40d   : > { %v11733_v11 = vcombine.low %v7936_v6, %v7946_v32  ;;  %v13853_v32 = vld [vmem:[#allocation3 + $0x2c] sm:$0x1]  ;;  %v11688_v30 = vrot.slane %v7949_v13, 9 }
 0x40e   : > { %v8029_v37 = vrot.slane %v8027_v28, 4  ;;  %v8030_v54 = vrot.slane %v13853_v32, 5  ;;  %v8024_v6 = vsel %vm14711_vm0, %v8022_v22, %v8023_v26  ;;  %v7951_v22 = vld [vmem:[#allocation3 + $0x3c] sm:$0xe] }
 0x40f   : > { %v8028_v15 = vsel %vm14711_vm0, %v11688_v30, %v8027_v28  ;;  %v8044_v28 = vrot.slane %v16548_v12, 5  ;;  %v11690_v26 = vrot.slane %v7951_v22, 9  ;;  %v13720_v12 = vld [vmem:[%s18954_s6 + $0x10] sm:$0xff]   ;;  %v13723_v30 = vld [vmem:[%s18954_s6 + $0x60] sm:$0xff]  }
 0x410   : > { %v8031_v31 = vsel %vm14711_vm0, %v8029_v37, %v8030_v54 }
 0x411   : > { %v11736_v49 = vcombine.low %v8028_v15, %v8031_v31  ;;  %v8045_v13 = vsel %vm14711_vm0, %v8043_v41, %v8044_v28  ;;  %v13724_v31 = vld [vmem:[%s18954_s6 + $0x20] sm:$0xff]   ;;  %v6733_v15 = vshll.u32 %v17040_v8, 16 }
 0x412   : > { %8668 = vmatmul.mubr.bf16.gmra.mrb[72].mxu1 %v11716_v1  ;;  %v11687_v1 = vrot.slane %v7948_v23, 9  ;;  %v13719_v23 = vld [vmem:[%s18954_s6 + $0x50] sm:$0xff]  }
 0x413   : > { %8675 = vmatprep.mubr.bf16.mxu1 %v11733_v11  ;;  %v13854_v11 = vld [vmem:[#allocation3 + $0x34] sm:$0xf] }
 0x414   : > { %v8034_v63 = vrot.slane %v13854_v11, 5  ;;  %v8021_v27 = vsel %vm14711_vm0, %v11687_v1, %v8020_v42  ;;  %v13855_v42 = vld [vmem:[#allocation3 + $0x38] sm:$0x1]  ;;  %v8042_v1 = vsel %vm14711_vm0, %v11690_v26, %v8041_v40  ;;  %v13725_v40 = vld [vmem:[%s18954_s6 + $0x68] sm:$0xff]  }
 0x415   : > { %v11735_v3 = vcombine.low %v8021_v27, %v8024_v6  ;;  %v8037_v53 = vrot.slane %v13855_v42, 5  ;;  %v13721_v6 = vld [vmem:[%s18954_s6 + $0x58] sm:$0xff]   ;;  %v11738_v11 = vcombine.low %v8042_v1, %v8045_v13  ;;  %v13726_v27 = vld [vmem:[%s18954_s6 + $0x28] sm:$0xff]  }
 0x416   : > { %v8036_v5 = vrot.slane %v8034_v63, 4  ;;  %v6684_v1 = vld [vmem:[#allocation3 + $0x14] sm:$0x1] }
 0x418   : > { %v8038_v18 = vsel %vm14711_vm0, %v8036_v5, %v8037_v53  ;;  %v6683_v53 = vld [vmem:[#allocation3 + $0x8] sm:$0x1] }
 0x419   : > { %v6719_v56 = vshll.u32 %v6683_v53, 16 }
 0x41a   : > { %8676 = vmatmul.mubr.bf16.gmra.mrb[76].mxu1 %v11717_v43  ;;  %v7950_v43 = vld [vmem:[#allocation3 + $0x30] sm:$0xe] }
 0x41b   : > { %12962 = vmatprep.mubr.bf16.mxu1 %v11734_v58  ;;  %v13718_v58 = vld [vmem:[%s18954_s6 + $0x8] sm:$0xff]   ;;  %v11689_v37 = vrot.slane %v7950_v43, 9 }
 0x41d   : > { %v8035_v32 = vsel %vm14711_vm0, %v11689_v37, %v8034_v63  ;;  %v13722_v63 = vld [vmem:[%s18954_s6 + $0x18] sm:$0xff]  }
 0x41e   : > { %v11737_v54 = vcombine.low %v8035_v32, %v8038_v18  ;;  %v17067_v18 = vld [vmem:[#allocation3 + $0x24] sm:$0xf] }
 0x422   : > { %12963 = vmatmul.mubr.bf16.vlgmr.msra.gmra.mrb[80].mxu1 %v11735_v3  ;;  %v17047_v3 = vld [vmem:[#allocation3 + $0xc] sm:$0xf] }
 0x423   : > { %12295 = vmatpush3.bf16.msra.mxu1 %v13716_v46  ;;  %12966 = vmatprep.mubr.bf16.mxu1 %v11736_v49  ;;  %v13727_v46 = vld [vmem:[%s18954_s6 + $0x70] sm:$0xff]   ;;  %v6724_v33 = vshrl.u32 %v17047_v3, 16 }
 0x424   : > { %12296 = vmatprep.subr.bf16.mxu1 %v13717_v45  ;;  %v6737_v45 = vshrl.u32 %v17040_v8, 16  ;;  %v17054_v49 = vld [vmem:[#allocation3 + $0x18] sm:$0xf] }
 0x425   : > { %v6748_v22 = vshrl.u32 %v17054_v49, 16  ;;  %v6751_v28 = vshll.u32 %v17054_v49, 16  ;;  %v6726_v32 = vrot.slane %v6724_v33, 4 }
 0x426   : > { %v6739_v29 = vrot.slane %v6737_v45, 4 }
 0x427   : > { %12297 = vmatpush3.bf16.msra.mxu1 %v13718_v58 }
 0x428   : > { %12298 = vmatprep.subr.bf16.mxu1 %v13719_v23  ;;  %v6735_v23 = vrot.slane %v6733_v15, 5 }
 0x42a   : > { %12967 = vmatmul.mubr.bf16.gmra.mrb[84].mxu1 %v11737_v54  ;;  %v17069_v54 = vld [vmem:[#allocation3 + $0x28] sm:$0xf] }
 0x42b   : > { %12970 = vmatprep.mubr.bf16.mxu1 %v11738_v11  ;;  %12299 = vmatpush3.bf16.msra.mxu1 %v13720_v12  ;;  %v6753_v11 = vrot.slane %v6751_v28, 5 }
 0x42c   : > { %12300 = vmatprep.subr.bf16.mxu1 %v13721_v6  ;;  %v6750_v6 = vrot.slane %v6748_v22, 4  ;;  %v17090_v22 = vld [vmem:[#allocation3 + $0x34] sm:$0xf] }
 0x42d   : > { %v6805_v16 = vshll.u32 %v17090_v22, 16 }
 0x42f   : > { %12301 = vmatpush3.bf16.msra.mxu1 %v13722_v63  ;;  %v6740_v63 = vor.u32 %v6739_v29, %v6735_v23 }
 0x430   : > { %12302 = vmatprep.subr.bf16.mxu1 %v13723_v30  ;;  %v6685_v30 = vld [vmem:[#allocation3 + $0x20] sm:$0x1] }
 0x432   : > { %12971 = vmatmul.mubr.bf16.gmra.mrb[88].mxu1 %v11739_v62  ;;  %v17029_v62 = vld [vmem:[#allocation3] sm:$0xf] }
 0x433   : > { %12974 = vmatprep.mubr.bf16.mxu1 %v11740_v0  ;;  %12303 = vmatpush3.bf16.msra.mxu1 %v13724_v31  ;;  %v17036_v0 = vld [vmem:[#allocation3 + $0x4] sm:$0xf]  ;;  %v6700_v9 = vshrl.u32 %v17029_v62, 16  ;;  %v6703_v21 = vshll.u32 %v17029_v62, 16  ;;  %v6772_v31 = vshrl.u32 %v17067_v18, 16 }
 0x434   : > { %12304 = vmatprep.subr.bf16.mxu1 %v13725_v40  ;;  %v6713_v50 = vshrl.u32 %v17036_v0, 16  ;;  %v6775_v40 = vshll.u32 %v17067_v18, 16  ;;  %v11638_v28 = vcombine.low %v17029_v62, %v17036_v0 }
 0x435   : > { %v6702_v5 = vrot.slane %v6700_v9, 4  ;;  %v6705_v43 = vrot.slane %v6703_v21, 5  ;;  %v6754_v9 = vor.u32 %v6753_v11, %v6750_v6  ;;  %v6767_v21 = vshll.u32 %v6685_v30, 16  ;;  %v17121_v6 = vld [vmem:[#allocation3 + $0x38] sm:$0x1] }
 0x436   : > { %v6715_v59 = vrot.slane %v6713_v50, 4  ;;  %v6686_v50 = vld [vmem:[#allocation3 + $0x2c] sm:$0x1]  ;;  %v6774_v15 = vrot.slane %v6772_v31, 4  ;;  %v6777_v45 = vrot.slane %v6775_v40, 5  ;;  %v6809_v40 = vshrl.u32 %v17090_v22, 16 }
 0x437   : > { %12305 = vmatpush3.bf16.msra.mxu1 %v13726_v27  ;;  %v6706_v26 = vor.u32 %v6705_v43, %v6702_v5  ;;  %v6721_v27 = vrot.slane %v6719_v56, 5  ;;  %v6769_v33 = vrot.slane %v6767_v21, 5  ;;  %v17123_v11 = vld [vmem:[#allocation3 + $0x40] sm:$0xf] }
 0x438   : > { %12306 = vmatprep.subr.bf16.mxu1 %v13727_v46  ;;  %v6778_v29 = vor.u32 %v6777_v45, %v6774_v15  ;;  %v7177_v15 = vrot.slane %v17090_v22, 5  ;;  %v17147_v45 = vld [vmem:[#allocation3 + $0x58] sm:$0xf] }
 0x43a   : > { %12975 = vmatmul.mubr.bf16.gmra.mrb[92].mxu1 %v11741_v39  ;;  %v6709_v39 = vshll.u32 %v17036_v0, 16  ;;  %v17128_v30 = vrot.slane %v6778_v29, 4  ;;  %v17250_v0 = vld [vmem:[#allocation3 + $0x98] sm:$0x1] }
 0x43b   : > { %12978 = vmatprep.mubr.bf16.mxu1 %v11742_v47  ;;  %12307 = vmatpush3.bf16.msra.mxu1 %v13728_v38  ;;  %v17045_v47 = vld [vmem:[#allocation3 + $0x1c] sm:$0xf]  ;;  %v6781_v38 = vshll.u32 %v17069_v54, 16 }
 0x43c   : > { %12308 = vmatprep.subr.bf16.mxu1 %v13729_v20  ;;  %v6757_v41 = vshll.u32 %v17045_v47, 16  ;;  %v6761_v42 = vshrl.u32 %v17045_v47, 16  ;;  %v6711_v58 = vrot.slane %v6709_v39, 5  ;;  %v6785_v20 = vshrl.u32 %v17069_v54, 16 }
 0x43d   : > { %v6741_v39 = vrot.slane %v6740_v63, 4  ;;  %v17082_v52 = vrot.slane %v6781_v38, 5 }
 0x43e   : > { %v6763_v37 = vrot.slane %v6761_v42, 4  ;;  %v6716_v13 = vor.u32 %v6715_v59, %v6711_v58  ;;  %v6787_v51 = vrot.slane %v6785_v20, 4  ;;  %v6755_v59 = vrot.slane %v6754_v9, 4 }
 0x43f   : > { %12309 = vmatpush3.bf16.msra.mxu1 %v13730_v10  ;;  %v6707_v10 = vrot.slane %v6706_v26, 4  ;;  %v11625_v20 = vrot.slane %v7086_v57, 9  ;;  %v17141_v9 = vrot.slane %v6805_v16, 5  ;;  %v17232_v16 = vld [vmem:[#allocation3 + $0x80] sm:$0x1] }
 0x440   : > { %12994 = vmatprep.subr.bf16.mxu1 %v17034_v4  ;;  %v6717_v17 = vrot.slane %v6716_v13, 4  ;;  %v6788_v35 = vor.u32 %v6787_v51, %v17082_v52 }
 0x441   : > { %v6712_v43 = vsel %vm14295_vm5, %v6707_v10, %v6711_v58 }
 0x442   : > { %12979 = vmatmul.mubr.bf16.gmra.mrb[96].mxu1 %v11743_v36  ;;  %v6727_v36 = vshll.u32 %v17047_v3, 16  ;;  %v17137_v38 = vrot.slane %v6788_v35, 4 }
 0x443   : > { %12982 = vmatprep.mubr.bf16.mxu1 %v11744_v48  ;;  %v17065_v48 = vrot.slane %v6757_v41, 5  ;;  %v6722_v41 = vsel %vm14295_vm5, %v6717_v17, %v6721_v27  ;;  %v17133_v27 = vld [vmem:[#allocation3 + $0x44] sm:$0x1]  ;;  %v7173_v17 = vrot.slane %v6686_v50, 5 }
 0x444   : > { %v6729_v12 = vrot.slane %v6727_v36, 5  ;;  %v6791_v36 = vshll.u32 %v6686_v50, 16 }
 0x445   : > { %v6764_v46 = vor.u32 %v6763_v37, %v17065_v48  ;;  %v11654_v37 = vcombine.low %v6712_v43, %v6722_v41  ;;  %v7184_v43 = vrot.slane %v17123_v11, 5  ;;  %v7089_v41 = vld [vmem:[#allocation3 + $0x48] sm:$0xe] }
 0x446   : > { %v6730_v2 = vor.u32 %v6729_v12, %v6726_v32  ;;  %v6760_v12 = vsel %vm14295_vm5, %v6755_v59, %v17065_v48  ;;  %v7087_v48 = vld [vmem:[#allocation3 + $0x30] sm:$0xe]  ;;  %v7179_v59 = vrot.slane %v7177_v15, 4 }
 0x447   : > { %v6765_v5 = vrot.slane %v6764_v46, 4  ;;  %v17135_v46 = vld [vmem:[#allocation3 + $0x4c] sm:$0xf]  ;;  %v11626_v51 = vrot.slane %v7087_v48, 9  ;;  %v7186_v29 = vrot.slane %v7184_v43, 4 }
 0x448   : > { %v6731_v42 = vrot.slane %v6730_v2, 4  ;;  %v7088_v2 = vld [vmem:[#allocation3 + $0x3c] sm:$0xe]  ;;  %v7191_v19 = vrot.slane %v17135_v46, 5  ;;  %v7091_v48 = vld [vmem:[#allocation3 + $0x60] sm:$0xe] }
 0x449   : > { %v6770_v14 = vsel %vm14295_vm5, %v6765_v5, %v6769_v33  ;;  %v7180_v33 = vrot.slane %v17121_v6, 5  ;;  %v11630_v21 = vrot.slane %v7091_v48, 9 }
 0x44a   : > { %12983 = vmatmul.mubr.bf16.gmra.mrb[100].mxu1 %v11745_v34  ;;  %v6743_v34 = vshll.u32 %v6684_v1, 16  ;;  %v17119_v1 = vrot.slane %v6791_v36, 5  ;;  %v17126_v63 = vcombine.low %v6760_v12, %v6770_v14  ;;  %v11627_v36 = vrot.slane %v7088_v2, 9 }
 0x44b   : > { %12986 = vmatprep.mubr.bf16.mxu1 %v11746_v25  ;;  %v17084_v25 = vld [vmem:[#allocation3 + $0x30] sm:$0xf]  ;;  %v17176_v14 = vsel %vm14711_vm0, %v7179_v59, %v7180_v33  ;;  %v7193_v12 = vrot.slane %v7191_v19, 4 }
 0x44c   : > { %v6745_v53 = vrot.slane %v6743_v34, 5  ;;  %v6796_v56 = vshrl.u32 %v17084_v25, 16  ;;  %v6799_v32 = vshll.u32 %v17084_v25, 16  ;;  %19150 = vst [vmem:[#allocation13_spill] sm:$0xff] %v17176_v14  ;;  %v17180_v35 = vsel %vm14711_vm0, %v11627_v36, %v7184_v43  ;;  %v17199_v43 = vld [vmem:[#allocation3 + $0x68] sm:$0x1] }
 0x44d   : > { %19151 = vst [vmem:[#allocation12_spill] sm:$0xff] %v17180_v35  ;;  %v19164_v14 = vcombine.low %v17047_v3, %v17040_v8 }
 0x44e   : > { %v6746_v58 = vsel %vm14295_vm5, %v6741_v39, %v6745_v53  ;;  %v17130_v31 = vrot.slane %v6796_v56, 4  ;;  %v17139_v34 = vrot.slane %v6799_v32, 5  ;;  %v17144_v39 = vld [vmem:[#allocation3 + $0x50] sm:$0x1]  ;;  %v7187_v56 = vrot.slane %v17133_v27, 5 }
 0x44f   : > { %v17183_v32 = vld [vmem:[#allocation3 + $0x70] sm:$0xf] }
 0x450   : > { %v17189_v57 = vsel %vm14711_vm0, %v7186_v29, %v7187_v56  ;;  %v13734_v29 = vld [vmem:[%s18954_s6 + $0x88] sm:$0xff]   ;;  %v17215_v56 = vld [vmem:[#allocation3 + $0x3c] sm:$0xf] }
 0x451   : > { %19152 = vst [vmem:[#allocation14_spill] sm:$0xff] %v17189_v57  ;;  %v17295_v57 = vld [vmem:[#allocation3 + $0xac] sm:$0xf] }
 0x452   : > { %12987 = vmatmul.mubr.bf16.gmra.mrb[104].mxu1 %v11747_v55  ;;  %v6736_v55 = vsel %vm14295_vm5, %v6731_v42, %v6735_v23  ;;  %v7170_v23 = vrot.slane %v17069_v54, 5  ;;  %v17161_v42 = vld [vmem:[#allocation3 + $0x5c] sm:$0x1] }
 0x453   : > { %12990 = vmatprep.mubr.bf16.mxu1 %v11748_v60  ;;  %v17114_v60 = vcombine.low %v6736_v55, %v6746_v58  ;;  %v17168_v58 = vsel %vm14711_vm0, %v11626_v51, %v7177_v15  ;;  %v7198_v55 = vrot.slane %v17147_v45, 5  ;;  %v7201_v2 = vrot.slane %v17161_v42, 5  ;;  %v7092_v15 = vld [vmem:[#allocation3 + $0x6c] sm:$0xe] }
 0x454   : > { %v7172_v10 = vrot.slane %v7170_v23, 4  ;;  %v17151_v5 = vsel %vm14711_vm0, %v11625_v20, %v7170_v23  ;;  %19149 = vst [vmem:[#allocation11_spill] sm:$0xff] %v17168_v58  ;;  %v7194_v23 = vrot.slane %v17144_v39, 5  ;;  %v11631_v13 = vrot.slane %v7092_v15, 9  ;;  %v7093_v20 = vld [vmem:[#allocation3 + $0x78] sm:$0xe] }
 0x455   : > { %v7208_v51 = vrot.slane %v17199_v43, 5 }
 0x456   : > { %v17155_v50 = vsel %vm14711_vm0, %v7172_v10, %v7173_v17  ;;  %v11629_v10 = vrot.slane %v7090_v7, 9  ;;  %v7200_v17 = vrot.slane %v7198_v55, 4  ;;  %v17209_v33 = vsel %vm14711_vm0, %v7193_v12, %v7194_v23  ;;  %v17217_v7 = vld [vmem:[#allocation3 + $0x7c] sm:$0xf] }
 0x457   : > { %19148 = vst [vmem:[#allocation10_spill] sm:$0xff] %v17155_v50  ;;  %19154 = vst [vmem:[#allocation16_spill] sm:$0xff] %v17209_v33  ;;  %v7212_v12 = vrot.slane %v17183_v32, 5  ;;  %v17230_v23 = vrot.slane %v6809_v40, 4 }
 0x459   : > { %v7214_v26 = vrot.slane %v7212_v12, 4  ;;  %v17258_v15 = vsel %vm14711_vm0, %v11631_v13, %v7212_v12  ;;  %v11632_v13 = vrot.slane %v7093_v20, 9 }
 0x45a   : > { %12991 = vmatmul.mubr.bf16.gmra.mrb[108].mxu1 %v11749_v44  ;;  %v17172_v44 = vld [vmem:[#allocation3 + $0x64] sm:$0xf]  ;;  %19158 = vst [vmem:[#allocation20_spill] sm:$0xff] %v17258_v15 }
 0x45b   : > { %9021 = vmatprep.mubr.bf16.mxu1 %v11654_v37  ;;  %v11628_v37 = vrot.slane %v7089_v41, 9  ;;  %v17201_v41 = vld [vmem:[#allocation3 + $0x74] sm:$0x1]  ;;  %v7205_v36 = vrot.slane %v17172_v44, 5 }
 0x45c   : > { %v7215_v53 = vrot.slane %v17201_v41, 5 }
 0x45d   : > { %v17205_v59 = vsel %vm14711_vm0, %v11628_v37, %v7191_v19  ;;  %v17223_v19 = vsel %vm14711_vm0, %v11629_v10, %v7198_v55  ;;  %v17227_v37 = vsel %vm14711_vm0, %v7200_v17, %v7201_v2  ;;  %v17239_v10 = vld [vmem:[#allocation3 + $0x88] sm:$0xf]  ;;  %v17241_v17 = vld [vmem:[#allocation3 + $0x8c] sm:$0x1]  ;;  %v17243_v2 = vld [vmem:[#allocation3 + $0x94] sm:$0xf] }
 0x45e   : > { %19153 = vst [vmem:[#allocation15_spill] sm:$0xff] %v17205_v59  ;;  %19155 = vst [vmem:[#allocation17_spill] sm:$0xff] %v17223_v19  ;;  %v7207_v40 = vrot.slane %v7205_v36, 4  ;;  %v7096_v59 = vld [vmem:[#allocation3 + $0x9c] sm:$0xe] }
 0x45f   : > { %19156 = vst [vmem:[#allocation18_spill] sm:$0xff] %v17227_v37  ;;  %v7219_v37 = vrot.slane %v17217_v7, 5  ;;  %v11635_v35 = vrot.slane %v7096_v59, 9  ;;  %v17326_v59 = vld [vmem:[#allocation3 + $0xb8] sm:$0xf] }
 0x460   : > { %v17268_v62 = vsel %vm14711_vm0, %v7207_v40, %v7208_v51  ;;  %v17288_v40 = vld [vmem:[#allocation3 + $0xa4] sm:$0x1] }
 0x461   : > { %v12174_v55 = vpop.f32.mrb[16].mxu1  ;;  %19160 = vst [vmem:[#allocation22_spill] sm:$0xff] %v17268_v62  ;;  %v17292_v12 = vsel %vm14711_vm0, %v11632_v13, %v7219_v37  ;;  %v7221_v33 = vrot.slane %v7219_v37, 4  ;;  %v7226_v62 = vrot.slane %v17239_v10, 5  ;;  %v13740_v13 = vld [vmem:[%s18954_s6 + $0x98] sm:$0xff]  }
 0x462   : > { %9022 = vmatmul.mubr.bf16.vlgmr.msra.gmra.mrb[112].mxu1 %v11638_v28  ;;  %v12175_v48 = vpop.f32.mrb[17].mxu1  ;;  %v17254_v28 = vsel %vm14711_vm0, %v11630_v21, %v7205_v36  ;;  %v17272_v21 = vsel %vm14711_vm0, %v7214_v26, %v7215_v53  ;;  %v7094_v36 = vld [vmem:[#allocation3 + $0x84] sm:$0xe]  ;;  %v7095_v53 = vld [vmem:[#allocation3 + $0x90] sm:$0xe]  ;;  %v7229_v26 = vrot.slane %v17241_v17, 5 }
 0x463   : > { %12995 = vmatpush3.bf16.msra.mxu1 %v17034_v4  ;;  %9029 = vmatprep.mubr.bf16.mxu1 %v17114_v60  ;;  %19157 = vst [vmem:[#allocation19_spill] sm:$0xff] %v17254_v28  ;;  %v17261_v19 = vadd.f32 %v12175_v48, %v12174_v55  ;;  %v12177_v4 = vpop.f32.mrb[18].mxu1  ;;  %v13737_v60 = vld [vmem:[%s18954_s6 + $0x90] sm:$0xff]   ;;  %19161 = vst [vmem:[#allocation23_spill] sm:$0xff] %v17272_v21  ;;  %v7222_v48 = vrot.slane %v17232_v16, 5  ;;  %v11633_v51 = vrot.slane %v7094_v36, 9 }
 0x464   : > { %12996 = vmatprep.subr.bf16.mxu1 %v13734_v29  ;;  %v12178_v55 = vpop.f32.mrb[19].mxu1  ;;  %v7228_v28 = vrot.slane %v7226_v62, 4  ;;  %v7243_v21 = vrot.slane %v17288_v40, 5 }
 0x465   : > { %19159 = vst [vmem:[#allocation21_spill] sm:$0xff] %v17261_v19  ;;  %v17280_v19 = vld [vmem:[#allocation3 + $0xa0] sm:$0xf]  ;;  %v17286_v20 = vadd.f32 %v12178_v55, %v12177_v4  ;;  %v7233_v4 = vrot.slane %v17243_v2, 5  ;;  %v17305_v37 = vsel %vm14711_vm0, %v7221_v33, %v7222_v48  ;;  %v11634_v55 = vrot.slane %v7095_v53, 9 }
 0x466   : > { %19163 = vst [vmem:[#allocation25_spill] sm:$0xff] %v17305_v37  ;;  %v7240_v36 = vrot.slane %v17280_v19, 5  ;;  %v17313_v15 = vsel %vm14711_vm0, %v11633_v51, %v7226_v62  ;;  %v17318_v48 = vld [vmem:[#allocation3 + $0xb0] sm:$0x1]  ;;  %v17330_v8 = vsel %vm14711_vm0, %v7228_v28, %v7229_v26  ;;  %v7247_v62 = vrot.slane %v17295_v57, 5 }
 0x467   : > { %19162 = vst [vmem:[#allocation24_spill] sm:$0xff] %v17286_v20  ;;  %12997 = vmatpush3.bf16.msra.mxu1 %v13734_v29  ;;  %v7236_v29 = vrot.slane %v17250_v0, 5  ;;  %v7097_v20 = vld [vmem:[#allocation3 + $0xa8] sm:$0xe]  ;;  %v17322_v53 = vsel %vm14711_vm0, %v11634_v55, %v7233_v4  ;;  %v7235_v58 = vrot.slane %v7233_v4, 4 }
 0x468   : > { %12998 = vmatprep.subr.bf16.mxu1 %v13737_v60  ;;  %v7242_v50 = vrot.slane %v7240_v36, 4  ;;  %v17334_v3 = vsel %vm14711_vm0, %v11635_v35, %v7240_v36  ;;  %v7098_v37 = vld [vmem:[#allocation3 + $0xb4] sm:$0xe]  ;;  %v6823_v36 = vshll.u32 %v17215_v56, 16 }
 0x469   : > { %v12180_v33 = vpop.f32.mrb[20].mxu1  ;;  %v17348_v35 = vsel %vm14711_vm0, %v7235_v58, %v7236_v29  ;;  %v6829_v58 = vshll.u32 %v17123_v11, 16  ;;  %v6833_v29 = vshrl.u32 %v17123_v11, 16 }
 0x46a   : > { %9030 = vmatmul.mubr.bf16.gmra.mrb[116].mxu1 %v19164_v14  ;;  %v12181_v51 = vpop.f32.mrb[21].mxu1  ;;  %v11636_v14 = vrot.slane %v7097_v20, 9  ;;  %v17352_v26 = vsel %vm14711_vm0, %v7242_v50, %v7243_v21  ;;  %v7254_v50 = vrot.slane %v17326_v59, 5  ;;  %v6802_v21 = vor.u32 %v17139_v34, %v17130_v31 }
 0x46b   : > { %9037 = vmatprep.mubr.bf16.mxu1 %v17126_v63  ;;  %12999 = vmatpush3.bf16.msra.mxu1 %v13737_v60  ;;  %v17337_v4 = vadd.f32 %v12181_v51, %v12180_v33  ;;  %v12183_v55 = vpop.f32.mrb[22].mxu1  ;;  %v13743_v63 = vld [vmem:[%s18954_s6 + $0xa0] sm:$0xff]   ;;  %v17342_v60 = vld [vmem:[#allocation3 + $0xbc] sm:$0x1]  ;;  %19166 = vst [vmem:[#allocation27_spill] sm:$0xff] %v17352_v26  ;;  %v7249_v51 = vrot.slane %v7247_v62, 4 }
 0x46c   : > { %13000 = vmatprep.subr.bf16.mxu1 %v13740_v13  ;;  %v12184_v20 = vpop.f32.mrb[23].mxu1  ;;  %v17369_v33 = vsel %vm14711_vm0, %v11636_v14, %v7247_v62  ;;  %v11637_v31 = vrot.slane %v7098_v37, 9  ;;  %v7256_v34 = vrot.slane %v7254_v50, 4  ;;  %v19170_v14 = vsel %vm14295_vm5, %v17137_v38, %v17119_v1 }
 0x46d   : > { %19165 = vst [vmem:[#allocation26_spill] sm:$0xff] %v17337_v4  ;;  %v7250_v4 = vrot.slane %v17318_v48, 5  ;;  %v17359_v28 = vadd.f32 %v12184_v20, %v12183_v55  ;;  %19168 = vst [vmem:[#allocation29_spill] sm:$0xff] %v17369_v33  ;;  %v13746_v20 = vld [vmem:[%s18954_s6 + $0xa8] sm:$0xff]   ;;  %v19171_v62 = vsel %vm14295_vm5, %v17128_v30, %v17082_v52  ;;  %v19173_v37 = vcombine.low %v17054_v49, %v17045_v47 }
 0x46e   : > { %v17399_v33 = vsel %vm14711_vm0, %v11637_v31, %v7254_v50  ;;  %v6803_v30 = vrot.slane %v6802_v21, 4  ;;  %v19174_v38 = vshll.u32 %v17121_v6, 16  ;;  %v19175_v49 = vshrl.u32 %v17215_v56, 16  ;;  %v17414_v50 = vld [vmem:[#allocation3 + $0x48] sm:$0xf] }
 0x46f   : > { %19167 = vst [vmem:[#allocation28_spill] sm:$0xff] %v17359_v28  ;;  %13001 = vmatpush3.bf16.msra.mxu1 %v13740_v13  ;;  %v17373_v55 = vsel %vm14711_vm0, %v7249_v51, %v7250_v4  ;;  %v7257_v13 = vrot.slane %v17342_v60, 5  ;;  %v11657_v4 = vcombine.low %v19171_v62, %v19170_v14  ;;  %v19172_v51 = vor.u32 %v17230_v23, %v17141_v9 }
 0x470   : > { %19169 = vst [vmem:[#allocation30_spill] sm:$0xff] %v17373_v55  ;;  %13002 = vmatprep.subr.bf16.mxu1 %v13743_v63  ;;  %v6831_v28 = vrot.slane %v6829_v58, 5  ;;  %v6835_v55 = vrot.slane %v6833_v29, 4  ;;  %v6817_v47 = vrot.slane %v19174_v38, 5  ;;  %v6822_v23 = vrot.slane %v19175_v49, 4  ;;  %v13749_v29 = vld [vmem:[%s18954_s6 + $0xb0] sm:$0xff]  }
 0x471   : > { %v6813_v26 = vrot.slane %v19172_v51, 4  ;;  %v17403_v1 = vsel %vm14711_vm0, %v7256_v34, %v7257_v13  ;;  %v6825_v58 = vrot.slane %v6823_v36, 5  ;;  %v6853_v21 = vshll.u32 %v17135_v46, 16  ;;  %v13752_v51 = vld [vmem:[%s18954_s6 + $0xb8] sm:$0xff]  }
 0x472   : > { %9038 = vmatmul.mubr.bf16.gmra.mrb[120].mxu1 %v19173_v37  ;;  %v6836_v31 = vor.u32 %v6835_v55, %v6831_v28  ;;  %v6857_v6 = vshrl.u32 %v17135_v46, 16  ;;  %v11641_v34 = vcombine.low %v17067_v18, %v17069_v54  ;;  %v6839_v36 = vshll.u32 %v17133_v27, 16 }
 0x473   : > { %9045 = vmatprep.mubr.bf16.mxu1 %v11657_v4  ;;  %13003 = vmatpush3.bf16.msra.mxu1 %v13743_v63  ;;  %v6818_v63 = vsel %vm14295_vm5, %v6813_v26, %v6817_v47  ;;  %v6808_v14 = vsel %vm14295_vm5, %v6803_v30, %v17141_v9  ;;  %v6826_v62 = vor.u32 %v6825_v58, %v6822_v23  ;;  %v6844_v26 = vshrl.u32 %v17414_v50, 16 }
 0x474   : > { %13004 = vmatprep.subr.bf16.mxu1 %v13746_v20  ;;  %v6847_v55 = vshll.u32 %v17414_v50, 16  ;;  %v11658_v18 = vcombine.low %v6808_v14, %v6818_v63  ;;  %v6855_v38 = vrot.slane %v6853_v21, 5  ;;  %v6859_v9 = vrot.slane %v6857_v6, 4  ;;  %v13755_v63 = vld [vmem:[%s18954_s6 + $0x1c0] sm:$0xff]  }
 0x475   : > { %v6827_v47 = vrot.slane %v6826_v62, 4  ;;  %v6841_v49 = vrot.slane %v6839_v36, 5  ;;  %v6846_v23 = vrot.slane %v6844_v26, 4  ;;  %v6877_v6 = vshll.u32 %v17147_v45, 16 }
 0x476   : > { %v12186_v13 = vpop.f32.mrb[24].mxu1  ;;  %v6849_v58 = vrot.slane %v6847_v55, 5  ;;  %v6860_v21 = vor.u32 %v6859_v9, %v6855_v38  ;;  %v6863_v36 = vshll.u32 %v17144_v39, 16 }
 0x477   : > { %13005 = vmatpush3.bf16.msra.mxu1 %v13746_v20  ;;  %v12187_v4 = vpop.f32.mrb[25].mxu1  ;;  %v6837_v20 = vrot.slane %v6836_v31, 4  ;;  %v6832_v14 = vsel %vm14295_vm5, %v6827_v47, %v6831_v28  ;;  %v6901_v47 = vshll.u32 %v17172_v44, 16 }
 0x478   : > { %13006 = vmatprep.subr.bf16.mxu1 %v13749_v29  ;;  %v17431_v54 = vadd.f32 %v12187_v4, %v12186_v13  ;;  %v12189_v27 = vpop.f32.mrb[26].mxu1  ;;  %v17438_v13 = vld [vmem:[#allocation3 + $0x54] sm:$0xf]  ;;  %v6850_v62 = vor.u32 %v6849_v58, %v6846_v23 }
 0x479   : > { %v12190_v37 = vpop.f32.mrb[27].mxu1  ;;  %v6842_v31 = vsel %vm14295_vm5, %v6837_v20, %v6841_v49  ;;  %v6868_v4 = vshrl.u32 %v17438_v13, 16  ;;  %v6871_v26 = vshll.u32 %v17438_v13, 16  ;;  %v6905_v49 = vshrl.u32 %v17172_v44, 16 }
 0x47a   : > { %19176 = vst [vmem:[#allocation31_spill] sm:$0xff] %v17431_v54  ;;  %9046 = vmatmul.mubr.bf16.gmra.mrb[124].mxu1 %v11641_v34  ;;  %v17433_v30 = vadd.f32 %v12190_v37, %v12189_v27  ;;  %v6881_v34 = vshrl.u32 %v17147_v45, 16  ;;  %v11659_v55 = vcombine.low %v6832_v14, %v6842_v31  ;;  %v6879_v27 = vrot.slane %v6877_v6, 5 }
 0x47b   : > { %9053 = vmatprep.mubr.bf16.mxu1 %v11658_v18  ;;  %13007 = vmatpush3.bf16.msra.mxu1 %v13749_v29  ;;  %v11642_v29 = vcombine.low %v17084_v25, %v17090_v22  ;;  %v6861_v18 = vrot.slane %v6860_v21, 4  ;;  %v6851_v37 = vrot.slane %v6850_v62, 4  ;;  %v6865_v25 = vrot.slane %v6863_v36, 5 }
 0x47c   : > { %19177 = vst [vmem:[#allocation32_spill] sm:$0xff] %v17433_v30  ;;  %13008 = vmatprep.subr.bf16.mxu1 %v13752_v51  ;;  %v6883_v20 = vrot.slane %v6881_v34, 4  ;;  %v6870_v22 = vrot.slane %v6868_v4, 4  ;;  %v6873_v39 = vrot.slane %v6871_v26, 5  ;;  %v11643_v31 = vcombine.low %v17215_v56, %v17123_v11  ;;  %v17754_v30 = vld [vmem:[#allocation3 + $0xac] sm:$0xf] }
 0x47d   : > { %v6866_v28 = vsel %vm14295_vm5, %v6861_v18, %v6865_v25  ;;  %v6856_v21 = vsel %vm14295_vm5, %v6851_v37, %v6855_v38  ;;  %v6907_v18 = vrot.slane %v6905_v49, 4  ;;  %v17468_v37 = vld [vmem:[#allocation3 + $0x6c] sm:$0xf]  ;;  %v11644_v49 = vcombine.low %v17414_v50, %v17135_v46  ;;  %19210 = vst [vmem:[#allocation61_spill] sm:$0xff] %v17754_v30 }
 0x47e   : > { %v6884_v9 = vor.u32 %v6883_v20, %v6879_v27  ;;  %v6874_v34 = vor.u32 %v6873_v39, %v6870_v22  ;;  %v11660_v36 = vcombine.low %v6856_v21, %v6866_v28  ;;  %v6929_v28 = vshrl.u32 %v17183_v32, 16 }
 0x47f   : > { %13009 = vmatpush3.bf16.msra.mxu1 %v13752_v51  ;;  %v17451_v51 = vld [vmem:[#allocation3 + $0x60] sm:$0xf] }
 0x480   : > { %12430 = vmatprep.subr.bf16.mxu1 %v13755_v63  ;;  %v6892_v58 = vshrl.u32 %v17451_v51, 16  ;;  %v6895_v63 = vshll.u32 %v17451_v51, 16  ;;  %v6885_v26 = vrot.slane %v6884_v9, 4  ;;  %v6875_v25 = vrot.slane %v6874_v34, 4 }
 0x482   : > { %9054 = vmatmul.mubr.bf16.gmra.mrb[128].mxu1 %v11642_v29  ;;  %v6887_v29 = vshll.u32 %v17161_v42, 16  ;;  %v6894_v11 = vrot.slane %v6892_v58, 4  ;;  %v6897_v56 = vrot.slane %v6895_v63, 5  ;;  %v6925_v42 = vshll.u32 %v17183_v32, 16 }
 0x483   : > { %9061 = vmatprep.mubr.bf16.mxu1 %v11659_v55  ;;  %v6903_v55 = vrot.slane %v6901_v47, 5  ;;  %v6911_v47 = vshll.u32 %v17199_v43, 16  ;;  %v6916_v58 = vshrl.u32 %v17468_v37, 16  ;;  %v6919_v63 = vshll.u32 %v17468_v37, 16 }
 0x484   : > { %v6889_v38 = vrot.slane %v6887_v29, 5  ;;  %v6898_v9 = vor.u32 %v6897_v56, %v6894_v11  ;;  %v6927_v21 = vrot.slane %v6925_v42, 5  ;;  %v6931_v29 = vrot.slane %v6929_v28, 4 }
 0x485   : > { %v6908_v39 = vor.u32 %v6907_v18, %v6903_v55  ;;  %v6953_v43 = vshrl.u32 %v17217_v7, 16 }
 0x486   : > { %v6890_v22 = vsel %vm14295_vm5, %v6885_v26, %v6889_v38  ;;  %v6899_v50 = vrot.slane %v6898_v9, 4  ;;  %v6921_v26 = vrot.slane %v6919_v63, 5  ;;  %v11645_v9 = vcombine.low %v17438_v13, %v17147_v45 }
 0x487   : > { %v12192_v23 = vpop.f32.mrb[28].mxu1  ;;  %v6909_v34 = vrot.slane %v6908_v39, 4  ;;  %v6955_v28 = vrot.slane %v6953_v43, 4  ;;  %v6977_v43 = vshrl.u32 %v17239_v10, 16 }
 0x488   : > { %v12193_v6 = vpop.f32.mrb[29].mxu1 }
 0x489   : > { %v17464_v14 = vadd.f32 %v12193_v6, %v12192_v23  ;;  %v12195_v62 = vpop.f32.mrb[30].mxu1  ;;  %v6880_v23 = vsel %vm14295_vm5, %v6875_v25, %v6879_v27  ;;  %v17481_v6 = vld [vmem:[#allocation3 + $0x78] sm:$0xf] }
 0x48a   : > { %9062 = vmatmul.mubr.bf16.gmra.mrb[132].mxu1 %v11643_v31  ;;  %v12196_v4 = vpop.f32.mrb[31].mxu1  ;;  %v11661_v31 = vcombine.low %v6880_v23, %v6890_v22  ;;  %v6940_v18 = vshrl.u32 %v17481_v6, 16  ;;  %v6943_v11 = vshll.u32 %v17481_v6, 16  ;;  %v6932_v22 = vor.u32 %v6931_v29, %v6927_v21  ;;  %v17498_v29 = vld [vmem:[#allocation3 + $0x84] sm:$0xf] }
 0x48b   : > { %19178 = vst [vmem:[#allocation8_spill] sm:$0xff] %v17464_v14  ;;  %9069 = vmatprep.mubr.bf16.mxu1 %v11660_v36  ;;  %v17466_v20 = vadd.f32 %v12196_v4, %v12195_v62  ;;  %v6949_v36 = vshll.u32 %v17217_v7, 16  ;;  %v6913_v62 = vrot.slane %v6911_v47, 5  ;;  %v6918_v4 = vrot.slane %v6916_v58, 4 }
 0x48c   : > { %v6935_v47 = vshll.u32 %v17201_v41, 16  ;;  %v6904_v23 = vsel %vm14295_vm5, %v6899_v50, %v6903_v55  ;;  %v6942_v63 = vrot.slane %v6940_v18, 4  ;;  %v6964_v50 = vshrl.u32 %v17498_v29, 16 }
 0x48d   : > { %19179 = vst [vmem:[#allocation9_spill] sm:$0xff] %v17466_v20  ;;  %v6914_v42 = vsel %vm14295_vm5, %v6909_v34, %v6913_v62  ;;  %v6951_v39 = vrot.slane %v6949_v36, 5  ;;  %v6922_v58 = vor.u32 %v6921_v26, %v6918_v4  ;;  %v6973_v36 = vshll.u32 %v17239_v10, 16 }
 0x48e   : > { %v6937_v13 = vrot.slane %v6935_v47, 5  ;;  %v6959_v62 = vshll.u32 %v17232_v16, 16  ;;  %v6967_v4 = vshll.u32 %v17498_v29, 16  ;;  %v11646_v16 = vcombine.low %v17451_v51, %v17172_v44 }
 0x48f   : > { %v6956_v34 = vor.u32 %v6955_v28, %v6951_v39  ;;  %v6923_v45 = vrot.slane %v6922_v58, 4  ;;  %v17511_v28 = vld [vmem:[#allocation3 + $0x90] sm:$0xf]  ;;  %v6997_v51 = vshll.u32 %v17243_v2, 16 }
 0x490   : > { %v6961_v58 = vrot.slane %v6959_v62, 5  ;;  %v6988_v44 = vshrl.u32 %v17511_v28, 16 }
 0x491   : > { %v6928_v47 = vsel %vm14295_vm5, %v6923_v45, %v6927_v21  ;;  %v7001_v45 = vshrl.u32 %v17243_v2, 16 }
 0x492   : > { %9070 = vmatmul.mubr.bf16.gmra.mrb[136].mxu1 %v11644_v49  ;;  %v12198_v46 = vpop.f32.mrb[32].mxu1 }
 0x493   : > { %9077 = vmatprep.mubr.bf16.mxu1 %v11661_v31  ;;  %v12199_v27 = vpop.f32.mrb[33].mxu1  ;;  %v6945_v31 = vrot.slane %v6943_v11, 5  ;;  %v6957_v11 = vrot.slane %v6956_v34, 4 }
 0x494   : > { %v17487_v56 = vadd.f32 %v12199_v27, %v12198_v46  ;;  %v12201_v25 = vpop.f32.mrb[34].mxu1  ;;  %v11662_v46 = vcombine.low %v6904_v23, %v6914_v42  ;;  %v6933_v27 = vrot.slane %v6932_v22, 4 }
 0x495   : > { %v12202_v38 = vpop.f32.mrb[35].mxu1  ;;  %v6946_v41 = vor.u32 %v6945_v31, %v6942_v63  ;;  %v6962_v34 = vsel %vm14295_vm5, %v6957_v11, %v6961_v58 }
 0x496   : > { %19180 = vst [vmem:[#allocation7_spill] sm:$0xff] %v17487_v56  ;;  %v17491_v49 = vadd.f32 %v12202_v38, %v12201_v25  ;;  %v6938_v18 = vsel %vm14295_vm5, %v6933_v27, %v6937_v13  ;;  %v17507_v25 = vrot.slane %v6973_v36, 5  ;;  %v6979_v38 = vrot.slane %v6977_v43, 4 }
 0x497   : > { %v6947_v23 = vrot.slane %v6946_v41, 4  ;;  %v11663_v31 = vcombine.low %v6928_v47, %v6938_v18  ;;  %v6983_v27 = vshll.u32 %v17241_v17, 16  ;;  %v6969_v36 = vrot.slane %v6967_v4, 5 }
 0x498   : > { %19181 = vst [vmem:[#allocation33_spill] sm:$0xff] %v17491_v49  ;;  %v6980_v43 = vor.u32 %v6979_v38, %v17507_v25  ;;  %v7021_v13 = vshll.u32 %v17280_v19, 16  ;;  %v11647_v41 = vcombine.low %v17468_v37, %v17183_v32  ;;  %v7025_v4 = vshrl.u32 %v17280_v19, 16 }
 0x499   : > { %v6952_v21 = vsel %vm14295_vm5, %v6947_v23, %v6951_v39  ;;  %v6990_v38 = vrot.slane %v6988_v44, 4  ;;  %v6991_v39 = vshll.u32 %v17511_v28, 16  ;;  %v17539_v47 = vrot.slane %v6997_v51, 5  ;;  %v17543_v23 = vld [vmem:[#allocation3 + $0xb4] sm:$0xf] }
 0x49a   : > { %9078 = vmatmul.mubr.bf16.gmra.mrb[140].mxu1 %v11645_v9  ;;  %v11664_v62 = vcombine.low %v6952_v21, %v6962_v34  ;;  %v6981_v11 = vrot.slane %v6980_v43, 4  ;;  %v7045_v32 = vshll.u32 %v17295_v57, 16  ;;  %v7049_v37 = vshrl.u32 %v17295_v57, 16 }
 0x49b   : > { %9085 = vmatprep.mubr.bf16.mxu1 %v11662_v46  ;;  %v6966_v46 = vrot.slane %v6964_v50, 4  ;;  %v17531_v50 = vld [vmem:[#allocation3 + $0x9c] sm:$0xf]  ;;  %v17547_v34 = vrot.slane %v7021_v13, 5  ;;  %v7027_v43 = vrot.slane %v7025_v4, 4  ;;  %v7060_v21 = vshrl.u32 %v17543_v23, 16 }
 0x49c   : > { %v6993_v13 = vrot.slane %v6991_v39, 5 }
 0x49d   : > { %v12204_v55 = vpop.f32.mrb[36].mxu1  ;;  %v6970_v18 = vor.u32 %v6969_v36, %v6966_v46  ;;  %v7012_v46 = vshrl.u32 %v17531_v50, 16  ;;  %v7028_v49 = vor.u32 %v7027_v43, %v17547_v34 }
 0x49e   : > { %v12205_v26 = vpop.f32.mrb[37].mxu1 }
 0x49f   : > { %v17509_v42 = vadd.f32 %v12205_v26, %v12204_v55  ;;  %v12207_v22 = vpop.f32.mrb[38].mxu1  ;;  %v6985_v55 = vrot.slane %v6983_v27, 5  ;;  %v7015_v27 = vshll.u32 %v17531_v50, 16  ;;  %v6971_v52 = vrot.slane %v6970_v18, 4 }
 0x4a0   : > { %v12208_v9 = vpop.f32.mrb[39].mxu1  ;;  %v7062_v18 = vrot.slane %v7060_v21, 4 }
 0x4a1   : > { %19182 = vst [vmem:[#allocation34_spill] sm:$0xff] %v17509_v42  ;;  %v17517_v63 = vadd.f32 %v12208_v9, %v12207_v22  ;;  %v17535_v22 = vld [vmem:[#allocation3 + $0xa8] sm:$0xf]  ;;  %v6986_v4 = vsel %vm14295_vm5, %v6981_v11, %v6985_v55  ;;  %v6994_v11 = vor.u32 %v6993_v13, %v6990_v38 }
 0x4a2   : > { %9086 = vmatmul.mubr.bf16.gmra.mrb[144].mxu1 %v11646_v16  ;;  %v7036_v44 = vshrl.u32 %v17535_v22, 16  ;;  %v7039_v51 = vshll.u32 %v17535_v22, 16 }
 0x4a3   : > { %19183 = vst [vmem:[#allocation35_spill] sm:$0xff] %v17517_v63  ;;  %9093 = vmatprep.mubr.bf16.mxu1 %v11663_v31  ;;  %v7003_v31 = vrot.slane %v7001_v45, 4  ;;  %v7069_v45 = vshll.u32 %v17326_v59, 16  ;;  %v6995_v38 = vrot.slane %v6994_v11, 4 }
 0x4a4   : > { %v7038_v56 = vrot.slane %v7036_v44, 4  ;;  %v7041_v20 = vrot.slane %v7039_v51, 5  ;;  %v7031_v51 = vshll.u32 %v17288_v40, 16 }
 0x4a5   : > { %v12210_v17 = vpop.f32.mrb[40].mxu1  ;;  %v7004_v42 = vor.u32 %v7003_v31, %v17539_v47 }
 0x4a6   : > { %v12211_v26 = vpop.f32.mrb[41].mxu1 }
 0x4a7   : > { %v17537_v9 = vadd.f32 %v12211_v26, %v12210_v17  ;;  %v12213_v16 = vpop.f32.mrb[42].mxu1  ;;  %v7063_v17 = vshll.u32 %v17543_v23, 16  ;;  %v7073_v26 = vshrl.u32 %v17326_v59, 16 }
 0x4a8   : > { %v12214_v58 = vpop.f32.mrb[43].mxu1 }
 0x4a9   : > { %19184 = vst [vmem:[#allocation36_spill] sm:$0xff] %v17537_v9  ;;  %v17549_v36 = vadd.f32 %v12214_v58, %v12213_v16  ;;  %v17557_v9 = vrot.slane %v7045_v32, 5  ;;  %v7051_v16 = vrot.slane %v7049_v37, 4  ;;  %v7007_v58 = vshll.u32 %v17250_v0, 16 }
 0x4aa   : > { %9094 = vmatmul.mubr.bf16.gmra.mrb[148].mxu1 %v11647_v41  ;;  %v7014_v41 = vrot.slane %v7012_v46, 4  ;;  %v7065_v39 = vrot.slane %v7063_v17, 5  ;;  %v17564_v32 = vrot.slane %v7069_v45, 5  ;;  %v7075_v37 = vrot.slane %v7073_v26, 4 }
 0x4ab   : > { %19185 = vst [vmem:[#allocation37_spill] sm:$0xff] %v17549_v36  ;;  %9101 = vmatprep.mubr.bf16.mxu1 %v11664_v62  ;;  %v7017_v36 = vrot.slane %v7015_v27, 5  ;;  %v6976_v0 = vsel %vm14295_vm5, %v6971_v52, %v17507_v25  ;;  %v7052_v31 = vor.u32 %v7051_v16, %v17557_v9  ;;  %v11648_v27 = vcombine.low %v17481_v6, %v17217_v7 }
 0x4ac   : > { %v11665_v43 = vcombine.low %v6976_v0, %v6986_v4  ;;  %v7042_v17 = vor.u32 %v7041_v20, %v7038_v56  ;;  %v7055_v45 = vshll.u32 %v17318_v48, 16  ;;  %v7029_v26 = vrot.slane %v7028_v49, 4  ;;  %v17584_v49 = vld [vmem:[#allocation3 + $0x34] sm:$0xf]  ;;  %v9746_v0 = vld [vmem:[#allocation3 + $0x30] sm:$0xe] }
 0x4ad   : > { %v12216_v63 = vpop.f32.mrb[44].mxu1  ;;  %v7018_v44 = vor.u32 %v7017_v36, %v7014_v41  ;;  %v7066_v52 = vor.u32 %v7065_v39, %v7062_v18  ;;  %v7076_v25 = vor.u32 %v7075_v37, %v17564_v32  ;;  %v7009_v13 = vrot.slane %v7007_v58, 5  ;;  %v17678_v39 = vld [vmem:[#allocation3 + $0x7c] sm:$0xf] }
 0x4ae   : > { %v12217_v62 = vpop.f32.mrb[45].mxu1  ;;  %v7053_v16 = vrot.slane %v7052_v31, 4  ;;  %v7033_v6 = vrot.slane %v7031_v51, 5  ;;  %v7079_v36 = vshll.u32 %v17342_v60, 16  ;;  %v7043_v20 = vrot.slane %v7042_v17, 4 }
 0x4af   : > { %v17566_v14 = vadd.f32 %v12217_v62, %v12216_v63  ;;  %v12219_v55 = vpop.f32.mrb[46].mxu1  ;;  %v7005_v63 = vrot.slane %v7004_v42, 4  ;;  %v7019_v7 = vrot.slane %v7018_v44, 4  ;;  %v11649_v42 = vcombine.low %v17498_v29, %v17239_v10 }
 0x4b0   : > { %v12220_v46 = vpop.f32.mrb[47].mxu1  ;;  %v7057_v56 = vrot.slane %v7055_v45, 5  ;;  %v7034_v41 = vsel %vm14295_vm5, %v7029_v26, %v7033_v6  ;;  %v17590_v62 = vrot.slane %v7066_v52, 4  ;;  %v17592_v60 = vrot.slane %v7076_v25, 4  ;;  %v17626_v26 = vld [vmem:[#allocation3 + $0x44] sm:$0x1] }
 0x4b1   : > { %19186 = vst [vmem:[#allocation38_spill] sm:$0xff] %v17566_v14  ;;  %v17575_v21 = vadd.f32 %v12220_v46, %v12219_v55  ;;  %v7010_v48 = vsel %vm14295_vm5, %v7005_v63, %v7009_v13  ;;  %v7000_v29 = vsel %vm14295_vm5, %v6995_v38, %v17539_v47  ;;  %v17603_v55 = vld [vmem:[#allocation3 + $0x38] sm:$0x1]  ;;  %v7024_v46 = vsel %vm14295_vm5, %v7019_v7, %v17547_v34  ;;  %v17612_v47 = vld [vmem:[#allocation3 + $0x4c] sm:$0xf] }
 0x4b2   : > { %9102 = vmatmul.mubr.bf16.gmra.mrb[152].mxu1 %v11648_v27  ;;  %v7058_v37 = vsel %vm14295_vm5, %v7053_v16, %v7057_v56  ;;  %v11666_v31 = vcombine.low %v7000_v29, %v7010_v48  ;;  %v17608_v27 = vrot.slane %v7079_v36, 5  ;;  %v9824_v44 = vrot.slane %v17584_v49, 5  ;;  %v17624_v34 = vld [vmem:[#allocation3] sm:$0xe]  ;;  %v9747_v52 = vld [vmem:[#allocation3 + $0x3c] sm:$0xe] }
 0x4b3   : > { %19187 = vst [vmem:[#allocation39_spill] sm:$0xff] %v17575_v21  ;;  %9109 = vmatprep.mubr.bf16.mxu1 %v11665_v43  ;;  %v17610_v43 = vld [vmem:[#allocation3 + $0x40] sm:$0xf]  ;;  %v17617_v63 = vcombine.low %v7024_v46, %v7034_v41  ;;  %v7048_v17 = vsel %vm14295_vm5, %v7043_v20, %v17557_v9  ;;  %v17638_v13 = vld [vmem:[#allocation3 + $0x50] sm:$0x1]  ;;  %v11800_v16 = vrot.slane %v9746_v0, 9 }
 0x4b4   : > { %v17628_v25 = vcombine.low %v7048_v17, %v7058_v37  ;;  %v9748_v7 = vld [vmem:[#allocation3 + $0x48] sm:$0xe]  ;;  %v17640_v6 = vld [vmem:[#allocation3 + $0x4] sm:$0xf]  ;;  %v17646_v48 = vld [vmem:[#allocation3 + $0x58] sm:$0xf] }
 0x4b5   : > { %v12222_v40 = vpop.f32.mrb[48].mxu1  ;;  %v17648_v20 = vld [vmem:[#allocation3 + $0x64] sm:$0xf]  ;;  %v9826_v56 = vrot.slane %v9824_v44, 4  ;;  %v11801_v29 = vrot.slane %v9747_v52, 9  ;;  %v9831_v37 = vrot.slane %v17610_v43, 5 }
 0x4b6   : > { %v12223_v4 = vpop.f32.mrb[49].mxu1  ;;  %v9749_v0 = vld [vmem:[#allocation3 + $0x54] sm:$0xe]  ;;  %v9834_v17 = vrot.slane %v17626_v26, 5  ;;  %v9838_v41 = vrot.slane %v17612_v47, 5  ;;  %v9841_v9 = vrot.slane %v17638_v13, 5 }
 0x4b7   : > { %v17594_v18 = vadd.f32 %v12223_v4, %v12222_v40  ;;  %v12225_v10 = vpop.f32.mrb[50].mxu1  ;;  %v17643_v40 = vld [vmem:[#allocation3 + $0x8] sm:$0x1]  ;;  %v9827_v4 = vrot.slane %v17603_v55, 5  ;;  %v17671_v52 = vsel %vm14711_vm0, %v11801_v29, %v9831_v37  ;;  %v9752_v21 = vld [vmem:[#allocation3 + $0x78] sm:$0xe] }
 0x4b8   : > { %v12226_v11 = vpop.f32.mrb[51].mxu1  ;;  %v17665_v38 = vld [vmem:[#allocation3 + $0x68] sm:$0x1]  ;;  %19192 = vst [vmem:[#allocation44_spill] sm:$0xff] %v17671_v52  ;;  %v9840_v58 = vrot.slane %v9838_v41, 4 }
 0x4b9   : > { %19188 = vst [vmem:[#allocation40_spill] sm:$0xff] %v17594_v18  ;;  %v17615_v51 = vadd.f32 %v12226_v11, %v12225_v10  ;;  %v17654_v10 = vsel %vm14711_vm0, %v11800_v16, %v9824_v44  ;;  %v17661_v46 = vsel %vm14711_vm0, %v9826_v56, %v9827_v4  ;;  %v9833_v16 = vrot.slane %v9831_v37, 4  ;;  %v9750_v56 = vld [vmem:[#allocation3 + $0x60] sm:$0xe]  ;;  %v17729_v52 = vld [vmem:[#allocation3 + $0x8c] sm:$0x1] }
 0x4ba   : > { %9110 = vmatmul.mubr.bf16.gmra.mrb[156].mxu1 %v11649_v42  ;;  %19190 = vst [vmem:[#allocation42_spill] sm:$0xff] %v17654_v10  ;;  %19191 = vst [vmem:[#allocation43_spill] sm:$0xff] %v17661_v46  ;;  %v11802_v42 = vrot.slane %v9748_v7, 9  ;;  %v17676_v7 = vld [vmem:[#allocation3 + $0x70] sm:$0xf]  ;;  %v9845_v18 = vrot.slane %v17646_v48, 5 }
 0x4bb   : > { %19189 = vst [vmem:[#allocation41_spill] sm:$0xff] %v17615_v51  ;;  %9117 = vmatprep.mubr.bf16.mxu1 %v11666_v31  ;;  %v17657_v31 = vld [vmem:[#allocation3 + $0x5c] sm:$0x1]  ;;  %v11803_v51 = vrot.slane %v9749_v0, 9  ;;  %v17683_v29 = vsel %vm14711_vm0, %v9833_v16, %v9834_v17  ;;  %v9751_v46 = vld [vmem:[#allocation3 + $0x6c] sm:$0xe]  ;;  %v17699_v17 = vsel %vm14711_vm0, %v9840_v58, %v9841_v9 }
 0x4bc   : > { %19194 = vst [vmem:[#allocation46_spill] sm:$0xff] %v17683_v29  ;;  %v17687_v37 = vsel %vm14711_vm0, %v11802_v42, %v9838_v41  ;;  %19197 = vst [vmem:[#allocation49_spill] sm:$0xff] %v17699_v17  ;;  %v11804_v16 = vrot.slane %v9750_v56, 9  ;;  %v19198_v42 = vcombine.low %v17511_v28, %v17243_v2  ;;  %v17704_v41 = vld [vmem:[#allocation3 + $0x80] sm:$0x1]  ;;  %v9847_v0 = vrot.slane %v9845_v18, 4 }
 0x4bd   : > { %v12228_v11 = vpop.f32.mrb[52].mxu1  ;;  %19195 = vst [vmem:[#allocation47_spill] sm:$0xff] %v17687_v37  ;;  %19199 = vst [vmem:[#allocation50_spill] sm:$0xff] %v17704_v41  ;;  %v17713_v58 = vld [vmem:[#allocation3 + $0x88] sm:$0xf]  ;;  %v9855_v28 = vrot.slane %v17665_v38, 5 }
 0x4be   : > { %v12229_v45 = vpop.f32.mrb[53].mxu1  ;;  %19201 = vst [vmem:[#allocation52_spill] sm:$0xff] %v17713_v58  ;;  %v17715_v9 = vld [vmem:[#allocation3 + $0x94] sm:$0xf]  ;;  %v11805_v56 = vrot.slane %v9751_v46, 9 }
 0x4bf   : > { %v17674_v4 = vadd.f32 %v12229_v45, %v12228_v11  ;;  %v12231_v36 = vpop.f32.mrb[54].mxu1  ;;  %v9848_v45 = vrot.slane %v17657_v31, 5  ;;  %v9852_v11 = vrot.slane %v17648_v20, 5  ;;  %v9753_v17 = vld [vmem:[#allocation3 + $0x84] sm:$0xe] }
 0x4c0   : > { %v12232_v44 = vpop.f32.mrb[55].mxu1 }
 0x4c1   : > { %19193 = vst [vmem:[#allocation45_spill] sm:$0xff] %v17674_v4  ;;  %v17691_v10 = vadd.f32 %v12232_v44, %v12231_v36  ;;  %v17693_v4 = vld [vmem:[#allocation3 + $0x74] sm:$0x1]  ;;  %v17710_v44 = vsel %vm14711_vm0, %v11803_v51, %v9845_v18  ;;  %v9854_v29 = vrot.slane %v9852_v11, 4  ;;  %v17719_v2 = vsel %vm14711_vm0, %v11804_v16, %v9852_v11 }
 0x4c2   : > { %9118 = vmatmul.mubr.bf16.gmra.mrb[160].mxu1 %v19198_v42  ;;  %19200 = vst [vmem:[#allocation51_spill] sm:$0xff] %v17710_v44  ;;  %19202 = vst [vmem:[#allocation53_spill] sm:$0xff] %v17719_v2  ;;  %v9859_v42 = vrot.slane %v17676_v7, 5  ;;  %v17725_v51 = vsel %vm14711_vm0, %v9847_v0, %v9848_v45  ;;  %v9862_v18 = vrot.slane %v17693_v4, 5  ;;  %v9866_v36 = vrot.slane %v17678_v39, 5 }
 0x4c3   : > { %19196 = vst [vmem:[#allocation48_spill] sm:$0xff] %v17691_v10  ;;  %9125 = vmatprep.mubr.bf16.mxu1 %v17617_v63  ;;  %19203 = vst [vmem:[#allocation54_spill] sm:$0xff] %v17725_v51  ;;  %v11806_v63 = vrot.slane %v9752_v21, 9  ;;  %v17735_v46 = vsel %vm14711_vm0, %v9854_v29, %v9855_v28  ;;  %v9869_v45 = vrot.slane %v17704_v41, 5  ;;  %v17738_v10 = vld [vmem:[#allocation3 + $0x98] sm:$0x1] }
 0x4c4   : > { %19204 = vst [vmem:[#allocation55_spill] sm:$0xff] %v17735_v46  ;;  %v9861_v16 = vrot.slane %v9859_v42, 4  ;;  %19205 = vst [vmem:[#allocation56_spill] sm:$0xff] %v17738_v10  ;;  %v17744_v14 = vsel %vm14711_vm0, %v11805_v56, %v9859_v42  ;;  %v9868_v51 = vrot.slane %v9866_v36, 4  ;;  %v9754_v29 = vld [vmem:[#allocation3 + $0x90] sm:$0xe] }
 0x4c5   : > { %v12234_v37 = vpop.f32.mrb[56].mxu1  ;;  %19206 = vst [vmem:[#allocation57_spill] sm:$0xff] %v17744_v14  ;;  %v17748_v11 = vsel %vm14711_vm0, %v11806_v63, %v9866_v36  ;;  %v17752_v41 = vld [vmem:[#allocation3 + $0xa0] sm:$0xf]  ;;  %v11807_v46 = vrot.slane %v9753_v17, 9  ;;  %v9873_v56 = vrot.slane %v17713_v58, 5  ;;  %v19215_v63 = vcombine.low %v17531_v50, %v17280_v19 }
 0x4c6   : > { %v12235_v0 = vpop.f32.mrb[57].mxu1  ;;  %19207 = vst [vmem:[#allocation58_spill] sm:$0xff] %v17748_v11  ;;  %19209 = vst [vmem:[#allocation60_spill] sm:$0xff] %v17752_v41  ;;  %v17758_v21 = vsel %vm14711_vm0, %v9861_v16, %v9862_v18  ;;  %v9876_v36 = vrot.slane %v17729_v52, 5  ;;  %v9755_v2 = vld [vmem:[#allocation3 + $0x9c] sm:$0xe] }
 0x4c7   : > { %v17750_v28 = vadd.f32 %v12235_v0, %v12234_v37  ;;  %v12237_v44 = vpop.f32.mrb[58].mxu1  ;;  %19211 = vst [vmem:[#allocation62_spill] sm:$0xff] %v17758_v21  ;;  %v17765_v37 = vsel %vm14711_vm0, %v9868_v51, %v9869_v45  ;;  %v9880_v0 = vrot.slane %v17715_v9, 5  ;;  %v17771_v18 = vld [vmem:[#allocation3 + $0xa4] sm:$0x1]  ;;  %v9875_v58 = vrot.slane %v9873_v56, 4 }
 0x4c8   : > { %v12238_v42 = vpop.f32.mrb[59].mxu1  ;;  %19212 = vst [vmem:[#allocation63_spill] sm:$0xff] %v17765_v37  ;;  %19214 = vst [vmem:[#allocation65_spill] sm:$0xff] %v17771_v18  ;;  %v9356_v17 = vld [vmem:[#allocation3 + $0xb0] sm:$0x1]  ;;  %v11808_v54 = vrot.slane %v9754_v29, 9  ;;  %v17782_v21 = vsel %vm14711_vm0, %v11807_v46, %v9873_v56 }
 0x4c9   : > { %19208 = vst [vmem:[#allocation59_spill] sm:$0xff] %v17750_v28  ;;  %v17769_v28 = vadd.f32 %v12238_v42, %v12237_v44  ;;  %v19216_v51 = vrot.slane %v17640_v6, 5  ;;  %19217 = vst [vmem:[#allocation66_spill] sm:$0xff] %v17782_v21  ;;  %v9882_v44 = vrot.slane %v9880_v0, 4  ;;  %v9883_v42 = vrot.slane %v17738_v10, 5 }
 0x4ca   : > { %9126 = vmatmul.mubr.bf16.gmra.mrb[164].mxu1 %v19215_v63  ;;  %v9756_v14 = vld [vmem:[#allocation3 + $0xa8] sm:$0xe]  ;;  %v17786_v16 = vld [vmem:[#allocation3 + $0xb8] sm:$0xf]  ;;  %v17790_v29 = vsel %vm14711_vm0, %v9875_v58, %v9876_v36  ;;  %v17794_v19 = vsel %vm14711_vm0, %v11808_v54, %v9880_v0  ;;  %v11809_v50 = vrot.slane %v9755_v2, 9  ;;  %v9887_v46 = vrot.slane %v17752_v41, 5 }
 0x4cb   : > { %19213 = vst [vmem:[#allocation64_spill] sm:$0xff] %v17769_v28  ;;  %v7151_v45 = vrot.slane %v19216_v51, 4  ;;  %9133 = vmatprep.mubr.bf16.mxu1 %v17628_v25  ;;  %19218 = vst [vmem:[#allocation67_spill] sm:$0xff] %v17790_v29  ;;  %v9757_v56 = vld [vmem:[#allocation3 + $0xb4] sm:$0xe]  ;;  %v17801_v25 = vsel %vm14711_vm0, %v9882_v44, %v9883_v42  ;;  %v9890_v37 = vrot.slane %v17771_v18, 5 }
 0x4cc   : > { %v9341_v63 = vld [vmem:[#allocation3 + $0xc4] sm:$0xf]  ;;  %19219 = vst [vmem:[#allocation68_spill] sm:$0xff] %v17801_v25  ;;  %v9894_v58 = vrot.slane %v17754_v30, 5  ;;  %v17805_v11 = vld [vmem:[#allocation3 + $0xbc] sm:$0x1]  ;;  %v17811_v51 = vsel %vm14711_vm0, %v11809_v50, %v9887_v46 }
 0x4cd   : > { %v12240_v36 = vpop.f32.mrb[60].mxu1  ;;  %v9889_v2 = vrot.slane %v9887_v46, 4  ;;  %v11810_v0 = vrot.slane %v9756_v14, 9  ;;  %v9897_v28 = vrot.slane %v9356_v17, 5  ;;  %v11811_v42 = vrot.slane %v9757_v56, 9  ;;  %v19258_v46 = vld [vmem:[#allocation29_spill] sm:$0xff] }
 0x4ce   : > { %v12241_v10 = vpop.f32.mrb[61].mxu1  ;;  %v9896_v44 = vrot.slane %v9894_v58, 4  ;;  %v9901_v29 = vrot.slane %v17786_v16, 5  ;;  %v9358_v30 = vld [vmem:[#allocation3 + $0xc8] sm:$0x1]  ;;  %v9908_v54 = vrot.slane %v9341_v63, 5  ;;  %v19223_v63 = vsel %vm14295_vm5, %v17590_v62, %v17564_v32 }
 0x4cf   : > { %v17814_v21 = vadd.f32 %v12241_v10, %v12240_v36  ;;  %v12243_v18 = vpop.f32.mrb[62].mxu1  ;;  %v17818_v41 = vsel %vm14711_vm0, %v9889_v2, %v9890_v37  ;;  %v17822_v14 = vsel %vm14711_vm0, %v11810_v0, %v9894_v58  ;;  %v9758_v17 = vld [vmem:[#allocation3 + $0xc0] sm:$0xe]  ;;  %v9904_v36 = vrot.slane %v17805_v11, 5 }
 0x4d0   : > { %19220 = vst [vmem:[#allocation69_spill] sm:$0xff] %v17822_v14  ;;  %v12244_v50 = vpop.f32.mrb[63].mxu1  ;;  %v17828_v10 = vsel %vm14711_vm0, %v9896_v44, %v9897_v28  ;;  %v9903_v56 = vrot.slane %v9901_v29, 4  ;;  %v19222_v37 = vsel %vm14295_vm5, %v17592_v60, %v17608_v27  ;;  %v9910_v2 = vrot.slane %v9908_v54, 4  ;;  %v18010_v14 = vld [vmem:[#allocation3 + $0x2c] sm:$0x1] }
 0x4d1   : > { %19221 = vst [vmem:[#allocation70_spill] sm:$0xff] %v17828_v10  ;;  %v17831_v25 = vadd.f32 %v12244_v50, %v12243_v18  ;;  %v11669_v58 = vcombine.low %v19223_v63, %v19222_v37  ;;  %v19224_v0 = vcombine.low %v17535_v22, %v17295_v57  ;;  %v17850_v18 = vsel %vm14711_vm0, %v11811_v42, %v9901_v29  ;;  %v13859_v37 = vld [vmem:[#allocation3 + $0x1c] sm:$0xf] }
 0x4d2   : > { %19225 = vst [vmem:[#allocation71_spill] sm:$0xff] %v17850_v18  ;;  %v17854_v60 = vsel %vm14711_vm0, %v9903_v56, %v9904_v36  ;;  %v11812_v27 = vrot.slane %v9758_v17, 9  ;;  %v9911_v44 = vrot.slane %v9358_v30, 5  ;;  %v19227_v62 = vrot.slane %v17640_v6, 5  ;;  %v13858_v6 = vld [vmem:[#allocation3 + $0x10] sm:$0xf] }
 0x4d3   : > { %9134 = vmatmul.mubr.bf16.gmra.mrb[168].mxu1 %v19224_v0  ;;  %19226 = vst [vmem:[#allocation72_spill] sm:$0xff] %v17854_v60  ;;  %v19228_v50 = vrot.slane %v17624_v34, 9  ;;  %v19229_v22 = vrot.slane %v17643_v40, 5  ;;  %v7156_v56 = vrot.slane %v13858_v6, 5  ;;  %v7163_v40 = vrot.slane %v13859_v37, 5 }
 0x4d4   : > { %9141 = vmatprep.mubr.bf16.mxu1 %v11669_v58  ;;  %v17870_v42 = vsel %vm14711_vm0, %v11812_v27, %v9908_v54  ;;  %v17874_v30 = vsel %vm14711_vm0, %v9910_v2, %v9911_v44  ;;  %v11653_v54 = vcombine.low %v17543_v23, %v17326_v59  ;;  %v7084_v44 = vld [vmem:[#allocation3 + $0xc] sm:$0xe]  ;;  %v7085_v6 = vld [vmem:[#allocation3 + $0x18] sm:$0xe]  ;;  %v13861_v34 = vld [vmem:[#allocation3 + $0x20] sm:$0x1] }
 0x4d5   : > { %v7150_v57 = vsel %vm14711_vm0, %v19228_v50, %v19227_v62  ;;  %v7153_v29 = vsel %vm14711_vm0, %v7151_v45, %v19229_v22  ;;  %19230 = vst [vmem:[#allocation73_spill] sm:$0xff] %v17870_v42  ;;  %19231 = vst [vmem:[#allocation74_spill] sm:$0xff] %v17874_v30  ;;  %v12246_v17 = vpop.f32.mrb[64].mxu1  ;;  %v7158_v2 = vrot.slane %v7156_v56, 4  ;;  %v7165_v62 = vrot.slane %v7163_v40, 4 }
 0x4d6   : > { %v12247_v36 = vpop.f32.mrb[65].mxu1  ;;  %v11670_v58 = vcombine.low %v7150_v57, %v7153_v29  ;;  %v13860_v50 = vld [vmem:[#allocation3 + $0x14] sm:$0x1]  ;;  %v7166_v37 = vrot.slane %v13861_v34, 5  ;;  %v11624_v32 = vrot.slane %v7085_v6, 9  ;;  %v13756_v34 = vld [vmem:[%s18954_s6 + $0x180] sm:$0xff]  }
 0x4d7   : > { %v17878_v63 = vadd.f32 %v12247_v36, %v12246_v17  ;;  %v12249_v45 = vpop.f32.mrb[66].mxu1  ;;  %v7159_v22 = vrot.slane %v13860_v50, 5  ;;  %v11623_v36 = vrot.slane %v7084_v44, 9  ;;  %v13757_v44 = vld [vmem:[%s18954_s6 + $0x1c8] sm:$0xff]  }
 0x4d8   : > { %v12250_v0 = vpop.f32.mrb[67].mxu1  ;;  %v7167_v59 = vsel %vm14711_vm0, %v7165_v62, %v7166_v37 }
 0x4d9   : > { %v17882_v27 = vadd.f32 %v12250_v0, %v12249_v45  ;;  %v7160_v57 = vsel %vm14711_vm0, %v7158_v2, %v7159_v22  ;;  %v7157_v0 = vsel %vm14711_vm0, %v11623_v36, %v7156_v56  ;;  %v7164_v2 = vsel %vm14711_vm0, %v11624_v32, %v7163_v40  ;;  %v13758_v56 = vld [vmem:[%s18954_s6 + $0x188] sm:$0xff]   ;;  %v13759_v22 = vld [vmem:[%s18954_s6 + $0x1d0] sm:$0xff]  }
 0x4da   : > { %v11672_v50 = vcombine.low %v7164_v2, %v7167_v59  ;;  %v19232_v59 = vld [vmem:[#allocation10_spill] sm:$0xff]  ;;  %v13763_v2 = vld [vmem:[%s18954_s6 + $0x1e0] sm:$0xff]  }
 0x4db   : > { %9142 = vmatmul.mubr.bf16.gmra.mrb[172].mxu1 %v11653_v54  ;;  %v11671_v54 = vcombine.low %v7157_v0, %v7160_v57  ;;  %v13761_v57 = vld [vmem:[%s18954_s6 + $0x1d8] sm:$0xff]   ;;  %v19234_v0 = vld [vmem:[#allocation11_spill] sm:$0xff] }
 0x4dc   : > { %13010 = vmatprep.mubr.bf16.mxu1 %v11670_v58 }
 0x4dd   : > { %v12252_v17 = vpop.f32.mrb[68].mxu1 }
 0x4de   : > { %v12253_v29 = vpop.f32.mrb[69].mxu1 }
 0x4df   : > { %v17888_v23 = vadd.f32 %v12253_v29, %v12252_v17  ;;  %v12255_v45 = vpop.f32.mrb[70].mxu1  ;;  %v13760_v17 = vld [vmem:[%s18954_s6 + $0x190] sm:$0xff]  }
 0x4e0   : > { %v12256_v58 = vpop.f32.mrb[71].mxu1 }
 0x4e1   : > { %v17900_v62 = vadd.f32 %v12256_v58, %v12255_v45  ;;  %v19233_v45 = vcombine.low %v17151_v5, %v19232_v59  ;;  %v19240_v59 = vld [vmem:[#allocation15_spill] sm:$0xff] }
 0x4e3   : > { %13011 = vmatmul.mubr.bf16.vlgmr.msra.gmra.mrb[80].mxu1 %v11671_v54  ;;  %v13762_v54 = vld [vmem:[%s18954_s6 + $0x198] sm:$0xff]  }
 0x4e4   : > { %12431 = vmatpush3.bf16.msra.mxu1 %v13756_v34  ;;  %13014 = vmatprep.mubr.bf16.mxu1 %v11672_v50  ;;  %v19235_v34 = vld [vmem:[#allocation13_spill] sm:$0xff] }
 0x4e5   : > { %12432 = vmatprep.subr.bf16.mxu1 %v13757_v44  ;;  %v12258_v32 = vpop.f32.mrb[72].mxu1  ;;  %v19236_v58 = vcombine.low %v19234_v0, %v19235_v34  ;;  %v13766_v34 = vld [vmem:[%s18954_s6 + $0x1a8] sm:$0xff]  }
 0x4e6   : > { %v12259_v40 = vpop.f32.mrb[73].mxu1 }
 0x4e7   : > { %v17908_v6 = vadd.f32 %v12259_v40, %v12258_v32  ;;  %v12261_v37 = vpop.f32.mrb[74].mxu1  ;;  %v13765_v40 = vld [vmem:[%s18954_s6 + $0x1e8] sm:$0xff]  }
 0x4e8   : > { %12433 = vmatpush3.bf16.msra.mxu1 %v13758_v56  ;;  %v12262_v36 = vpop.f32.mrb[75].mxu1 }
 0x4e9   : > { %12434 = vmatprep.subr.bf16.mxu1 %v13759_v22  ;;  %v17916_v29 = vadd.f32 %v12262_v36, %v12261_v37  ;;  %v13764_v22 = vld [vmem:[%s18954_s6 + $0x1a0] sm:$0xff]   ;;  %v19238_v36 = vld [vmem:[#allocation14_spill] sm:$0xff] }
 0x4eb   : > { %13015 = vmatmul.mubr.bf16.gmra.mrb[84].mxu1 %v19233_v45  ;;  %v19241_v45 = vld [vmem:[#allocation16_spill] sm:$0xff] }
 0x4ec   : > { %13018 = vmatprep.mubr.bf16.mxu1 %v19236_v58  ;;  %12435 = vmatpush3.bf16.msra.mxu1 %v13760_v17  ;;  %v19237_v17 = vld [vmem:[#allocation12_spill] sm:$0xff]  ;;  %v19242_v0 = vcombine.low %v19240_v59, %v19241_v45  ;;  %v13767_v58 = vld [vmem:[%s18954_s6 + $0x1f0] sm:$0xff]  }
 0x4ed   : > { %12436 = vmatprep.subr.bf16.mxu1 %v13761_v57  ;;  %v12264_v44 = vpop.f32.mrb[76].mxu1  ;;  %v19239_v57 = vcombine.low %v19237_v17, %v19238_v36  ;;  %v13770_v17 = vld [vmem:[%s18954_s6 + $0x1b8] sm:$0xff]   ;;  %v17970_v36 = vld [vmem:[%s18954_s6 + $0x200] sm:$0xff]   ;;  %v19250_v59 = vld [vmem:[#allocation23_spill] sm:$0xff] }
 0x4ee   : > { %v12265_v50 = vpop.f32.mrb[77].mxu1 }
 0x4ef   : > { %v17930_v56 = vadd.f32 %v12265_v50, %v12264_v44  ;;  %v12267_v5 = vpop.f32.mrb[78].mxu1  ;;  %v19243_v44 = vld [vmem:[#allocation17_spill] sm:$0xff]  ;;  %v19244_v50 = vld [vmem:[#allocation18_spill] sm:$0xff] }
 0x4f0   : > { %12437 = vmatpush3.bf16.msra.mxu1 %v13762_v54  ;;  %v12268_v32 = vpop.f32.mrb[79].mxu1  ;;  %v13768_v54 = vld [vmem:[%s18954_s6 + $0x1b0] sm:$0xff]  }
 0x4f1   : > { %12438 = vmatprep.subr.bf16.mxu1 %v13763_v2  ;;  %v17938_v37 = vadd.f32 %v12268_v32, %v12267_v5  ;;  %v13769_v2 = vld [vmem:[%s18954_s6 + $0x1f8] sm:$0xff]   ;;  %v19245_v5 = vcombine.low %v19243_v44, %v19244_v50  ;;  %v19247_v32 = vld [vmem:[#allocation22_spill] sm:$0xff] }
 0x4f3   : > { %13019 = vmatmul.mubr.bf16.gmra.mrb[88].mxu1 %v19239_v57  ;;  %v19249_v57 = vld [vmem:[#allocation20_spill] sm:$0xff] }
 0x4f4   : > { %13022 = vmatprep.mubr.bf16.mxu1 %v19242_v0  ;;  %12439 = vmatpush3.bf16.msra.mxu1 %v13764_v22  ;;  %v19246_v22 = vld [vmem:[#allocation19_spill] sm:$0xff]  ;;  %v19251_v45 = vcombine.low %v19249_v57, %v19250_v59  ;;  %v19252_v0 = vld [vmem:[#allocation25_spill] sm:$0xff] }
 0x4f5   : > { %12440 = vmatprep.subr.bf16.mxu1 %v13765_v40  ;;  %v19248_v40 = vcombine.low %v19246_v22, %v19247_v32  ;;  %v19254_v22 = vcombine.low %v17313_v15, %v17330_v8 }
 0x4f8   : > { %12441 = vmatpush3.bf16.msra.mxu1 %v13766_v34  ;;  %v19253_v34 = vcombine.low %v17292_v12, %v19252_v0  ;;  %v19255_v12 = vcombine.low %v17322_v53, %v17348_v35  ;;  %v17997_v0 = vld [vmem:[#allocation3 + $0x20] sm:$0x1]  ;;  %v19256_v35 = vld [vmem:[#allocation27_spill] sm:$0xff] }
 0x4f9   : > { %12442 = vmatprep.subr.bf16.mxu1 %v13767_v58  ;;  %v17979_v58 = vld [vmem:[#allocation3 + $0x1c] sm:$0xf]  ;;  %v9380_v53 = vshll.u32 %v17997_v0, 16 }
 0x4fa   : > { %v9374_v44 = vshrl.u32 %v17979_v58, 16 }
 0x4fb   : > { %13023 = vmatmul.mubr.bf16.gmra.mrb[92].mxu1 %v19245_v5  ;;  %v9382_v10 = vrot.slane %v9380_v53, 5  ;;  %v19261_v53 = vcombine.low %v17399_v33, %v17403_v1 }
 0x4fc   : > { %13026 = vmatprep.mubr.bf16.mxu1 %v19248_v40  ;;  %12443 = vmatpush3.bf16.msra.mxu1 %v13768_v54  ;;  %v17981_v54 = vld [vmem:[#allocation3 + $0x18] sm:$0xf]  ;;  %v9376_v40 = vrot.slane %v9374_v44, 4 }
 0x4fd   : > { %12444 = vmatprep.subr.bf16.mxu1 %v13769_v2  ;;  %v9370_v2 = vshll.u32 %v17979_v58, 16  ;;  %v9361_v50 = vshrl.u32 %v17981_v54, 16  ;;  %v9364_v5 = vshll.u32 %v17981_v54, 16  ;;  %v11814_v33 = vcombine.low %v17981_v54, %v17979_v58 }
 0x4ff   : > { %v9372_v32 = vrot.slane %v9370_v2, 5  ;;  %v9363_v57 = vrot.slane %v9361_v50, 4  ;;  %v9366_v59 = vrot.slane %v9364_v5, 5  ;;  %v19257_v50 = vcombine.low %v17334_v3, %v19256_v35 }
 0x500   : > { %12445 = vmatpush3.bf16.msra.mxu1 %v13770_v17  ;;  %v17993_v17 = vld [vmem:[#allocation3 + $0x28] sm:$0xf] }
 0x501   : > { %13042 = vmatprep.subr.bf16.mxu1 %v17970_v36  ;;  %v9394_v28 = vshll.u32 %v17993_v17, 16  ;;  %v9398_v15 = vshrl.u32 %v17993_v17, 16  ;;  %v9367_v44 = vor.u32 %v9366_v59, %v9363_v57  ;;  %v18012_v57 = vld [vmem:[#allocation3 + $0x30] sm:$0xf] }
 0x503   : > { %13027 = vmatmul.mubr.bf16.gmra.mrb[96].mxu1 %v19251_v45  ;;  %v17995_v45 = vld [vmem:[#allocation3 + $0x24] sm:$0xf]  ;;  %v9368_v18 = vrot.slane %v9367_v44, 4 }
 0x504   : > { %13030 = vmatprep.mubr.bf16.mxu1 %v19253_v34  ;;  %v9377_v34 = vor.u32 %v9376_v40, %v9372_v32  ;;  %v9385_v8 = vshrl.u32 %v17995_v45, 16  ;;  %v9388_v2 = vshll.u32 %v17995_v45, 16  ;;  %v19259_v40 = vld [vmem:[#allocation30_spill] sm:$0xff] }
 0x505   : > { %v19260_v30 = vcombine.low %v19258_v46, %v19259_v40  ;;  %v9373_v46 = vsel %vm14295_vm5, %v9368_v18, %v9372_v32  ;;  %v18026_v18 = vld [vmem:[#allocation3 + $0x3c] sm:$0xf] }
 0x506   : > { %v9378_v5 = vrot.slane %v9377_v34, 4  ;;  %v9387_v42 = vrot.slane %v9385_v8, 4  ;;  %v9390_v60 = vrot.slane %v9388_v2, 5  ;;  %v9418_v34 = vshll.u32 %v17584_v49, 16 }
 0x507   : > { %v9409_v8 = vshrl.u32 %v18012_v57, 16  ;;  %v9412_v2 = vshll.u32 %v18012_v57, 16 }
 0x508   : > { %v9383_v59 = vsel %vm14295_vm5, %v9378_v5, %v9382_v10  ;;  %v9420_v35 = vrot.slane %v9418_v34, 5  ;;  %v9428_v34 = vshll.u32 %v17603_v55, 16 }
 0x509   : > { %v11830_v44 = vcombine.low %v9373_v46, %v9383_v59  ;;  %v9442_v59 = vshll.u32 %v17610_v43, 16  ;;  %v9446_v46 = vshrl.u32 %v17610_v43, 16 }
 0x50b   : > { %13031 = vmatmul.mubr.bf16.gmra.mrb[100].mxu1 %v19254_v22  ;;  %v9396_v22 = vrot.slane %v9394_v28, 5  ;;  %v9422_v28 = vshrl.u32 %v17584_v49, 16 }
 0x50c   : > { %13034 = vmatprep.mubr.bf16.mxu1 %v19255_v12  ;;  %v9400_v12 = vrot.slane %v9398_v15, 4  ;;  %v9391_v15 = vor.u32 %v9390_v60, %v9387_v42  ;;  %v9411_v42 = vrot.slane %v9409_v8, 4 }
 0x50e   : > { %v9401_v3 = vor.u32 %v9400_v12, %v9396_v22  ;;  %v9392_v5 = vrot.slane %v9391_v15, 4  ;;  %v9414_v12 = vrot.slane %v9412_v2, 5  ;;  %v9433_v15 = vshrl.u32 %v18026_v18, 16 }
 0x510   : > { %v9402_v10 = vrot.slane %v9401_v3, 4  ;;  %v9397_v1 = vsel %vm14295_vm5, %v9392_v5, %v9396_v22  ;;  %v9415_v3 = vor.u32 %v9414_v12, %v9411_v42  ;;  %v9430_v22 = vrot.slane %v9428_v34, 5  ;;  %v18046_v5 = vld [vmem:[#allocation3 + $0x48] sm:$0xf] }
 0x511   : > { %v9435_v55 = vrot.slane %v9433_v15, 4  ;;  %v9466_v12 = vshll.u32 %v17612_v47, 16 }
 0x512   : > { %v9416_v54 = vrot.slane %v9415_v3, 4  ;;  %v13780_v3 = vld [vmem:[%s18954_s6 + $0x218] sm:$0xff]  }
 0x513   : > { %13035 = vmatmul.mubr.bf16.gmra.mrb[104].mxu1 %v19257_v50  ;;  %v9424_v50 = vrot.slane %v9422_v28, 4  ;;  %v13774_v28 = vld [vmem:[%s18954_s6 + $0x208] sm:$0xff]  }
 0x514   : > { %13038 = vmatprep.mubr.bf16.mxu1 %v19260_v30  ;;  %v9404_v30 = vshll.u32 %v18010_v14, 16 }
 0x515   : > { %v9425_v40 = vor.u32 %v9424_v50, %v9420_v35  ;;  %v13777_v50 = vld [vmem:[%s18954_s6 + $0x210] sm:$0xff]  }
 0x516   : > { %v9406_v60 = vrot.slane %v9404_v30, 5  ;;  %v9436_v30 = vshll.u32 %v18026_v18, 16 }
 0x517   : > { %v9426_v2 = vrot.slane %v9425_v40, 4  ;;  %v9452_v40 = vshll.u32 %v17626_v26, 16  ;;  %v18062_v26 = vld [vmem:[#allocation3 + $0x54] sm:$0xf] }
 0x518   : > { %v9407_v32 = vsel %vm14295_vm5, %v9402_v10, %v9406_v60  ;;  %v9438_v10 = vrot.slane %v9436_v30, 5 }
 0x519   : > { %v11831_v8 = vcombine.low %v9397_v1, %v9407_v32  ;;  %v9431_v60 = vsel %vm14295_vm5, %v9426_v2, %v9430_v22  ;;  %v11815_v32 = vcombine.low %v17995_v45, %v17993_v17  ;;  %v9460_v1 = vshll.u32 %v18046_v5, 16 }
 0x51a   : > { %v9468_v45 = vrot.slane %v9466_v12, 5  ;;  %v9454_v30 = vrot.slane %v9452_v40, 5  ;;  %v13786_v40 = vld [vmem:[%s18954_s6 + $0x228] sm:$0xff]  }
 0x51b   : > { %13039 = vmatmul.mubr.bf16.gmra.mrb[108].mxu1 %v19261_v53  ;;  %v9448_v53 = vrot.slane %v9446_v46, 4  ;;  %v9439_v46 = vor.u32 %v9438_v10, %v9435_v55  ;;  %v9462_v2 = vrot.slane %v9460_v1, 5  ;;  %v9490_v55 = vshll.u32 %v17646_v48, 16 }
 0x51c   : > { %10352 = vmatprep.mubr.bf16.mxu1 %v11830_v44  ;;  %v9444_v44 = vrot.slane %v9442_v59, 5  ;;  %v9421_v59 = vsel %vm14295_vm5, %v9416_v54, %v9420_v35  ;;  %v9494_v10 = vshrl.u32 %v17646_v48, 16 }
 0x51d   : > { %v11832_v34 = vcombine.low %v9421_v59, %v9431_v60  ;;  %v9440_v35 = vrot.slane %v9439_v46, 4  ;;  %v9484_v60 = vshll.u32 %v18062_v26, 16 }
 0x51e   : > { %v9449_v42 = vor.u32 %v9448_v53, %v9444_v44  ;;  %v13783_v53 = vld [vmem:[%s18954_s6 + $0x220] sm:$0xff]   ;;  %v9496_v1 = vrot.slane %v9494_v10, 4 }
 0x51f   : > { %v9445_v12 = vsel %vm14295_vm5, %v9440_v35, %v9444_v44 }
 0x520   : > { %v9450_v15 = vrot.slane %v9449_v42, 4  ;;  %v11816_v42 = vcombine.low %v18012_v57, %v17584_v49  ;;  %v9486_v49 = vrot.slane %v9484_v60, 5  ;;  %v9500_v60 = vshll.u32 %v17657_v31, 16 }
 0x522   : > { %v9455_v54 = vsel %vm14295_vm5, %v9450_v15, %v9454_v30  ;;  %v18086_v15 = vld [vmem:[#allocation3 + $0x60] sm:$0xf] }
 0x523   : > { %10353 = vmatmul.mubr.bf16.vlgmr.msra.gmra.mrb[176].mxu1 %v11814_v33  ;;  %v9457_v33 = vshrl.u32 %v18046_v5, 16  ;;  %v11833_v59 = vcombine.low %v9445_v12, %v9455_v54  ;;  %v9508_v12 = vshll.u32 %v18086_v15, 16 }
 0x524   : > { %13043 = vmatpush3.bf16.msra.mxu1 %v17970_v36  ;;  %10360 = vmatprep.mubr.bf16.mxu1 %v11831_v8  ;;  %v9470_v36 = vshrl.u32 %v17612_v47, 16 }
 0x525   : > { %13044 = vmatprep.subr.bf16.mxu1 %v13774_v28  ;;  %v9459_v8 = vrot.slane %v9457_v33, 4  ;;  %v18081_v33 = vrot.slane %v9490_v55, 5 }
 0x527   : > { %v9497_v30 = vor.u32 %v9496_v1, %v18081_v33  ;;  %v19263_v1 = vld [vmem:[#allocation24_spill] sm:$0xff] }
 0x528   : > { %13045 = vmatpush3.bf16.msra.mxu1 %v13774_v28  ;;  %v9472_v28 = vrot.slane %v9470_v36, 4  ;;  %v9463_v36 = vor.u32 %v9462_v2, %v9459_v8  ;;  %v9514_v8 = vshll.u32 %v17648_v20, 16  ;;  %v9518_v2 = vshrl.u32 %v17648_v20, 16 }
 0x529   : > { %13046 = vmatprep.subr.bf16.mxu1 %v13777_v50 }
 0x52a   : > { %v9473_v22 = vor.u32 %v9472_v28, %v9468_v45  ;;  %v9464_v57 = vrot.slane %v9463_v36, 4  ;;  %v13792_v36 = vld [vmem:[%s18954_s6 + $0x238] sm:$0xff]  }
 0x52b   : > { %10361 = vmatmul.mubr.bf16.gmra.mrb[180].mxu1 %v11815_v32  ;;  %v9476_v32 = vshll.u32 %v17638_v13, 16  ;;  %v13789_v13 = vld [vmem:[%s18954_s6 + $0x230] sm:$0xff]  }
 0x52c   : > { %10368 = vmatprep.mubr.bf16.mxu1 %v11832_v34  ;;  %13047 = vmatpush3.bf16.msra.mxu1 %v13777_v50  ;;  %v9481_v50 = vshrl.u32 %v18062_v26, 16  ;;  %v9474_v46 = vrot.slane %v9473_v22, 4  ;;  %v11817_v22 = vcombine.low %v18026_v18, %v17610_v43 }
 0x52d   : > { %13048 = vmatprep.subr.bf16.mxu1 %v13780_v3  ;;  %v9478_v44 = vrot.slane %v9476_v32, 5  ;;  %v19262_v32 = vld [vmem:[#allocation21_spill] sm:$0xff] }
 0x52f   : > { %v9479_v35 = vsel %vm14295_vm5, %v9474_v46, %v9478_v44  ;;  %v9516_v46 = vrot.slane %v9514_v8, 5  ;;  %v9510_v44 = vrot.slane %v9508_v12, 5  ;;  %v9538_v8 = vshll.u32 %v17676_v7, 16 }
 0x530   : > { %13049 = vmatpush3.bf16.msra.mxu1 %v13780_v3  ;;  %v9483_v3 = vrot.slane %v9481_v50, 4  ;;  %v9469_v50 = vsel %vm14295_vm5, %v9464_v57, %v9468_v45  ;;  %v9520_v45 = vrot.slane %v9518_v2, 4  ;;  %v9542_v2 = vshrl.u32 %v17676_v7, 16 }
 0x531   : > { %13050 = vmatprep.subr.bf16.mxu1 %v13783_v53  ;;  %v11834_v18 = vcombine.low %v9469_v50, %v9479_v35 }
 0x532   : > { %v9487_v55 = vor.u32 %v9486_v49, %v9483_v3  ;;  %v9502_v49 = vrot.slane %v9500_v60, 5  ;;  %v9524_v60 = vshll.u32 %v17665_v38, 16 }
 0x533   : > { %10369 = vmatmul.mubr.bf16.gmra.mrb[184].mxu1 %v11816_v42  ;;  %v9505_v42 = vshrl.u32 %v18086_v15, 16 }
 0x534   : > { %10376 = vmatprep.mubr.bf16.mxu1 %v11833_v59  ;;  %13051 = vmatpush3.bf16.msra.mxu1 %v13783_v53  ;;  %v9488_v3 = vrot.slane %v9487_v55, 4 }
 0x535   : > { %13052 = vmatprep.subr.bf16.mxu1 %v13786_v40  ;;  %v12310_v34 = vpop.f32.mrb[112].mxu1  ;;  %v9507_v57 = vrot.slane %v9505_v42, 4 }
 0x536   : > { %v12311_v28 = vpop.f32.mrb[113].mxu1  ;;  %v9493_v55 = vsel %vm14295_vm5, %v9488_v3, %v18081_v33  ;;  %v9526_v3 = vrot.slane %v9524_v60, 5 }
 0x537   : > { %v12312_v53 = vadd.f32 %v12311_v28, %v12310_v34  ;;  %v12313_v54 = vpop.f32.mrb[114].mxu1  ;;  %v18109_v28 = vld [vmem:[#allocation3 + $0x6c] sm:$0xf]  ;;  %v9511_v50 = vor.u32 %v9510_v44, %v9507_v57  ;;  %v18129_v57 = vld [vmem:[#allocation3 + $0x78] sm:$0xf] }
 0x538   : > { %13053 = vmatpush3.bf16.msra.mxu1 %v13786_v40  ;;  %v12314_v10 = vpop.f32.mrb[115].mxu1  ;;  %v9498_v40 = vrot.slane %v9497_v30, 4  ;;  %v9521_v30 = vor.u32 %v9520_v45, %v9516_v46  ;;  %v9529_v42 = vshrl.u32 %v18109_v28, 16  ;;  %v9532_v12 = vshll.u32 %v18109_v28, 16 }
 0x539   : > { %13054 = vmatprep.subr.bf16.mxu1 %v13789_v13  ;;  %v18104_v59 = vadd.f32 %v12312_v53, %v19262_v32  ;;  %v12315_v43 = vadd.f32 %v12314_v10, %v12313_v54  ;;  %v19264_v32 = vld [vmem:[#allocation26_spill] sm:$0xff]  ;;  %v9544_v45 = vrot.slane %v9542_v2, 4 }
 0x53a   : > { %v9503_v35 = vsel %vm14295_vm5, %v9498_v40, %v9502_v49  ;;  %v9531_v38 = vrot.slane %v9529_v42, 4  ;;  %v9534_v49 = vrot.slane %v9532_v12, 5  ;;  %v9548_v42 = vshll.u32 %v17693_v4, 16  ;;  %v19266_v12 = vld [vmem:[#allocation31_spill] sm:$0xff]  ;;  %v18150_v4 = vld [vmem:[#allocation3 + $0x84] sm:$0xf] }
 0x53b   : > { %10377 = vmatmul.mubr.bf16.gmra.mrb[188].mxu1 %v11817_v22  ;;  %v18107_v31 = vadd.f32 %v12315_v43, %v19263_v1  ;;  %v11835_v40 = vcombine.low %v9493_v55, %v9503_v35  ;;  %v19265_v1 = vld [vmem:[#allocation28_spill] sm:$0xff] }
 0x53c   : > { %10384 = vmatprep.mubr.bf16.mxu1 %v11834_v18  ;;  %13055 = vmatpush3.bf16.msra.mxu1 %v13789_v13  ;;  %v11818_v13 = vcombine.low %v18046_v5, %v17612_v47  ;;  %v9522_v47 = vrot.slane %v9521_v30, 4  ;;  %v9540_v5 = vrot.slane %v9538_v8, 5  ;;  %v9562_v30 = vshll.u32 %v17678_v39, 16 }
 0x53d   : > { %13056 = vmatprep.subr.bf16.mxu1 %v13792_v36  ;;  %v12316_v34 = vpop.f32.mrb[116].mxu1  ;;  %v9566_v8 = vshrl.u32 %v17678_v39, 16  ;;  %v9535_v60 = vor.u32 %v9534_v49, %v9531_v38  ;;  %v19269_v49 = vld [vmem:[#allocation52_spill] sm:$0xff] }
 0x53e   : > { %v12317_v53 = vpop.f32.mrb[117].mxu1  ;;  %v9545_v35 = vor.u32 %v9544_v45, %v9540_v5  ;;  %v18145_v45 = vrot.slane %v9562_v30, 5  ;;  %v9590_v30 = vshrl.u32 %v19269_v49, 16 }
 0x53f   : > { %v12318_v54 = vadd.f32 %v12317_v53, %v12316_v34  ;;  %v12319_v22 = vpop.f32.mrb[118].mxu1  ;;  %v9527_v53 = vsel %vm14295_vm5, %v9522_v47, %v9526_v3  ;;  %v19267_v3 = vld [vmem:[#allocation32_spill] sm:$0xff] }
 0x540   : > { %13057 = vmatpush3.bf16.msra.mxu1 %v13792_v36  ;;  %v12320_v10 = vpop.f32.mrb[119].mxu1  ;;  %v9512_v36 = vrot.slane %v9511_v50, 4  ;;  %v9546_v47 = vrot.slane %v9545_v35, 4 }
 0x541   : > { %v18124_v43 = vadd.f32 %v12318_v54, %v19264_v32  ;;  %v12321_v18 = vadd.f32 %v12320_v10, %v12319_v22  ;;  %v9553_v22 = vshrl.u32 %v18129_v57, 16  ;;  %v11819_v10 = vcombine.low %v18062_v26, %v17646_v48 }
 0x542   : > { %v9517_v50 = vsel %vm14295_vm5, %v9512_v36, %v9516_v46  ;;  %v9536_v46 = vrot.slane %v9535_v60, 4  ;;  %v9550_v36 = vrot.slane %v9548_v42, 5  ;;  %v9577_v42 = vshrl.u32 %v18150_v4, 16 }
 0x543   : > { %10385 = vmatmul.mubr.bf16.gmra.mrb[192].mxu1 %v11818_v13  ;;  %v18127_v33 = vadd.f32 %v12321_v18, %v19265_v1  ;;  %v9556_v13 = vshll.u32 %v18129_v57, 16  ;;  %v9568_v1 = vrot.slane %v9566_v8, 4  ;;  %v9555_v48 = vrot.slane %v9553_v22, 4 }
 0x544   : > { %10392 = vmatprep.mubr.bf16.mxu1 %v11835_v40  ;;  %v11836_v40 = vcombine.low %v9517_v50, %v9527_v53  ;;  %v9551_v53 = vsel %vm14295_vm5, %v9546_v47, %v9550_v36  ;;  %v11820_v22 = vcombine.low %v18086_v15, %v17648_v20  ;;  %v19270_v50 = vld [vmem:[#allocation50_spill] sm:$0xff]  ;;  %v9592_v15 = vrot.slane %v9590_v30, 4 }
 0x545   : > { %v12322_v44 = vpop.f32.mrb[120].mxu1  ;;  %v9558_v26 = vrot.slane %v9556_v13, 5  ;;  %v9569_v35 = vor.u32 %v9568_v1, %v18145_v45  ;;  %v9572_v60 = vshll.u32 %v19270_v50, 16  ;;  %v11821_v30 = vcombine.low %v18109_v28, %v17676_v7 }
 0x546   : > { %v12323_v34 = vpop.f32.mrb[121].mxu1  ;;  %v9596_v28 = vshll.u32 %v17729_v52, 16 }
 0x547   : > { %v12324_v2 = vadd.f32 %v12323_v34, %v12322_v44  ;;  %v12325_v54 = vpop.f32.mrb[122].mxu1  ;;  %v9586_v34 = vshll.u32 %v19269_v49, 16  ;;  %v9559_v13 = vor.u32 %v9558_v26, %v9555_v48  ;;  %v9570_v20 = vrot.slane %v9569_v35, 4  ;;  %v18169_v48 = vld [vmem:[#allocation3 + $0xd0] sm:$0xf] }
 0x548   : > { %v12326_v55 = vpop.f32.mrb[123].mxu1  ;;  %v18171_v26 = vld [vmem:[#allocation3 + $0xd4] sm:$0x1]  ;;  %v9915_v49 = vrot.slane %v18169_v48, 5 }
 0x549   : > { %v18143_v32 = vadd.f32 %v12324_v2, %v19266_v12  ;;  %v12327_v18 = vadd.f32 %v12326_v55, %v12325_v54  ;;  %v9580_v12 = vshll.u32 %v18150_v4, 16  ;;  %v9560_v36 = vrot.slane %v9559_v13, 4 }
 0x54b   : > { %10393 = vmatmul.mubr.bf16.gmra.mrb[196].mxu1 %v11819_v10  ;;  %v18148_v44 = vadd.f32 %v12327_v18, %v19267_v3  ;;  %v9541_v10 = vsel %vm14295_vm5, %v9536_v46, %v9540_v5  ;;  %v19271_v18 = vld [vmem:[#allocation8_spill] sm:$0xff]  ;;  %v18167_v3 = vrot.slane %v9586_v34, 5  ;;  %v19273_v5 = vld [vmem:[#allocation9_spill] sm:$0xff]  ;;  %v9579_v34 = vrot.slane %v9577_v42, 4 }
 0x54c   : > { %10400 = vmatprep.mubr.bf16.mxu1 %v11836_v40  ;;  %v11837_v1 = vcombine.low %v9541_v10, %v9551_v53  ;;  %v9574_v53 = vrot.slane %v9572_v60, 5  ;;  %v9917_v10 = vrot.slane %v9915_v49, 4  ;;  %v9614_v60 = vshrl.u32 %v17715_v9, 16 }
 0x54d   : > { %19268 = vst [vmem:[#allocation10_spill] sm:$0xff] %v18148_v44  ;;  %v12328_v38 = vpop.f32.mrb[124].mxu1  ;;  %v9565_v7 = vsel %vm14295_vm5, %v9560_v36, %v18145_v45  ;;  %v18209_v44 = vld [vmem:[#allocation3 + $0x9c] sm:$0xf] }
 0x54e   : > { %v12329_v2 = vpop.f32.mrb[125].mxu1  ;;  %v9575_v13 = vsel %vm14295_vm5, %v9570_v20, %v9574_v53 }
 0x54f   : > { %v12330_v8 = vadd.f32 %v12329_v2, %v12328_v38  ;;  %v12331_v54 = vpop.f32.mrb[126].mxu1  ;;  %v9759_v38 = vld [vmem:[#allocation3 + $0xcc] sm:$0xe]  ;;  %v9918_v2 = vrot.slane %v18171_v26, 5  ;;  %v11838_v45 = vcombine.low %v9565_v7, %v9575_v13  ;;  %v11822_v7 = vcombine.low %v18129_v57, %v17678_v39 }
 0x550   : > { %v12332_v55 = vpop.f32.mrb[127].mxu1 }
 0x551   : > { %v18165_v40 = vadd.f32 %v12330_v8, %v19271_v18  ;;  %v12333_v47 = vadd.f32 %v12332_v55, %v12331_v54  ;;  %v9582_v8 = vrot.slane %v9580_v12, 5  ;;  %v11813_v54 = vrot.slane %v9759_v38, 9 }
 0x552   : > { %v9610_v55 = vshll.u32 %v17715_v9, 16  ;;  %v9593_v18 = vor.u32 %v9592_v15, %v18167_v3 }
 0x553   : > { %19272 = vst [vmem:[#allocation11_spill] sm:$0xff] %v18165_v40  ;;  %10401 = vmatmul.mubr.bf16.gmra.mrb[200].mxu1 %v11820_v22  ;;  %v18174_v46 = vadd.f32 %v12333_v47, %v19273_v5  ;;  %v18180_v22 = vld [vmem:[#allocation3 + $0x90] sm:$0xf]  ;;  %v18189_v42 = vsel %vm14711_vm0, %v11813_v54, %v9915_v49  ;;  %v9583_v15 = vor.u32 %v9582_v8, %v9579_v34  ;;  %v19275_v49 = vld [vmem:[#allocation7_spill] sm:$0xff]  ;;  %v9598_v8 = vrot.slane %v9596_v28, 5  ;;  %v19279_v28 = vld [vmem:[#allocation56_spill] sm:$0xff] }
 0x554   : > { %10408 = vmatprep.mubr.bf16.mxu1 %v11837_v1  ;;  %v18197_v1 = vsel %vm14711_vm0, %v9917_v10, %v9918_v2  ;;  %v9601_v9 = vshrl.u32 %v18180_v22, 16  ;;  %v9604_v5 = vshll.u32 %v18180_v22, 16  ;;  %v9594_v52 = vrot.slane %v9593_v18, 4  ;;  %v19276_v2 = vld [vmem:[#allocation33_spill] sm:$0xff] }
 0x555   : > { %19274 = vst [vmem:[#allocation13_spill] sm:$0xff] %v18174_v46  ;;  %v12334_v35 = vpop.f32.mrb[128].mxu1  ;;  %v9612_v36 = vrot.slane %v9610_v55, 5  ;;  %v9584_v34 = vrot.slane %v9583_v15, 4 }
 0x556   : > { %v12335_v50 = vpop.f32.mrb[129].mxu1  ;;  %v9606_v46 = vrot.slane %v9604_v5, 5 }
 0x557   : > { %v12336_v12 = vadd.f32 %v12335_v50, %v12334_v35  ;;  %v12337_v47 = vpop.f32.mrb[130].mxu1  ;;  %v9616_v35 = vrot.slane %v9614_v60, 4  ;;  %v9603_v50 = vrot.slane %v9601_v9, 4  ;;  %v9589_v9 = vsel %vm14295_vm5, %v9584_v34, %v18167_v3 }
 0x558   : > { %v12338_v20 = vpop.f32.mrb[131].mxu1 }
 0x559   : > { %v18204_v53 = vadd.f32 %v12336_v12, %v19275_v49  ;;  %v12339_v54 = vadd.f32 %v12338_v20, %v12337_v47  ;;  %v9599_v12 = vsel %vm14295_vm5, %v9594_v52, %v9598_v8  ;;  %v9617_v13 = vor.u32 %v9616_v35, %v9612_v36 }
 0x55a   : > { %v9620_v20 = vshll.u32 %v19279_v28, 16  ;;  %v9607_v5 = vor.u32 %v9606_v46, %v9603_v50  ;;  %v9625_v49 = vshrl.u32 %v18209_v44, 16  ;;  %v18229_v28 = vld [vmem:[#allocation3 + $0xa8] sm:$0xf] }
 0x55b   : > { %10409 = vmatmul.mubr.bf16.gmra.mrb[204].mxu1 %v11821_v30  ;;  %v18207_v10 = vadd.f32 %v12339_v54, %v19276_v2  ;;  %v19278_v30 = vld [vmem:[#allocation60_spill] sm:$0xff]  ;;  %v9628_v54 = vshll.u32 %v18209_v44, 16  ;;  %v9618_v35 = vrot.slane %v9617_v13, 4  ;;  %v19282_v2 = vld [vmem:[#allocation35_spill] sm:$0xff] }
 0x55c   : > { %10416 = vmatprep.mubr.bf16.mxu1 %v11838_v45  ;;  %v9634_v18 = vshll.u32 %v19278_v30, 16  ;;  %v9638_v55 = vshrl.u32 %v19278_v30, 16  ;;  %v19280_v45 = vld [vmem:[#allocation34_spill] sm:$0xff]  ;;  %v9608_v30 = vrot.slane %v9607_v5, 4  ;;  %v9622_v3 = vrot.slane %v9620_v20, 5  ;;  %v19285_v20 = vld [vmem:[#allocation65_spill] sm:$0xff] }
 0x55d   : > { %19277 = vst [vmem:[#allocation12_spill] sm:$0xff] %v18207_v10  ;;  %v12340_v40 = vpop.f32.mrb[132].mxu1  ;;  %v9627_v46 = vrot.slane %v9625_v49, 4  ;;  %v9630_v34 = vrot.slane %v9628_v54, 5  ;;  %v9644_v5 = vshll.u32 %v19285_v20, 16 }
 0x55e   : > { %v12341_v38 = vpop.f32.mrb[133].mxu1  ;;  %v9636_v39 = vrot.slane %v9634_v18, 5  ;;  %v9640_v57 = vrot.slane %v9638_v55, 4  ;;  %v9613_v54 = vsel %vm14295_vm5, %v9608_v30, %v9612_v36 }
 0x55f   : > { %v12342_v60 = vadd.f32 %v12341_v38, %v12340_v40  ;;  %v12343_v47 = vpop.f32.mrb[134].mxu1  ;;  %v11839_v38 = vcombine.low %v9589_v9, %v9599_v12  ;;  %v9646_v36 = vrot.slane %v9644_v5, 5 }
 0x560   : > { %v12344_v15 = vpop.f32.mrb[135].mxu1  ;;  %v9641_v12 = vor.u32 %v9640_v57, %v9636_v39 }
 0x561   : > { %v18224_v52 = vadd.f32 %v12342_v60, %v19280_v45  ;;  %v12345_v40 = vadd.f32 %v12344_v15, %v12343_v47  ;;  %v9623_v60 = vsel %vm14295_vm5, %v9618_v35, %v9622_v3  ;;  %v19284_v47 = vld [vmem:[#allocation61_spill] sm:$0xff]  ;;  %v9631_v45 = vor.u32 %v9630_v34, %v9627_v46  ;;  %v19286_v35 = vld [vmem:[#allocation36_spill] sm:$0xff]  ;;  %v18247_v34 = vld [vmem:[#allocation3 + $0xb4] sm:$0xf] }
 0x562   : > { %v9658_v13 = vshll.u32 %v19284_v47, 16  ;;  %v9662_v18 = vshrl.u32 %v19284_v47, 16  ;;  %v13862_v15 = vld [vmem:[#allocation3 + $0x88] sm:$0xf]  ;;  %v9642_v3 = vrot.slane %v9641_v12, 4  ;;  %v9682_v12 = vshll.u32 %v17786_v16, 16 }
 0x563   : > { %19281 = vst [vmem:[#allocation14_spill] sm:$0xff] %v18224_v52  ;;  %10417 = vmatmul.mubr.bf16.gmra.mrb[208].mxu1 %v11822_v7  ;;  %v18227_v8 = vadd.f32 %v12345_v40, %v19282_v2  ;;  %v11823_v9 = vcombine.low %v18150_v4, %v13862_v15  ;;  %v9649_v40 = vshrl.u32 %v18229_v28, 16  ;;  %v19288_v47 = vld [vmem:[#allocation37_spill] sm:$0xff]  ;;  %v9632_v20 = vrot.slane %v9631_v45, 4 }
 0x564   : > { %10424 = vmatprep.mubr.bf16.mxu1 %v11839_v38  ;;  %v9652_v38 = vshll.u32 %v18229_v28, 16  ;;  %v9664_v4 = vrot.slane %v9662_v18, 4  ;;  %v9676_v5 = vshll.u32 %v18247_v34, 16 }
 0x565   : > { %19283 = vst [vmem:[#allocation15_spill] sm:$0xff] %v18227_v8  ;;  %v12346_v50 = vpop.f32.mrb[136].mxu1  ;;  %v9651_v30 = vrot.slane %v9649_v40, 4  ;;  %v9637_v40 = vsel %vm14295_vm5, %v9632_v20, %v9636_v39 }
 0x566   : > { %v12347_v10 = vpop.f32.mrb[137].mxu1  ;;  %v9654_v46 = vrot.slane %v9652_v38, 5 }
 0x567   : > { %v12348_v55 = vadd.f32 %v12347_v10, %v12346_v50  ;;  %v12349_v7 = vpop.f32.mrb[138].mxu1  ;;  %v11840_v10 = vcombine.low %v9613_v54, %v9623_v60  ;;  %v9660_v50 = vrot.slane %v9658_v13, 5  ;;  %v9686_v13 = vshrl.u32 %v17786_v16, 16  ;;  %v13863_v54 = vld [vmem:[#allocation3 + $0x94] sm:$0xf] }
 0x568   : > { %v12350_v49 = vpop.f32.mrb[139].mxu1  ;;  %v11824_v45 = vcombine.low %v18180_v22, %v13863_v54  ;;  %v9655_v38 = vor.u32 %v9654_v46, %v9651_v30  ;;  %v9678_v54 = vrot.slane %v9676_v5, 5  ;;  %v18266_v30 = vld [vmem:[#allocation3 + $0xc0] sm:$0xf] }
 0x569   : > { %v18242_v57 = vadd.f32 %v12348_v55, %v19286_v35  ;;  %v12351_v2 = vadd.f32 %v12350_v49, %v12349_v7  ;;  %v9647_v55 = vsel %vm14295_vm5, %v9642_v3, %v9646_v36  ;;  %v9665_v60 = vor.u32 %v9664_v4, %v9660_v50  ;;  %v13864_v35 = vld [vmem:[#allocation3 + $0xb0] sm:$0x1]  ;;  %v19292_v36 = vld [vmem:[#allocation39_spill] sm:$0xff] }
 0x56a   : > { %v18261_v4 = vrot.slane %v9682_v12, 5  ;;  %v9656_v39 = vrot.slane %v9655_v38, 4  ;;  %v18272_v12 = vld [vmem:[#allocation3 + $0xc4] sm:$0xf]  ;;  %v9700_v38 = vshll.u32 %v18266_v30, 16 }
 0x56b   : > { %19287 = vst [vmem:[#allocation16_spill] sm:$0xff] %v18242_v57  ;;  %10425 = vmatmul.mubr.bf16.gmra.mrb[212].mxu1 %v11823_v9  ;;  %v18245_v15 = vadd.f32 %v12351_v2, %v19288_v47  ;;  %v9673_v9 = vshrl.u32 %v18247_v34, 16  ;;  %v9668_v2 = vshll.u32 %v13864_v35, 16  ;;  %v9688_v47 = vrot.slane %v9686_v13, 4  ;;  %v13866_v35 = vld [vmem:[#allocation3 + $0xa0] sm:$0xf] }
 0x56c   : > { %10432 = vmatprep.mubr.bf16.mxu1 %v11840_v10  ;;  %v19290_v10 = vld [vmem:[#allocation38_spill] sm:$0xff]  ;;  %v9706_v13 = vshll.u32 %v18272_v12, 16  ;;  %v19298_v57 = vld [vmem:[#allocation45_spill] sm:$0xff] }
 0x56d   : > { %19289 = vst [vmem:[#allocation17_spill] sm:$0xff] %v18245_v15  ;;  %v12352_v8 = vpop.f32.mrb[140].mxu1  ;;  %v9675_v22 = vrot.slane %v9673_v9, 4  ;;  %v9670_v20 = vrot.slane %v9668_v2, 5  ;;  %v9710_v9 = vshrl.u32 %v18272_v12, 16  ;;  %v11825_v2 = vcombine.low %v18209_v44, %v13866_v35 }
 0x56e   : > { %v12353_v52 = vpop.f32.mrb[141].mxu1 }
 0x56f   : > { %v12354_v18 = vadd.f32 %v12353_v52, %v12352_v8  ;;  %v12355_v7 = vpop.f32.mrb[142].mxu1  ;;  %v11841_v52 = vcombine.low %v9637_v40, %v9647_v55  ;;  %v9666_v8 = vrot.slane %v9665_v60, 4  ;;  %v9689_v60 = vor.u32 %v9688_v47, %v18261_v4 }
 0x570   : > { %v12356_v49 = vpop.f32.mrb[143].mxu1  ;;  %v9697_v40 = vshrl.u32 %v18266_v30, 16 }
 0x571   : > { %v18259_v3 = vadd.f32 %v12354_v18, %v19290_v10  ;;  %v12357_v16 = vadd.f32 %v12356_v49, %v12355_v7  ;;  %v9692_v18 = vshll.u32 %v17805_v11, 16  ;;  %v9671_v55 = vsel %vm14295_vm5, %v9666_v8, %v9670_v20 }
 0x572   : > { %v9661_v10 = vsel %vm14295_vm5, %v9656_v39, %v9660_v50  ;;  %v9708_v20 = vrot.slane %v9706_v13, 5  ;;  %v9699_v35 = vrot.slane %v9697_v40, 4 }
 0x573   : > { %19291 = vst [vmem:[#allocation18_spill] sm:$0xff] %v18259_v3  ;;  %10433 = vmatmul.mubr.bf16.gmra.mrb[216].mxu1 %v11824_v45  ;;  %v18264_v15 = vadd.f32 %v12357_v16, %v19292_v36  ;;  %v9679_v45 = vor.u32 %v9678_v54, %v9675_v22  ;;  %v19294_v16 = vld [vmem:[#allocation40_spill] sm:$0xff]  ;;  %v11842_v47 = vcombine.low %v9661_v10, %v9671_v55  ;;  %v18284_v36 = vld [vmem:[#allocation3 + $0xcc] sm:$0xf]  ;;  %v9690_v22 = vrot.slane %v9689_v60, 4 }
 0x574   : > { %10440 = vmatprep.mubr.bf16.mxu1 %v11841_v52  ;;  %v9694_v54 = vrot.slane %v9692_v18, 5  ;;  %v9702_v3 = vrot.slane %v9700_v38, 5  ;;  %v9721_v50 = vshrl.u32 %v18284_v36, 16  ;;  %v9724_v39 = vshll.u32 %v18284_v36, 16  ;;  %v13867_v18 = vld [vmem:[#allocation3 + $0xac] sm:$0xf] }
 0x575   : > { %19293 = vst [vmem:[#allocation19_spill] sm:$0xff] %v18264_v15  ;;  %v12358_v46 = vpop.f32.mrb[144].mxu1  ;;  %v9680_v44 = vrot.slane %v9679_v45, 4  ;;  %v9730_v55 = vshll.u32 %v18169_v48, 16  ;;  %v11826_v13 = vcombine.low %v18229_v28, %v13867_v18  ;;  %v13868_v10 = vld [vmem:[#allocation3 + $0xc8] sm:$0x1] }
 0x576   : > { %v12359_v7 = vpop.f32.mrb[145].mxu1 }
 0x577   : > { %v12360_v5 = vadd.f32 %v12359_v7, %v12358_v46  ;;  %v12361_v49 = vpop.f32.mrb[146].mxu1  ;;  %v9712_v46 = vrot.slane %v9710_v9, 4  ;;  %v19296_v7 = vld [vmem:[#allocation41_spill] sm:$0xff]  ;;  %v9695_v9 = vsel %vm14295_vm5, %v9690_v22, %v9694_v54  ;;  %v9685_v38 = vsel %vm14295_vm5, %v9680_v44, %v18261_v4 }
 0x578   : > { %v12362_v11 = vpop.f32.mrb[147].mxu1  ;;  %v11843_v22 = vcombine.low %v9685_v38, %v9695_v9  ;;  %v13869_v9 = vld [vmem:[#allocation3 + $0xb8] sm:$0xf] }
 0x579   : > { %v18282_v52 = vadd.f32 %v12360_v5, %v19294_v16  ;;  %v12363_v8 = vadd.f32 %v12362_v11, %v12361_v49  ;;  %v9734_v5 = vshrl.u32 %v18169_v48, 16  ;;  %v9713_v11 = vor.u32 %v9712_v46, %v9708_v20  ;;  %v19299_v46 = vld [vmem:[#allocation48_spill] sm:$0xff] }
 0x57a   : > { %v9716_v16 = vshll.u32 %v13868_v10, 16 }
 0x57b   : > { %19295 = vst [vmem:[#allocation22_spill] sm:$0xff] %v18282_v52  ;;  %10441 = vmatmul.mubr.bf16.gmra.mrb[220].mxu1 %v11825_v2  ;;  %v18287_v15 = vadd.f32 %v12363_v8, %v19296_v7  ;;  %v9703_v2 = vor.u32 %v9702_v3, %v9699_v35  ;;  %v9726_v7 = vrot.slane %v9724_v39, 5  ;;  %v9736_v52 = vrot.slane %v9734_v5, 4 }
 0x57c   : > { %10448 = vmatprep.mubr.bf16.mxu1 %v11842_v47  ;;  %v9723_v47 = vrot.slane %v9721_v50, 4  ;;  %v9714_v54 = vrot.slane %v9713_v11, 4  ;;  %v9718_v4 = vrot.slane %v9716_v16, 5  ;;  %v9740_v50 = vshll.u32 %v18171_v26, 16 }
 0x57d   : > { %19297 = vst [vmem:[#allocation20_spill] sm:$0xff] %v18287_v15  ;;  %v12364_v49 = vpop.f32.mrb[148].mxu1  ;;  %v9732_v15 = vrot.slane %v9730_v55, 5  ;;  %v9704_v3 = vrot.slane %v9703_v2, 4 }
 0x57e   : > { %v12365_v60 = vpop.f32.mrb[149].mxu1  ;;  %v9727_v44 = vor.u32 %v9726_v7, %v9723_v47  ;;  %v9742_v2 = vrot.slane %v9740_v50, 5 }
 0x57f   : > { %v12366_v45 = vadd.f32 %v12365_v60, %v12364_v49  ;;  %v12367_v40 = vpop.f32.mrb[150].mxu1  ;;  %v9737_v35 = vor.u32 %v9736_v52, %v9732_v15  ;;  %v19300_v52 = vld [vmem:[#allocation59_spill] sm:$0xff] }
 0x580   : > { %v12368_v8 = vpop.f32.mrb[151].mxu1 }
 0x581   : > { %v18300_v28 = vadd.f32 %v12366_v45, %v19298_v57  ;;  %v12369_v18 = vadd.f32 %v12368_v8, %v12367_v40  ;;  %v9719_v57 = vsel %vm14295_vm5, %v9714_v54, %v9718_v4  ;;  %v9709_v45 = vsel %vm14295_vm5, %v9704_v3, %v9708_v20  ;;  %v19301_v8 = vld [vmem:[#allocation64_spill] sm:$0xff] }
 0x582   : > { %v9728_v40 = vrot.slane %v9727_v44, 4  ;;  %v9738_v38 = vrot.slane %v9737_v35, 4  ;;  %v11844_v16 = vcombine.low %v9709_v45, %v9719_v57  ;;  %v11828_v44 = vcombine.low %v18266_v30, %v18272_v12 }
 0x583   : > { %10449 = vmatmul.mubr.bf16.gmra.mrb[224].mxu1 %v11826_v13  ;;  %v18303_v49 = vadd.f32 %v12369_v18, %v19299_v46  ;;  %v11827_v13 = vcombine.low %v18247_v34, %v13869_v9  ;;  %v9817_v57 = vrot.slane %v17993_v17, 5  ;;  %v11829_v30 = vcombine.low %v18284_v36, %v18169_v48 }
 0x584   : > { %10456 = vmatprep.mubr.bf16.mxu1 %v11843_v22  ;;  %v9733_v34 = vsel %vm14295_vm5, %v9728_v40, %v9732_v15  ;;  %v9743_v7 = vsel %vm14295_vm5, %v9738_v38, %v9742_v2  ;;  %v9810_v22 = vrot.slane %v17979_v58, 5  ;;  %v9813_v58 = vrot.slane %v17997_v0, 5  ;;  %v9745_v40 = vld [vmem:[#allocation3 + $0x24] sm:$0xe] }
 0x585   : > { %v12370_v39 = vpop.f32.mrb[152].mxu1  ;;  %v11845_v4 = vcombine.low %v9733_v34, %v9743_v7  ;;  %v9819_v17 = vrot.slane %v9817_v57, 4  ;;  %v9820_v48 = vrot.slane %v18010_v14, 5  ;;  %v11799_v2 = vrot.slane %v9745_v40, 9  ;;  %v19315_v40 = vld [vmem:[#allocation55_spill] sm:$0xff] }
 0x586   : > { %v12371_v55 = vpop.f32.mrb[153].mxu1  ;;  %v9812_v15 = vrot.slane %v9810_v22, 4 }
 0x587   : > { %v12372_v5 = vadd.f32 %v12371_v55, %v12370_v39  ;;  %v12373_v60 = vpop.f32.mrb[154].mxu1  ;;  %v9744_v39 = vld [vmem:[#allocation3 + $0x18] sm:$0xe] }
 0x588   : > { %v12374_v11 = vpop.f32.mrb[155].mxu1  ;;  %v11798_v12 = vrot.slane %v9744_v39, 9  ;;  %v19306_v39 = vld [vmem:[#allocation46_spill] sm:$0xff] }
 0x589   : > { %v18312_v10 = vadd.f32 %v12372_v5, %v19300_v52  ;;  %v12375_v26 = vadd.f32 %v12374_v11, %v12373_v60  ;;  %v9821_v52 = vsel %vm14711_vm0, %v9819_v17, %v9820_v48  ;;  %v19314_v17 = vld [vmem:[#allocation53_spill] sm:$0xff] }
 0x58a   : > { %v19316_v48 = vcombine.low %v19314_v17, %v19315_v40 }
 0x58b   : > { %10457 = vmatmul.mubr.bf16.gmra.mrb[228].mxu1 %v11827_v13  ;;  %v18315_v47 = vadd.f32 %v12375_v26, %v19301_v8  ;;  %v9818_v8 = vsel %vm14711_vm0, %v11799_v2, %v9817_v57  ;;  %v19309_v57 = vld [vmem:[#allocation49_spill] sm:$0xff]  ;;  %v19318_v2 = vld [vmem:[#allocation62_spill] sm:$0xff] }
 0x58c   : > { %10464 = vmatprep.mubr.bf16.mxu1 %v11844_v16  ;;  %v11847_v7 = vcombine.low %v9818_v8, %v9821_v52  ;;  %v19324_v8 = vld [vmem:[#allocation67_spill] sm:$0xff] }
 0x58d   : > { %v12376_v20 = vpop.f32.mrb[156].mxu1 }
 0x58e   : > { %v12377_v18 = vpop.f32.mrb[157].mxu1 }
 0x58f   : > { %v12378_v54 = vadd.f32 %v12377_v18, %v12376_v20  ;;  %v12379_v46 = vpop.f32.mrb[158].mxu1  ;;  %v19302_v18 = vld [vmem:[#allocation42_spill] sm:$0xff] }
 0x590   : > { %v12380_v3 = vpop.f32.mrb[159].mxu1 }
 0x591   : > { %v18325_v35 = vadd.f32 %v12378_v54, %v17814_v21  ;;  %v12381_v50 = vadd.f32 %v12380_v3, %v12379_v46  ;;  %v9814_v21 = vsel %vm14711_vm0, %v9812_v15, %v9813_v58 }
 0x593   : > { %10465 = vmatmul.mubr.bf16.gmra.mrb[232].mxu1 %v11828_v44  ;;  %v18328_v24 = vadd.f32 %v12381_v50, %v17831_v25  ;;  %v9811_v25 = vsel %vm14711_vm0, %v11798_v12, %v9810_v22  ;;  %v19303_v22 = vld [vmem:[#allocation43_spill] sm:$0xff] }
 0x594   : > { %10472 = vmatprep.mubr.bf16.mxu1 %v11845_v4  ;;  %v11846_v45 = vcombine.low %v9811_v25, %v9814_v21  ;;  %v19304_v54 = vcombine.low %v19302_v18, %v19303_v22  ;;  %v19311_v25 = vld [vmem:[#allocation51_spill] sm:$0xff]  ;;  %v19329_v18 = vld [vmem:[#allocation69_spill] sm:$0xff]  ;;  %v19330_v22 = vld [vmem:[#allocation70_spill] sm:$0xff] }
 0x595   : > { %v12382_v55 = vpop.f32.mrb[160].mxu1 }
 0x596   : > { %v12383_v5 = vpop.f32.mrb[161].mxu1 }
 0x597   : > { %v12384_v60 = vadd.f32 %v12383_v5, %v12382_v55  ;;  %v12385_v9 = vpop.f32.mrb[162].mxu1  ;;  %v19308_v55 = vld [vmem:[#allocation47_spill] sm:$0xff] }
 0x598   : > { %v12386_v13 = vpop.f32.mrb[163].mxu1  ;;  %v19310_v5 = vcombine.low %v19308_v55, %v19309_v57 }
 0x599   : > { %v18339_v11 = vadd.f32 %v12384_v60, %v17878_v63  ;;  %v12387_v0 = vadd.f32 %v12386_v13, %v12385_v9 }
 0x59b   : > { %10473 = vmatmul.mubr.bf16.gmra.mrb[236].mxu1 %v11829_v30  ;;  %v18343_v36 = vadd.f32 %v12387_v0, %v17882_v27  ;;  %v19312_v0 = vld [vmem:[#allocation54_spill] sm:$0xff] }
 0x59c   : > { %13058 = vmatprep.mubr.bf16.mxu1 %v11846_v45  ;;  %v19313_v45 = vcombine.low %v19311_v25, %v19312_v0 }
 0x59d   : > { %v12388_v38 = vpop.f32.mrb[164].mxu1 }
 0x59e   : > { %v12389_v26 = vpop.f32.mrb[165].mxu1 }
 0x59f   : > { %v12390_v16 = vadd.f32 %v12389_v26, %v12388_v38  ;;  %v12391_v63 = vpop.f32.mrb[166].mxu1  ;;  %v19317_v38 = vld [vmem:[#allocation57_spill] sm:$0xff]  ;;  %v19320_v26 = vld [vmem:[#allocation58_spill] sm:$0xff] }
 0x5a0   : > { %v12392_v34 = vpop.f32.mrb[167].mxu1  ;;  %v19319_v52 = vcombine.low %v19317_v38, %v19318_v2 }
 0x5a1   : > { %v18350_v20 = vadd.f32 %v12390_v16, %v17888_v23  ;;  %v12393_v14 = vadd.f32 %v12392_v34, %v12391_v63  ;;  %v19305_v23 = vld [vmem:[#allocation44_spill] sm:$0xff]  ;;  %v19321_v16 = vld [vmem:[#allocation63_spill] sm:$0xff]  ;;  %v19323_v63 = vld [vmem:[#allocation66_spill] sm:$0xff] }
 0x5a2   : > { %v19307_v58 = vcombine.low %v19305_v23, %v19306_v39  ;;  %v19325_v34 = vcombine.low %v19323_v63, %v19324_v8  ;;  %v19341_v8 = vld [vmem:[#allocation13_spill] sm:$0xff] }
 0x5a3   : > { %13059 = vmatmul.mubr.bf16.vlgmr.msra.gmra.mrb[80].mxu1 %v11847_v7  ;;  %v18353_v27 = vadd.f32 %v12393_v14, %v17900_v62  ;;  %v19326_v7 = vld [vmem:[#allocation68_spill] sm:$0xff]  ;;  %v19328_v14 = vcombine.low %v17811_v51, %v17818_v41 }
 0x5a4   : > { %13062 = vmatprep.mubr.bf16.mxu1 %v19304_v54  ;;  %v19331_v54 = vcombine.low %v19329_v18, %v19330_v22 }
 0x5a6   : > { %v12394_v46 = vpop.f32.mrb[168].mxu1 }
 0x5a7   : > { %v12395_v4 = vpop.f32.mrb[169].mxu1 }
 0x5a8   : > { %v12396_v3 = vadd.f32 %v12395_v4, %v12394_v46  ;;  %v12397_v44 = vpop.f32.mrb[170].mxu1  ;;  %v19332_v46 = vld [vmem:[#allocation71_spill] sm:$0xff]  ;;  %v19333_v4 = vld [vmem:[#allocation72_spill] sm:$0xff] }
 0x5a9   : > { %v12398_v61 = vpop.f32.mrb[171].mxu1 }
 0x5aa   : > { %v18359_v50 = vadd.f32 %v12396_v3, %v17908_v6  ;;  %v12399_v15 = vadd.f32 %v12398_v61, %v12397_v44  ;;  %v19334_v3 = vcombine.low %v19332_v46, %v19333_v4  ;;  %v19335_v44 = vld [vmem:[#allocation73_spill] sm:$0xff]  ;;  %v19336_v61 = vld [vmem:[#allocation74_spill] sm:$0xff]  ;;  %v19342_v46 = vld [vmem:[#allocation12_spill] sm:$0xff] }
 0x5ab   : > { %13063 = vmatmul.mubr.bf16.gmra.mrb[84].mxu1 %v19307_v58 }
 0x5ac   : > { %v18365_v62 = vadd.f32 %v12399_v15, %v17916_v29  ;;  %13066 = vmatprep.mubr.bf16.mxu1 %v19310_v5  ;;  %v19337_v15 = vcombine.low %v19335_v44, %v19336_v61 }
 0x5ae   : > { %v12400_v30 = vpop.f32.mrb[172].mxu1 }
 0x5af   : > { %v12401_v12 = vpop.f32.mrb[173].mxu1 }
 0x5b0   : > { %v12402_v21 = vadd.f32 %v12401_v12, %v12400_v30  ;;  %v12403_v60 = vpop.f32.mrb[174].mxu1 }
 0x5b1   : > { %v12404_v9 = vpop.f32.mrb[175].mxu1 }
 0x5b2   : > { %v18371_v6 = vadd.f32 %v12402_v21, %v17930_v56  ;;  %v12405_v13 = vadd.f32 %v12404_v9, %v12403_v60  ;;  %v19322_v56 = vcombine.low %v19320_v26, %v19321_v16 }
 0x5b3   : > { %13067 = vmatmul.mubr.bf16.gmra.mrb[88].mxu1 %v19313_v45 }
 0x5b4   : > { %v18377_v29 = vadd.f32 %v12405_v13, %v17938_v37  ;;  %13070 = vmatprep.mubr.bf16.mxu1 %v19316_v48  ;;  %v19327_v37 = vcombine.low %v17794_v19, %v19326_v7  ;;  %v19338_v19 = vcombine.low %v18189_v42, %v18197_v1  ;;  %v19339_v48 = vld [vmem:[#allocation10_spill] sm:$0xff] }
 0x5bb   : > { %13071 = vmatmul.mubr.bf16.gmra.mrb[92].mxu1 %v19319_v52 }
 0x5bc   : > { %13074 = vmatprep.mubr.bf16.mxu1 %v19322_v56 }
 0x5c3   : > { %13075 = vmatmul.mubr.bf16.gmra.mrb[96].mxu1 %v19325_v34 }
 0x5c4   : > { %13078 = vmatprep.mubr.bf16.mxu1 %v19327_v37 }
 0x5cb   : > { %13079 = vmatmul.mubr.bf16.gmra.mrb[100].mxu1 %v19328_v14 }
 0x5cc   : > { %13082 = vmatprep.mubr.bf16.mxu1 %v19331_v54 }
 0x5d3   : > { %13083 = vmatmul.mubr.bf16.gmra.mrb[104].mxu1 %v19334_v3 }
 0x5d4   : > { %13086 = vmatprep.mubr.bf16.mxu1 %v19337_v15 }
 0x5db   : > { %13087 = vmatmul.mubr.bf16.gmra.mrb[108].mxu1 %v19338_v19 }
 0x5f6   : > { %v12446_v23 = vpop.f32.mrb[176].mxu1 }
 0x5f7   : > { %v12447_v39 = vpop.f32.mrb[177].mxu1 }
 0x5f8   : > { %v12448_v41 = vadd.f32 %v12447_v39, %v12446_v23  ;;  %v12449_v51 = vpop.f32.mrb[178].mxu1  ;;  %v19343_v39 = vld [vmem:[#allocation14_spill] sm:$0xff] }
 0x5f9   : > { %v12450_v58 = vpop.f32.mrb[179].mxu1 }
 0x5fa   : > { %v12451_v55 = vadd.f32 %v12450_v58, %v12449_v51  ;;  %v18410_v57 = vadd.f32 %v18104_v59, %v12448_v41  ;;  %v19344_v51 = vld [vmem:[#allocation15_spill] sm:$0xff] }
 0x5fc   : > { %v18413_v5 = vadd.f32 %v18107_v31, %v12451_v55 }
 0x5fe   : > { %v12452_v30 = vpop.f32.mrb[180].mxu1 }
 0x5ff   : > { %v12453_v12 = vpop.f32.mrb[181].mxu1 }
 0x600   : > { %v12454_v21 = vadd.f32 %v12453_v12, %v12452_v30  ;;  %v12455_v60 = vpop.f32.mrb[182].mxu1 }
 0x601   : > { %v12456_v9 = vpop.f32.mrb[183].mxu1 }
 0x602   : > { %v12457_v13 = vadd.f32 %v12456_v9, %v12455_v60  ;;  %v18416_v42 = vadd.f32 %v18124_v43, %v12454_v21  ;;  %v19345_v9 = vld [vmem:[#allocation16_spill] sm:$0xff] }
 0x604   : > { %v18419_v1 = vadd.f32 %v18127_v33, %v12457_v13  ;;  %v19340_v33 = vld [vmem:[#allocation11_spill] sm:$0xff] }
 0x606   : > { %v12458_v25 = vpop.f32.mrb[184].mxu1 }
 0x607   : > { %v12459_v0 = vpop.f32.mrb[185].mxu1 }
 0x608   : > { %v12460_v45 = vadd.f32 %v12459_v0, %v12458_v25  ;;  %v12461_v59 = vpop.f32.mrb[186].mxu1  ;;  %v19346_v25 = vld [vmem:[#allocation17_spill] sm:$0xff] }
 0x609   : > { %v12462_v17 = vpop.f32.mrb[187].mxu1 }
 0x60a   : > { %v12463_v40 = vadd.f32 %v12462_v17, %v12461_v59  ;;  %v18422_v31 = vadd.f32 %v18143_v32, %v12460_v45 }
 0x60c   : > { %v18425_v38 = vadd.f32 %v19339_v48, %v12463_v40 }
 0x60e   : > { %v12464_v2 = vpop.f32.mrb[188].mxu1 }
 0x60f   : > { %v12465_v52 = vpop.f32.mrb[189].mxu1 }
 0x610   : > { %v12466_v26 = vadd.f32 %v12465_v52, %v12464_v2  ;;  %v12467_v43 = vpop.f32.mrb[190].mxu1  ;;  %v19347_v52 = vld [vmem:[#allocation18_spill] sm:$0xff] }
 0x611   : > { %v12468_v16 = vpop.f32.mrb[191].mxu1 }
 0x612   : > { %v12469_v56 = vadd.f32 %v12468_v16, %v12467_v43  ;;  %v18428_v63 = vadd.f32 %v19340_v33, %v12466_v26  ;;  %v19348_v43 = vld [vmem:[#allocation19_spill] sm:$0xff] }
 0x614   : > { %v18431_v34 = vadd.f32 %v19341_v8, %v12469_v56 }
 0x616   : > { %v12470_v7 = vpop.f32.mrb[192].mxu1 }
 0x617   : > { %v12471_v37 = vpop.f32.mrb[193].mxu1 }
 0x618   : > { %v12472_v14 = vadd.f32 %v12471_v37, %v12470_v7  ;;  %v12473_v32 = vpop.f32.mrb[194].mxu1  ;;  %v13795_v37 = vld [vmem:[%s18959_s11] sm:$0xff]  }
 0x619   : > { %v12474_v18 = vpop.f32.mrb[195].mxu1  ;;  %13090 = vmatprep.subr.bf16.mxu0 %v13795_v37 }
 0x61a   : > { %v12475_v22 = vadd.f32 %v12474_v18, %v12473_v32  ;;  %v18434_v54 = vadd.f32 %v18204_v53, %v12472_v14  ;;  %v13796_v14 = vld [vmem:[%s18959_s11 + $0x8] sm:$0xff]   ;;  %13091 = vmatpush3.bf16.msra.mxu0 %v13795_v37  ;;  %v13874_v37 = vld [vmem:[%s14092_s26 + $0x20] sm:$0xff] }
 0x61b   : > { %13092 = vmatprep.subr.bf16.mxu0 %v13796_v14 }
 0x61c   : > { %v18437_v4 = vadd.f32 %v19342_v46, %v12475_v22  ;;  %v19349_v22 = vld [vmem:[#allocation22_spill] sm:$0xff] }
 0x61e   : > { %v12476_v3 = vpop.f32.mrb[196].mxu1  ;;  %13093 = vmatpush3.bf16.msra.mxu0 %v13796_v14 }
 0x61f   : > { %v12477_v44 = vpop.f32.mrb[197].mxu1 }
 0x620   : > { %v12478_v61 = vadd.f32 %v12477_v44, %v12476_v3  ;;  %v12479_v15 = vpop.f32.mrb[198].mxu1  ;;  %v19350_v3 = vld [vmem:[#allocation20_spill] sm:$0xff] }
 0x621   : > { %v12480_v19 = vpop.f32.mrb[199].mxu1 }
 0x622   : > { %v12481_v23 = vadd.f32 %v12480_v19, %v12479_v15  ;;  %v18440_v41 = vadd.f32 %v19343_v39, %v12478_v61 }
 0x624   : > { %v18443_v58 = vadd.f32 %v19344_v51, %v12481_v23 }
 0x626   : > { %v12482_v55 = vpop.f32.mrb[200].mxu1 }
 0x627   : > { %v12483_v30 = vpop.f32.mrb[201].mxu1 }
 0x628   : > { %v12484_v12 = vadd.f32 %v12483_v30, %v12482_v55  ;;  %v12485_v53 = vpop.f32.mrb[202].mxu1 }
 0x629   : > { %v12486_v21 = vpop.f32.mrb[203].mxu1 }
 0x62a   : > { %v12487_v60 = vadd.f32 %v12486_v21, %v12485_v53  ;;  %v18446_v13 = vadd.f32 %v19345_v9, %v12484_v12 }
 0x62c   : > { %v18449_v0 = vadd.f32 %v19346_v25, %v12487_v60 }
 0x62e   : > { %v12488_v45 = vpop.f32.mrb[204].mxu1 }
 0x62f   : > { %v12489_v59 = vpop.f32.mrb[205].mxu1 }
 0x630   : > { %v12490_v17 = vadd.f32 %v12489_v59, %v12488_v45  ;;  %v12491_v40 = vpop.f32.mrb[206].mxu1  ;;  %v13797_v59 = vld [vmem:[%s18959_s11 + $0x10] sm:$0xff]  }
 0x631   : > { %v12492_v48 = vpop.f32.mrb[207].mxu1  ;;  %13094 = vmatprep.subr.bf16.mxu0 %v13797_v59 }
 0x632   : > { %v12493_v2 = vadd.f32 %v12492_v48, %v12491_v40  ;;  %v18452_v26 = vadd.f32 %v19347_v52, %v12490_v17  ;;  %v13871_v17 = vld [vmem:[%s14092_s26 + $0x8] sm:$0xff]  ;;  %13095 = vmatpush3.bf16.msra.mxu0 %v13797_v59 }
 0x634   : > { %v18455_v16 = vadd.f32 %v19348_v43, %v12493_v2 }
 0x636   : > { %v12494_v56 = vpop.f32.mrb[208].mxu1 }
 0x637   : > { %v12495_v33 = vpop.f32.mrb[209].mxu1 }
 0x638   : > { %v12496_v8 = vadd.f32 %v12495_v33, %v12494_v56  ;;  %v12497_v7 = vpop.f32.mrb[210].mxu1  ;;  %v13872_v56 = vld [vmem:[%s14092_s26 + $0x10] sm:$0xff]  ;;  %v13873_v33 = vld [vmem:[%s14092_s26 + $0x18] sm:$0xff] }
 0x639   : > { %v12498_v32 = vpop.f32.mrb[211].mxu1 }
 0x63a   : > { %v12499_v18 = vadd.f32 %v12498_v32, %v12497_v7  ;;  %v18464_v46 = vadd.f32 %v19349_v22, %v12496_v8  ;;  %v10742_v8 = vpack.c.bf16 %v13873_v33, %v13872_v56 }
 0x63c   : > { %v18467_v44 = vadd.f32 %v19350_v3, %v12499_v18 }
 0x63e   : > { %v12500_v61 = vpop.f32.mrb[212].mxu1 }
 0x63f   : > { %v12501_v15 = vpop.f32.mrb[213].mxu1 }
 0x640   : > { %v12502_v19 = vadd.f32 %v12501_v15, %v12500_v61  ;;  %v12503_v23 = vpop.f32.mrb[214].mxu1 }
 0x641   : > { %v12504_v39 = vpop.f32.mrb[215].mxu1 }
 0x642   : > { %v12505_v51 = vadd.f32 %v12504_v39, %v12503_v23  ;;  %v18470_v55 = vadd.f32 %v18300_v28, %v12502_v19  ;;  %v13798_v28 = vld [vmem:[%s18959_s11 + $0x18] sm:$0xff]   ;;  %v13876_v23 = vld [vmem:[%s14092_s26 + $0x30] sm:$0xff] }
 0x643   : > { %13096 = vmatprep.subr.bf16.mxu0 %v13798_v28  ;;  %v13877_v39 = vld [vmem:[%s14092_s26 + $0x38] sm:$0xff] }
 0x644   : > { %v18473_v30 = vadd.f32 %v18303_v49, %v12505_v51  ;;  %v13870_v49 = vld [vmem:[%s14092_s26] sm:$0xff]  ;;  %13097 = vmatpush3.bf16.msra.mxu0 %v13798_v28  ;;  %v10744_v51 = vpack.c.bf16 %v13877_v39, %v13876_v23 }
 0x645   : > { %v10741_v40 = vpack.c.bf16 %v13871_v17, %v13870_v49  ;;  %v13880_v17 = vld [vmem:[%s14092_s26 + $0x50] sm:$0xff] }
 0x646   : > { %v12506_v12 = vpop.f32.mrb[216].mxu1 }
 0x647   : > { %v12507_v53 = vpop.f32.mrb[217].mxu1  ;;  %13098 = vmatprep.mubr.msk.bf16.mxu0 %vm1730_vm4, %v10741_v40  ;;  %v13881_v40 = vld [vmem:[%s14092_s26 + $0x58] sm:$0xff] }
 0x648   : > { %v12508_v21 = vadd.f32 %v12507_v53, %v12506_v12  ;;  %v12509_v60 = vpop.f32.mrb[218].mxu1  ;;  %13099 = vmatmul.mubr.msk.bf16.vlgmr.msra.gmra.mrb[32].mxu0 %vm1730_vm4, %v10742_v8  ;;  %v13878_v53 = vld [vmem:[%s14092_s26 + $0x40] sm:$0xff] }
 0x649   : > { %v12510_v9 = vpop.f32.mrb[219].mxu1 }
 0x64a   : > { %v12511_v25 = vadd.f32 %v12510_v9, %v12509_v60  ;;  %v18476_v45 = vadd.f32 %v18312_v10, %v12508_v21 }
 0x64c   : > { %v18487_v48 = vadd.f32 %v18315_v47, %v12511_v25  ;;  %v13875_v47 = vld [vmem:[%s14092_s26 + $0x28] sm:$0xff] }
 0x64d   : > { %v10743_v14 = vpack.c.bf16 %v13875_v47, %v13874_v37 }
 0x64e   : > { %v12512_v10 = vpop.f32.mrb[220].mxu1 }
 0x64f   : > { %v12513_v2 = vpop.f32.mrb[221].mxu1  ;;  %13102 = vmatprep.mubr.msk.bf16.mxu0 %vm1730_vm4, %v10743_v14  ;;  %v13884_v14 = vld [vmem:[%s14092_s26 + $0x70] sm:$0xff] }
 0x650   : > { %v12514_v52 = vadd.f32 %v12513_v2, %v12512_v10  ;;  %v12515_v43 = vpop.f32.mrb[222].mxu1  ;;  %13103 = vmatmul.mubr.msk.bf16.gmra.mrb[36].mxu0 %vm1730_vm4, %v10744_v51  ;;  %v10746_v10 = vpack.c.bf16 %v13881_v40, %v13880_v17 }
 0x651   : > { %v12516_v7 = vpop.f32.mrb[223].mxu1 }
 0x652   : > { %v12517_v32 = vadd.f32 %v12516_v7, %v12515_v43  ;;  %v18495_v18 = vadd.f32 %v18325_v35, %v12514_v52  ;;  %v13879_v35 = vld [vmem:[%s14092_s26 + $0x48] sm:$0xff]  ;;  %v13882_v52 = vld [vmem:[%s14092_s26 + $0x60] sm:$0xff] }
 0x654   : > { %v18498_v22 = vadd.f32 %v18328_v24, %v12517_v32  ;;  %v10745_v24 = vpack.c.bf16 %v13879_v35, %v13878_v53  ;;  %v13885_v32 = vld [vmem:[%s14092_s26 + $0x78] sm:$0xff] }
 0x656   : > { %v12518_v3 = vpop.f32.mrb[224].mxu1  ;;  %13106 = vmatprep.mubr.msk.bf16.mxu0 %vm1730_vm4, %v10745_v24  ;;  %v13888_v24 = vld [vmem:[%s14092_s26 + $0x90] sm:$0xff] }
 0x657   : > { %v12519_v61 = vpop.f32.mrb[225].mxu1 }
 0x658   : > { %v12520_v15 = vadd.f32 %v12519_v61, %v12518_v3  ;;  %v12521_v19 = vpop.f32.mrb[226].mxu1  ;;  %13107 = vmatmul.mubr.msk.bf16.gmra.mrb[40].mxu0 %vm1730_vm4, %v10746_v10  ;;  %v10748_v3 = vpack.c.bf16 %v13885_v32, %v13884_v14 }
 0x659   : > { %v12522_v12 = vpop.f32.mrb[227].mxu1 }
 0x65a   : > { %v12523_v21 = vadd.f32 %v12522_v12, %v12521_v19  ;;  %v18507_v60 = vadd.f32 %v18339_v11, %v12520_v15  ;;  %v13883_v11 = vld [vmem:[%s14092_s26 + $0x68] sm:$0xff]  ;;  %v13886_v15 = vld [vmem:[%s14092_s26 + $0x80] sm:$0xff] }
 0x65c   : > { %v18510_v9 = vadd.f32 %v18343_v36, %v12523_v21  ;;  %v10747_v36 = vpack.c.bf16 %v13883_v11, %v13882_v52  ;;  %v13889_v21 = vld [vmem:[%s14092_s26 + $0x98] sm:$0xff] }
 0x65e   : > { %v12524_v25 = vpop.f32.mrb[228].mxu1  ;;  %13110 = vmatprep.mubr.msk.bf16.mxu0 %vm1730_vm4, %v10747_v36 }
 0x65f   : > { %v12525_v59 = vpop.f32.mrb[229].mxu1 }
 0x660   : > { %v12526_v28 = vadd.f32 %v12525_v59, %v12524_v25  ;;  %v12527_v49 = vpop.f32.mrb[230].mxu1  ;;  %13111 = vmatmul.mubr.msk.bf16.gmra.mrb[44].mxu0 %vm1730_vm4, %v10748_v3  ;;  %v10750_v25 = vpack.c.bf16 %v13889_v21, %v13888_v24  ;;  %v13899_v24 = vld [vmem:[%s14092_s26 + $0xe8] sm:$0xff] }
 0x661   : > { %v12528_v2 = vpop.f32.mrb[231].mxu1 }
 0x662   : > { %v12529_v43 = vadd.f32 %v12528_v2, %v12527_v49  ;;  %v18519_v56 = vadd.f32 %v18350_v20, %v12526_v28  ;;  %v13887_v20 = vld [vmem:[%s14092_s26 + $0x88] sm:$0xff]  ;;  %v13890_v28 = vld [vmem:[%s14092_s26 + $0xa0] sm:$0xff] }
 0x664   : > { %v18522_v33 = vadd.f32 %v18353_v27, %v12529_v43  ;;  %v10749_v27 = vpack.c.bf16 %v13887_v20, %v13886_v15  ;;  %v13892_v43 = vld [vmem:[%s14092_s26 + $0xb0] sm:$0xff] }
 0x666   : > { %v12530_v8 = vpop.f32.mrb[232].mxu1  ;;  %13114 = vmatprep.mubr.msk.bf16.mxu0 %vm1730_vm4, %v10749_v27  ;;  %v13896_v27 = vld [vmem:[%s14092_s26 + $0xd0] sm:$0xff] }
 0x667   : > { %v12531_v7 = vpop.f32.mrb[233].mxu1 }
 0x668   : > { %v12532_v37 = vadd.f32 %v12531_v7, %v12530_v8  ;;  %v12533_v47 = vpop.f32.mrb[234].mxu1  ;;  %13115 = vmatmul.mubr.msk.bf16.gmra.mrb[48].mxu0 %vm1730_vm4, %v10750_v25  ;;  %v13893_v8 = vld [vmem:[%s14092_s26 + $0xb8] sm:$0xff] }
 0x669   : > { %v12534_v61 = vpop.f32.mrb[235].mxu1 }
 0x66a   : > { %v12535_v19 = vadd.f32 %v12534_v61, %v12533_v47  ;;  %v18531_v23 = vadd.f32 %v18359_v50, %v12532_v37  ;;  %v13891_v50 = vld [vmem:[%s14092_s26 + $0xa8] sm:$0xff]  ;;  %v13894_v37 = vld [vmem:[%s14092_s26 + $0xc0] sm:$0xff] }
 0x66b   : > { %v10751_v49 = vpack.c.bf16 %v13891_v50, %v13890_v28  ;;  %v13895_v47 = vld [vmem:[%s14092_s26 + $0xc8] sm:$0xff] }
 0x66c   : > { %v18534_v39 = vadd.f32 %v18365_v62, %v12535_v19  ;;  %v10753_v14 = vpack.c.bf16 %v13895_v47, %v13894_v37  ;;  %v13897_v19 = vld [vmem:[%s14092_s26 + $0xd8] sm:$0xff] }
 0x66d   : > { %13118 = vmatprep.mubr.msk.bf16.mxu0 %vm1730_vm4, %v10751_v49 }
 0x66e   : > { %v12536_v51 = vpop.f32.mrb[236].mxu1 }
 0x66f   : > { %v12537_v12 = vpop.f32.mrb[237].mxu1 }
 0x670   : > { %v12538_v53 = vadd.f32 %v12537_v12, %v12536_v51  ;;  %v12539_v35 = vpop.f32.mrb[238].mxu1  ;;  %v10754_v51 = vpack.c.bf16 %v13897_v19, %v13896_v27 }
 0x671   : > { %v12540_v59 = vpop.f32.mrb[239].mxu1 }
 0x672   : > { %v12541_v62 = vadd.f32 %v12540_v59, %v12539_v35  ;;  %v18543_v17 = vadd.f32 %v18371_v6, %v12538_v53  ;;  %v10752_v6 = vpack.c.bf16 %v13893_v8, %v13892_v43  ;;  %v13898_v35 = vld [vmem:[%s14092_s26 + $0xe0] sm:$0xff] }
 0x674   : > { %v18546_v40 = vadd.f32 %v18377_v29, %v12541_v62  ;;  %13119 = vmatmul.mubr.msk.bf16.gmra.mrb[52].mxu0 %vm1730_vm4, %v10752_v6 }
 0x675   : > { %13122 = vmatprep.mubr.msk.bf16.mxu0 %vm1730_vm4, %v10753_v14 }
 0x676   : > { %v13060_v10 = vpop.f32.mrb[80].mxu1 }
 0x677   : > { %v18551_v2 = vadd.f32 %v18416_v42, %v13060_v10  ;;  %v10515_v52 = vpop.f32.mrb[81].mxu1  ;;  %v13900_v10 = vld [vmem:[%s14092_s26 + $0xf0] sm:$0xff] }
 0x678   : > { %v18554_v11 = vadd.f32 %v18410_v57, %v10515_v52  ;;  %v13061_v36 = vpop.f32.mrb[82].mxu1  ;;  %v13901_v52 = vld [vmem:[%s14092_s26 + $0xf8] sm:$0xff]  ;;  %s18893_s26 = scalar_lea.hbm %s18960_s12, %s11977_s15 }
 0x679   : > { %v18559_v7 = vadd.f32 %v18419_v1, %v13061_v36  ;;  %v10518_v29 = vpop.f32.mrb[83].mxu1  ;;  %v10756_v36 = vpack.c.bf16 %v13901_v52, %v13900_v10 }
 0x67a   : > { %v18564_v42 = vadd.f32 %v18413_v5, %v10518_v29 }
 0x67c   : > { %v10674_v57 = vadd.f32 %v18564_v42, %v18554_v11  ;;  %13123 = vmatmul.mubr.msk.bf16.gmra.mrb[56].mxu0 %vm1730_vm4, %v10754_v51 }
 0x67e   : > { %v10675_v1 = vadd.f32 %v18551_v2, %v10674_v57  ;;  %v13064_v32 = vpop.f32.mrb[84].mxu1 }
 0x67f   : > { %v18572_v3 = vadd.f32 %v18428_v63, %v13064_v32  ;;  %v10531_v61 = vpop.f32.mrb[85].mxu1  ;;  %v10755_v63 = vpack.c.bf16 %v13899_v24, %v13898_v35 }
 0x680   : > { %v18575_v15 = vadd.f32 %v18422_v31, %v10531_v61  ;;  %v10676_v5 = vadd.f32 %v18559_v7, %v10675_v1  ;;  %v13065_v20 = vpop.f32.mrb[86].mxu1 }
 0x681   : > { %v18581_v12 = vadd.f32 %v18431_v34, %v13065_v20  ;;  %v10534_v53 = vpop.f32.mrb[87].mxu1  ;;  %13126 = vmatprep.mubr.msk.bf16.mxu0 %vm1730_vm4, %v10755_v63 }
 0x682   : > { %v10677_v21 = vadd.f32 %v18575_v15, %v10676_v5  ;;  %v18587_v31 = vadd.f32 %v18425_v38, %v10534_v53 }
 0x684   : > { %v10678_v25 = vadd.f32 %v18587_v31, %v10677_v21  ;;  %13127 = vmatmul.mubr.msk.bf16.gmra.mrb[60].mxu0 %vm1730_vm4, %v10756_v36 }
 0x686   : > { %v10679_v34 = vadd.f32 %v18572_v3, %v10678_v25  ;;  %v13068_v59 = vpop.f32.mrb[88].mxu1 }
 0x687   : > { %v18594_v28 = vadd.f32 %v18440_v41, %v13068_v59  ;;  %v10547_v50 = vpop.f32.mrb[89].mxu1 }
 0x688   : > { %v18597_v49 = vadd.f32 %v18434_v54, %v10547_v50  ;;  %v10680_v62 = vadd.f32 %v18581_v12, %v10679_v34  ;;  %v13069_v38 = vpop.f32.mrb[90].mxu1 }
 0x689   : > { %v18603_v43 = vadd.f32 %v18443_v58, %v13069_v38  ;;  %v10550_v8 = vpop.f32.mrb[91].mxu1 }
 0x68a   : > { %v10681_v6 = vadd.f32 %v18597_v49, %v10680_v62  ;;  %v18607_v29 = vadd.f32 %v18437_v4, %v10550_v8 }
 0x68c   : > { %v10682_v41 = vadd.f32 %v18607_v29, %v10681_v6 }
 0x68e   : > { %v10683_v54 = vadd.f32 %v18594_v28, %v10682_v41  ;;  %v13072_v37 = vpop.f32.mrb[92].mxu1 }
 0x68f   : > { %v18613_v47 = vadd.f32 %v18452_v26, %v13072_v37  ;;  %v10563_v14 = vpop.f32.mrb[93].mxu1 }
 0x690   : > { %v18616_v58 = vadd.f32 %v18446_v13, %v10563_v14  ;;  %v10684_v57 = vadd.f32 %v18603_v43, %v10683_v54  ;;  %v13073_v1 = vpop.f32.mrb[94].mxu1 }
 0x691   : > { %v18620_v4 = vadd.f32 %v18455_v16, %v13073_v1  ;;  %v10566_v32 = vpop.f32.mrb[95].mxu1 }
 0x692   : > { %v10685_v61 = vadd.f32 %v18616_v58, %v10684_v57  ;;  %v18624_v5 = vadd.f32 %v18449_v0, %v10566_v32 }
 0x694   : > { %v10686_v20 = vadd.f32 %v18624_v5, %v10685_v61 }
 0x696   : > { %v10687_v26 = vadd.f32 %v18613_v47, %v10686_v20  ;;  %v13076_v27 = vpop.f32.mrb[96].mxu1 }
 0x697   : > { %v18629_v13 = vadd.f32 %v18470_v55, %v13076_v27  ;;  %v10579_v19 = vpop.f32.mrb[97].mxu1 }
 0x698   : > { %v18632_v51 = vadd.f32 %v18464_v46, %v10579_v19  ;;  %v10688_v16 = vadd.f32 %v18620_v4, %v10687_v26  ;;  %v13077_v53 = vpop.f32.mrb[98].mxu1 }
 0x699   : > { %v18636_v35 = vadd.f32 %v18473_v30, %v13077_v53  ;;  %v10582_v0 = vpop.f32.mrb[99].mxu1 }
 0x69a   : > { %v10689_v24 = vadd.f32 %v18632_v51, %v10688_v16  ;;  %v18640_v63 = vadd.f32 %v18467_v44, %v10582_v0 }
 0x69c   : > { %v10690_v21 = vadd.f32 %v18640_v63, %v10689_v24 }
 0x69e   : > { %v10691_v55 = vadd.f32 %v18629_v13, %v10690_v21  ;;  %v13080_v25 = vpop.f32.mrb[100].mxu1 }
 0x69f   : > { %v18645_v46 = vadd.f32 %v18495_v18, %v13080_v25  ;;  %v10595_v34 = vpop.f32.mrb[101].mxu1 }
 0x6a0   : > { %v18648_v59 = vadd.f32 %v18476_v45, %v10595_v34  ;;  %v10692_v30 = vadd.f32 %v18636_v35, %v10691_v55  ;;  %v13081_v50 = vpop.f32.mrb[102].mxu1 }
 0x6a1   : > { %v18652_v62 = vadd.f32 %v18498_v22, %v13081_v50  ;;  %v10598_v44 = vpop.f32.mrb[103].mxu1 }
 0x6a2   : > { %v10693_v38 = vadd.f32 %v18648_v59, %v10692_v30  ;;  %v18656_v10 = vadd.f32 %v18487_v48, %v10598_v44 }
 0x6a4   : > { %v10694_v52 = vadd.f32 %v18656_v10, %v10693_v38 }
 0x6a6   : > { %v10695_v18 = vadd.f32 %v18645_v46, %v10694_v52  ;;  %v13084_v36 = vpop.f32.mrb[104].mxu1 }
 0x6a7   : > { %v18661_v45 = vadd.f32 %v18519_v56, %v13084_v36  ;;  %v10611_v8 = vpop.f32.mrb[105].mxu1 }
 0x6a8   : > { %v18664_v6 = vadd.f32 %v18507_v60, %v10611_v8  ;;  %v10696_v22 = vadd.f32 %v18652_v62, %v10695_v18  ;;  %v13085_v41 = vpop.f32.mrb[106].mxu1 }
 0x6a9   : > { %v18668_v54 = vadd.f32 %v18522_v33, %v13085_v41  ;;  %v10614_v48 = vpop.f32.mrb[107].mxu1 }
 0x6aa   : > { %v10697_v37 = vadd.f32 %v18664_v6, %v10696_v22  ;;  %v18672_v14 = vadd.f32 %v18510_v9, %v10614_v48  ;;  %v10717_v48 = vld [vmem:[%s18956_s8] sm:$0xff] }
 0x6ab   : > { %19351 = vst [vmem:[#allocation23_spill] sm:$0xff] %v18668_v54 }
 0x6ac   : > { %19352 = vst [vmem:[#allocation25_spill] sm:$0xff] %v18672_v14  ;;  %v10698_v57 = vadd.f32 %v18672_v14, %v10697_v37 }
 0x6ae   : > { %v10699_v56 = vadd.f32 %v18661_v45, %v10698_v57  ;;  %v13088_v1 = vpop.f32.mrb[108].mxu1 }
 0x6af   : > { %v18677_v60 = vadd.f32 %v18543_v17, %v13088_v1  ;;  %v10627_v32 = vpop.f32.mrb[109].mxu1 }
 0x6b0   : > { %v18680_v61 = vadd.f32 %v18531_v23, %v10627_v32  ;;  %v10700_v33 = vadd.f32 %v18668_v54, %v10699_v56  ;;  %v13089_v20 = vpop.f32.mrb[110].mxu1 }
 0x6b1   : > { %19353 = vst [vmem:[#allocation27_spill] sm:$0xff] %v18677_v60  ;;  %v18684_v26 = vadd.f32 %v18546_v40, %v13089_v20  ;;  %v10630_v9 = vpop.f32.mrb[111].mxu1  ;;  %v10713_v40 = vld [vmem:[%s18955_s7] sm:$0xff] }
 0x6b2   : > { %19354 = vst [vmem:[#allocation29_spill] sm:$0xff] %v18680_v61  ;;  %v10701_v27 = vadd.f32 %v18680_v61, %v10700_v33  ;;  %v18688_v19 = vadd.f32 %v18534_v39, %v10630_v9  ;;  %v13967_v39 = vmov 0  }
 0x6b3   : > { %19355 = vst [vmem:[#allocation30_spill] sm:$0xff] %v18684_v26  ;;  %13597 = vset.pattern.permute.xlu0 %v13967_v39 }
 0x6b4   : > { %19356 = vst [vmem:[#allocation21_spill] sm:$0xff] %v18688_v19  ;;  %v10702_v16 = vadd.f32 %v18688_v19, %v10701_v27  ;;  %v10720_v19 = vld [vmem:[%s18957_s9] sm:$0xff] }
 0x6b6   : > { %v10703_v17 = vadd.f32 %v18677_v60, %v10702_v16 }
 0x6b8   : > { %v10704_v53 = vadd.f32 %v18684_v26, %v10703_v17 }
 0x6ba   : > { %v10705_v23 = vrot.slane %v10704_v53, 4 }
 0x6bc   : > { %v10706_v0 = vadd.f32 %v10705_v23, %v10704_v53 }
 0x6be   : > { %v10707_v24 = vrot.slane %v10706_v0, 2 }
 0x6c0   : > { %v10708_v21 = vadd.f32 %v10707_v24, %v10706_v0 }
 0x6c2   : > { %v10709_v55 = vrot.slane %v10708_v21, 1 }
 0x6c4   : > { %v10710_v25 = vadd.f32 %v10709_v55, %v10708_v21 }
 0x6c6   : > { %v10712_v34 = vmul.f32 0.00390625, %v10710_v25 }
 0x6c8   : > { %v10714_v30 = vmul.f32 %v10713_v40, %v10712_v34 }
 0x6ca   : > { %10715 = vadd.xlane.f32.xlu0 %v10714_v30 }
 0x71b   : > { %v18696_v50 = vpop.f32.mrb[32].mxu0 }
 0x71c   : > { %v18698_v44 = vpop.f32.mrb[33].mxu0 }
 0x71d   : > { %v18700_v38 = vpop.f32.mrb[34].mxu0 }
 0x71e   : > { %v18702_v52 = vpop.f32.mrb[35].mxu0 }
 0x723   : > { %v18704_v18 = vpop.f32.mrb[36].mxu0 }
 0x724   : > { %v18706_v36 = vpop.f32.mrb[37].mxu0 }
 0x725   : > { %v18708_v8 = vpop.f32.mrb[38].mxu0 }
 0x726   : > { %v18710_v22 = vpop.f32.mrb[39].mxu0 }
 0x72b   : > { %v18712_v41 = vpop.f32.mrb[40].mxu0 }
 0x72c   : > { %v10903_v1 = vpop.f32.mrb[41].mxu0 }
 0x72d   : > { %v18717_v32 = vpop.f32.mrb[42].mxu0 }
 0x72e   : > { %v18719_v33 = vpop.f32.mrb[43].mxu0 }
 0x733   : > { %v18721_v20 = vpop.f32.mrb[44].mxu0 }
 0x734   : > { %v18723_v9 = vpop.f32.mrb[45].mxu0 }
 0x735   : > { %v18725_v27 = vpop.f32.mrb[46].mxu0 }
 0x736   : > { %v18727_v16 = vpop.f32.mrb[47].mxu0 }
 0x73b   : > { %v18729_v17 = vpop.f32.mrb[48].mxu0 }
 0x73c   : > { %v18731_v53 = vpop.f32.mrb[49].mxu0 }
 0x73d   : > { %v18733_v23 = vpop.f32.mrb[50].mxu0 }
 0x73e   : > { %v18735_v0 = vpop.f32.mrb[51].mxu0 }
 0x747   : > { %v18737_v24 = vpop.f32.mrb[52].mxu0 }
 0x748   : > { %v18739_v21 = vpop.f32.mrb[53].mxu0 }
 0x749   : > { %19357 = vst [vmem:[#allocation24_spill] sm:$0xff] %v18739_v21  ;;  %v18741_v55 = vpop.f32.mrb[54].mxu0 }
 0x74a   : > { %19358 = vst [vmem:[#allocation26_spill] sm:$0xff] %v18741_v55  ;;  %v18743_v25 = vpop.f32.mrb[55].mxu0 }
 0x74b   : > { %19359 = vst [vmem:[#allocation28_spill] sm:$0xff] %v18743_v25  ;;  %v10998_v25 = vlaneseq }
 0x74d   : > { %v10999_v55 = vshrl.u32 %v10998_v25, 7 }
 0x74f   : > { %v18745_v40 = vpop.f32.mrb[56].mxu0  ;;  %v11000_v21 = vsub.s32 0, %v10999_v55 }
 0x750   : > { %19360 = vst [vmem:[#allocation31_spill] sm:$0xff] %v18745_v40  ;;  %v18747_v34 = vpop.f32.mrb[57].mxu0 }
 0x751   : > { %19361 = vst [vmem:[#allocation32_spill] sm:$0xff] %v18747_v34  ;;  %v18749_v30 = vpop.f32.mrb[58].mxu0 }
 0x752   : > { %19362 = vst [vmem:[#allocation52_spill] sm:$0xff] %v18749_v30  ;;  %v18751_v39 = vpop.f32.mrb[59].mxu0 }
 0x753   : > { %19363 = vst [vmem:[#allocation50_spill] sm:$0xff] %v18751_v39 }
 0x757   : > { %v10716_v37 = vpop.xlane.xlu0 %10715 }
 0x758   : > { %v10718_v57 = vadd.f32 %v10717_v48, %v10716_v37  ;;  %v18753_v48 = vpop.f32.mrb[60].mxu0 }
 0x759   : > { %19364 = vst [vmem:[#allocation8_spill] sm:$0xff] %v18753_v48  ;;  %v18755_v37 = vpop.f32.mrb[61].mxu0  ;;  %v10733_v48 = vld [vmem:[%s18958_s10] sm:$0x1] }
 0x75a   : > { %v10719_v56 = vmax.f32 %v10718_v57, 0.0  ;;  %19365 = vst [vmem:[#allocation9_spill] sm:$0xff] %v18755_v37  ;;  %v18757_v57 = vpop.f32.mrb[62].mxu0 }
 0x75b   : > { %19366 = vst [vmem:[#allocation7_spill] sm:$0xff] %v18757_v57 }
 0x75c   : > { %10723 = vperm.xlu0 %13597, %v10719_v56   ;;  %v18759_v56 = vpop.f32.mrb[63].mxu0 }
 0x75d   : > { %19367 = vst [vmem:[#allocation33_spill] sm:$0xff] %v18759_v56 }
 0x7db   : > { %v10724_v26 = vpop.permute.xlu0 %10723 }
 0x7dc   : > { %v10726_v61 = vmul.f32 %v10724_v26, %v10720_v19 }
 0x7de   : > { %v10727_v60 = vrot.slane %v10726_v61, 4 }
 0x7e0   : > { %v10728_v14 = vadd.f32 %v10727_v60, %v10726_v61 }
 0x7e2   : > { %v10729_v54 = vrot.slane %v10728_v14, 2 }
 0x7e4   : > { %v10730_v30 = vadd.f32 %v10729_v54, %v10728_v14 }
 0x7e6   : > { %v10731_v34 = vrot.slane %v10730_v30, 1 }
 0x7e8   : > { %v10732_v37 = vadd.f32 %v10731_v34, %v10730_v30 }
 0x7ea   : > { %v10734_v39 = vadd.f32 %v10733_v48, %v10732_v37  ;;  %v19371_v48 = vld [vmem:[#allocation31_spill] sm:$0xff]  ;;  %v19372_v37 = vld [vmem:[#allocation32_spill] sm:$0xff] }
 0x7ec   : > { %v11886_v57 = vmul.f32 -1.442695, %v10734_v39 }
 0x7ee   : > { %13799 = vpow2.f32 %v11886_v57 }
 0x7f8   : > { %v13800_v56 = vpop.eup %13799 }
 0x7f9   : > { %v10738_v40 = vadd.f32 1.0, %v13800_v56  ;;  %v19375_v56 = vld [vmem:[#allocation27_spill] sm:$0xff] }
 0x7fb   : > { %13801 = vrcp.f32 %v10738_v40 }
 0x805   : > { %v13802_v26 = vpop.eup %13801 }
 0x806   : > { %v18767_v19 = vrot.slane %v13802_v26, %v11000_v21 }
 0x808   : > { %v11002_v54 = vmul.f32 %v18554_v11, %v18767_v19  ;;  %v11003_v14 = vmul.f32 %v18564_v42, %v18767_v19  ;;  %v11004_v60 = vmul.f32 %v18551_v2, %v18767_v19  ;;  %v11005_v61 = vmul.f32 %v18559_v7, %v18767_v19 }
 0x809   : > { %v11006_v40 = vmul.f32 %v18575_v15, %v18767_v19  ;;  %v11007_v21 = vmul.f32 %v18587_v31, %v18767_v19  ;;  %v11008_v11 = vmul.f32 %v18572_v3, %v18767_v19  ;;  %v11009_v42 = vmul.f32 %v18581_v12, %v18767_v19 }
 0x80a   : > { %v11012_v2 = vmul.f32 %v18594_v28, %v18767_v19  ;;  %v11010_v7 = vmul.f32 %v18597_v49, %v18767_v19  ;;  %v11034_v15 = vadd.f32 %v11002_v54, %v18698_v44  ;;  %v11035_v31 = vadd.f32 %v11003_v14, %v18702_v52  ;;  %v19376_v54 = vld [vmem:[#allocation29_spill] sm:$0xff] }
 0x80b   : > { %v11036_v55 = vadd.f32 %v18696_v50, %v11004_v60  ;;  %v11037_v3 = vadd.f32 %v18700_v38, %v11005_v61  ;;  %v11038_v12 = vadd.f32 %v11006_v40, %v18706_v36  ;;  %v11039_v25 = vadd.f32 %v11007_v21, %v18710_v22  ;;  %v19377_v60 = vld [vmem:[#allocation30_spill] sm:$0xff]  ;;  %v19378_v40 = vld [vmem:[#allocation21_spill] sm:$0xff] }
 0x80c   : > { %v11042_v28 = vadd.f32 %v11010_v7, %v10903_v1  ;;  %v11040_v49 = vadd.f32 %v18704_v18, %v11008_v11  ;;  %v11041_v44 = vadd.f32 %v18708_v8, %v11009_v42  ;;  %v11044_v34 = vadd.f32 %v18712_v41, %v11012_v2  ;;  %11066 = vst [vmem:[%s14094_s28] sm:$0xff] %v11034_v15  ;;  %v19379_v11 = vld [vmem:[#allocation52_spill] sm:$0xff]  ;;  %v19380_v2 = vld [vmem:[#allocation50_spill] sm:$0xff] }
 0x80d   : > { %11067 = vst [vmem:[%s14094_s28 + $0x8] sm:$0xff] %v11035_v31  ;;  %v11013_v50 = vmul.f32 %v18603_v43, %v18767_v19  ;;  %11068 = vst [vmem:[%s14094_s28 + $0x10] sm:$0xff] %v11036_v55  ;;  %v11011_v38 = vmul.f32 %v18607_v29, %v18767_v19  ;;  %v11016_v52 = vmul.f32 %v18613_v47, %v18767_v19  ;;  %v19381_v15 = vld [vmem:[#allocation8_spill] sm:$0xff]  ;;  %v19382_v55 = vld [vmem:[#allocation9_spill] sm:$0xff] }
 0x80e   : > { %11069 = vst [vmem:[%s14094_s28 + $0x18] sm:$0xff] %v11037_v3  ;;  %11070 = vst [vmem:[%s14094_s28 + $0x20] sm:$0xff] %v11038_v12  ;;  %v11014_v18 = vmul.f32 %v18616_v58, %v18767_v19  ;;  %v11017_v43 = vmul.f32 %v18620_v4, %v18767_v19  ;;  %v11015_v29 = vmul.f32 %v18624_v5, %v18767_v19  ;;  %v19383_v12 = vld [vmem:[#allocation7_spill] sm:$0xff] }
 0x80f   : > { %11071 = vst [vmem:[%s14094_s28 + $0x28] sm:$0xff] %v11039_v25  ;;  %11074 = vst [vmem:[%s14094_s28 + $0x40] sm:$0xff] %v11042_v28  ;;  %v11020_v47 = vmul.f32 %v18629_v13, %v18767_v19  ;;  %v11018_v58 = vmul.f32 %v18632_v51, %v18767_v19  ;;  %v11045_v36 = vadd.f32 %v18717_v32, %v11013_v50  ;;  %v19384_v25 = vld [vmem:[#allocation33_spill] sm:$0xff] }
 0x810   : > { %11072 = vst [vmem:[%s14094_s28 + $0x30] sm:$0xff] %v11040_v49  ;;  %11073 = vst [vmem:[%s14094_s28 + $0x38] sm:$0xff] %v11041_v44  ;;  %v11043_v8 = vadd.f32 %v11011_v38, %v18719_v33  ;;  %v11048_v22 = vadd.f32 %v18721_v20, %v11016_v52  ;;  %v11046_v4 = vadd.f32 %v11014_v18, %v18723_v9 }
 0x811   : > { %11076 = vst [vmem:[%s14094_s28 + $0x50] sm:$0xff] %v11044_v34  ;;  %v11049_v5 = vadd.f32 %v18725_v27, %v11017_v43  ;;  %v11047_v41 = vadd.f32 %v11015_v29, %v18727_v16  ;;  %v11052_v13 = vadd.f32 %v18729_v17, %v11020_v47  ;;  %v11050_v51 = vadd.f32 %v11018_v58, %v18731_v53  ;;  %v19368_v17 = vld [vmem:[#allocation24_spill] sm:$0xff]  ;;  %v19369_v53 = vld [vmem:[#allocation26_spill] sm:$0xff] }
 0x812   : > { %11077 = vst [vmem:[%s14094_s28 + $0x58] sm:$0xff] %v11045_v36  ;;  %11075 = vst [vmem:[%s14094_s28 + $0x48] sm:$0xff] %v11043_v8  ;;  %v11021_v1 = vmul.f32 %v18636_v35, %v18767_v19  ;;  %v11019_v32 = vmul.f32 %v18640_v63, %v18767_v19  ;;  %v11024_v33 = vmul.f32 %v18645_v46, %v18767_v19 }
 0x813   : > { %11080 = vst [vmem:[%s14094_s28 + $0x70] sm:$0xff] %v11048_v22  ;;  %11078 = vst [vmem:[%s14094_s28 + $0x60] sm:$0xff] %v11046_v4  ;;  %v11022_v20 = vmul.f32 %v18648_v59, %v18767_v19  ;;  %v11025_v35 = vmul.f32 %v18652_v62, %v18767_v19  ;;  %v11023_v63 = vmul.f32 %v18656_v10, %v18767_v19  ;;  %v19370_v10 = vld [vmem:[#allocation28_spill] sm:$0xff] }
 0x814   : > { %11081 = vst [vmem:[%s14094_s28 + $0x78] sm:$0xff] %v11049_v5  ;;  %11079 = vst [vmem:[%s14094_s28 + $0x68] sm:$0xff] %v11047_v41  ;;  %v11028_v46 = vmul.f32 %v18661_v45, %v18767_v19  ;;  %v11026_v59 = vmul.f32 %v18664_v6, %v18767_v19  ;;  %v11053_v9 = vadd.f32 %v18733_v23, %v11021_v1  ;;  %v19373_v23 = vld [vmem:[#allocation23_spill] sm:$0xff] }
 0x815   : > { %11084 = vst [vmem:[%s14094_s28 + $0x90] sm:$0xff] %v11052_v13  ;;  %11082 = vst [vmem:[%s14094_s28 + $0x80] sm:$0xff] %v11050_v51  ;;  %v11051_v27 = vadd.f32 %v11019_v32, %v18735_v0  ;;  %v11056_v16 = vadd.f32 %v18737_v24, %v11024_v33  ;;  %v11054_v62 = vadd.f32 %v11022_v20, %v19368_v17  ;;  %v19374_v24 = vld [vmem:[#allocation25_spill] sm:$0xff] }
 0x816   : > { %v11057_v30 = vadd.f32 %v19369_v53, %v11025_v35  ;;  %v11055_v39 = vadd.f32 %v11023_v63, %v19370_v10  ;;  %v11060_v45 = vadd.f32 %v19371_v48, %v11028_v46  ;;  %v11058_v6 = vadd.f32 %v11026_v59, %v19372_v37  ;;  %11085 = vst [vmem:[%s14094_s28 + $0x98] sm:$0xff] %v11053_v9 }
 0x817   : > { %11083 = vst [vmem:[%s14094_s28 + $0x88] sm:$0xff] %v11051_v27  ;;  %11088 = vst [vmem:[%s14094_s28 + $0xb0] sm:$0xff] %v11056_v16  ;;  %v11029_v0 = vmul.f32 %v19373_v23, %v18767_v19  ;;  %v11027_v57 = vmul.f32 %v19374_v24, %v18767_v19  ;;  %v11032_v26 = vmul.f32 %v19375_v56, %v18767_v19 }
 0x818   : > { %11086 = vst [vmem:[%s14094_s28 + $0xa0] sm:$0xff] %v11054_v62  ;;  %v11030_v14 = vmul.f32 %v19376_v54, %v18767_v19  ;;  %11089 = vst [vmem:[%s14094_s28 + $0xb8] sm:$0xff] %v11057_v30  ;;  %v11033_v61 = vmul.f32 %v19377_v60, %v18767_v19  ;;  %v11031_v21 = vmul.f32 %v19378_v40, %v18767_v19 }
 0x819   : > { %11087 = vst [vmem:[%s14094_s28 + $0xa8] sm:$0xff] %v11055_v39  ;;  %11092 = vst [vmem:[%s14094_s28 + $0xd0] sm:$0xff] %v11060_v45  ;;  %v11061_v42 = vadd.f32 %v19379_v11, %v11029_v0  ;;  %v11059_v7 = vadd.f32 %v11027_v57, %v19380_v2  ;;  %v11064_v31 = vadd.f32 %v19381_v15, %v11032_v26 }
 0x81a   : > { %11090 = vst [vmem:[%s14094_s28 + $0xc0] sm:$0xff] %v11058_v6  ;;  %v11062_v3 = vadd.f32 %v11030_v14, %v19382_v55  ;;  %v11065_v19 = vadd.f32 %v19383_v12, %v11033_v61  ;;  %v11063_v28 = vadd.f32 %v11031_v21, %v19384_v25 }
 0x81b   : > { %11093 = vst [vmem:[%s14094_s28 + $0xd8] sm:$0xff] %v11061_v42  ;;  %11091 = vst [vmem:[%s14094_s28 + $0xc8] sm:$0xff] %v11059_v7 }
 0x81c   : > { %11096 = vst [vmem:[%s14094_s28 + $0xf0] sm:$0xff] %v11064_v31  ;;  %11094 = vst [vmem:[%s14094_s28 + $0xe0] sm:$0xff] %v11062_v3 }
 0x81d   : > { %11097 = vst [vmem:[%s14094_s28 + $0xf8] sm:$0xff] %v11065_v19  ;;  %11095 = vst [vmem:[%s14094_s28 + $0xe8] sm:$0xff] %v11063_v28 }
 0x81e   : > { %13915 = shalt.err (!%p13912_p4)
}
 0x81f   : > { %s13916_s28 = scalar_lea.hbm %s18893_s26, 4096  ;;  %s13920_s25 = scalar_lea.hbm %s18960_s12, 8192 }
 0x820   : > { %p13917_p7 = scmp.ne.s32.totalorder %s18893_s26, %s13916_s28  ;;  %p13921_p10 = scmp.lt.u32.totalorder %s18893_s26, %s18960_s12 }
 0x821   : > { %p13922_p11 = scmp.lt.u32.totalorder %s13920_s25, %s13916_s28  ;;  %p13924_p13 = scmp.lt.u32.totalorder %s13916_s28, %s18893_s26 }
 0x822   : > { %p13918_p8 = pnand %p13917_p7, %p14074_p5 }
 0x823   : > { %p13923_p12 = por %p13922_p11, %p13921_p10 }
 0x824   : > { %p13919_p9 = pneg %p13918_p8 }
 0x825   : > { %p13925_p0 = por %p13924_p13, %p13923_p12 }
 0x827   : > { %p13926_p1 = pnand %p13925_p0, %p13919_p9 }
 0x829   : > { %13929 = shalt.err (!%p13926_p1)
}
 0x82a   : > { %s13969_s19 = smov 128   ;;  %s13970_s20 = smov 8  }
 0x82b   : > { %13554 = dma.vmem_to_hbm [thread:$0]  (%p14074_p5), %s18895_s1, 4096, %s18893_s26, %s18907_s18, %s13969_s19, %s13969_s19, %s13970_s20  }
 0x82c PF: > { %p13560_p2 = scmp.ge.s32.totalorder %s13964_s24, 2  ;;  %s11127_s29 = sand.u32 1, %s13952_s21  }
 0x82d   : > { %s11128_s16 = scalar_lea.sflag [#allocation5], %s11127_s29 }
 0x82e   : > { %p13557_p3 = pnand %p13560_p2, %p14078_p6 }
 0x830   : > { %13947 = dma.done.wait (!%p13557_p3), %s11128_s16, 4096  }
 0x831   : > { %13949 = vsyncadd (!%p13557_p3), %s11128_s16, 4294963200  ;;  %p22_p4 = scmp.ge.s32.totalorder %s14061_s27, 4   ;;  %s19386_s21 = smov %s13956_s22 }
 0x832   : > { %s19387_s22 = smov %s13960_s23  ;;  %s19388_s23 = smov %s14072_s30 }
 0x833   : > { %s19389_s24 = smov %s14061_s27  ;;  %24 = sbr.rel (!%p22_p4) target bundleno = 7 (0x7), region = 111 }
 0x83a   :  { %11133 = vsyncpa [#allocation5], 1 }
 0x83b   :  { %11135 = vsyncpa [#allocation5 + $0x1], 1 }

</bundles_post_ra>
